<compile_context>
chip_gen: v6e
topology: v6e:2x2x1
jax: 0.10.0
libtpu: 0.0.40
codegen_flags: <defaults>
</compile_context>

<pallas_src>
import functools
import math

import jax
import jax.numpy as jnp
from jax.experimental import pallas as pl
from jax.experimental.pallas import tpu as pltpu


# -----------------------------------------------------------------------------
# Helpers
# -----------------------------------------------------------------------------
_BLOCK_FIELDS = ("wqkv", "bqkv", "wproj", "bproj", "ln1_w", "ln1_b",
                 "ln2_w", "ln2_b", "wfc1", "bfc1", "wfc2", "bfc2")

_CPARAMS = pltpu.CompilerParams(
    dimension_semantics=("arbitrary",),          # depth axis carries state -> sequential
    vmem_limit_bytes=32 * 1024 * 1024,           # explicit scoped-VMEM budget (v5e default=16MiB)
)


def _round_up(n, m):
    return ((n + m - 1) // m) * m


def _pad_rows(x, m_pad):
    m = x.shape[0]
    if m == m_pad:
        return x
    pad = jnp.zeros((m_pad - m,) + x.shape[1:], x.dtype)
    return jnp.concatenate([x, pad], axis=0)


def _const_spec(shape):
    zeros = (0,) * len(shape)
    return pl.BlockSpec(tuple(int(s) for s in shape), lambda d: zeros)


def _layer_spec(shape):
    # (depth, r, c) stacked weight -> per-layer (r, c) block, indexed by grid step d.
    return pl.BlockSpec((None, int(shape[1]), int(shape[2])), lambda d: (d, 0, 0))


def _layer_norm(v, w, b):
    mu = jnp.mean(v, axis=-1, keepdims=True)
    var = jnp.mean((v - mu) ** 2, axis=-1, keepdims=True)
    return (v - mu) * jax.lax.rsqrt(var + 1e-5) * w + b


def _attn_mask(bid_col, bid_row, causal):
    """Additive mask built in-kernel from O(M) batch-id vectors (no O(M^2) DMA)."""
    same = bid_col == bid_row                                   # (M,1)==(1,M) -> (M,M)
    if causal:
        m = bid_col.shape[0]
        ri = jax.lax.broadcasted_iota(jnp.int32, (m, m), 0)
        ci = jax.lax.broadcasted_iota(jnp.int32, (m, m), 1)
        same = jnp.logical_and(same, ci <= ri)
    return jnp.where(same, 0.0, -1e30).astype(jnp.float32)


def _run_block(x, mask, blk, ctx_ref, num_heads):
    """One timm-style ViT Block on x (M, D).

    Fused lane-dense QKV matmul; per-head score/context only; heads written into a
    VMEM context scratch; one dense (M,D)@(D,D) output projection; dense MLP.
    """
    (wqkv, bqkv, wproj, bproj, ln1w, ln1b, ln2w, ln2b,
     wfc1, bfc1, wfc2, bfc2) = blk
    M, D = x.shape
    H = num_heads
    hd = D // H
    scale = float(hd) ** -0.5

    h1 = _layer_norm(x, ln1w[...], ln1b[...])
    qkv = jnp.dot(h1, wqkv[...], preferred_element_type=jnp.float32) + bqkv[...]   # (M, 3D)

    for hidx in range(H):
        q = qkv[:, hidx * hd:(hidx + 1) * hd]
        k = qkv[:, D + hidx * hd:D + (hidx + 1) * hd]
        v = qkv[:, 2 * D + hidx * hd:2 * D + (hidx + 1) * hd]
        s = jax.lax.dot_general(q, k, (((1,), (1,)), ((), ())),
                                preferred_element_type=jnp.float32) * scale        # (M, M)
        s = s + mask
        s = s - jnp.max(s, axis=-1, keepdims=True)
        p = jnp.exp(s)
        p = p / jnp.sum(p, axis=-1, keepdims=True)          # exact recip: feeds the losses
        ctx_ref[:, hidx * hd:(hidx + 1) * hd] = jnp.dot(
            p, v, preferred_element_type=jnp.float32)

    x = x + jnp.dot(ctx_ref[...], wproj[...],
                    preferred_element_type=jnp.float32) + bproj[...]

    h2 = _layer_norm(x, ln2w[...], ln2b[...])
    m = jnp.dot(h2, wfc1[...], preferred_element_type=jnp.float32) + bfc1[...]
    m = jax.nn.gelu(m, approximate=True)       # TODO(synk): nn.GELU default is erf
    m = jnp.dot(m, wfc2[...], preferred_element_type=jnp.float32) + bfc2[...]
    return x + m


# -----------------------------------------------------------------------------
# Kernel 1: encoder (embed + mask token + `depth` blocks + final LN)
# -----------------------------------------------------------------------------
def _encoder_kernel(*refs, num_heads):
    (poly_ref, h_ref, pos_ref, slot0_ref, bidc_ref, bidr_ref,
     pw1, pb1, pw2, pb2, hw, hb, mtok) = refs[:13]
    blk = refs[13:25]
    nw, nb = refs[25:27]
    o_ref = refs[27]
    x_scr = refs[28]
    ctx_scr = refs[29]

    d = pl.program_id(0)

    @pl.when(d == 0)
    def _init():
        # PolyEmbed (approx 2-layer MLP) + h_embedding(Linear(1,D)) -> ReLU, + pos embed
        t = jnp.dot(poly_ref[...], pw1[...],
                    preferred_element_type=jnp.float32) + pb1[...]
        t = jnp.maximum(t, 0.0)
        t = jnp.dot(t, pw2[...], preferred_element_type=jnp.float32) + pb2[...]
        he = h_ref[...] * hw[...] + hb[...]
        emb = jnp.maximum(t + he, 0.0) + pos_ref[...]
        s0 = slot0_ref[...]                       # slot-0 rows carry the learned mask token
        x_scr[...] = s0 * mtok[...] + (1.0 - s0) * emb

    mask = _attn_mask(bidc_ref[...], bidr_ref[...], causal=False)
    x = _run_block(x_scr[...], mask, blk, ctx_scr, num_heads)
    x_scr[...] = x

    @pl.when(d == pl.num_programs(0) - 1)
    def _fin():
        o_ref[...] = _layer_norm(x, nw[...], nb[...])


def encoder_forward(kp, poly_pad, h_pad, pos_pad, slot0, bid_col, bid_row, cfg):
    Mp = poly_pad.shape[0]
    De = cfg["embed_dim"]
    const_args = (poly_pad, h_pad, pos_pad, slot0, bid_col, bid_row,
                  kp["poly_w1"], kp["poly_b1"], kp["poly_w2"], kp["poly_b2"],
                  kp["h_w"], kp["h_b"], kp["mask_token2d"])
    stack = kp["enc_stack"]
    tail = (kp["enc_norm_w"], kp["enc_norm_b"])
    in_specs = ([_const_spec(a.shape) for a in const_args]
                + [_layer_spec(s.shape) for s in stack]
                + [_const_spec(a.shape) for a in tail])
    return pl.pallas_call(
        functools.partial(_encoder_kernel, num_heads=cfg["num_heads"]),
        out_shape=jax.ShapeDtypeStruct((Mp, De), jnp.float32),
        grid=(cfg["depth"],),
        in_specs=in_specs,
        out_specs=_const_spec((Mp, De)),
        scratch_shapes=[pltpu.VMEM((Mp, De), jnp.float32),   # activation carry
                        pltpu.VMEM((Mp, De), jnp.float32)],  # head-concat context
        compiler_params=_CPARAMS,
    )(*const_args, *stack, *tail)


# -----------------------------------------------------------------------------
# Kernel 2: decoder (embed + blocks + LN + pred / h_pred)
# -----------------------------------------------------------------------------
def _decoder_kernel(*refs, num_heads):
    (lat_ref, pos_ref, bidc_ref, bidr_ref, dew, deb) = refs[:6]
    blk = refs[6:18]
    nw, nb, pw, pb, hpw, hpb = refs[18:24]
    pred_ref = refs[24]
    hpred_ref = refs[25]
    x_scr = refs[26]
    ctx_scr = refs[27]

    d = pl.program_id(0)

    @pl.when(d == 0)
    def _init():
        x0 = jnp.dot(lat_ref[...], dew[...],
                     preferred_element_type=jnp.float32) + deb[...]
        x_scr[...] = jnp.maximum(x0, 0.0) + pos_ref[...]

    mask = _attn_mask(bidc_ref[...], bidr_ref[...], causal=False)
    x = _run_block(x_scr[...], mask, blk, ctx_scr, num_heads)
    x_scr[...] = x

    @pl.when(d == pl.num_programs(0) - 1)
    def _fin():
        xn = _layer_norm(x, nw[...], nb[...])
        pred_ref[...] = jnp.dot(xn, pw[...],
                                preferred_element_type=jnp.float32) + pb[...]
        # h_pred = Linear(Dd, 1): row-reduce on the VPU instead of an N=1 matmul.
        hpred_ref[...] = jnp.sum(xn * hpw[...], axis=-1, keepdims=True) + hpb[...]


def decoder_forward(kp, lat_arr, pe_dec, bid_col, bid_row, cfg):
    Mp = lat_arr.shape[0]
    Dd = cfg["decoder_embed_dim"]
    const_args = (lat_arr, pe_dec, bid_col, bid_row,
                  kp["dec_embed_w"], kp["dec_embed_b"])
    stack = kp["dec_stack"]
    tail = (kp["dec_norm_w"], kp["dec_norm_b"],
            kp["dec_pred_w"], kp["dec_pred_b"],
            kp["h_pred_w_row"], kp["h_pred_b"])
    in_specs = ([_const_spec(a.shape) for a in const_args]
                + [_layer_spec(s.shape) for s in stack]
                + [_const_spec(a.shape) for a in tail])
    out_shapes = (jax.ShapeDtypeStruct((Mp, Dd), jnp.float32),
                  jax.ShapeDtypeStruct((Mp, 1), jnp.float32))
    return pl.pallas_call(
        functools.partial(_decoder_kernel, num_heads=cfg["decoder_num_heads"]),
        out_shape=out_shapes,
        grid=(cfg["decoder_depth"],),
        in_specs=in_specs,
        out_specs=(_const_spec((Mp, Dd)), _const_spec((Mp, 1))),
        scratch_shapes=[pltpu.VMEM((Mp, Dd), jnp.float32),
                        pltpu.VMEM((Mp, Dd), jnp.float32)],
        compiler_params=_CPARAMS,
    )(*const_args, *stack, *tail)


# -----------------------------------------------------------------------------
# Kernel 3: AutoPoly (point embed + causal blocks + head) + all losses
# -----------------------------------------------------------------------------
def _auto_kernel(*refs, num_heads, np_real, pos_weight):
    (lat_ref, pshift_ref, pin_ref, first_ref, pidc_ref, pidr_ref,
     valid_ref, stop_ref, hp_ref, ht_ref, ptw, ptb) = refs[:12]
    blk = refs[12:24]
    headw, headb = refs[24:26]
    out_ref, loss_ref = refs[26:28]
    x_scr = refs[28]
    ctx_scr = refs[29]

    d = pl.program_id(0)

    @pl.when(d == 0)
    def _init():
        pts = jnp.dot(pshift_ref[...], ptw[...],
                      preferred_element_type=jnp.float32) + ptb[...]        # (NPp, Dd)
        # Expand the (N, Dd) conditioning latents to the first row of each polygon
        # with a tiny selection matmul (no host-side P-fold repeat / HBM blowup).
        npp = pts.shape[0]
        n_lat = lat_ref.shape[0]
        col = jax.lax.broadcasted_iota(jnp.int32, (npp, n_lat), 1)
        f = first_ref[...]
        sel = jnp.where(jnp.logical_and(pidc_ref[...] == col, f > 0.5), 1.0, 0.0)
        lat_rep = jnp.dot(sel, lat_ref[...], preferred_element_type=jnp.float32)
        x_scr[...] = f * lat_rep + (1.0 - f) * pts

    mask = _attn_mask(pidc_ref[...], pidr_ref[...], causal=True)
    x = _run_block(x_scr[...], mask, blk, ctx_scr, num_heads)
    x_scr[...] = x

    @pl.when(d == pl.num_programs(0) - 1)
    def _fin():
        out = jnp.dot(x, headw[...], preferred_element_type=jnp.float32) + headb[...]
        out_ref[...] = out                                                   # (NPp, 3)

        # masked MSE over valid vertices (== gathered MSE), guarded denominator
        valid = valid_ref[...]
        diff = out[:, :2] - pin_ref[...]
        sq = diff * diff * valid
        loss_l1 = jnp.sum(sq) / (jnp.maximum(jnp.sum(valid), 1.0) * 2.0)

        # BCEWithLogitsLoss(pos_weight), mean over the NP real positions
        logits = out[:, 2:3]
        tgt = stop_ref[...]
        sp_neg = jnp.maximum(-logits, 0.0) + jnp.log1p(jnp.exp(-jnp.abs(logits)))
        sp_pos = jnp.maximum(logits, 0.0) + jnp.log1p(jnp.exp(-jnp.abs(logits)))
        bce = pos_weight * tgt * sp_neg + (1.0 - tgt) * sp_pos
        npp = out.shape[0]
        row_i = jax.lax.broadcasted_iota(jnp.int32, (npp, 1), 0)
        real = (row_i < np_real).astype(jnp.float32)
        loss_len = jnp.sum(bce * real) / float(np_real)

        # nn.L1Loss over target heights
        loss_h = jnp.mean(jnp.abs(hp_ref[...] - ht_ref[...]))

        ci = jax.lax.broadcasted_iota(jnp.int32, (1, 3), 1)
        loss_ref[...] = jnp.where(ci == 0, loss_l1,
                                  jnp.where(ci == 1, loss_len, loss_h))


def autopoly_forward(kp, latauto, pshift, pin, first, pid_col, pid_row,
                     valid, stop, hpred_slice, htar_slice, np_real, cfg):
    NPp = pshift.shape[0]
    Dd = cfg["decoder_embed_dim"]
    const_args = (latauto, pshift, pin, first, pid_col, pid_row, valid, stop,
                  hpred_slice, htar_slice, kp["auto_pt_w"], kp["auto_pt_b"])
    stack = kp["auto_stack"]
    tail = (kp["auto_head_w"], kp["auto_head_b"])
    in_specs = ([_const_spec(a.shape) for a in const_args]
                + [_layer_spec(s.shape) for s in stack]
                + [_const_spec(a.shape) for a in tail])
    out_shapes = (jax.ShapeDtypeStruct((NPp, 3), jnp.float32),
                  jax.ShapeDtypeStruct((1, 3), jnp.float32))
    return pl.pallas_call(
        functools.partial(_auto_kernel, num_heads=cfg["decoder_num_heads"],
                          np_real=int(np_real), pos_weight=float(cfg["pos_weight"])),
        out_shape=out_shapes,
        grid=(cfg["auto_depth"],),
        in_specs=in_specs,
        out_specs=(_const_spec((NPp, 3)), _const_spec((1, 3))),
        scratch_shapes=[pltpu.VMEM((NPp, Dd), jnp.float32),
                        pltpu.VMEM((NPp, Dd), jnp.float32)],
        compiler_params=_CPARAMS,
    )(*const_args, *stack, *tail)


# -----------------------------------------------------------------------------
# Host glue: sin/cos positional embedding (numpy on host in the original module)
# -----------------------------------------------------------------------------
def get_1d_embed(embed_dim, pos):  # pos: (B, N)
    omega = jnp.arange(embed_dim // 2, dtype=jnp.float32) / (embed_dim / 2.0)
    omega = 1.0 / (10000.0 ** omega)
    out = pos[..., None] * omega
    return jnp.concatenate([jnp.sin(out), jnp.cos(out)], axis=2)


def pos_embed_cxy(embed_dim, pos):  # pos: (B, N, 2)
    emb_h = get_1d_embed(embed_dim // 2, pos[:, :, 0])
    emb_w = get_1d_embed(embed_dim // 2, pos[:, :, 1])
    return jnp.concatenate([emb_h, emb_w], axis=2)


# -----------------------------------------------------------------------------
# Parameter initialization (PyTorch layout) and kernel-layout preparation
# -----------------------------------------------------------------------------
def xavier(key, shape):
    fan_in, fan_out = shape
    a = math.sqrt(6.0 / (fan_in + fan_out))
    return jax.random.uniform(key, shape, jnp.float32, -a, a)


def init_block(key, dim, mlp_ratio=4.0):
    ks = jax.random.split(key, 4)
    hidden = int(dim * mlp_ratio)
    z = lambda *s: jnp.zeros(s, jnp.float32)
    return dict(
        ln1_w=jnp.ones((1, dim), jnp.float32), ln1_b=z(1, dim),
        wqkv=xavier(ks[0], (dim, 3 * dim)), bqkv=z(1, 3 * dim),
        wproj=xavier(ks[1], (dim, dim)), bproj=z(1, dim),
        ln2_w=jnp.ones((1, dim), jnp.float32), ln2_b=z(1, dim),
        wfc1=xavier(ks[2], (dim, hidden)), bfc1=z(1, hidden),
        wfc2=xavier(ks[3], (hidden, dim)), bfc2=z(1, dim),
    )


def init_params(key, cfg):
    De, Dd, P = cfg["embed_dim"], cfg["decoder_embed_dim"], cfg["max_poly"]
    keys = iter(jax.random.split(key, 64))
    nxt = lambda: next(keys)
    z = lambda *s: jnp.zeros(s, jnp.float32)
    params = {}
    params["poly_w1"] = xavier(nxt(), (P * 2, De)); params["poly_b1"] = z(1, De)
    params["poly_w2"] = xavier(nxt(), (De, De));    params["poly_b2"] = z(1, De)
    params["h_w"] = xavier(nxt(), (1, De)); params["h_b"] = z(1, De)
    params["mask_token"] = 0.02 * jax.random.normal(nxt(), (1, 1, De), jnp.float32)
    params["enc_blocks"] = [init_block(nxt(), De, cfg["mlp_ratio"])
                            for _ in range(cfg["depth"])]
    params["enc_norm_w"] = jnp.ones((1, De), jnp.float32); params["enc_norm_b"] = z(1, De)
    params["dec_embed_w"] = xavier(nxt(), (De, Dd)); params["dec_embed_b"] = z(1, Dd)
    params["dec_blocks"] = [init_block(nxt(), Dd, cfg["mlp_ratio"])
                            for _ in range(cfg["decoder_depth"])]
    params["dec_norm_w"] = jnp.ones((1, Dd), jnp.float32); params["dec_norm_b"] = z(1, Dd)
    params["dec_pred_w"] = xavier(nxt(), (Dd, Dd)); params["dec_pred_b"] = z(1, Dd)
    params["h_pred_w"] = xavier(nxt(), (Dd, 1)); params["h_pred_b"] = z(1, 1)
    params["auto_pt_w"] = xavier(nxt(), (2, Dd)); params["auto_pt_b"] = z(1, Dd)
    params["auto_blocks"] = [init_block(nxt(), Dd, cfg["mlp_ratio"])
                             for _ in range(cfg["auto_depth"])]
    params["auto_head_w"] = xavier(nxt(), (Dd, 3)); params["auto_head_b"] = z(1, 3)
    return params


def stack_blocks(blocks):
    """Depth-stack per-block weights (fused QKV layout, no per-head repack)."""
    return tuple(jnp.stack([b[f] for b in blocks], axis=0) for f in _BLOCK_FIELDS)


def prepare_kernel_params(params, cfg):
    kp = dict(params)
    kp["mask_token2d"] = params["mask_token"].reshape(1, -1)
    kp["enc_stack"] = stack_blocks(params["enc_blocks"])
    kp["dec_stack"] = stack_blocks(params["dec_blocks"])
    kp["auto_stack"] = stack_blocks(params["auto_blocks"])
    kp["h_pred_w_row"] = params["h_pred_w"].reshape(1, -1)   # (1, Dd) for VPU row-reduce
    return kp


# -----------------------------------------------------------------------------
# Model forward (mirrors MAGECityPolyGen3D.forward)
# -----------------------------------------------------------------------------
def mage_forward(params, poly, pos, h, polytar, postar, htar, len_tar, cfg):
    B, R, P, _ = poly.shape
    De, Dd, Mb = cfg["embed_dim"], cfg["decoder_embed_dim"], cfg["max_build"]
    n_tar = len_tar.shape[1]
    S_enc = 1 + R
    kp = prepare_kernel_params(params, cfg)

    # ---------------- encoder (batch folded into rows, padded to x8) ----------------
    M_enc = B * S_enc
    Mp_enc = _round_up(M_enc, 8)
    poly_seq = jnp.concatenate(
        [jnp.zeros((B, 1, P * 2), jnp.float32), poly.reshape(B, R, P * 2)],
        axis=1).reshape(M_enc, P * 2)
    h_seq = jnp.concatenate(
        [jnp.zeros((B, 1, 1), jnp.float32), h], axis=1).reshape(M_enc, 1)
    pe_enc = pos_embed_cxy(De, pos)
    pos_seq = jnp.concatenate(
        [jnp.zeros((B, 1, De), jnp.float32), pe_enc], axis=1).reshape(M_enc, De)
    slot0 = jnp.concatenate(
        [jnp.ones((B, 1, 1), jnp.float32), jnp.zeros((B, R, 1), jnp.float32)],
        axis=1).reshape(M_enc, 1)
    bid_e = jnp.arange(Mp_enc, dtype=jnp.int32) // S_enc     # pad rows -> phantom batches
    latent = encoder_forward(
        kp, _pad_rows(poly_seq, Mp_enc), _pad_rows(h_seq, Mp_enc),
        _pad_rows(pos_seq, Mp_enc), _pad_rows(slot0, Mp_enc),
        bid_e.reshape(Mp_enc, 1), bid_e.reshape(1, Mp_enc), cfg)[:M_enc]

    # ---------------- decoder ----------------
    lat3 = latent.reshape(B, S_enc, De)
    lat_arr = jnp.concatenate(
        [lat3[:, 1:, :], jnp.broadcast_to(lat3[:, 0:1, :], (B, Mb - R, De))],
        axis=1).reshape(B * Mb, De)
    posall = jnp.concatenate([pos, postar], axis=1)           # (B, Mb, 2)
    pe_dec = pos_embed_cxy(Dd, posall).reshape(B * Mb, Dd)
    M_dec = B * Mb
    Mp_dec = _round_up(M_dec, 8)
    bid_d = jnp.arange(Mp_dec, dtype=jnp.int32) // Mb
    pred, h_pred = decoder_forward(
        kp, _pad_rows(lat_arr, Mp_dec), _pad_rows(pe_dec, Mp_dec),
        bid_d.reshape(Mp_dec, 1), bid_d.reshape(1, Mp_dec), cfg)
    pred_latent = pred[:M_dec].reshape(B, Mb, Dd)
    h_pred = h_pred[:M_dec].reshape(B, Mb, 1)

    # ---------------- AutoPoly + losses ----------------
    N = B * n_tar
    NP = N * P
    NPp = _round_up(NP, 8)
    latauto = pred_latent[:, R:R + n_tar, :].reshape(N, Dd)
    polyauto = polytar[:, :n_tar].reshape(N, P, 2)
    poly_flat = polyauto.reshape(NP, 2)
    poly_shift = jnp.concatenate(
        [jnp.zeros((N, 1, 2), jnp.float32), polyauto[:, :P - 1, :]],
        axis=1).reshape(NP, 2)
    tpos = jnp.arange(NP, dtype=jnp.int32) % P
    first = (tpos == 0).astype(jnp.float32).reshape(NP, 1)
    len_rep = jnp.repeat(len_tar.reshape(N).astype(jnp.int32), P)
    valid = (tpos < len_rep).astype(jnp.float32).reshape(NP, 1)
    stop = (tpos == len_rep).astype(jnp.float32).reshape(NP, 1)
    pid = jnp.arange(NPp, dtype=jnp.int32) // P               # pad rows -> phantom polys
    h_pred_slice = h_pred[:, R:R + n_tar, :].reshape(N, 1)
    htar_slice = htar[:, :n_tar, :].reshape(N, 1)

    out_flat, losses = autopoly_forward(
        kp, latauto, _pad_rows(poly_shift, NPp), _pad_rows(poly_flat, NPp),
        _pad_rows(first, NPp), pid.reshape(NPp, 1), pid.reshape(1, NPp),
        _pad_rows(valid, NPp), _pad_rows(stop, NPp),
        h_pred_slice, htar_slice, NP, cfg)
    out = out_flat[:NP].reshape(N, P, 3)
    loss_l1, loss_len, loss_height = losses[0, 0], losses[0, 1], losses[0, 2]
    return loss_l1, loss_height, loss_len, out


# -----------------------------------------------------------------------------
if __name__ == "__main__":
    cfg = dict(max_poly=8, embed_dim=32, depth=2, num_heads=4, max_build=8,
               decoder_embed_dim=16, decoder_depth=2, decoder_num_heads=4,
               auto_depth=2, pos_weight=20.0, mlp_ratio=4.0)

    key = jax.random.PRNGKey(0)
    kparams, kdata = jax.random.split(key)
    params = init_params(kparams, cfg)

    B, R, P = 2, 4, cfg["max_poly"]
    n_tar = cfg["max_build"] - R
    ks = jax.random.split(kdata, 7)
    poly = jax.random.uniform(ks[0], (B, R, P, 2), jnp.float32, 0.0, 50.0)
    pos = jax.random.uniform(ks[1], (B, R, 2), jnp.float32, 0.0, 50.0)
    h = jax.random.uniform(ks[2], (B, R, 1), jnp.float32, 0.0, 10.0)
    polytar = jax.random.uniform(ks[3], (B, n_tar, P, 2), jnp.float32, 0.0, 50.0)
    postar = jax.random.uniform(ks[4], (B, n_tar, 2), jnp.float32, 0.0, 50.0)
    htar = jax.random.uniform(ks[5], (B, n_tar, 1), jnp.float32, 0.0, 10.0)
    len_tar = jax.random.randint(ks[6], (B, n_tar), 1, P - 1)

    fwd = jax.jit(functools.partial(mage_forward, cfg=cfg))
    loss_l1, loss_height, loss_len, out = fwd(
        params, poly, pos, h, polytar, postar, htar, len_tar)
    jax.block_until_ready((loss_l1, loss_height, loss_len, out))
    print("KERNEL_OK")
</pallas_src>

<mosaic_0001>
module attributes {stable_mosaic.version = 11 : i64} {
  func.func @_encoder_kernel(%arg0: i32, %arg1: memref<16x16xf32, #tpu.memory_space<vmem>>, %arg2: memref<16x1xf32, #tpu.memory_space<vmem>>, %arg3: memref<16x32xf32, #tpu.memory_space<vmem>>, %arg4: memref<16x1xf32, #tpu.memory_space<vmem>>, %arg5: memref<16x1xi32, #tpu.memory_space<vmem>>, %arg6: memref<1x16xi32, #tpu.memory_space<vmem>>, %arg7: memref<16x32xf32, #tpu.memory_space<vmem>>, %arg8: memref<1x32xf32, #tpu.memory_space<vmem>>, %arg9: memref<32x32xf32, #tpu.memory_space<vmem>>, %arg10: memref<1x32xf32, #tpu.memory_space<vmem>>, %arg11: memref<1x32xf32, #tpu.memory_space<vmem>>, %arg12: memref<1x32xf32, #tpu.memory_space<vmem>>, %arg13: memref<1x32xf32, #tpu.memory_space<vmem>>, %arg14: memref<1x32x96xf32, #tpu.memory_space<vmem>>, %arg15: memref<1x1x96xf32, #tpu.memory_space<vmem>>, %arg16: memref<1x32x32xf32, #tpu.memory_space<vmem>>, %arg17: memref<1x1x32xf32, #tpu.memory_space<vmem>>, %arg18: memref<1x1x32xf32, #tpu.memory_space<vmem>>, %arg19: memref<1x1x32xf32, #tpu.memory_space<vmem>>, %arg20: memref<1x1x32xf32, #tpu.memory_space<vmem>>, %arg21: memref<1x1x32xf32, #tpu.memory_space<vmem>>, %arg22: memref<1x32x128xf32, #tpu.memory_space<vmem>>, %arg23: memref<1x1x128xf32, #tpu.memory_space<vmem>>, %arg24: memref<1x128x32xf32, #tpu.memory_space<vmem>>, %arg25: memref<1x1x32xf32, #tpu.memory_space<vmem>>, %arg26: memref<1x32xf32, #tpu.memory_space<vmem>>, %arg27: memref<1x32xf32, #tpu.memory_space<vmem>>, %arg28: memref<16x32xf32, #tpu.memory_space<vmem>>, %arg29: memref<16x32xf32, #tpu.memory_space<vmem>>, %arg30: memref<16x32xf32, #tpu.memory_space<vmem>>) attributes {dimension_semantics = [#tpu.dimension_semantics<arbitrary>], iteration_bounds = array<i64: 2>, scalar_prefetch = 0 : i64, scratch_operands = 2 : i64, tpu.core_type = #tpu.core_type<tc>, window_params = [{pipeline_mode = #tpu.pipeline_mode<synchronous>, transform_indices = @transform_0, window_bounds = array<i64: 16, 16>}, {pipeline_mode = #tpu.pipeline_mode<synchronous>, transform_indices = @transform_1, window_bounds = array<i64: 16, 1>}, {pipeline_mode = #tpu.pipeline_mode<synchronous>, transform_indices = @transform_2, window_bounds = array<i64: 16, 32>}, {pipeline_mode = #tpu.pipeline_mode<synchronous>, transform_indices = @transform_3, window_bounds = array<i64: 16, 1>}, {pipeline_mode = #tpu.pipeline_mode<synchronous>, transform_indices = @transform_4, window_bounds = array<i64: 16, 1>}, {pipeline_mode = #tpu.pipeline_mode<synchronous>, transform_indices = @transform_5, window_bounds = array<i64: 1, 16>}, {pipeline_mode = #tpu.pipeline_mode<synchronous>, transform_indices = @transform_6, window_bounds = array<i64: 16, 32>}, {pipeline_mode = #tpu.pipeline_mode<synchronous>, transform_indices = @transform_7, window_bounds = array<i64: 1, 32>}, {pipeline_mode = #tpu.pipeline_mode<synchronous>, transform_indices = @transform_8, window_bounds = array<i64: 32, 32>}, {pipeline_mode = #tpu.pipeline_mode<synchronous>, transform_indices = @transform_9, window_bounds = array<i64: 1, 32>}, {pipeline_mode = #tpu.pipeline_mode<synchronous>, transform_indices = @transform_10, window_bounds = array<i64: 1, 32>}, {pipeline_mode = #tpu.pipeline_mode<synchronous>, transform_indices = @transform_11, window_bounds = array<i64: 1, 32>}, {pipeline_mode = #tpu.pipeline_mode<synchronous>, transform_indices = @transform_12, window_bounds = array<i64: 1, 32>}, {transform_indices = @transform_13, window_bounds = array<i64: 1, 32, 96>}, {transform_indices = @transform_14, window_bounds = array<i64: 1, 1, 96>}, {transform_indices = @transform_15, window_bounds = array<i64: 1, 32, 32>}, {transform_indices = @transform_16, window_bounds = array<i64: 1, 1, 32>}, {transform_indices = @transform_17, window_bounds = array<i64: 1, 1, 32>}, {transform_indices = @transform_18, window_bounds = array<i64: 1, 1, 32>}, {transform_indices = @transform_19, window_bounds = array<i64: 1, 1, 32>}, {transform_indices = @transform_20, window_bounds = array<i64: 1, 1, 32>}, {transform_indices = @transform_21, window_bounds = array<i64: 1, 32, 128>}, {transform_indices = @transform_22, window_bounds = array<i64: 1, 1, 128>}, {transform_indices = @transform_23, window_bounds = array<i64: 1, 128, 32>}, {transform_indices = @transform_24, window_bounds = array<i64: 1, 1, 32>}, {pipeline_mode = #tpu.pipeline_mode<synchronous>, transform_indices = @transform_25, window_bounds = array<i64: 1, 32>}, {pipeline_mode = #tpu.pipeline_mode<synchronous>, transform_indices = @transform_26, window_bounds = array<i64: 1, 32>}, {pipeline_mode = #tpu.pipeline_mode<synchronous>, transform_indices = @transform_27, window_bounds = array<i64: 16, 32>}]} {
    %c0_i32 = arith.constant 0 : i32
    %0 = arith.cmpi eq, %arg0, %c0_i32 : i32
    %1 = arith.extui %0 : i1 to i32
    %c0_i32_0 = arith.constant 0 : i32
    %2 = arith.cmpi ne, %1, %c0_i32_0 : i32
    scf.if %2 {
      %c0_91 = arith.constant 0 : index
      %c0_92 = arith.constant 0 : index
      %184 = vector.load %arg1[%c0_91, %c0_92] : memref<16x16xf32, #tpu.memory_space<vmem>>, vector<16x16xf32>
      %c0_93 = arith.constant 0 : index
      %c0_94 = arith.constant 0 : index
      %185 = vector.load %arg7[%c0_93, %c0_94] : memref<16x32xf32, #tpu.memory_space<vmem>>, vector<16x32xf32>
      %cst_95 = arith.constant dense<0.000000e+00> : vector<16x32xf32>
      %186 = tpu.matmul %184, %185, %cst_95 {dimension_numbers = #tpu.dot_dimension_numbers<[1], [0], [0], [1], [0, 0, 1, 1], [], []>} : vector<16x16xf32>, vector<16x32xf32>, vector<16x32xf32> -> vector<16x32xf32>
      %c0_96 = arith.constant 0 : index
      %c0_97 = arith.constant 0 : index
      %187 = vector.load %arg8[%c0_96, %c0_97] : memref<1x32xf32, #tpu.memory_space<vmem>>, vector<1x32xf32>
      %188 = vector.broadcast %187 : vector<1x32xf32> to vector<16x32xf32>
      %189 = arith.addf %186, %188 : vector<16x32xf32>
      %cst_98 = arith.constant 0.000000e+00 : f32
      %190 = vector.broadcast %cst_98 : f32 to vector<16x32xf32>
      %191 = arith.maximumf %189, %190 : vector<16x32xf32>
      %c0_99 = arith.constant 0 : index
      %c0_100 = arith.constant 0 : index
      %192 = vector.load %arg9[%c0_99, %c0_100] : memref<32x32xf32, #tpu.memory_space<vmem>>, vector<32x32xf32>
      %cst_101 = arith.constant dense<0.000000e+00> : vector<16x32xf32>
      %193 = tpu.matmul %191, %192, %cst_101 {dimension_numbers = #tpu.dot_dimension_numbers<[1], [0], [0], [1], [0, 0, 1, 1], [], []>} : vector<16x32xf32>, vector<32x32xf32>, vector<16x32xf32> -> vector<16x32xf32>
      %c0_102 = arith.constant 0 : index
      %c0_103 = arith.constant 0 : index
      %194 = vector.load %arg10[%c0_102, %c0_103] : memref<1x32xf32, #tpu.memory_space<vmem>>, vector<1x32xf32>
      %195 = vector.broadcast %194 : vector<1x32xf32> to vector<16x32xf32>
      %196 = arith.addf %193, %195 : vector<16x32xf32>
      %c0_104 = arith.constant 0 : index
      %c0_105 = arith.constant 0 : index
      %197 = vector.load %arg2[%c0_104, %c0_105] : memref<16x1xf32, #tpu.memory_space<vmem>>, vector<16x1xf32>
      %c0_106 = arith.constant 0 : index
      %c0_107 = arith.constant 0 : index
      %198 = vector.load %arg11[%c0_106, %c0_107] : memref<1x32xf32, #tpu.memory_space<vmem>>, vector<1x32xf32>
      %199 = vector.broadcast %197 : vector<16x1xf32> to vector<16x32xf32>
      %200 = vector.broadcast %198 : vector<1x32xf32> to vector<16x32xf32>
      %201 = arith.mulf %199, %200 : vector<16x32xf32>
      %c0_108 = arith.constant 0 : index
      %c0_109 = arith.constant 0 : index
      %202 = vector.load %arg12[%c0_108, %c0_109] : memref<1x32xf32, #tpu.memory_space<vmem>>, vector<1x32xf32>
      %203 = vector.broadcast %202 : vector<1x32xf32> to vector<16x32xf32>
      %204 = arith.addf %201, %203 : vector<16x32xf32>
      %205 = arith.addf %196, %204 : vector<16x32xf32>
      %cst_110 = arith.constant 0.000000e+00 : f32
      %206 = vector.broadcast %cst_110 : f32 to vector<16x32xf32>
      %207 = arith.maximumf %205, %206 : vector<16x32xf32>
      %c0_111 = arith.constant 0 : index
      %c0_112 = arith.constant 0 : index
      %208 = vector.load %arg3[%c0_111, %c0_112] : memref<16x32xf32, #tpu.memory_space<vmem>>, vector<16x32xf32>
      %209 = arith.addf %207, %208 : vector<16x32xf32>
      %c0_113 = arith.constant 0 : index
      %c0_114 = arith.constant 0 : index
      %210 = vector.load %arg4[%c0_113, %c0_114] : memref<16x1xf32, #tpu.memory_space<vmem>>, vector<16x1xf32>
      %c0_115 = arith.constant 0 : index
      %c0_116 = arith.constant 0 : index
      %211 = vector.load %arg13[%c0_115, %c0_116] : memref<1x32xf32, #tpu.memory_space<vmem>>, vector<1x32xf32>
      %212 = vector.broadcast %210 : vector<16x1xf32> to vector<16x32xf32>
      %213 = vector.broadcast %211 : vector<1x32xf32> to vector<16x32xf32>
      %214 = arith.mulf %212, %213 : vector<16x32xf32>
      %cst_117 = arith.constant 1.000000e+00 : f32
      %215 = vector.broadcast %cst_117 : f32 to vector<16x1xf32>
      %216 = arith.subf %215, %210 : vector<16x1xf32>
      %217 = vector.broadcast %216 : vector<16x1xf32> to vector<16x32xf32>
      %218 = arith.mulf %217, %209 : vector<16x32xf32>
      %219 = arith.addf %214, %218 : vector<16x32xf32>
      %c0_118 = arith.constant 0 : index
      %c0_119 = arith.constant 0 : index
      %220 = vector.load %arg29[%c0_118, %c0_119] : memref<16x32xf32, #tpu.memory_space<vmem>>, vector<16x32xf32>
      tpu.vector_store %arg29[%c0_118, %c0_119], %219 {strides = array<i32>} : memref<16x32xf32, #tpu.memory_space<vmem>>, vector<16x32xf32>,
    } else {
    }
    %c0 = arith.constant 0 : index
    %c0_1 = arith.constant 0 : index
    %3 = vector.load %arg5[%c0, %c0_1] : memref<16x1xi32, #tpu.memory_space<vmem>>, vector<16x1xi32>
    %c0_2 = arith.constant 0 : index
    %c0_3 = arith.constant 0 : index
    %4 = vector.load %arg6[%c0_2, %c0_3] : memref<1x16xi32, #tpu.memory_space<vmem>>, vector<1x16xi32>
    %5 = vector.broadcast %3 : vector<16x1xi32> to vector<16x16xi32>
    %6 = vector.broadcast %4 : vector<1x16xi32> to vector<16x16xi32>
    %7 = arith.cmpi eq, %5, %6 : vector<16x16xi32>
    %cst = arith.constant 0.000000e+00 : f32
    %cst_4 = arith.constant -1.000000e+30 : f32
    %8 = vector.broadcast %cst : f32 to vector<16x16xf32>
    %9 = vector.broadcast %cst_4 : f32 to vector<16x16xf32>
    %10 = arith.select %7, %8, %9 : vector<16x16xi1>, vector<16x16xf32>
    %c0_5 = arith.constant 0 : index
    %c0_6 = arith.constant 0 : index
    %11 = vector.load %arg29[%c0_5, %c0_6] : memref<16x32xf32, #tpu.memory_space<vmem>>, vector<16x32xf32>
    %c0_7 = arith.constant 0 : index
    %c0_8 = arith.constant 0 : index
    %c0_9 = arith.constant 0 : index
    %12 = vector.load %arg18[%c0_7, %c0_8, %c0_9] : memref<1x1x32xf32, #tpu.memory_space<vmem>>, vector<1x1x32xf32>
    %13 = vector.shape_cast %12 : vector<1x1x32xf32> to vector<1x32xf32>
    %c0_10 = arith.constant 0 : index
    %c0_11 = arith.constant 0 : index
    %c0_12 = arith.constant 0 : index
    %14 = vector.load %arg19[%c0_10, %c0_11, %c0_12] : memref<1x1x32xf32, #tpu.memory_space<vmem>>, vector<1x1x32xf32>
    %15 = vector.shape_cast %14 : vector<1x1x32xf32> to vector<1x32xf32>
    %cst_13 = arith.constant dense<0.000000e+00> : vector<16xf32>
    %16 = vector.multi_reduction <add>, %11, %cst_13 [1] : vector<16x32xf32> to vector<16xf32>
    %17 = vector.shape_cast %16 : vector<16xf32> to vector<16x1xf32>
    %cst_14 = arith.constant 3.200000e+01 : f32
    %18 = vector.broadcast %cst_14 : f32 to vector<16x1xf32>
    %19 = arith.divf %17, %18 : vector<16x1xf32>
    %20 = vector.broadcast %19 : vector<16x1xf32> to vector<16x32xf32>
    %21 = arith.subf %11, %20 : vector<16x32xf32>
    %22 = arith.mulf %21, %21 : vector<16x32xf32>
    %cst_15 = arith.constant dense<0.000000e+00> : vector<16xf32>
    %23 = vector.multi_reduction <add>, %22, %cst_15 [1] : vector<16x32xf32> to vector<16xf32>
    %24 = vector.shape_cast %23 : vector<16xf32> to vector<16x1xf32>
    %cst_16 = arith.constant 3.200000e+01 : f32
    %25 = vector.broadcast %cst_16 : f32 to vector<16x1xf32>
    %26 = arith.divf %24, %25 : vector<16x1xf32>
    %27 = vector.broadcast %19 : vector<16x1xf32> to vector<16x32xf32>
    %28 = arith.subf %11, %27 : vector<16x32xf32>
    %cst_17 = arith.constant 9.99999974E-6 : f32
    %29 = vector.broadcast %cst_17 : f32 to vector<16x1xf32>
    %30 = arith.addf %26, %29 : vector<16x1xf32>
    %31 = math.rsqrt %30 : vector<16x1xf32>
    %32 = vector.broadcast %31 : vector<16x1xf32> to vector<16x32xf32>
    %33 = arith.mulf %28, %32 : vector<16x32xf32>
    %34 = vector.broadcast %13 : vector<1x32xf32> to vector<16x32xf32>
    %35 = arith.mulf %33, %34 : vector<16x32xf32>
    %36 = vector.broadcast %15 : vector<1x32xf32> to vector<16x32xf32>
    %37 = arith.addf %35, %36 : vector<16x32xf32>
    %c0_18 = arith.constant 0 : index
    %c0_19 = arith.constant 0 : index
    %c0_20 = arith.constant 0 : index
    %38 = vector.load %arg14[%c0_18, %c0_19, %c0_20] : memref<1x32x96xf32, #tpu.memory_space<vmem>>, vector<1x32x96xf32>
    %39 = vector.shape_cast %38 : vector<1x32x96xf32> to vector<32x96xf32>
    %cst_21 = arith.constant dense<0.000000e+00> : vector<16x96xf32>
    %40 = tpu.matmul %37, %39, %cst_21 {dimension_numbers = #tpu.dot_dimension_numbers<[1], [0], [0], [1], [0, 0, 1, 1], [], []>} : vector<16x32xf32>, vector<32x96xf32>, vector<16x96xf32> -> vector<16x96xf32>
    %c0_22 = arith.constant 0 : index
    %c0_23 = arith.constant 0 : index
    %c0_24 = arith.constant 0 : index
    %41 = vector.load %arg15[%c0_22, %c0_23, %c0_24] : memref<1x1x96xf32, #tpu.memory_space<vmem>>, vector<1x1x96xf32>
    %42 = vector.shape_cast %41 : vector<1x1x96xf32> to vector<1x96xf32>
    %43 = vector.broadcast %42 : vector<1x96xf32> to vector<16x96xf32>
    %44 = arith.addf %40, %43 : vector<16x96xf32>
    %45 = vector.extract_strided_slice %44 {offsets = [0, 0], sizes = [16, 8], strides = [1, 1]} : vector<16x96xf32> to vector<16x8xf32>
    %46 = vector.extract_strided_slice %44 {offsets = [0, 32], sizes = [16, 8], strides = [1, 1]} : vector<16x96xf32> to vector<16x8xf32>
    %47 = vector.extract_strided_slice %44 {offsets = [0, 64], sizes = [16, 8], strides = [1, 1]} : vector<16x96xf32> to vector<16x8xf32>
    %cst_25 = arith.constant dense<0.000000e+00> : vector<16x16xf32>
    %48 = tpu.matmul %45, %46, %cst_25 {dimension_numbers = #tpu.dot_dimension_numbers<[1], [1], [0], [0], [0, 0, 1, 0], [], []>} : vector<16x8xf32>, vector<16x8xf32>, vector<16x16xf32> -> vector<16x16xf32>
    %cst_26 = arith.constant 0.353553385 : f32
    %49 = vector.broadcast %cst_26 : f32 to vector<16x16xf32>
    %50 = arith.mulf %48, %49 : vector<16x16xf32>
    %51 = arith.addf %50, %10 : vector<16x16xf32>
    %cst_27 = arith.constant dense<0xFF800000> : vector<16xf32>
    %52 = vector.multi_reduction <maximumf>, %51, %cst_27 [1] : vector<16x16xf32> to vector<16xf32>
    %53 = vector.shape_cast %52 : vector<16xf32> to vector<16x1xf32>
    %54 = vector.broadcast %53 : vector<16x1xf32> to vector<16x16xf32>
    %55 = arith.subf %51, %54 : vector<16x16xf32>
    %56 = math.exp %55 : vector<16x16xf32>
    %cst_28 = arith.constant dense<0.000000e+00> : vector<16xf32>
    %57 = vector.multi_reduction <add>, %56, %cst_28 [1] : vector<16x16xf32> to vector<16xf32>
    %58 = vector.shape_cast %57 : vector<16xf32> to vector<16x1xf32>
    %59 = vector.broadcast %58 : vector<16x1xf32> to vector<16x16xf32>
    %60 = arith.divf %56, %59 : vector<16x16xf32>
    %cst_29 = arith.constant dense<0.000000e+00> : vector<16x8xf32>
    %61 = tpu.matmul %60, %47, %cst_29 {dimension_numbers = #tpu.dot_dimension_numbers<[1], [0], [0], [1], [0, 0, 1, 1], [], []>} : vector<16x16xf32>, vector<16x8xf32>, vector<16x8xf32> -> vector<16x8xf32>
    %c0_30 = arith.constant 0 : index
    %c0_31 = arith.constant 0 : index
    %62 = vector.load %arg30[%c0_30, %c0_31] : memref<16x32xf32, #tpu.memory_space<vmem>>, vector<16x8xf32>
    tpu.vector_store %arg30[%c0_30, %c0_31], %61 {strides = array<i32>} : memref<16x32xf32, #tpu.memory_space<vmem>>, vector<16x8xf32>,
    %63 = vector.extract_strided_slice %44 {offsets = [0, 8], sizes = [16, 8], strides = [1, 1]} : vector<16x96xf32> to vector<16x8xf32>
    %64 = vector.extract_strided_slice %44 {offsets = [0, 40], sizes = [16, 8], strides = [1, 1]} : vector<16x96xf32> to vector<16x8xf32>
    %65 = vector.extract_strided_slice %44 {offsets = [0, 72], sizes = [16, 8], strides = [1, 1]} : vector<16x96xf32> to vector<16x8xf32>
    %cst_32 = arith.constant dense<0.000000e+00> : vector<16x16xf32>
    %66 = tpu.matmul %63, %64, %cst_32 {dimension_numbers = #tpu.dot_dimension_numbers<[1], [1], [0], [0], [0, 0, 1, 0], [], []>} : vector<16x8xf32>, vector<16x8xf32>, vector<16x16xf32> -> vector<16x16xf32>
    %cst_33 = arith.constant 0.353553385 : f32
    %67 = vector.broadcast %cst_33 : f32 to vector<16x16xf32>
    %68 = arith.mulf %66, %67 : vector<16x16xf32>
    %69 = arith.addf %68, %10 : vector<16x16xf32>
    %cst_34 = arith.constant dense<0xFF800000> : vector<16xf32>
    %70 = vector.multi_reduction <maximumf>, %69, %cst_34 [1] : vector<16x16xf32> to vector<16xf32>
    %71 = vector.shape_cast %70 : vector<16xf32> to vector<16x1xf32>
    %72 = vector.broadcast %71 : vector<16x1xf32> to vector<16x16xf32>
    %73 = arith.subf %69, %72 : vector<16x16xf32>
    %74 = math.exp %73 : vector<16x16xf32>
    %cst_35 = arith.constant dense<0.000000e+00> : vector<16xf32>
    %75 = vector.multi_reduction <add>, %74, %cst_35 [1] : vector<16x16xf32> to vector<16xf32>
    %76 = vector.shape_cast %75 : vector<16xf32> to vector<16x1xf32>
    %77 = vector.broadcast %76 : vector<16x1xf32> to vector<16x16xf32>
    %78 = arith.divf %74, %77 : vector<16x16xf32>
    %cst_36 = arith.constant dense<0.000000e+00> : vector<16x8xf32>
    %79 = tpu.matmul %78, %65, %cst_36 {dimension_numbers = #tpu.dot_dimension_numbers<[1], [0], [0], [1], [0, 0, 1, 1], [], []>} : vector<16x16xf32>, vector<16x8xf32>, vector<16x8xf32> -> vector<16x8xf32>
    %c0_37 = arith.constant 0 : index
    %c8 = arith.constant 8 : index
    %80 = vector.load %arg30[%c0_37, %c8] : memref<16x32xf32, #tpu.memory_space<vmem>>, vector<16x8xf32>
    tpu.vector_store %arg30[%c0_37, %c8], %79 {strides = array<i32>} : memref<16x32xf32, #tpu.memory_space<vmem>>, vector<16x8xf32>,
    %81 = vector.extract_strided_slice %44 {offsets = [0, 16], sizes = [16, 8], strides = [1, 1]} : vector<16x96xf32> to vector<16x8xf32>
    %82 = vector.extract_strided_slice %44 {offsets = [0, 48], sizes = [16, 8], strides = [1, 1]} : vector<16x96xf32> to vector<16x8xf32>
    %83 = vector.extract_strided_slice %44 {offsets = [0, 80], sizes = [16, 8], strides = [1, 1]} : vector<16x96xf32> to vector<16x8xf32>
    %cst_38 = arith.constant dense<0.000000e+00> : vector<16x16xf32>
    %84 = tpu.matmul %81, %82, %cst_38 {dimension_numbers = #tpu.dot_dimension_numbers<[1], [1], [0], [0], [0, 0, 1, 0], [], []>} : vector<16x8xf32>, vector<16x8xf32>, vector<16x16xf32> -> vector<16x16xf32>
    %cst_39 = arith.constant 0.353553385 : f32
    %85 = vector.broadcast %cst_39 : f32 to vector<16x16xf32>
    %86 = arith.mulf %84, %85 : vector<16x16xf32>
    %87 = arith.addf %86, %10 : vector<16x16xf32>
    %cst_40 = arith.constant dense<0xFF800000> : vector<16xf32>
    %88 = vector.multi_reduction <maximumf>, %87, %cst_40 [1] : vector<16x16xf32> to vector<16xf32>
    %89 = vector.shape_cast %88 : vector<16xf32> to vector<16x1xf32>
    %90 = vector.broadcast %89 : vector<16x1xf32> to vector<16x16xf32>
    %91 = arith.subf %87, %90 : vector<16x16xf32>
    %92 = math.exp %91 : vector<16x16xf32>
    %cst_41 = arith.constant dense<0.000000e+00> : vector<16xf32>
    %93 = vector.multi_reduction <add>, %92, %cst_41 [1] : vector<16x16xf32> to vector<16xf32>
    %94 = vector.shape_cast %93 : vector<16xf32> to vector<16x1xf32>
    %95 = vector.broadcast %94 : vector<16x1xf32> to vector<16x16xf32>
    %96 = arith.divf %92, %95 : vector<16x16xf32>
    %cst_42 = arith.constant dense<0.000000e+00> : vector<16x8xf32>
    %97 = tpu.matmul %96, %83, %cst_42 {dimension_numbers = #tpu.dot_dimension_numbers<[1], [0], [0], [1], [0, 0, 1, 1], [], []>} : vector<16x16xf32>, vector<16x8xf32>, vector<16x8xf32> -> vector<16x8xf32>
    %c0_43 = arith.constant 0 : index
    %c16 = arith.constant 16 : index
    %98 = vector.load %arg30[%c0_43, %c16] : memref<16x32xf32, #tpu.memory_space<vmem>>, vector<16x8xf32>
    tpu.vector_store %arg30[%c0_43, %c16], %97 {strides = array<i32>} : memref<16x32xf32, #tpu.memory_space<vmem>>, vector<16x8xf32>,
    %99 = vector.extract_strided_slice %44 {offsets = [0, 24], sizes = [16, 8], strides = [1, 1]} : vector<16x96xf32> to vector<16x8xf32>
    %100 = vector.extract_strided_slice %44 {offsets = [0, 56], sizes = [16, 8], strides = [1, 1]} : vector<16x96xf32> to vector<16x8xf32>
    %101 = vector.extract_strided_slice %44 {offsets = [0, 88], sizes = [16, 8], strides = [1, 1]} : vector<16x96xf32> to vector<16x8xf32>
    %cst_44 = arith.constant dense<0.000000e+00> : vector<16x16xf32>
    %102 = tpu.matmul %99, %100, %cst_44 {dimension_numbers = #tpu.dot_dimension_numbers<[1], [1], [0], [0], [0, 0, 1, 0], [], []>} : vector<16x8xf32>, vector<16x8xf32>, vector<16x16xf32> -> vector<16x16xf32>
    %cst_45 = arith.constant 0.353553385 : f32
    %103 = vector.broadcast %cst_45 : f32 to vector<16x16xf32>
    %104 = arith.mulf %102, %103 : vector<16x16xf32>
    %105 = arith.addf %104, %10 : vector<16x16xf32>
    %cst_46 = arith.constant dense<0xFF800000> : vector<16xf32>
    %106 = vector.multi_reduction <maximumf>, %105, %cst_46 [1] : vector<16x16xf32> to vector<16xf32>
    %107 = vector.shape_cast %106 : vector<16xf32> to vector<16x1xf32>
    %108 = vector.broadcast %107 : vector<16x1xf32> to vector<16x16xf32>
    %109 = arith.subf %105, %108 : vector<16x16xf32>
    %110 = math.exp %109 : vector<16x16xf32>
    %cst_47 = arith.constant dense<0.000000e+00> : vector<16xf32>
    %111 = vector.multi_reduction <add>, %110, %cst_47 [1] : vector<16x16xf32> to vector<16xf32>
    %112 = vector.shape_cast %111 : vector<16xf32> to vector<16x1xf32>
    %113 = vector.broadcast %112 : vector<16x1xf32> to vector<16x16xf32>
    %114 = arith.divf %110, %113 : vector<16x16xf32>
    %cst_48 = arith.constant dense<0.000000e+00> : vector<16x8xf32>
    %115 = tpu.matmul %114, %101, %cst_48 {dimension_numbers = #tpu.dot_dimension_numbers<[1], [0], [0], [1], [0, 0, 1, 1], [], []>} : vector<16x16xf32>, vector<16x8xf32>, vector<16x8xf32> -> vector<16x8xf32>
    %c0_49 = arith.constant 0 : index
    %c24 = arith.constant 24 : index
    %116 = vector.load %arg30[%c0_49, %c24] : memref<16x32xf32, #tpu.memory_space<vmem>>, vector<16x8xf32>
    tpu.vector_store %arg30[%c0_49, %c24], %115 {strides = array<i32>} : memref<16x32xf32, #tpu.memory_space<vmem>>, vector<16x8xf32>,
    %c0_50 = arith.constant 0 : index
    %c0_51 = arith.constant 0 : index
    %117 = vector.load %arg30[%c0_50, %c0_51] : memref<16x32xf32, #tpu.memory_space<vmem>>, vector<16x32xf32>
    %c0_52 = arith.constant 0 : index
    %c0_53 = arith.constant 0 : index
    %c0_54 = arith.constant 0 : index
    %118 = vector.load %arg16[%c0_52, %c0_53, %c0_54] : memref<1x32x32xf32, #tpu.memory_space<vmem>>, vector<1x32x32xf32>
    %119 = vector.shape_cast %118 : vector<1x32x32xf32> to vector<32x32xf32>
    %cst_55 = arith.constant dense<0.000000e+00> : vector<16x32xf32>
    %120 = tpu.matmul %117, %119, %cst_55 {dimension_numbers = #tpu.dot_dimension_numbers<[1], [0], [0], [1], [0, 0, 1, 1], [], []>} : vector<16x32xf32>, vector<32x32xf32>, vector<16x32xf32> -> vector<16x32xf32>
    %121 = arith.addf %11, %120 : vector<16x32xf32>
    %c0_56 = arith.constant 0 : index
    %c0_57 = arith.constant 0 : index
    %c0_58 = arith.constant 0 : index
    %122 = vector.load %arg17[%c0_56, %c0_57, %c0_58] : memref<1x1x32xf32, #tpu.memory_space<vmem>>, vector<1x1x32xf32>
    %123 = vector.shape_cast %122 : vector<1x1x32xf32> to vector<1x32xf32>
    %124 = vector.broadcast %123 : vector<1x32xf32> to vector<16x32xf32>
    %125 = arith.addf %121, %124 : vector<16x32xf32>
    %c0_59 = arith.constant 0 : index
    %c0_60 = arith.constant 0 : index
    %c0_61 = arith.constant 0 : index
    %126 = vector.load %arg20[%c0_59, %c0_60, %c0_61] : memref<1x1x32xf32, #tpu.memory_space<vmem>>, vector<1x1x32xf32>
    %127 = vector.shape_cast %126 : vector<1x1x32xf32> to vector<1x32xf32>
    %c0_62 = arith.constant 0 : index
    %c0_63 = arith.constant 0 : index
    %c0_64 = arith.constant 0 : index
    %128 = vector.load %arg21[%c0_62, %c0_63, %c0_64] : memref<1x1x32xf32, #tpu.memory_space<vmem>>, vector<1x1x32xf32>
    %129 = vector.shape_cast %128 : vector<1x1x32xf32> to vector<1x32xf32>
    %cst_65 = arith.constant dense<0.000000e+00> : vector<16xf32>
    %130 = vector.multi_reduction <add>, %125, %cst_65 [1] : vector<16x32xf32> to vector<16xf32>
    %131 = vector.shape_cast %130 : vector<16xf32> to vector<16x1xf32>
    %cst_66 = arith.constant 3.200000e+01 : f32
    %132 = vector.broadcast %cst_66 : f32 to vector<16x1xf32>
    %133 = arith.divf %131, %132 : vector<16x1xf32>
    %134 = vector.broadcast %133 : vector<16x1xf32> to vector<16x32xf32>
    %135 = arith.subf %125, %134 : vector<16x32xf32>
    %136 = arith.mulf %135, %135 : vector<16x32xf32>
    %cst_67 = arith.constant dense<0.000000e+00> : vector<16xf32>
    %137 = vector.multi_reduction <add>, %136, %cst_67 [1] : vector<16x32xf32> to vector<16xf32>
    %138 = vector.shape_cast %137 : vector<16xf32> to vector<16x1xf32>
    %cst_68 = arith.constant 3.200000e+01 : f32
    %139 = vector.broadcast %cst_68 : f32 to vector<16x1xf32>
    %140 = arith.divf %138, %139 : vector<16x1xf32>
    %141 = vector.broadcast %133 : vector<16x1xf32> to vector<16x32xf32>
    %142 = arith.subf %125, %141 : vector<16x32xf32>
    %cst_69 = arith.constant 9.99999974E-6 : f32
    %143 = vector.broadcast %cst_69 : f32 to vector<16x1xf32>
    %144 = arith.addf %140, %143 : vector<16x1xf32>
    %145 = math.rsqrt %144 : vector<16x1xf32>
    %146 = vector.broadcast %145 : vector<16x1xf32> to vector<16x32xf32>
    %147 = arith.mulf %142, %146 : vector<16x32xf32>
    %148 = vector.broadcast %127 : vector<1x32xf32> to vector<16x32xf32>
    %149 = arith.mulf %147, %148 : vector<16x32xf32>
    %150 = vector.broadcast %129 : vector<1x32xf32> to vector<16x32xf32>
    %151 = arith.addf %149, %150 : vector<16x32xf32>
    %c0_70 = arith.constant 0 : index
    %c0_71 = arith.constant 0 : index
    %c0_72 = arith.constant 0 : index
    %152 = vector.load %arg22[%c0_70, %c0_71, %c0_72] : memref<1x32x128xf32, #tpu.memory_space<vmem>>, vector<1x32x128xf32>
    %153 = vector.shape_cast %152 : vector<1x32x128xf32> to vector<32x128xf32>
    %cst_73 = arith.constant dense<0.000000e+00> : vector<16x128xf32>
    %154 = tpu.matmul %151, %153, %cst_73 {dimension_numbers = #tpu.dot_dimension_numbers<[1], [0], [0], [1], [0, 0, 1, 1], [], []>} : vector<16x32xf32>, vector<32x128xf32>, vector<16x128xf32> -> vector<16x128xf32>
    %c0_74 = arith.constant 0 : index
    %c0_75 = arith.constant 0 : index
    %c0_76 = arith.constant 0 : index
    %155 = vector.load %arg23[%c0_74, %c0_75, %c0_76] : memref<1x1x128xf32, #tpu.memory_space<vmem>>, vector<1x1x128xf32>
    %156 = vector.shape_cast %155 : vector<1x1x128xf32> to vector<1x128xf32>
    %157 = vector.broadcast %156 : vector<1x128xf32> to vector<16x128xf32>
    %158 = arith.addf %154, %157 : vector<16x128xf32>
    %159 = arith.mulf %158, %158 : vector<16x128xf32>
    %160 = arith.mulf %158, %159 : vector<16x128xf32>
    %cst_77 = arith.constant 4.471500e-02 : f32
    %161 = vector.broadcast %cst_77 : f32 to vector<16x128xf32>
    %162 = arith.mulf %161, %160 : vector<16x128xf32>
    %163 = arith.addf %158, %162 : vector<16x128xf32>
    %cst_78 = arith.constant 0.797884583 : f32
    %164 = vector.broadcast %cst_78 : f32 to vector<16x128xf32>
    %165 = arith.mulf %164, %163 : vector<16x128xf32>
    %166 = math.tanh %165 : vector<16x128xf32>
    %cst_79 = arith.constant 1.000000e+00 : f32
    %167 = vector.broadcast %cst_79 : f32 to vector<16x128xf32>
    %168 = arith.addf %167, %166 : vector<16x128xf32>
    %cst_80 = arith.constant 5.000000e-01 : f32
    %169 = vector.broadcast %cst_80 : f32 to vector<16x128xf32>
    %170 = arith.mulf %169, %168 : vector<16x128xf32>
    %171 = arith.mulf %158, %170 : vector<16x128xf32>
    %c0_81 = arith.constant 0 : index
    %c0_82 = arith.constant 0 : index
    %c0_83 = arith.constant 0 : index
    %172 = vector.load %arg24[%c0_81, %c0_82, %c0_83] : memref<1x128x32xf32, #tpu.memory_space<vmem>>, vector<1x128x32xf32>
    %173 = vector.shape_cast %172 : vector<1x128x32xf32> to vector<128x32xf32>
    %cst_84 = arith.constant dense<0.000000e+00> : vector<16x32xf32>
    %174 = tpu.matmul %171, %173, %cst_84 {dimension_numbers = #tpu.dot_dimension_numbers<[1], [0], [0], [1], [0, 0, 1, 1], [], []>} : vector<16x128xf32>, vector<128x32xf32>, vector<16x32xf32> -> vector<16x32xf32>
    %c0_85 = arith.constant 0 : index
    %c0_86 = arith.constant 0 : index
    %c0_87 = arith.constant 0 : index
    %175 = vector.load %arg25[%c0_85, %c0_86, %c0_87] : memref<1x1x32xf32, #tpu.memory_space<vmem>>, vector<1x1x32xf32>
    %176 = vector.shape_cast %175 : vector<1x1x32xf32> to vector<1x32xf32>
    %177 = vector.broadcast %176 : vector<1x32xf32> to vector<16x32xf32>
    %178 = arith.addf %174, %177 : vector<16x32xf32>
    %179 = arith.addf %125, %178 : vector<16x32xf32>
    %c0_88 = arith.constant 0 : index
    %c0_89 = arith.constant 0 : index
    %180 = vector.load %arg29[%c0_88, %c0_89] : memref<16x32xf32, #tpu.memory_space<vmem>>, vector<16x32xf32>
    tpu.vector_store %arg29[%c0_88, %c0_89], %179 {strides = array<i32>} : memref<16x32xf32, #tpu.memory_space<vmem>>, vector<16x32xf32>,
    %c1_i32 = arith.constant 1 : i32
    %181 = arith.cmpi eq, %arg0, %c1_i32 : i32
    %182 = arith.extui %181 : i1 to i32
    %c0_i32_90 = arith.constant 0 : i32
    %183 = arith.cmpi ne, %182, %c0_i32_90 : i32
    scf.if %183 {
      %c0_91 = arith.constant 0 : index
      %c0_92 = arith.constant 0 : index
      %184 = vector.load %arg26[%c0_91, %c0_92] : memref<1x32xf32, #tpu.memory_space<vmem>>, vector<1x32xf32>
      %c0_93 = arith.constant 0 : index
      %c0_94 = arith.constant 0 : index
      %185 = vector.load %arg27[%c0_93, %c0_94] : memref<1x32xf32, #tpu.memory_space<vmem>>, vector<1x32xf32>
      %cst_95 = arith.constant dense<0.000000e+00> : vector<16xf32>
      %186 = vector.multi_reduction <add>, %179, %cst_95 [1] : vector<16x32xf32> to vector<16xf32>
      %187 = vector.shape_cast %186 : vector<16xf32> to vector<16x1xf32>
      %cst_96 = arith.constant 3.200000e+01 : f32
      %188 = vector.broadcast %cst_96 : f32 to vector<16x1xf32>
      %189 = arith.divf %187, %188 : vector<16x1xf32>
      %190 = vector.broadcast %189 : vector<16x1xf32> to vector<16x32xf32>
      %191 = arith.subf %179, %190 : vector<16x32xf32>
      %192 = arith.mulf %191, %191 : vector<16x32xf32>
      %cst_97 = arith.constant dense<0.000000e+00> : vector<16xf32>
      %193 = vector.multi_reduction <add>, %192, %cst_97 [1] : vector<16x32xf32> to vector<16xf32>
      %194 = vector.shape_cast %193 : vector<16xf32> to vector<16x1xf32>
      %cst_98 = arith.constant 3.200000e+01 : f32
      %195 = vector.broadcast %cst_98 : f32 to vector<16x1xf32>
      %196 = arith.divf %194, %195 : vector<16x1xf32>
      %197 = vector.broadcast %189 : vector<16x1xf32> to vector<16x32xf32>
      %198 = arith.subf %179, %197 : vector<16x32xf32>
      %cst_99 = arith.constant 9.99999974E-6 : f32
      %199 = vector.broadcast %cst_99 : f32 to vector<16x1xf32>
      %200 = arith.addf %196, %199 : vector<16x1xf32>
      %201 = math.rsqrt %200 : vector<16x1xf32>
      %202 = vector.broadcast %201 : vector<16x1xf32> to vector<16x32xf32>
      %203 = arith.mulf %198, %202 : vector<16x32xf32>
      %204 = vector.broadcast %184 : vector<1x32xf32> to vector<16x32xf32>
      %205 = arith.mulf %203, %204 : vector<16x32xf32>
      %206 = vector.broadcast %185 : vector<1x32xf32> to vector<16x32xf32>
      %207 = arith.addf %205, %206 : vector<16x32xf32>
      %c0_100 = arith.constant 0 : index
      %c0_101 = arith.constant 0 : index
      %208 = vector.load %arg28[%c0_100, %c0_101] : memref<16x32xf32, #tpu.memory_space<vmem>>, vector<16x32xf32>
      tpu.vector_store %arg28[%c0_100, %c0_101], %207 {strides = array<i32>} : memref<16x32xf32, #tpu.memory_space<vmem>>, vector<16x32xf32>,
    } else {
    }
    return
  }
  func.func @transform_0(%arg0: i32) -> (i32, i32) {
    %c0_i32 = arith.constant 0 : i32
    %c0_i32_0 = arith.constant 0 : i32
    %c0_i32_1 = arith.constant 0 : i32
    return %c0_i32, %c0_i32_0 : i32, i32
  }
  func.func @transform_1(%arg0: i32) -> (i32, i32) {
    %c0_i32 = arith.constant 0 : i32
    %c0_i32_0 = arith.constant 0 : i32
    %c0_i32_1 = arith.constant 0 : i32
    return %c0_i32, %c0_i32_0 : i32, i32
  }
  func.func @transform_2(%arg0: i32) -> (i32, i32) {
    %c0_i32 = arith.constant 0 : i32
    %c0_i32_0 = arith.constant 0 : i32
    %c0_i32_1 = arith.constant 0 : i32
    return %c0_i32, %c0_i32_0 : i32, i32
  }
  func.func @transform_3(%arg0: i32) -> (i32, i32) {
    %c0_i32 = arith.constant 0 : i32
    %c0_i32_0 = arith.constant 0 : i32
    %c0_i32_1 = arith.constant 0 : i32
    return %c0_i32, %c0_i32_0 : i32, i32
  }
  func.func @transform_4(%arg0: i32) -> (i32, i32) {
    %c0_i32 = arith.constant 0 : i32
    %c0_i32_0 = arith.constant 0 : i32
    %c0_i32_1 = arith.constant 0 : i32
    return %c0_i32, %c0_i32_0 : i32, i32
  }
  func.func @transform_5(%arg0: i32) -> (i32, i32) {
    %c0_i32 = arith.constant 0 : i32
    %c0_i32_0 = arith.constant 0 : i32
    %c0_i32_1 = arith.constant 0 : i32
    return %c0_i32, %c0_i32_0 : i32, i32
  }
  func.func @transform_6(%arg0: i32) -> (i32, i32) {
    %c0_i32 = arith.constant 0 : i32
    %c0_i32_0 = arith.constant 0 : i32
    %c0_i32_1 = arith.constant 0 : i32
    return %c0_i32, %c0_i32_0 : i32, i32
  }
  func.func @transform_7(%arg0: i32) -> (i32, i32) {
    %c0_i32 = arith.constant 0 : i32
    %c0_i32_0 = arith.constant 0 : i32
    %c0_i32_1 = arith.constant 0 : i32
    return %c0_i32, %c0_i32_0 : i32, i32
  }
  func.func @transform_8(%arg0: i32) -> (i32, i32) {
    %c0_i32 = arith.constant 0 : i32
    %c0_i32_0 = arith.constant 0 : i32
    %c0_i32_1 = arith.constant 0 : i32
    return %c0_i32, %c0_i32_0 : i32, i32
  }
  func.func @transform_9(%arg0: i32) -> (i32, i32) {
    %c0_i32 = arith.constant 0 : i32
    %c0_i32_0 = arith.constant 0 : i32
    %c0_i32_1 = arith.constant 0 : i32
    return %c0_i32, %c0_i32_0 : i32, i32
  }
  func.func @transform_10(%arg0: i32) -> (i32, i32) {
    %c0_i32 = arith.constant 0 : i32
    %c0_i32_0 = arith.constant 0 : i32
    %c0_i32_1 = arith.constant 0 : i32
    return %c0_i32, %c0_i32_0 : i32, i32
  }
  func.func @transform_11(%arg0: i32) -> (i32, i32) {
    %c0_i32 = arith.constant 0 : i32
    %c0_i32_0 = arith.constant 0 : i32
    %c0_i32_1 = arith.constant 0 : i32
    return %c0_i32, %c0_i32_0 : i32, i32
  }
  func.func @transform_12(%arg0: i32) -> (i32, i32) {
    %c0_i32 = arith.constant 0 : i32
    %c0_i32_0 = arith.constant 0 : i32
    %c0_i32_1 = arith.constant 0 : i32
    return %c0_i32, %c0_i32_0 : i32, i32
  }
  func.func @transform_13(%arg0: i32) -> (i32, i32, i32) {
    %c0_i32 = arith.constant 0 : i32
    %c0_i32_0 = arith.constant 0 : i32
    %c0_i32_1 = arith.constant 0 : i32
    return %arg0, %c0_i32, %c0_i32_0 : i32, i32, i32
  }
  func.func @transform_14(%arg0: i32) -> (i32, i32, i32) {
    %c0_i32 = arith.constant 0 : i32
    %c0_i32_0 = arith.constant 0 : i32
    %c0_i32_1 = arith.constant 0 : i32
    return %arg0, %c0_i32, %c0_i32_0 : i32, i32, i32
  }
  func.func @transform_15(%arg0: i32) -> (i32, i32, i32) {
    %c0_i32 = arith.constant 0 : i32
    %c0_i32_0 = arith.constant 0 : i32
    %c0_i32_1 = arith.constant 0 : i32
    return %arg0, %c0_i32, %c0_i32_0 : i32, i32, i32
  }
  func.func @transform_16(%arg0: i32) -> (i32, i32, i32) {
    %c0_i32 = arith.constant 0 : i32
    %c0_i32_0 = arith.constant 0 : i32
    %c0_i32_1 = arith.constant 0 : i32
    return %arg0, %c0_i32, %c0_i32_0 : i32, i32, i32
  }
  func.func @transform_17(%arg0: i32) -> (i32, i32, i32) {
    %c0_i32 = arith.constant 0 : i32
    %c0_i32_0 = arith.constant 0 : i32
    %c0_i32_1 = arith.constant 0 : i32
    return %arg0, %c0_i32, %c0_i32_0 : i32, i32, i32
  }
  func.func @transform_18(%arg0: i32) -> (i32, i32, i32) {
    %c0_i32 = arith.constant 0 : i32
    %c0_i32_0 = arith.constant 0 : i32
    %c0_i32_1 = arith.constant 0 : i32
    return %arg0, %c0_i32, %c0_i32_0 : i32, i32, i32
  }
  func.func @transform_19(%arg0: i32) -> (i32, i32, i32) {
    %c0_i32 = arith.constant 0 : i32
    %c0_i32_0 = arith.constant 0 : i32
    %c0_i32_1 = arith.constant 0 : i32
    return %arg0, %c0_i32, %c0_i32_0 : i32, i32, i32
  }
  func.func @transform_20(%arg0: i32) -> (i32, i32, i32) {
    %c0_i32 = arith.constant 0 : i32
    %c0_i32_0 = arith.constant 0 : i32
    %c0_i32_1 = arith.constant 0 : i32
    return %arg0, %c0_i32, %c0_i32_0 : i32, i32, i32
  }
  func.func @transform_21(%arg0: i32) -> (i32, i32, i32) {
    %c0_i32 = arith.constant 0 : i32
    %c0_i32_0 = arith.constant 0 : i32
    %c0_i32_1 = arith.constant 0 : i32
    return %arg0, %c0_i32, %c0_i32_0 : i32, i32, i32
  }
  func.func @transform_22(%arg0: i32) -> (i32, i32, i32) {
    %c0_i32 = arith.constant 0 : i32
    %c0_i32_0 = arith.constant 0 : i32
    %c0_i32_1 = arith.constant 0 : i32
    return %arg0, %c0_i32, %c0_i32_0 : i32, i32, i32
  }
  func.func @transform_23(%arg0: i32) -> (i32, i32, i32) {
    %c0_i32 = arith.constant 0 : i32
    %c0_i32_0 = arith.constant 0 : i32
    %c0_i32_1 = arith.constant 0 : i32
    return %arg0, %c0_i32, %c0_i32_0 : i32, i32, i32
  }
  func.func @transform_24(%arg0: i32) -> (i32, i32, i32) {
    %c0_i32 = arith.constant 0 : i32
    %c0_i32_0 = arith.constant 0 : i32
    %c0_i32_1 = arith.constant 0 : i32
    return %arg0, %c0_i32, %c0_i32_0 : i32, i32, i32
  }
  func.func @transform_25(%arg0: i32) -> (i32, i32) {
    %c0_i32 = arith.constant 0 : i32
    %c0_i32_0 = arith.constant 0 : i32
    %c0_i32_1 = arith.constant 0 : i32
    return %c0_i32, %c0_i32_0 : i32, i32
  }
  func.func @transform_26(%arg0: i32) -> (i32, i32) {
    %c0_i32 = arith.constant 0 : i32
    %c0_i32_0 = arith.constant 0 : i32
    %c0_i32_1 = arith.constant 0 : i32
    return %c0_i32, %c0_i32_0 : i32, i32
  }
  func.func @transform_27(%arg0: i32) -> (i32, i32) {
    %c0_i32 = arith.constant 0 : i32
    %c0_i32_0 = arith.constant 0 : i32
    %c0_i32_1 = arith.constant 0 : i32
    return %c0_i32, %c0_i32_0 : i32, i32
  }
}

module attributes {stable_mosaic.version = 11 : i64} {
  func.func @_decoder_kernel(%arg0: i32, %arg1: memref<16x32xf32, #tpu.memory_space<vmem>>, %arg2: memref<16x16xf32, #tpu.memory_space<vmem>>, %arg3: memref<16x1xi32, #tpu.memory_space<vmem>>, %arg4: memref<1x16xi32, #tpu.memory_space<vmem>>, %arg5: memref<32x16xf32, #tpu.memory_space<vmem>>, %arg6: memref<1x16xf32, #tpu.memory_space<vmem>>, %arg7: memref<1x16x48xf32, #tpu.memory_space<vmem>>, %arg8: memref<1x1x48xf32, #tpu.memory_space<vmem>>, %arg9: memref<1x16x16xf32, #tpu.memory_space<vmem>>, %arg10: memref<1x1x16xf32, #tpu.memory_space<vmem>>, %arg11: memref<1x1x16xf32, #tpu.memory_space<vmem>>, %arg12: memref<1x1x16xf32, #tpu.memory_space<vmem>>, %arg13: memref<1x1x16xf32, #tpu.memory_space<vmem>>, %arg14: memref<1x1x16xf32, #tpu.memory_space<vmem>>, %arg15: memref<1x16x64xf32, #tpu.memory_space<vmem>>, %arg16: memref<1x1x64xf32, #tpu.memory_space<vmem>>, %arg17: memref<1x64x16xf32, #tpu.memory_space<vmem>>, %arg18: memref<1x1x16xf32, #tpu.memory_space<vmem>>, %arg19: memref<1x16xf32, #tpu.memory_space<vmem>>, %arg20: memref<1x16xf32, #tpu.memory_space<vmem>>, %arg21: memref<16x16xf32, #tpu.memory_space<vmem>>, %arg22: memref<1x16xf32, #tpu.memory_space<vmem>>, %arg23: memref<1x16xf32, #tpu.memory_space<vmem>>, %arg24: memref<1x1xf32, #tpu.memory_space<vmem>>, %arg25: memref<16x16xf32, #tpu.memory_space<vmem>>, %arg26: memref<16x1xf32, #tpu.memory_space<vmem>>, %arg27: memref<16x16xf32, #tpu.memory_space<vmem>>, %arg28: memref<16x16xf32, #tpu.memory_space<vmem>>) attributes {dimension_semantics = [#tpu.dimension_semantics<arbitrary>], iteration_bounds = array<i64: 2>, scalar_prefetch = 0 : i64, scratch_operands = 2 : i64, tpu.core_type = #tpu.core_type<tc>, window_params = [{pipeline_mode = #tpu.pipeline_mode<synchronous>, transform_indices = @transform_0, window_bounds = array<i64: 16, 32>}, {pipeline_mode = #tpu.pipeline_mode<synchronous>, transform_indices = @transform_1, window_bounds = array<i64: 16, 16>}, {pipeline_mode = #tpu.pipeline_mode<synchronous>, transform_indices = @transform_2, window_bounds = array<i64: 16, 1>}, {pipeline_mode = #tpu.pipeline_mode<synchronous>, transform_indices = @transform_3, window_bounds = array<i64: 1, 16>}, {pipeline_mode = #tpu.pipeline_mode<synchronous>, transform_indices = @transform_4, window_bounds = array<i64: 32, 16>}, {pipeline_mode = #tpu.pipeline_mode<synchronous>, transform_indices = @transform_5, window_bounds = array<i64: 1, 16>}, {transform_indices = @transform_6, window_bounds = array<i64: 1, 16, 48>}, {transform_indices = @transform_7, window_bounds = array<i64: 1, 1, 48>}, {transform_indices = @transform_8, window_bounds = array<i64: 1, 16, 16>}, {transform_indices = @transform_9, window_bounds = array<i64: 1, 1, 16>}, {transform_indices = @transform_10, window_bounds = array<i64: 1, 1, 16>}, {transform_indices = @transform_11, window_bounds = array<i64: 1, 1, 16>}, {transform_indices = @transform_12, window_bounds = array<i64: 1, 1, 16>}, {transform_indices = @transform_13, window_bounds = array<i64: 1, 1, 16>}, {transform_indices = @transform_14, window_bounds = array<i64: 1, 16, 64>}, {transform_indices = @transform_15, window_bounds = array<i64: 1, 1, 64>}, {transform_indices = @transform_16, window_bounds = array<i64: 1, 64, 16>}, {transform_indices = @transform_17, window_bounds = array<i64: 1, 1, 16>}, {pipeline_mode = #tpu.pipeline_mode<synchronous>, transform_indices = @transform_18, window_bounds = array<i64: 1, 16>}, {pipeline_mode = #tpu.pipeline_mode<synchronous>, transform_indices = @transform_19, window_bounds = array<i64: 1, 16>}, {pipeline_mode = #tpu.pipeline_mode<synchronous>, transform_indices = @transform_20, window_bounds = array<i64: 16, 16>}, {pipeline_mode = #tpu.pipeline_mode<synchronous>, transform_indices = @transform_21, window_bounds = array<i64: 1, 16>}, {pipeline_mode = #tpu.pipeline_mode<synchronous>, transform_indices = @transform_22, window_bounds = array<i64: 1, 16>}, {pipeline_mode = #tpu.pipeline_mode<synchronous>, transform_indices = @transform_23, window_bounds = array<i64: 1, 1>}, {pipeline_mode = #tpu.pipeline_mode<synchronous>, transform_indices = @transform_24, window_bounds = array<i64: 16, 16>}, {pipeline_mode = #tpu.pipeline_mode<synchronous>, transform_indices = @transform_25, window_bounds = array<i64: 16, 1>}]} {
    %c0_i32 = arith.constant 0 : i32
    %0 = arith.cmpi eq, %arg0, %c0_i32 : i32
    %1 = arith.extui %0 : i1 to i32
    %c0_i32_0 = arith.constant 0 : i32
    %2 = arith.cmpi ne, %1, %c0_i32_0 : i32
    scf.if %2 {
      %c0_91 = arith.constant 0 : index
      %c0_92 = arith.constant 0 : index
      %184 = vector.load %arg1[%c0_91, %c0_92] : memref<16x32xf32, #tpu.memory_space<vmem>>, vector<16x32xf32>
      %c0_93 = arith.constant 0 : index
      %c0_94 = arith.constant 0 : index
      %185 = vector.load %arg5[%c0_93, %c0_94] : memref<32x16xf32, #tpu.memory_space<vmem>>, vector<32x16xf32>
      %cst_95 = arith.constant dense<0.000000e+00> : vector<16x16xf32>
      %186 = tpu.matmul %184, %185, %cst_95 {dimension_numbers = #tpu.dot_dimension_numbers<[1], [0], [0], [1], [0, 0, 1, 1], [], []>} : vector<16x32xf32>, vector<32x16xf32>, vector<16x16xf32> -> vector<16x16xf32>
      %c0_96 = arith.constant 0 : index
      %c0_97 = arith.constant 0 : index
      %187 = vector.load %arg6[%c0_96, %c0_97] : memref<1x16xf32, #tpu.memory_space<vmem>>, vector<1x16xf32>
      %188 = vector.broadcast %187 : vector<1x16xf32> to vector<16x16xf32>
      %189 = arith.addf %186, %188 : vector<16x16xf32>
      %cst_98 = arith.constant 0.000000e+00 : f32
      %190 = vector.broadcast %cst_98 : f32 to vector<16x16xf32>
      %191 = arith.maximumf %189, %190 : vector<16x16xf32>
      %c0_99 = arith.constant 0 : index
      %c0_100 = arith.constant 0 : index
      %192 = vector.load %arg2[%c0_99, %c0_100] : memref<16x16xf32, #tpu.memory_space<vmem>>, vector<16x16xf32>
      %193 = arith.addf %191, %192 : vector<16x16xf32>
      %c0_101 = arith.constant 0 : index
      %c0_102 = arith.constant 0 : index
      %194 = vector.load %arg27[%c0_101, %c0_102] : memref<16x16xf32, #tpu.memory_space<vmem>>, vector<16x16xf32>
      tpu.vector_store %arg27[%c0_101, %c0_102], %193 {strides = array<i32>} : memref<16x16xf32, #tpu.memory_space<vmem>>, vector<16x16xf32>,
    } else {
    }
    %c0 = arith.constant 0 : index
    %c0_1 = arith.constant 0 : index
    %3 = vector.load %arg3[%c0, %c0_1] : memref<16x1xi32, #tpu.memory_space<vmem>>, vector<16x1xi32>
    %c0_2 = arith.constant 0 : index
    %c0_3 = arith.constant 0 : index
    %4 = vector.load %arg4[%c0_2, %c0_3] : memref<1x16xi32, #tpu.memory_space<vmem>>, vector<1x16xi32>
    %5 = vector.broadcast %3 : vector<16x1xi32> to vector<16x16xi32>
    %6 = vector.broadcast %4 : vector<1x16xi32> to vector<16x16xi32>
    %7 = arith.cmpi eq, %5, %6 : vector<16x16xi32>
    %cst = arith.constant 0.000000e+00 : f32
    %cst_4 = arith.constant -1.000000e+30 : f32
    %8 = vector.broadcast %cst : f32 to vector<16x16xf32>
    %9 = vector.broadcast %cst_4 : f32 to vector<16x16xf32>
    %10 = arith.select %7, %8, %9 : vector<16x16xi1>, vector<16x16xf32>
    %c0_5 = arith.constant 0 : index
    %c0_6 = arith.constant 0 : index
    %11 = vector.load %arg27[%c0_5, %c0_6] : memref<16x16xf32, #tpu.memory_space<vmem>>, vector<16x16xf32>
    %c0_7 = arith.constant 0 : index
    %c0_8 = arith.constant 0 : index
    %c0_9 = arith.constant 0 : index
    %12 = vector.load %arg11[%c0_7, %c0_8, %c0_9] : memref<1x1x16xf32, #tpu.memory_space<vmem>>, vector<1x1x16xf32>
    %13 = vector.shape_cast %12 : vector<1x1x16xf32> to vector<1x16xf32>
    %c0_10 = arith.constant 0 : index
    %c0_11 = arith.constant 0 : index
    %c0_12 = arith.constant 0 : index
    %14 = vector.load %arg12[%c0_10, %c0_11, %c0_12] : memref<1x1x16xf32, #tpu.memory_space<vmem>>, vector<1x1x16xf32>
    %15 = vector.shape_cast %14 : vector<1x1x16xf32> to vector<1x16xf32>
    %cst_13 = arith.constant dense<0.000000e+00> : vector<16xf32>
    %16 = vector.multi_reduction <add>, %11, %cst_13 [1] : vector<16x16xf32> to vector<16xf32>
    %17 = vector.shape_cast %16 : vector<16xf32> to vector<16x1xf32>
    %cst_14 = arith.constant 1.600000e+01 : f32
    %18 = vector.broadcast %cst_14 : f32 to vector<16x1xf32>
    %19 = arith.divf %17, %18 : vector<16x1xf32>
    %20 = vector.broadcast %19 : vector<16x1xf32> to vector<16x16xf32>
    %21 = arith.subf %11, %20 : vector<16x16xf32>
    %22 = arith.mulf %21, %21 : vector<16x16xf32>
    %cst_15 = arith.constant dense<0.000000e+00> : vector<16xf32>
    %23 = vector.multi_reduction <add>, %22, %cst_15 [1] : vector<16x16xf32> to vector<16xf32>
    %24 = vector.shape_cast %23 : vector<16xf32> to vector<16x1xf32>
    %cst_16 = arith.constant 1.600000e+01 : f32
    %25 = vector.broadcast %cst_16 : f32 to vector<16x1xf32>
    %26 = arith.divf %24, %25 : vector<16x1xf32>
    %27 = vector.broadcast %19 : vector<16x1xf32> to vector<16x16xf32>
    %28 = arith.subf %11, %27 : vector<16x16xf32>
    %cst_17 = arith.constant 9.99999974E-6 : f32
    %29 = vector.broadcast %cst_17 : f32 to vector<16x1xf32>
    %30 = arith.addf %26, %29 : vector<16x1xf32>
    %31 = math.rsqrt %30 : vector<16x1xf32>
    %32 = vector.broadcast %31 : vector<16x1xf32> to vector<16x16xf32>
    %33 = arith.mulf %28, %32 : vector<16x16xf32>
    %34 = vector.broadcast %13 : vector<1x16xf32> to vector<16x16xf32>
    %35 = arith.mulf %33, %34 : vector<16x16xf32>
    %36 = vector.broadcast %15 : vector<1x16xf32> to vector<16x16xf32>
    %37 = arith.addf %35, %36 : vector<16x16xf32>
    %c0_18 = arith.constant 0 : index
    %c0_19 = arith.constant 0 : index
    %c0_20 = arith.constant 0 : index
    %38 = vector.load %arg7[%c0_18, %c0_19, %c0_20] : memref<1x16x48xf32, #tpu.memory_space<vmem>>, vector<1x16x48xf32>
    %39 = vector.shape_cast %38 : vector<1x16x48xf32> to vector<16x48xf32>
    %cst_21 = arith.constant dense<0.000000e+00> : vector<16x48xf32>
    %40 = tpu.matmul %37, %39, %cst_21 {dimension_numbers = #tpu.dot_dimension_numbers<[1], [0], [0], [1], [0, 0, 1, 1], [], []>} : vector<16x16xf32>, vector<16x48xf32>, vector<16x48xf32> -> vector<16x48xf32>
    %c0_22 = arith.constant 0 : index
    %c0_23 = arith.constant 0 : index
    %c0_24 = arith.constant 0 : index
    %41 = vector.load %arg8[%c0_22, %c0_23, %c0_24] : memref<1x1x48xf32, #tpu.memory_space<vmem>>, vector<1x1x48xf32>
    %42 = vector.shape_cast %41 : vector<1x1x48xf32> to vector<1x48xf32>
    %43 = vector.broadcast %42 : vector<1x48xf32> to vector<16x48xf32>
    %44 = arith.addf %40, %43 : vector<16x48xf32>
    %45 = vector.extract_strided_slice %44 {offsets = [0, 0], sizes = [16, 4], strides = [1, 1]} : vector<16x48xf32> to vector<16x4xf32>
    %46 = vector.extract_strided_slice %44 {offsets = [0, 16], sizes = [16, 4], strides = [1, 1]} : vector<16x48xf32> to vector<16x4xf32>
    %47 = vector.extract_strided_slice %44 {offsets = [0, 32], sizes = [16, 4], strides = [1, 1]} : vector<16x48xf32> to vector<16x4xf32>
    %cst_25 = arith.constant dense<0.000000e+00> : vector<16x16xf32>
    %48 = tpu.matmul %45, %46, %cst_25 {dimension_numbers = #tpu.dot_dimension_numbers<[1], [1], [0], [0], [0, 0, 1, 0], [], []>} : vector<16x4xf32>, vector<16x4xf32>, vector<16x16xf32> -> vector<16x16xf32>
    %cst_26 = arith.constant 5.000000e-01 : f32
    %49 = vector.broadcast %cst_26 : f32 to vector<16x16xf32>
    %50 = arith.mulf %48, %49 : vector<16x16xf32>
    %51 = arith.addf %50, %10 : vector<16x16xf32>
    %cst_27 = arith.constant dense<0xFF800000> : vector<16xf32>
    %52 = vector.multi_reduction <maximumf>, %51, %cst_27 [1] : vector<16x16xf32> to vector<16xf32>
    %53 = vector.shape_cast %52 : vector<16xf32> to vector<16x1xf32>
    %54 = vector.broadcast %53 : vector<16x1xf32> to vector<16x16xf32>
    %55 = arith.subf %51, %54 : vector<16x16xf32>
    %56 = math.exp %55 : vector<16x16xf32>
    %cst_28 = arith.constant dense<0.000000e+00> : vector<16xf32>
    %57 = vector.multi_reduction <add>, %56, %cst_28 [1] : vector<16x16xf32> to vector<16xf32>
    %58 = vector.shape_cast %57 : vector<16xf32> to vector<16x1xf32>
    %59 = vector.broadcast %58 : vector<16x1xf32> to vector<16x16xf32>
    %60 = arith.divf %56, %59 : vector<16x16xf32>
    %cst_29 = arith.constant dense<0.000000e+00> : vector<16x4xf32>
    %61 = tpu.matmul %60, %47, %cst_29 {dimension_numbers = #tpu.dot_dimension_numbers<[1], [0], [0], [1], [0, 0, 1, 1], [], []>} : vector<16x16xf32>, vector<16x4xf32>, vector<16x4xf32> -> vector<16x4xf32>
    %c0_30 = arith.constant 0 : index
    %c0_31 = arith.constant 0 : index
    %62 = vector.load %arg28[%c0_30, %c0_31] : memref<16x16xf32, #tpu.memory_space<vmem>>, vector<16x4xf32>
    tpu.vector_store %arg28[%c0_30, %c0_31], %61 {strides = array<i32>} : memref<16x16xf32, #tpu.memory_space<vmem>>, vector<16x4xf32>,
    %63 = vector.extract_strided_slice %44 {offsets = [0, 4], sizes = [16, 4], strides = [1, 1]} : vector<16x48xf32> to vector<16x4xf32>
    %64 = vector.extract_strided_slice %44 {offsets = [0, 20], sizes = [16, 4], strides = [1, 1]} : vector<16x48xf32> to vector<16x4xf32>
    %65 = vector.extract_strided_slice %44 {offsets = [0, 36], sizes = [16, 4], strides = [1, 1]} : vector<16x48xf32> to vector<16x4xf32>
    %cst_32 = arith.constant dense<0.000000e+00> : vector<16x16xf32>
    %66 = tpu.matmul %63, %64, %cst_32 {dimension_numbers = #tpu.dot_dimension_numbers<[1], [1], [0], [0], [0, 0, 1, 0], [], []>} : vector<16x4xf32>, vector<16x4xf32>, vector<16x16xf32> -> vector<16x16xf32>
    %cst_33 = arith.constant 5.000000e-01 : f32
    %67 = vector.broadcast %cst_33 : f32 to vector<16x16xf32>
    %68 = arith.mulf %66, %67 : vector<16x16xf32>
    %69 = arith.addf %68, %10 : vector<16x16xf32>
    %cst_34 = arith.constant dense<0xFF800000> : vector<16xf32>
    %70 = vector.multi_reduction <maximumf>, %69, %cst_34 [1] : vector<16x16xf32> to vector<16xf32>
    %71 = vector.shape_cast %70 : vector<16xf32> to vector<16x1xf32>
    %72 = vector.broadcast %71 : vector<16x1xf32> to vector<16x16xf32>
    %73 = arith.subf %69, %72 : vector<16x16xf32>
    %74 = math.exp %73 : vector<16x16xf32>
    %cst_35 = arith.constant dense<0.000000e+00> : vector<16xf32>
    %75 = vector.multi_reduction <add>, %74, %cst_35 [1] : vector<16x16xf32> to vector<16xf32>
    %76 = vector.shape_cast %75 : vector<16xf32> to vector<16x1xf32>
    %77 = vector.broadcast %76 : vector<16x1xf32> to vector<16x16xf32>
    %78 = arith.divf %74, %77 : vector<16x16xf32>
    %cst_36 = arith.constant dense<0.000000e+00> : vector<16x4xf32>
    %79 = tpu.matmul %78, %65, %cst_36 {dimension_numbers = #tpu.dot_dimension_numbers<[1], [0], [0], [1], [0, 0, 1, 1], [], []>} : vector<16x16xf32>, vector<16x4xf32>, vector<16x4xf32> -> vector<16x4xf32>
    %c0_37 = arith.constant 0 : index
    %c4 = arith.constant 4 : index
    %80 = vector.load %arg28[%c0_37, %c4] : memref<16x16xf32, #tpu.memory_space<vmem>>, vector<16x4xf32>
    tpu.vector_store %arg28[%c0_37, %c4], %79 {strides = array<i32>} : memref<16x16xf32, #tpu.memory_space<vmem>>, vector<16x4xf32>,
    %81 = vector.extract_strided_slice %44 {offsets = [0, 8], sizes = [16, 4], strides = [1, 1]} : vector<16x48xf32> to vector<16x4xf32>
    %82 = vector.extract_strided_slice %44 {offsets = [0, 24], sizes = [16, 4], strides = [1, 1]} : vector<16x48xf32> to vector<16x4xf32>
    %83 = vector.extract_strided_slice %44 {offsets = [0, 40], sizes = [16, 4], strides = [1, 1]} : vector<16x48xf32> to vector<16x4xf32>
    %cst_38 = arith.constant dense<0.000000e+00> : vector<16x16xf32>
    %84 = tpu.matmul %81, %82, %cst_38 {dimension_numbers = #tpu.dot_dimension_numbers<[1], [1], [0], [0], [0, 0, 1, 0], [], []>} : vector<16x4xf32>, vector<16x4xf32>, vector<16x16xf32> -> vector<16x16xf32>
    %cst_39 = arith.constant 5.000000e-01 : f32
    %85 = vector.broadcast %cst_39 : f32 to vector<16x16xf32>
    %86 = arith.mulf %84, %85 : vector<16x16xf32>
    %87 = arith.addf %86, %10 : vector<16x16xf32>
    %cst_40 = arith.constant dense<0xFF800000> : vector<16xf32>
    %88 = vector.multi_reduction <maximumf>, %87, %cst_40 [1] : vector<16x16xf32> to vector<16xf32>
    %89 = vector.shape_cast %88 : vector<16xf32> to vector<16x1xf32>
    %90 = vector.broadcast %89 : vector<16x1xf32> to vector<16x16xf32>
    %91 = arith.subf %87, %90 : vector<16x16xf32>
    %92 = math.exp %91 : vector<16x16xf32>
    %cst_41 = arith.constant dense<0.000000e+00> : vector<16xf32>
    %93 = vector.multi_reduction <add>, %92, %cst_41 [1] : vector<16x16xf32> to vector<16xf32>
    %94 = vector.shape_cast %93 : vector<16xf32> to vector<16x1xf32>
    %95 = vector.broadcast %94 : vector<16x1xf32> to vector<16x16xf32>
    %96 = arith.divf %92, %95 : vector<16x16xf32>
    %cst_42 = arith.constant dense<0.000000e+00> : vector<16x4xf32>
    %97 = tpu.matmul %96, %83, %cst_42 {dimension_numbers = #tpu.dot_dimension_numbers<[1], [0], [0], [1], [0, 0, 1, 1], [], []>} : vector<16x16xf32>, vector<16x4xf32>, vector<16x4xf32> -> vector<16x4xf32>
    %c0_43 = arith.constant 0 : index
    %c8 = arith.constant 8 : index
    %98 = vector.load %arg28[%c0_43, %c8] : memref<16x16xf32, #tpu.memory_space<vmem>>, vector<16x4xf32>
    tpu.vector_store %arg28[%c0_43, %c8], %97 {strides = array<i32>} : memref<16x16xf32, #tpu.memory_space<vmem>>, vector<16x4xf32>,
    %99 = vector.extract_strided_slice %44 {offsets = [0, 12], sizes = [16, 4], strides = [1, 1]} : vector<16x48xf32> to vector<16x4xf32>
    %100 = vector.extract_strided_slice %44 {offsets = [0, 28], sizes = [16, 4], strides = [1, 1]} : vector<16x48xf32> to vector<16x4xf32>
    %101 = vector.extract_strided_slice %44 {offsets = [0, 44], sizes = [16, 4], strides = [1, 1]} : vector<16x48xf32> to vector<16x4xf32>
    %cst_44 = arith.constant dense<0.000000e+00> : vector<16x16xf32>
    %102 = tpu.matmul %99, %100, %cst_44 {dimension_numbers = #tpu.dot_dimension_numbers<[1], [1], [0], [0], [0, 0, 1, 0], [], []>} : vector<16x4xf32>, vector<16x4xf32>, vector<16x16xf32> -> vector<16x16xf32>
    %cst_45 = arith.constant 5.000000e-01 : f32
    %103 = vector.broadcast %cst_45 : f32 to vector<16x16xf32>
    %104 = arith.mulf %102, %103 : vector<16x16xf32>
    %105 = arith.addf %104, %10 : vector<16x16xf32>
    %cst_46 = arith.constant dense<0xFF800000> : vector<16xf32>
    %106 = vector.multi_reduction <maximumf>, %105, %cst_46 [1] : vector<16x16xf32> to vector<16xf32>
    %107 = vector.shape_cast %106 : vector<16xf32> to vector<16x1xf32>
    %108 = vector.broadcast %107 : vector<16x1xf32> to vector<16x16xf32>
    %109 = arith.subf %105, %108 : vector<16x16xf32>
    %110 = math.exp %109 : vector<16x16xf32>
    %cst_47 = arith.constant dense<0.000000e+00> : vector<16xf32>
    %111 = vector.multi_reduction <add>, %110, %cst_47 [1] : vector<16x16xf32> to vector<16xf32>
    %112 = vector.shape_cast %111 : vector<16xf32> to vector<16x1xf32>
    %113 = vector.broadcast %112 : vector<16x1xf32> to vector<16x16xf32>
    %114 = arith.divf %110, %113 : vector<16x16xf32>
    %cst_48 = arith.constant dense<0.000000e+00> : vector<16x4xf32>
    %115 = tpu.matmul %114, %101, %cst_48 {dimension_numbers = #tpu.dot_dimension_numbers<[1], [0], [0], [1], [0, 0, 1, 1], [], []>} : vector<16x16xf32>, vector<16x4xf32>, vector<16x4xf32> -> vector<16x4xf32>
    %c0_49 = arith.constant 0 : index
    %c12 = arith.constant 12 : index
    %116 = vector.load %arg28[%c0_49, %c12] : memref<16x16xf32, #tpu.memory_space<vmem>>, vector<16x4xf32>
    tpu.vector_store %arg28[%c0_49, %c12], %115 {strides = array<i32>} : memref<16x16xf32, #tpu.memory_space<vmem>>, vector<16x4xf32>,
    %c0_50 = arith.constant 0 : index
    %c0_51 = arith.constant 0 : index
    %117 = vector.load %arg28[%c0_50, %c0_51] : memref<16x16xf32, #tpu.memory_space<vmem>>, vector<16x16xf32>
    %c0_52 = arith.constant 0 : index
    %c0_53 = arith.constant 0 : index
    %c0_54 = arith.constant 0 : index
    %118 = vector.load %arg9[%c0_52, %c0_53, %c0_54] : memref<1x16x16xf32, #tpu.memory_space<vmem>>, vector<1x16x16xf32>
    %119 = vector.shape_cast %118 : vector<1x16x16xf32> to vector<16x16xf32>
    %cst_55 = arith.constant dense<0.000000e+00> : vector<16x16xf32>
    %120 = tpu.matmul %117, %119, %cst_55 {dimension_numbers = #tpu.dot_dimension_numbers<[1], [0], [0], [1], [0, 0, 1, 1], [], []>} : vector<16x16xf32>, vector<16x16xf32>, vector<16x16xf32> -> vector<16x16xf32>
    %121 = arith.addf %11, %120 : vector<16x16xf32>
    %c0_56 = arith.constant 0 : index
    %c0_57 = arith.constant 0 : index
    %c0_58 = arith.constant 0 : index
    %122 = vector.load %arg10[%c0_56, %c0_57, %c0_58] : memref<1x1x16xf32, #tpu.memory_space<vmem>>, vector<1x1x16xf32>
    %123 = vector.shape_cast %122 : vector<1x1x16xf32> to vector<1x16xf32>
    %124 = vector.broadcast %123 : vector<1x16xf32> to vector<16x16xf32>
    %125 = arith.addf %121, %124 : vector<16x16xf32>
    %c0_59 = arith.constant 0 : index
    %c0_60 = arith.constant 0 : index
    %c0_61 = arith.constant 0 : index
    %126 = vector.load %arg13[%c0_59, %c0_60, %c0_61] : memref<1x1x16xf32, #tpu.memory_space<vmem>>, vector<1x1x16xf32>
    %127 = vector.shape_cast %126 : vector<1x1x16xf32> to vector<1x16xf32>
    %c0_62 = arith.constant 0 : index
    %c0_63 = arith.constant 0 : index
    %c0_64 = arith.constant 0 : index
    %128 = vector.load %arg14[%c0_62, %c0_63, %c0_64] : memref<1x1x16xf32, #tpu.memory_space<vmem>>, vector<1x1x16xf32>
    %129 = vector.shape_cast %128 : vector<1x1x16xf32> to vector<1x16xf32>
    %cst_65 = arith.constant dense<0.000000e+00> : vector<16xf32>
    %130 = vector.multi_reduction <add>, %125, %cst_65 [1] : vector<16x16xf32> to vector<16xf32>
    %131 = vector.shape_cast %130 : vector<16xf32> to vector<16x1xf32>
    %cst_66 = arith.constant 1.600000e+01 : f32
    %132 = vector.broadcast %cst_66 : f32 to vector<16x1xf32>
    %133 = arith.divf %131, %132 : vector<16x1xf32>
    %134 = vector.broadcast %133 : vector<16x1xf32> to vector<16x16xf32>
    %135 = arith.subf %125, %134 : vector<16x16xf32>
    %136 = arith.mulf %135, %135 : vector<16x16xf32>
    %cst_67 = arith.constant dense<0.000000e+00> : vector<16xf32>
    %137 = vector.multi_reduction <add>, %136, %cst_67 [1] : vector<16x16xf32> to vector<16xf32>
    %138 = vector.shape_cast %137 : vector<16xf32> to vector<16x1xf32>
    %cst_68 = arith.constant 1.600000e+01 : f32
    %139 = vector.broadcast %cst_68 : f32 to vector<16x1xf32>
    %140 = arith.divf %138, %139 : vector<16x1xf32>
    %141 = vector.broadcast %133 : vector<16x1xf32> to vector<16x16xf32>
    %142 = arith.subf %125, %141 : vector<16x16xf32>
    %cst_69 = arith.constant 9.99999974E-6 : f32
    %143 = vector.broadcast %cst_69 : f32 to vector<16x1xf32>
    %144 = arith.addf %140, %143 : vector<16x1xf32>
    %145 = math.rsqrt %144 : vector<16x1xf32>
    %146 = vector.broadcast %145 : vector<16x1xf32> to vector<16x16xf32>
    %147 = arith.mulf %142, %146 : vector<16x16xf32>
    %148 = vector.broadcast %127 : vector<1x16xf32> to vector<16x16xf32>
    %149 = arith.mulf %147, %148 : vector<16x16xf32>
    %150 = vector.broadcast %129 : vector<1x16xf32> to vector<16x16xf32>
    %151 = arith.addf %149, %150 : vector<16x16xf32>
    %c0_70 = arith.constant 0 : index
    %c0_71 = arith.constant 0 : index
    %c0_72 = arith.constant 0 : index
    %152 = vector.load %arg15[%c0_70, %c0_71, %c0_72] : memref<1x16x64xf32, #tpu.memory_space<vmem>>, vector<1x16x64xf32>
    %153 = vector.shape_cast %152 : vector<1x16x64xf32> to vector<16x64xf32>
    %cst_73 = arith.constant dense<0.000000e+00> : vector<16x64xf32>
    %154 = tpu.matmul %151, %153, %cst_73 {dimension_numbers = #tpu.dot_dimension_numbers<[1], [0], [0], [1], [0, 0, 1, 1], [], []>} : vector<16x16xf32>, vector<16x64xf32>, vector<16x64xf32> -> vector<16x64xf32>
    %c0_74 = arith.constant 0 : index
    %c0_75 = arith.constant 0 : index
    %c0_76 = arith.constant 0 : index
    %155 = vector.load %arg16[%c0_74, %c0_75, %c0_76] : memref<1x1x64xf32, #tpu.memory_space<vmem>>, vector<1x1x64xf32>
    %156 = vector.shape_cast %155 : vector<1x1x64xf32> to vector<1x64xf32>
    %157 = vector.broadcast %156 : vector<1x64xf32> to vector<16x64xf32>
    %158 = arith.addf %154, %157 : vector<16x64xf32>
    %159 = arith.mulf %158, %158 : vector<16x64xf32>
    %160 = arith.mulf %158, %159 : vector<16x64xf32>
    %cst_77 = arith.constant 4.471500e-02 : f32
    %161 = vector.broadcast %cst_77 : f32 to vector<16x64xf32>
    %162 = arith.mulf %161, %160 : vector<16x64xf32>
    %163 = arith.addf %158, %162 : vector<16x64xf32>
    %cst_78 = arith.constant 0.797884583 : f32
    %164 = vector.broadcast %cst_78 : f32 to vector<16x64xf32>
    %165 = arith.mulf %164, %163 : vector<16x64xf32>
    %166 = math.tanh %165 : vector<16x64xf32>
    %cst_79 = arith.constant 1.000000e+00 : f32
    %167 = vector.broadcast %cst_79 : f32 to vector<16x64xf32>
    %168 = arith.addf %167, %166 : vector<16x64xf32>
    %cst_80 = arith.constant 5.000000e-01 : f32
    %169 = vector.broadcast %cst_80 : f32 to vector<16x64xf32>
    %170 = arith.mulf %169, %168 : vector<16x64xf32>
    %171 = arith.mulf %158, %170 : vector<16x64xf32>
    %c0_81 = arith.constant 0 : index
    %c0_82 = arith.constant 0 : index
    %c0_83 = arith.constant 0 : index
    %172 = vector.load %arg17[%c0_81, %c0_82, %c0_83] : memref<1x64x16xf32, #tpu.memory_space<vmem>>, vector<1x64x16xf32>
    %173 = vector.shape_cast %172 : vector<1x64x16xf32> to vector<64x16xf32>
    %cst_84 = arith.constant dense<0.000000e+00> : vector<16x16xf32>
    %174 = tpu.matmul %171, %173, %cst_84 {dimension_numbers = #tpu.dot_dimension_numbers<[1], [0], [0], [1], [0, 0, 1, 1], [], []>} : vector<16x64xf32>, vector<64x16xf32>, vector<16x16xf32> -> vector<16x16xf32>
    %c0_85 = arith.constant 0 : index
    %c0_86 = arith.constant 0 : index
    %c0_87 = arith.constant 0 : index
    %175 = vector.load %arg18[%c0_85, %c0_86, %c0_87] : memref<1x1x16xf32, #tpu.memory_space<vmem>>, vector<1x1x16xf32>
    %176 = vector.shape_cast %175 : vector<1x1x16xf32> to vector<1x16xf32>
    %177 = vector.broadcast %176 : vector<1x16xf32> to vector<16x16xf32>
    %178 = arith.addf %174, %177 : vector<16x16xf32>
    %179 = arith.addf %125, %178 : vector<16x16xf32>
    %c0_88 = arith.constant 0 : index
    %c0_89 = arith.constant 0 : index
    %180 = vector.load %arg27[%c0_88, %c0_89] : memref<16x16xf32, #tpu.memory_space<vmem>>, vector<16x16xf32>
    tpu.vector_store %arg27[%c0_88, %c0_89], %179 {strides = array<i32>} : memref<16x16xf32, #tpu.memory_space<vmem>>, vector<16x16xf32>,
    %c1_i32 = arith.constant 1 : i32
    %181 = arith.cmpi eq, %arg0, %c1_i32 : i32
    %182 = arith.extui %181 : i1 to i32
    %c0_i32_90 = arith.constant 0 : i32
    %183 = arith.cmpi ne, %182, %c0_i32_90 : i32
    scf.if %183 {
      %c0_91 = arith.constant 0 : index
      %c0_92 = arith.constant 0 : index
      %184 = vector.load %arg19[%c0_91, %c0_92] : memref<1x16xf32, #tpu.memory_space<vmem>>, vector<1x16xf32>
      %c0_93 = arith.constant 0 : index
      %c0_94 = arith.constant 0 : index
      %185 = vector.load %arg20[%c0_93, %c0_94] : memref<1x16xf32, #tpu.memory_space<vmem>>, vector<1x16xf32>
      %cst_95 = arith.constant dense<0.000000e+00> : vector<16xf32>
      %186 = vector.multi_reduction <add>, %179, %cst_95 [1] : vector<16x16xf32> to vector<16xf32>
      %187 = vector.shape_cast %186 : vector<16xf32> to vector<16x1xf32>
      %cst_96 = arith.constant 1.600000e+01 : f32
      %188 = vector.broadcast %cst_96 : f32 to vector<16x1xf32>
      %189 = arith.divf %187, %188 : vector<16x1xf32>
      %190 = vector.broadcast %189 : vector<16x1xf32> to vector<16x16xf32>
      %191 = arith.subf %179, %190 : vector<16x16xf32>
      %192 = arith.mulf %191, %191 : vector<16x16xf32>
      %cst_97 = arith.constant dense<0.000000e+00> : vector<16xf32>
      %193 = vector.multi_reduction <add>, %192, %cst_97 [1] : vector<16x16xf32> to vector<16xf32>
      %194 = vector.shape_cast %193 : vector<16xf32> to vector<16x1xf32>
      %cst_98 = arith.constant 1.600000e+01 : f32
      %195 = vector.broadcast %cst_98 : f32 to vector<16x1xf32>
      %196 = arith.divf %194, %195 : vector<16x1xf32>
      %197 = vector.broadcast %189 : vector<16x1xf32> to vector<16x16xf32>
      %198 = arith.subf %179, %197 : vector<16x16xf32>
      %cst_99 = arith.constant 9.99999974E-6 : f32
      %199 = vector.broadcast %cst_99 : f32 to vector<16x1xf32>
      %200 = arith.addf %196, %199 : vector<16x1xf32>
      %201 = math.rsqrt %200 : vector<16x1xf32>
      %202 = vector.broadcast %201 : vector<16x1xf32> to vector<16x16xf32>
      %203 = arith.mulf %198, %202 : vector<16x16xf32>
      %204 = vector.broadcast %184 : vector<1x16xf32> to vector<16x16xf32>
      %205 = arith.mulf %203, %204 : vector<16x16xf32>
      %206 = vector.broadcast %185 : vector<1x16xf32> to vector<16x16xf32>
      %207 = arith.addf %205, %206 : vector<16x16xf32>
      %c0_100 = arith.constant 0 : index
      %c0_101 = arith.constant 0 : index
      %208 = vector.load %arg21[%c0_100, %c0_101] : memref<16x16xf32, #tpu.memory_space<vmem>>, vector<16x16xf32>
      %cst_102 = arith.constant dense<0.000000e+00> : vector<16x16xf32>
      %209 = tpu.matmul %207, %208, %cst_102 {dimension_numbers = #tpu.dot_dimension_numbers<[1], [0], [0], [1], [0, 0, 1, 1], [], []>} : vector<16x16xf32>, vector<16x16xf32>, vector<16x16xf32> -> vector<16x16xf32>
      %c0_103 = arith.constant 0 : index
      %c0_104 = arith.constant 0 : index
      %210 = vector.load %arg22[%c0_103, %c0_104] : memref<1x16xf32, #tpu.memory_space<vmem>>, vector<1x16xf32>
      %211 = vector.broadcast %210 : vector<1x16xf32> to vector<16x16xf32>
      %212 = arith.addf %209, %211 : vector<16x16xf32>
      %c0_105 = arith.constant 0 : index
      %c0_106 = arith.constant 0 : index
      %213 = vector.load %arg25[%c0_105, %c0_106] : memref<16x16xf32, #tpu.memory_space<vmem>>, vector<16x16xf32>
      tpu.vector_store %arg25[%c0_105, %c0_106], %212 {strides = array<i32>} : memref<16x16xf32, #tpu.memory_space<vmem>>, vector<16x16xf32>,
      %c0_107 = arith.constant 0 : index
      %c0_108 = arith.constant 0 : index
      %214 = vector.load %arg23[%c0_107, %c0_108] : memref<1x16xf32, #tpu.memory_space<vmem>>, vector<1x16xf32>
      %215 = vector.broadcast %214 : vector<1x16xf32> to vector<16x16xf32>
      %216 = arith.mulf %207, %215 : vector<16x16xf32>
      %cst_109 = arith.constant dense<0.000000e+00> : vector<16xf32>
      %217 = vector.multi_reduction <add>, %216, %cst_109 [1] : vector<16x16xf32> to vector<16xf32>
      %218 = vector.shape_cast %217 : vector<16xf32> to vector<16x1xf32>
      %c0_110 = arith.constant 0 : index
      %c0_111 = arith.constant 0 : index
      %219 = vector.load %arg24[%c0_110, %c0_111] : memref<1x1xf32, #tpu.memory_space<vmem>>, vector<1x1xf32>
      %220 = vector.broadcast %219 : vector<1x1xf32> to vector<16x1xf32>
      %221 = arith.addf %218, %220 : vector<16x1xf32>
      %c0_112 = arith.constant 0 : index
      %c0_113 = arith.constant 0 : index
      %222 = vector.load %arg26[%c0_112, %c0_113] : memref<16x1xf32, #tpu.memory_space<vmem>>, vector<16x1xf32>
      tpu.vector_store %arg26[%c0_112, %c0_113], %221 {strides = array<i32>} : memref<16x1xf32, #tpu.memory_space<vmem>>, vector<16x1xf32>,
    } else {
    }
    return
  }
  func.func @transform_0(%arg0: i32) -> (i32, i32) {
    %c0_i32 = arith.constant 0 : i32
    %c0_i32_0 = arith.constant 0 : i32
    %c0_i32_1 = arith.constant 0 : i32
    return %c0_i32, %c0_i32_0 : i32, i32
  }
  func.func @transform_1(%arg0: i32) -> (i32, i32) {
    %c0_i32 = arith.constant 0 : i32
    %c0_i32_0 = arith.constant 0 : i32
    %c0_i32_1 = arith.constant 0 : i32
    return %c0_i32, %c0_i32_0 : i32, i32
  }
  func.func @transform_2(%arg0: i32) -> (i32, i32) {
    %c0_i32 = arith.constant 0 : i32
    %c0_i32_0 = arith.constant 0 : i32
    %c0_i32_1 = arith.constant 0 : i32
    return %c0_i32, %c0_i32_0 : i32, i32
  }
  func.func @transform_3(%arg0: i32) -> (i32, i32) {
    %c0_i32 = arith.constant 0 : i32
    %c0_i32_0 = arith.constant 0 : i32
    %c0_i32_1 = arith.constant 0 : i32
    return %c0_i32, %c0_i32_0 : i32, i32
  }
  func.func @transform_4(%arg0: i32) -> (i32, i32) {
    %c0_i32 = arith.constant 0 : i32
    %c0_i32_0 = arith.constant 0 : i32
    %c0_i32_1 = arith.constant 0 : i32
    return %c0_i32, %c0_i32_0 : i32, i32
  }
  func.func @transform_5(%arg0: i32) -> (i32, i32) {
    %c0_i32 = arith.constant 0 : i32
    %c0_i32_0 = arith.constant 0 : i32
    %c0_i32_1 = arith.constant 0 : i32
    return %c0_i32, %c0_i32_0 : i32, i32
  }
  func.func @transform_6(%arg0: i32) -> (i32, i32, i32) {
    %c0_i32 = arith.constant 0 : i32
    %c0_i32_0 = arith.constant 0 : i32
    %c0_i32_1 = arith.constant 0 : i32
    return %arg0, %c0_i32, %c0_i32_0 : i32, i32, i32
  }
  func.func @transform_7(%arg0: i32) -> (i32, i32, i32) {
    %c0_i32 = arith.constant 0 : i32
    %c0_i32_0 = arith.constant 0 : i32
    %c0_i32_1 = arith.constant 0 : i32
    return %arg0, %c0_i32, %c0_i32_0 : i32, i32, i32
  }
  func.func @transform_8(%arg0: i32) -> (i32, i32, i32) {
    %c0_i32 = arith.constant 0 : i32
    %c0_i32_0 = arith.constant 0 : i32
    %c0_i32_1 = arith.constant 0 : i32
    return %arg0, %c0_i32, %c0_i32_0 : i32, i32, i32
  }
  func.func @transform_9(%arg0: i32) -> (i32, i32, i32) {
    %c0_i32 = arith.constant 0 : i32
    %c0_i32_0 = arith.constant 0 : i32
    %c0_i32_1 = arith.constant 0 : i32
    return %arg0, %c0_i32, %c0_i32_0 : i32, i32, i32
  }
  func.func @transform_10(%arg0: i32) -> (i32, i32, i32) {
    %c0_i32 = arith.constant 0 : i32
    %c0_i32_0 = arith.constant 0 : i32
    %c0_i32_1 = arith.constant 0 : i32
    return %arg0, %c0_i32, %c0_i32_0 : i32, i32, i32
  }
  func.func @transform_11(%arg0: i32) -> (i32, i32, i32) {
    %c0_i32 = arith.constant 0 : i32
    %c0_i32_0 = arith.constant 0 : i32
    %c0_i32_1 = arith.constant 0 : i32
    return %arg0, %c0_i32, %c0_i32_0 : i32, i32, i32
  }
  func.func @transform_12(%arg0: i32) -> (i32, i32, i32) {
    %c0_i32 = arith.constant 0 : i32
    %c0_i32_0 = arith.constant 0 : i32
    %c0_i32_1 = arith.constant 0 : i32
    return %arg0, %c0_i32, %c0_i32_0 : i32, i32, i32
  }
  func.func @transform_13(%arg0: i32) -> (i32, i32, i32) {
    %c0_i32 = arith.constant 0 : i32
    %c0_i32_0 = arith.constant 0 : i32
    %c0_i32_1 = arith.constant 0 : i32
    return %arg0, %c0_i32, %c0_i32_0 : i32, i32, i32
  }
  func.func @transform_14(%arg0: i32) -> (i32, i32, i32) {
    %c0_i32 = arith.constant 0 : i32
    %c0_i32_0 = arith.constant 0 : i32
    %c0_i32_1 = arith.constant 0 : i32
    return %arg0, %c0_i32, %c0_i32_0 : i32, i32, i32
  }
  func.func @transform_15(%arg0: i32) -> (i32, i32, i32) {
    %c0_i32 = arith.constant 0 : i32
    %c0_i32_0 = arith.constant 0 : i32
    %c0_i32_1 = arith.constant 0 : i32
    return %arg0, %c0_i32, %c0_i32_0 : i32, i32, i32
  }
  func.func @transform_16(%arg0: i32) -> (i32, i32, i32) {
    %c0_i32 = arith.constant 0 : i32
    %c0_i32_0 = arith.constant 0 : i32
    %c0_i32_1 = arith.constant 0 : i32
    return %arg0, %c0_i32, %c0_i32_0 : i32, i32, i32
  }
  func.func @transform_17(%arg0: i32) -> (i32, i32, i32) {
    %c0_i32 = arith.constant 0 : i32
    %c0_i32_0 = arith.constant 0 : i32
    %c0_i32_1 = arith.constant 0 : i32
    return %arg0, %c0_i32, %c0_i32_0 : i32, i32, i32
  }
  func.func @transform_18(%arg0: i32) -> (i32, i32) {
    %c0_i32 = arith.constant 0 : i32
    %c0_i32_0 = arith.constant 0 : i32
    %c0_i32_1 = arith.constant 0 : i32
    return %c0_i32, %c0_i32_0 : i32, i32
  }
  func.func @transform_19(%arg0: i32) -> (i32, i32) {
    %c0_i32 = arith.constant 0 : i32
    %c0_i32_0 = arith.constant 0 : i32
    %c0_i32_1 = arith.constant 0 : i32
    return %c0_i32, %c0_i32_0 : i32, i32
  }
  func.func @transform_20(%arg0: i32) -> (i32, i32) {
    %c0_i32 = arith.constant 0 : i32
    %c0_i32_0 = arith.constant 0 : i32
    %c0_i32_1 = arith.constant 0 : i32
    return %c0_i32, %c0_i32_0 : i32, i32
  }
  func.func @transform_21(%arg0: i32) -> (i32, i32) {
    %c0_i32 = arith.constant 0 : i32
    %c0_i32_0 = arith.constant 0 : i32
    %c0_i32_1 = arith.constant 0 : i32
    return %c0_i32, %c0_i32_0 : i32, i32
  }
  func.func @transform_22(%arg0: i32) -> (i32, i32) {
    %c0_i32 = arith.constant 0 : i32
    %c0_i32_0 = arith.constant 0 : i32
    %c0_i32_1 = arith.constant 0 : i32
    return %c0_i32, %c0_i32_0 : i32, i32
  }
  func.func @transform_23(%arg0: i32) -> (i32, i32) {
    %c0_i32 = arith.constant 0 : i32
    %c0_i32_0 = arith.constant 0 : i32
    %c0_i32_1 = arith.constant 0 : i32
    return %c0_i32, %c0_i32_0 : i32, i32
  }
  func.func @transform_24(%arg0: i32) -> (i32, i32) {
    %c0_i32 = arith.constant 0 : i32
    %c0_i32_0 = arith.constant 0 : i32
    %c0_i32_1 = arith.constant 0 : i32
    return %c0_i32, %c0_i32_0 : i32, i32
  }
  func.func @transform_25(%arg0: i32) -> (i32, i32) {
    %c0_i32 = arith.constant 0 : i32
    %c0_i32_0 = arith.constant 0 : i32
    %c0_i32_1 = arith.constant 0 : i32
    return %c0_i32, %c0_i32_0 : i32, i32
  }
}

module attributes {stable_mosaic.version = 11 : i64} {
  func.func @_auto_kernel(%arg0: i32, %arg1: memref<8x16xf32, #tpu.memory_space<vmem>>, %arg2: memref<64x2xf32, #tpu.memory_space<vmem>>, %arg3: memref<64x2xf32, #tpu.memory_space<vmem>>, %arg4: memref<64x1xf32, #tpu.memory_space<vmem>>, %arg5: memref<64x1xi32, #tpu.memory_space<vmem>>, %arg6: memref<1x64xi32, #tpu.memory_space<vmem>>, %arg7: memref<64x1xf32, #tpu.memory_space<vmem>>, %arg8: memref<64x1xf32, #tpu.memory_space<vmem>>, %arg9: memref<8x1xf32, #tpu.memory_space<vmem>>, %arg10: memref<8x1xf32, #tpu.memory_space<vmem>>, %arg11: memref<2x16xf32, #tpu.memory_space<vmem>>, %arg12: memref<1x16xf32, #tpu.memory_space<vmem>>, %arg13: memref<1x16x48xf32, #tpu.memory_space<vmem>>, %arg14: memref<1x1x48xf32, #tpu.memory_space<vmem>>, %arg15: memref<1x16x16xf32, #tpu.memory_space<vmem>>, %arg16: memref<1x1x16xf32, #tpu.memory_space<vmem>>, %arg17: memref<1x1x16xf32, #tpu.memory_space<vmem>>, %arg18: memref<1x1x16xf32, #tpu.memory_space<vmem>>, %arg19: memref<1x1x16xf32, #tpu.memory_space<vmem>>, %arg20: memref<1x1x16xf32, #tpu.memory_space<vmem>>, %arg21: memref<1x16x64xf32, #tpu.memory_space<vmem>>, %arg22: memref<1x1x64xf32, #tpu.memory_space<vmem>>, %arg23: memref<1x64x16xf32, #tpu.memory_space<vmem>>, %arg24: memref<1x1x16xf32, #tpu.memory_space<vmem>>, %arg25: memref<16x3xf32, #tpu.memory_space<vmem>>, %arg26: memref<1x3xf32, #tpu.memory_space<vmem>>, %arg27: memref<64x3xf32, #tpu.memory_space<vmem>>, %arg28: memref<1x3xf32, #tpu.memory_space<vmem>>, %arg29: memref<64x16xf32, #tpu.memory_space<vmem>>, %arg30: memref<64x16xf32, #tpu.memory_space<vmem>>) attributes {dimension_semantics = [#tpu.dimension_semantics<arbitrary>], iteration_bounds = array<i64: 2>, scalar_prefetch = 0 : i64, scratch_operands = 2 : i64, tpu.core_type = #tpu.core_type<tc>, window_params = [{pipeline_mode = #tpu.pipeline_mode<synchronous>, transform_indices = @transform_0, window_bounds = array<i64: 8, 16>}, {pipeline_mode = #tpu.pipeline_mode<synchronous>, transform_indices = @transform_1, window_bounds = array<i64: 64, 2>}, {pipeline_mode = #tpu.pipeline_mode<synchronous>, transform_indices = @transform_2, window_bounds = array<i64: 64, 2>}, {pipeline_mode = #tpu.pipeline_mode<synchronous>, transform_indices = @transform_3, window_bounds = array<i64: 64, 1>}, {pipeline_mode = #tpu.pipeline_mode<synchronous>, transform_indices = @transform_4, window_bounds = array<i64: 64, 1>}, {pipeline_mode = #tpu.pipeline_mode<synchronous>, transform_indices = @transform_5, window_bounds = array<i64: 1, 64>}, {pipeline_mode = #tpu.pipeline_mode<synchronous>, transform_indices = @transform_6, window_bounds = array<i64: 64, 1>}, {pipeline_mode = #tpu.pipeline_mode<synchronous>, transform_indices = @transform_7, window_bounds = array<i64: 64, 1>}, {pipeline_mode = #tpu.pipeline_mode<synchronous>, transform_indices = @transform_8, window_bounds = array<i64: 8, 1>}, {pipeline_mode = #tpu.pipeline_mode<synchronous>, transform_indices = @transform_9, window_bounds = array<i64: 8, 1>}, {pipeline_mode = #tpu.pipeline_mode<synchronous>, transform_indices = @transform_10, window_bounds = array<i64: 2, 16>}, {pipeline_mode = #tpu.pipeline_mode<synchronous>, transform_indices = @transform_11, window_bounds = array<i64: 1, 16>}, {transform_indices = @transform_12, window_bounds = array<i64: 1, 16, 48>}, {transform_indices = @transform_13, window_bounds = array<i64: 1, 1, 48>}, {transform_indices = @transform_14, window_bounds = array<i64: 1, 16, 16>}, {transform_indices = @transform_15, window_bounds = array<i64: 1, 1, 16>}, {transform_indices = @transform_16, window_bounds = array<i64: 1, 1, 16>}, {transform_indices = @transform_17, window_bounds = array<i64: 1, 1, 16>}, {transform_indices = @transform_18, window_bounds = array<i64: 1, 1, 16>}, {transform_indices = @transform_19, window_bounds = array<i64: 1, 1, 16>}, {transform_indices = @transform_20, window_bounds = array<i64: 1, 16, 64>}, {transform_indices = @transform_21, window_bounds = array<i64: 1, 1, 64>}, {transform_indices = @transform_22, window_bounds = array<i64: 1, 64, 16>}, {transform_indices = @transform_23, window_bounds = array<i64: 1, 1, 16>}, {pipeline_mode = #tpu.pipeline_mode<synchronous>, transform_indices = @transform_24, window_bounds = array<i64: 16, 3>}, {pipeline_mode = #tpu.pipeline_mode<synchronous>, transform_indices = @transform_25, window_bounds = array<i64: 1, 3>}, {pipeline_mode = #tpu.pipeline_mode<synchronous>, transform_indices = @transform_26, window_bounds = array<i64: 64, 3>}, {pipeline_mode = #tpu.pipeline_mode<synchronous>, transform_indices = @transform_27, window_bounds = array<i64: 1, 3>}]} {
    %c0_i32 = arith.constant 0 : i32
    %0 = arith.cmpi eq, %arg0, %c0_i32 : i32
    %1 = arith.extui %0 : i1 to i32
    %c0_i32_0 = arith.constant 0 : i32
    %2 = arith.cmpi ne, %1, %c0_i32_0 : i32
    scf.if %2 {
      %c0_91 = arith.constant 0 : index
      %c0_92 = arith.constant 0 : index
      %188 = vector.load %arg2[%c0_91, %c0_92] : memref<64x2xf32, #tpu.memory_space<vmem>>, vector<64x2xf32>
      %c0_93 = arith.constant 0 : index
      %c0_94 = arith.constant 0 : index
      %189 = vector.load %arg11[%c0_93, %c0_94] : memref<2x16xf32, #tpu.memory_space<vmem>>, vector<2x16xf32>
      %cst_95 = arith.constant dense<0.000000e+00> : vector<64x16xf32>
      %190 = tpu.matmul %188, %189, %cst_95 {dimension_numbers = #tpu.dot_dimension_numbers<[1], [0], [0], [1], [0, 0, 1, 1], [], []>} : vector<64x2xf32>, vector<2x16xf32>, vector<64x16xf32> -> vector<64x16xf32>
      %c0_96 = arith.constant 0 : index
      %c0_97 = arith.constant 0 : index
      %191 = vector.load %arg12[%c0_96, %c0_97] : memref<1x16xf32, #tpu.memory_space<vmem>>, vector<1x16xf32>
      %192 = vector.broadcast %191 : vector<1x16xf32> to vector<64x16xf32>
      %193 = arith.addf %190, %192 : vector<64x16xf32>
      %194 = tpu.iota {dimensions = array<i32: 1>} : vector<64x8xi32>
      %c0_98 = arith.constant 0 : index
      %c0_99 = arith.constant 0 : index
      %195 = vector.load %arg4[%c0_98, %c0_99] : memref<64x1xf32, #tpu.memory_space<vmem>>, vector<64x1xf32>
      %c0_100 = arith.constant 0 : index
      %c0_101 = arith.constant 0 : index
      %196 = vector.load %arg5[%c0_100, %c0_101] : memref<64x1xi32, #tpu.memory_space<vmem>>, vector<64x1xi32>
      %197 = vector.broadcast %196 : vector<64x1xi32> to vector<64x8xi32>
      %198 = arith.cmpi eq, %197, %194 : vector<64x8xi32>
      %cst_102 = arith.constant 5.000000e-01 : f32
      %199 = vector.broadcast %cst_102 : f32 to vector<64x1xf32>
      %200 = arith.cmpf ogt, %195, %199 : vector<64x1xf32>
      %201 = vector.broadcast %200 : vector<64x1xi1> to vector<64x8xi1>
      %202 = arith.andi %198, %201 : vector<64x8xi1>
      %cst_103 = arith.constant 1.000000e+00 : f32
      %cst_104 = arith.constant 0.000000e+00 : f32
      %203 = vector.broadcast %cst_103 : f32 to vector<64x8xf32>
      %204 = vector.broadcast %cst_104 : f32 to vector<64x8xf32>
      %205 = arith.select %202, %203, %204 : vector<64x8xi1>, vector<64x8xf32>
      %c0_105 = arith.constant 0 : index
      %c0_106 = arith.constant 0 : index
      %206 = vector.load %arg1[%c0_105, %c0_106] : memref<8x16xf32, #tpu.memory_space<vmem>>, vector<8x16xf32>
      %cst_107 = arith.constant dense<0.000000e+00> : vector<64x16xf32>
      %207 = tpu.matmul %205, %206, %cst_107 {dimension_numbers = #tpu.dot_dimension_numbers<[1], [0], [0], [1], [0, 0, 1, 1], [], []>} : vector<64x8xf32>, vector<8x16xf32>, vector<64x16xf32> -> vector<64x16xf32>
      %208 = vector.broadcast %195 : vector<64x1xf32> to vector<64x16xf32>
      %209 = arith.mulf %208, %207 : vector<64x16xf32>
      %cst_108 = arith.constant 1.000000e+00 : f32
      %210 = vector.broadcast %cst_108 : f32 to vector<64x1xf32>
      %211 = arith.subf %210, %195 : vector<64x1xf32>
      %212 = vector.broadcast %211 : vector<64x1xf32> to vector<64x16xf32>
      %213 = arith.mulf %212, %193 : vector<64x16xf32>
      %214 = arith.addf %209, %213 : vector<64x16xf32>
      %c0_109 = arith.constant 0 : index
      %c0_110 = arith.constant 0 : index
      %215 = vector.load %arg29[%c0_109, %c0_110] : memref<64x16xf32, #tpu.memory_space<vmem>>, vector<64x16xf32>
      tpu.vector_store %arg29[%c0_109, %c0_110], %214 {strides = array<i32>} : memref<64x16xf32, #tpu.memory_space<vmem>>, vector<64x16xf32>,
    } else {
    }
    %c0 = arith.constant 0 : index
    %c0_1 = arith.constant 0 : index
    %3 = vector.load %arg5[%c0, %c0_1] : memref<64x1xi32, #tpu.memory_space<vmem>>, vector<64x1xi32>
    %c0_2 = arith.constant 0 : index
    %c0_3 = arith.constant 0 : index
    %4 = vector.load %arg6[%c0_2, %c0_3] : memref<1x64xi32, #tpu.memory_space<vmem>>, vector<1x64xi32>
    %5 = vector.broadcast %3 : vector<64x1xi32> to vector<64x64xi32>
    %6 = vector.broadcast %4 : vector<1x64xi32> to vector<64x64xi32>
    %7 = arith.cmpi eq, %5, %6 : vector<64x64xi32>
    %8 = tpu.iota {dimensions = array<i32: 0>} : vector<64x64xi32>
    %9 = tpu.iota {dimensions = array<i32: 1>} : vector<64x64xi32>
    %10 = arith.cmpi sle, %9, %8 : vector<64x64xi32>
    %11 = arith.andi %7, %10 : vector<64x64xi1>
    %cst = arith.constant 0.000000e+00 : f32
    %cst_4 = arith.constant -1.000000e+30 : f32
    %12 = vector.broadcast %cst : f32 to vector<64x64xf32>
    %13 = vector.broadcast %cst_4 : f32 to vector<64x64xf32>
    %14 = arith.select %11, %12, %13 : vector<64x64xi1>, vector<64x64xf32>
    %c0_5 = arith.constant 0 : index
    %c0_6 = arith.constant 0 : index
    %15 = vector.load %arg29[%c0_5, %c0_6] : memref<64x16xf32, #tpu.memory_space<vmem>>, vector<64x16xf32>
    %c0_7 = arith.constant 0 : index
    %c0_8 = arith.constant 0 : index
    %c0_9 = arith.constant 0 : index
    %16 = vector.load %arg17[%c0_7, %c0_8, %c0_9] : memref<1x1x16xf32, #tpu.memory_space<vmem>>, vector<1x1x16xf32>
    %17 = vector.shape_cast %16 : vector<1x1x16xf32> to vector<1x16xf32>
    %c0_10 = arith.constant 0 : index
    %c0_11 = arith.constant 0 : index
    %c0_12 = arith.constant 0 : index
    %18 = vector.load %arg18[%c0_10, %c0_11, %c0_12] : memref<1x1x16xf32, #tpu.memory_space<vmem>>, vector<1x1x16xf32>
    %19 = vector.shape_cast %18 : vector<1x1x16xf32> to vector<1x16xf32>
    %cst_13 = arith.constant dense<0.000000e+00> : vector<64xf32>
    %20 = vector.multi_reduction <add>, %15, %cst_13 [1] : vector<64x16xf32> to vector<64xf32>
    %21 = vector.shape_cast %20 : vector<64xf32> to vector<64x1xf32>
    %cst_14 = arith.constant 1.600000e+01 : f32
    %22 = vector.broadcast %cst_14 : f32 to vector<64x1xf32>
    %23 = arith.divf %21, %22 : vector<64x1xf32>
    %24 = vector.broadcast %23 : vector<64x1xf32> to vector<64x16xf32>
    %25 = arith.subf %15, %24 : vector<64x16xf32>
    %26 = arith.mulf %25, %25 : vector<64x16xf32>
    %cst_15 = arith.constant dense<0.000000e+00> : vector<64xf32>
    %27 = vector.multi_reduction <add>, %26, %cst_15 [1] : vector<64x16xf32> to vector<64xf32>
    %28 = vector.shape_cast %27 : vector<64xf32> to vector<64x1xf32>
    %cst_16 = arith.constant 1.600000e+01 : f32
    %29 = vector.broadcast %cst_16 : f32 to vector<64x1xf32>
    %30 = arith.divf %28, %29 : vector<64x1xf32>
    %31 = vector.broadcast %23 : vector<64x1xf32> to vector<64x16xf32>
    %32 = arith.subf %15, %31 : vector<64x16xf32>
    %cst_17 = arith.constant 9.99999974E-6 : f32
    %33 = vector.broadcast %cst_17 : f32 to vector<64x1xf32>
    %34 = arith.addf %30, %33 : vector<64x1xf32>
    %35 = math.rsqrt %34 : vector<64x1xf32>
    %36 = vector.broadcast %35 : vector<64x1xf32> to vector<64x16xf32>
    %37 = arith.mulf %32, %36 : vector<64x16xf32>
    %38 = vector.broadcast %17 : vector<1x16xf32> to vector<64x16xf32>
    %39 = arith.mulf %37, %38 : vector<64x16xf32>
    %40 = vector.broadcast %19 : vector<1x16xf32> to vector<64x16xf32>
    %41 = arith.addf %39, %40 : vector<64x16xf32>
    %c0_18 = arith.constant 0 : index
    %c0_19 = arith.constant 0 : index
    %c0_20 = arith.constant 0 : index
    %42 = vector.load %arg13[%c0_18, %c0_19, %c0_20] : memref<1x16x48xf32, #tpu.memory_space<vmem>>, vector<1x16x48xf32>
    %43 = vector.shape_cast %42 : vector<1x16x48xf32> to vector<16x48xf32>
    %cst_21 = arith.constant dense<0.000000e+00> : vector<64x48xf32>
    %44 = tpu.matmul %41, %43, %cst_21 {dimension_numbers = #tpu.dot_dimension_numbers<[1], [0], [0], [1], [0, 0, 1, 1], [], []>} : vector<64x16xf32>, vector<16x48xf32>, vector<64x48xf32> -> vector<64x48xf32>
    %c0_22 = arith.constant 0 : index
    %c0_23 = arith.constant 0 : index
    %c0_24 = arith.constant 0 : index
    %45 = vector.load %arg14[%c0_22, %c0_23, %c0_24] : memref<1x1x48xf32, #tpu.memory_space<vmem>>, vector<1x1x48xf32>
    %46 = vector.shape_cast %45 : vector<1x1x48xf32> to vector<1x48xf32>
    %47 = vector.broadcast %46 : vector<1x48xf32> to vector<64x48xf32>
    %48 = arith.addf %44, %47 : vector<64x48xf32>
    %49 = vector.extract_strided_slice %48 {offsets = [0, 0], sizes = [64, 4], strides = [1, 1]} : vector<64x48xf32> to vector<64x4xf32>
    %50 = vector.extract_strided_slice %48 {offsets = [0, 16], sizes = [64, 4], strides = [1, 1]} : vector<64x48xf32> to vector<64x4xf32>
    %51 = vector.extract_strided_slice %48 {offsets = [0, 32], sizes = [64, 4], strides = [1, 1]} : vector<64x48xf32> to vector<64x4xf32>
    %cst_25 = arith.constant dense<0.000000e+00> : vector<64x64xf32>
    %52 = tpu.matmul %49, %50, %cst_25 {dimension_numbers = #tpu.dot_dimension_numbers<[1], [1], [0], [0], [0, 0, 1, 0], [], []>} : vector<64x4xf32>, vector<64x4xf32>, vector<64x64xf32> -> vector<64x64xf32>
    %cst_26 = arith.constant 5.000000e-01 : f32
    %53 = vector.broadcast %cst_26 : f32 to vector<64x64xf32>
    %54 = arith.mulf %52, %53 : vector<64x64xf32>
    %55 = arith.addf %54, %14 : vector<64x64xf32>
    %cst_27 = arith.constant dense<0xFF800000> : vector<64xf32>
    %56 = vector.multi_reduction <maximumf>, %55, %cst_27 [1] : vector<64x64xf32> to vector<64xf32>
    %57 = vector.shape_cast %56 : vector<64xf32> to vector<64x1xf32>
    %58 = vector.broadcast %57 : vector<64x1xf32> to vector<64x64xf32>
    %59 = arith.subf %55, %58 : vector<64x64xf32>
    %60 = math.exp %59 : vector<64x64xf32>
    %cst_28 = arith.constant dense<0.000000e+00> : vector<64xf32>
    %61 = vector.multi_reduction <add>, %60, %cst_28 [1] : vector<64x64xf32> to vector<64xf32>
    %62 = vector.shape_cast %61 : vector<64xf32> to vector<64x1xf32>
    %63 = vector.broadcast %62 : vector<64x1xf32> to vector<64x64xf32>
    %64 = arith.divf %60, %63 : vector<64x64xf32>
    %cst_29 = arith.constant dense<0.000000e+00> : vector<64x4xf32>
    %65 = tpu.matmul %64, %51, %cst_29 {dimension_numbers = #tpu.dot_dimension_numbers<[1], [0], [0], [1], [0, 0, 1, 1], [], []>} : vector<64x64xf32>, vector<64x4xf32>, vector<64x4xf32> -> vector<64x4xf32>
    %c0_30 = arith.constant 0 : index
    %c0_31 = arith.constant 0 : index
    %66 = vector.load %arg30[%c0_30, %c0_31] : memref<64x16xf32, #tpu.memory_space<vmem>>, vector<64x4xf32>
    tpu.vector_store %arg30[%c0_30, %c0_31], %65 {strides = array<i32>} : memref<64x16xf32, #tpu.memory_space<vmem>>, vector<64x4xf32>,
    %67 = vector.extract_strided_slice %48 {offsets = [0, 4], sizes = [64, 4], strides = [1, 1]} : vector<64x48xf32> to vector<64x4xf32>
    %68 = vector.extract_strided_slice %48 {offsets = [0, 20], sizes = [64, 4], strides = [1, 1]} : vector<64x48xf32> to vector<64x4xf32>
    %69 = vector.extract_strided_slice %48 {offsets = [0, 36], sizes = [64, 4], strides = [1, 1]} : vector<64x48xf32> to vector<64x4xf32>
    %cst_32 = arith.constant dense<0.000000e+00> : vector<64x64xf32>
    %70 = tpu.matmul %67, %68, %cst_32 {dimension_numbers = #tpu.dot_dimension_numbers<[1], [1], [0], [0], [0, 0, 1, 0], [], []>} : vector<64x4xf32>, vector<64x4xf32>, vector<64x64xf32> -> vector<64x64xf32>
    %cst_33 = arith.constant 5.000000e-01 : f32
    %71 = vector.broadcast %cst_33 : f32 to vector<64x64xf32>
    %72 = arith.mulf %70, %71 : vector<64x64xf32>
    %73 = arith.addf %72, %14 : vector<64x64xf32>
    %cst_34 = arith.constant dense<0xFF800000> : vector<64xf32>
    %74 = vector.multi_reduction <maximumf>, %73, %cst_34 [1] : vector<64x64xf32> to vector<64xf32>
    %75 = vector.shape_cast %74 : vector<64xf32> to vector<64x1xf32>
    %76 = vector.broadcast %75 : vector<64x1xf32> to vector<64x64xf32>
    %77 = arith.subf %73, %76 : vector<64x64xf32>
    %78 = math.exp %77 : vector<64x64xf32>
    %cst_35 = arith.constant dense<0.000000e+00> : vector<64xf32>
    %79 = vector.multi_reduction <add>, %78, %cst_35 [1] : vector<64x64xf32> to vector<64xf32>
    %80 = vector.shape_cast %79 : vector<64xf32> to vector<64x1xf32>
    %81 = vector.broadcast %80 : vector<64x1xf32> to vector<64x64xf32>
    %82 = arith.divf %78, %81 : vector<64x64xf32>
    %cst_36 = arith.constant dense<0.000000e+00> : vector<64x4xf32>
    %83 = tpu.matmul %82, %69, %cst_36 {dimension_numbers = #tpu.dot_dimension_numbers<[1], [0], [0], [1], [0, 0, 1, 1], [], []>} : vector<64x64xf32>, vector<64x4xf32>, vector<64x4xf32> -> vector<64x4xf32>
    %c0_37 = arith.constant 0 : index
    %c4 = arith.constant 4 : index
    %84 = vector.load %arg30[%c0_37, %c4] : memref<64x16xf32, #tpu.memory_space<vmem>>, vector<64x4xf32>
    tpu.vector_store %arg30[%c0_37, %c4], %83 {strides = array<i32>} : memref<64x16xf32, #tpu.memory_space<vmem>>, vector<64x4xf32>,
    %85 = vector.extract_strided_slice %48 {offsets = [0, 8], sizes = [64, 4], strides = [1, 1]} : vector<64x48xf32> to vector<64x4xf32>
    %86 = vector.extract_strided_slice %48 {offsets = [0, 24], sizes = [64, 4], strides = [1, 1]} : vector<64x48xf32> to vector<64x4xf32>
    %87 = vector.extract_strided_slice %48 {offsets = [0, 40], sizes = [64, 4], strides = [1, 1]} : vector<64x48xf32> to vector<64x4xf32>
    %cst_38 = arith.constant dense<0.000000e+00> : vector<64x64xf32>
    %88 = tpu.matmul %85, %86, %cst_38 {dimension_numbers = #tpu.dot_dimension_numbers<[1], [1], [0], [0], [0, 0, 1, 0], [], []>} : vector<64x4xf32>, vector<64x4xf32>, vector<64x64xf32> -> vector<64x64xf32>
    %cst_39 = arith.constant 5.000000e-01 : f32
    %89 = vector.broadcast %cst_39 : f32 to vector<64x64xf32>
    %90 = arith.mulf %88, %89 : vector<64x64xf32>
    %91 = arith.addf %90, %14 : vector<64x64xf32>
    %cst_40 = arith.constant dense<0xFF800000> : vector<64xf32>
    %92 = vector.multi_reduction <maximumf>, %91, %cst_40 [1] : vector<64x64xf32> to vector<64xf32>
    %93 = vector.shape_cast %92 : vector<64xf32> to vector<64x1xf32>
    %94 = vector.broadcast %93 : vector<64x1xf32> to vector<64x64xf32>
    %95 = arith.subf %91, %94 : vector<64x64xf32>
    %96 = math.exp %95 : vector<64x64xf32>
    %cst_41 = arith.constant dense<0.000000e+00> : vector<64xf32>
    %97 = vector.multi_reduction <add>, %96, %cst_41 [1] : vector<64x64xf32> to vector<64xf32>
    %98 = vector.shape_cast %97 : vector<64xf32> to vector<64x1xf32>
    %99 = vector.broadcast %98 : vector<64x1xf32> to vector<64x64xf32>
    %100 = arith.divf %96, %99 : vector<64x64xf32>
    %cst_42 = arith.constant dense<0.000000e+00> : vector<64x4xf32>
    %101 = tpu.matmul %100, %87, %cst_42 {dimension_numbers = #tpu.dot_dimension_numbers<[1], [0], [0], [1], [0, 0, 1, 1], [], []>} : vector<64x64xf32>, vector<64x4xf32>, vector<64x4xf32> -> vector<64x4xf32>
    %c0_43 = arith.constant 0 : index
    %c8 = arith.constant 8 : index
    %102 = vector.load %arg30[%c0_43, %c8] : memref<64x16xf32, #tpu.memory_space<vmem>>, vector<64x4xf32>
    tpu.vector_store %arg30[%c0_43, %c8], %101 {strides = array<i32>} : memref<64x16xf32, #tpu.memory_space<vmem>>, vector<64x4xf32>,
    %103 = vector.extract_strided_slice %48 {offsets = [0, 12], sizes = [64, 4], strides = [1, 1]} : vector<64x48xf32> to vector<64x4xf32>
    %104 = vector.extract_strided_slice %48 {offsets = [0, 28], sizes = [64, 4], strides = [1, 1]} : vector<64x48xf32> to vector<64x4xf32>
    %105 = vector.extract_strided_slice %48 {offsets = [0, 44], sizes = [64, 4], strides = [1, 1]} : vector<64x48xf32> to vector<64x4xf32>
    %cst_44 = arith.constant dense<0.000000e+00> : vector<64x64xf32>
    %106 = tpu.matmul %103, %104, %cst_44 {dimension_numbers = #tpu.dot_dimension_numbers<[1], [1], [0], [0], [0, 0, 1, 0], [], []>} : vector<64x4xf32>, vector<64x4xf32>, vector<64x64xf32> -> vector<64x64xf32>
    %cst_45 = arith.constant 5.000000e-01 : f32
    %107 = vector.broadcast %cst_45 : f32 to vector<64x64xf32>
    %108 = arith.mulf %106, %107 : vector<64x64xf32>
    %109 = arith.addf %108, %14 : vector<64x64xf32>
    %cst_46 = arith.constant dense<0xFF800000> : vector<64xf32>
    %110 = vector.multi_reduction <maximumf>, %109, %cst_46 [1] : vector<64x64xf32> to vector<64xf32>
    %111 = vector.shape_cast %110 : vector<64xf32> to vector<64x1xf32>
    %112 = vector.broadcast %111 : vector<64x1xf32> to vector<64x64xf32>
    %113 = arith.subf %109, %112 : vector<64x64xf32>
    %114 = math.exp %113 : vector<64x64xf32>
    %cst_47 = arith.constant dense<0.000000e+00> : vector<64xf32>
    %115 = vector.multi_reduction <add>, %114, %cst_47 [1] : vector<64x64xf32> to vector<64xf32>
    %116 = vector.shape_cast %115 : vector<64xf32> to vector<64x1xf32>
    %117 = vector.broadcast %116 : vector<64x1xf32> to vector<64x64xf32>
    %118 = arith.divf %114, %117 : vector<64x64xf32>
    %cst_48 = arith.constant dense<0.000000e+00> : vector<64x4xf32>
    %119 = tpu.matmul %118, %105, %cst_48 {dimension_numbers = #tpu.dot_dimension_numbers<[1], [0], [0], [1], [0, 0, 1, 1], [], []>} : vector<64x64xf32>, vector<64x4xf32>, vector<64x4xf32> -> vector<64x4xf32>
    %c0_49 = arith.constant 0 : index
    %c12 = arith.constant 12 : index
    %120 = vector.load %arg30[%c0_49, %c12] : memref<64x16xf32, #tpu.memory_space<vmem>>, vector<64x4xf32>
    tpu.vector_store %arg30[%c0_49, %c12], %119 {strides = array<i32>} : memref<64x16xf32, #tpu.memory_space<vmem>>, vector<64x4xf32>,
    %c0_50 = arith.constant 0 : index
    %c0_51 = arith.constant 0 : index
    %121 = vector.load %arg30[%c0_50, %c0_51] : memref<64x16xf32, #tpu.memory_space<vmem>>, vector<64x16xf32>
    %c0_52 = arith.constant 0 : index
    %c0_53 = arith.constant 0 : index
    %c0_54 = arith.constant 0 : index
    %122 = vector.load %arg15[%c0_52, %c0_53, %c0_54] : memref<1x16x16xf32, #tpu.memory_space<vmem>>, vector<1x16x16xf32>
    %123 = vector.shape_cast %122 : vector<1x16x16xf32> to vector<16x16xf32>
    %cst_55 = arith.constant dense<0.000000e+00> : vector<64x16xf32>
    %124 = tpu.matmul %121, %123, %cst_55 {dimension_numbers = #tpu.dot_dimension_numbers<[1], [0], [0], [1], [0, 0, 1, 1], [], []>} : vector<64x16xf32>, vector<16x16xf32>, vector<64x16xf32> -> vector<64x16xf32>
    %125 = arith.addf %15, %124 : vector<64x16xf32>
    %c0_56 = arith.constant 0 : index
    %c0_57 = arith.constant 0 : index
    %c0_58 = arith.constant 0 : index
    %126 = vector.load %arg16[%c0_56, %c0_57, %c0_58] : memref<1x1x16xf32, #tpu.memory_space<vmem>>, vector<1x1x16xf32>
    %127 = vector.shape_cast %126 : vector<1x1x16xf32> to vector<1x16xf32>
    %128 = vector.broadcast %127 : vector<1x16xf32> to vector<64x16xf32>
    %129 = arith.addf %125, %128 : vector<64x16xf32>
    %c0_59 = arith.constant 0 : index
    %c0_60 = arith.constant 0 : index
    %c0_61 = arith.constant 0 : index
    %130 = vector.load %arg19[%c0_59, %c0_60, %c0_61] : memref<1x1x16xf32, #tpu.memory_space<vmem>>, vector<1x1x16xf32>
    %131 = vector.shape_cast %130 : vector<1x1x16xf32> to vector<1x16xf32>
    %c0_62 = arith.constant 0 : index
    %c0_63 = arith.constant 0 : index
    %c0_64 = arith.constant 0 : index
    %132 = vector.load %arg20[%c0_62, %c0_63, %c0_64] : memref<1x1x16xf32, #tpu.memory_space<vmem>>, vector<1x1x16xf32>
    %133 = vector.shape_cast %132 : vector<1x1x16xf32> to vector<1x16xf32>
    %cst_65 = arith.constant dense<0.000000e+00> : vector<64xf32>
    %134 = vector.multi_reduction <add>, %129, %cst_65 [1] : vector<64x16xf32> to vector<64xf32>
    %135 = vector.shape_cast %134 : vector<64xf32> to vector<64x1xf32>
    %cst_66 = arith.constant 1.600000e+01 : f32
    %136 = vector.broadcast %cst_66 : f32 to vector<64x1xf32>
    %137 = arith.divf %135, %136 : vector<64x1xf32>
    %138 = vector.broadcast %137 : vector<64x1xf32> to vector<64x16xf32>
    %139 = arith.subf %129, %138 : vector<64x16xf32>
    %140 = arith.mulf %139, %139 : vector<64x16xf32>
    %cst_67 = arith.constant dense<0.000000e+00> : vector<64xf32>
    %141 = vector.multi_reduction <add>, %140, %cst_67 [1] : vector<64x16xf32> to vector<64xf32>
    %142 = vector.shape_cast %141 : vector<64xf32> to vector<64x1xf32>
    %cst_68 = arith.constant 1.600000e+01 : f32
    %143 = vector.broadcast %cst_68 : f32 to vector<64x1xf32>
    %144 = arith.divf %142, %143 : vector<64x1xf32>
    %145 = vector.broadcast %137 : vector<64x1xf32> to vector<64x16xf32>
    %146 = arith.subf %129, %145 : vector<64x16xf32>
    %cst_69 = arith.constant 9.99999974E-6 : f32
    %147 = vector.broadcast %cst_69 : f32 to vector<64x1xf32>
    %148 = arith.addf %144, %147 : vector<64x1xf32>
    %149 = math.rsqrt %148 : vector<64x1xf32>
    %150 = vector.broadcast %149 : vector<64x1xf32> to vector<64x16xf32>
    %151 = arith.mulf %146, %150 : vector<64x16xf32>
    %152 = vector.broadcast %131 : vector<1x16xf32> to vector<64x16xf32>
    %153 = arith.mulf %151, %152 : vector<64x16xf32>
    %154 = vector.broadcast %133 : vector<1x16xf32> to vector<64x16xf32>
    %155 = arith.addf %153, %154 : vector<64x16xf32>
    %c0_70 = arith.constant 0 : index
    %c0_71 = arith.constant 0 : index
    %c0_72 = arith.constant 0 : index
    %156 = vector.load %arg21[%c0_70, %c0_71, %c0_72] : memref<1x16x64xf32, #tpu.memory_space<vmem>>, vector<1x16x64xf32>
    %157 = vector.shape_cast %156 : vector<1x16x64xf32> to vector<16x64xf32>
    %cst_73 = arith.constant dense<0.000000e+00> : vector<64x64xf32>
    %158 = tpu.matmul %155, %157, %cst_73 {dimension_numbers = #tpu.dot_dimension_numbers<[1], [0], [0], [1], [0, 0, 1, 1], [], []>} : vector<64x16xf32>, vector<16x64xf32>, vector<64x64xf32> -> vector<64x64xf32>
    %c0_74 = arith.constant 0 : index
    %c0_75 = arith.constant 0 : index
    %c0_76 = arith.constant 0 : index
    %159 = vector.load %arg22[%c0_74, %c0_75, %c0_76] : memref<1x1x64xf32, #tpu.memory_space<vmem>>, vector<1x1x64xf32>
    %160 = vector.shape_cast %159 : vector<1x1x64xf32> to vector<1x64xf32>
    %161 = vector.broadcast %160 : vector<1x64xf32> to vector<64x64xf32>
    %162 = arith.addf %158, %161 : vector<64x64xf32>
    %163 = arith.mulf %162, %162 : vector<64x64xf32>
    %164 = arith.mulf %162, %163 : vector<64x64xf32>
    %cst_77 = arith.constant 4.471500e-02 : f32
    %165 = vector.broadcast %cst_77 : f32 to vector<64x64xf32>
    %166 = arith.mulf %165, %164 : vector<64x64xf32>
    %167 = arith.addf %162, %166 : vector<64x64xf32>
    %cst_78 = arith.constant 0.797884583 : f32
    %168 = vector.broadcast %cst_78 : f32 to vector<64x64xf32>
    %169 = arith.mulf %168, %167 : vector<64x64xf32>
    %170 = math.tanh %169 : vector<64x64xf32>
    %cst_79 = arith.constant 1.000000e+00 : f32
    %171 = vector.broadcast %cst_79 : f32 to vector<64x64xf32>
    %172 = arith.addf %171, %170 : vector<64x64xf32>
    %cst_80 = arith.constant 5.000000e-01 : f32
    %173 = vector.broadcast %cst_80 : f32 to vector<64x64xf32>
    %174 = arith.mulf %173, %172 : vector<64x64xf32>
    %175 = arith.mulf %162, %174 : vector<64x64xf32>
    %c0_81 = arith.constant 0 : index
    %c0_82 = arith.constant 0 : index
    %c0_83 = arith.constant 0 : index
    %176 = vector.load %arg23[%c0_81, %c0_82, %c0_83] : memref<1x64x16xf32, #tpu.memory_space<vmem>>, vector<1x64x16xf32>
    %177 = vector.shape_cast %176 : vector<1x64x16xf32> to vector<64x16xf32>
    %cst_84 = arith.constant dense<0.000000e+00> : vector<64x16xf32>
    %178 = tpu.matmul %175, %177, %cst_84 {dimension_numbers = #tpu.dot_dimension_numbers<[1], [0], [0], [1], [0, 0, 1, 1], [], []>} : vector<64x64xf32>, vector<64x16xf32>, vector<64x16xf32> -> vector<64x16xf32>
    %c0_85 = arith.constant 0 : index
    %c0_86 = arith.constant 0 : index
    %c0_87 = arith.constant 0 : index
    %179 = vector.load %arg24[%c0_85, %c0_86, %c0_87] : memref<1x1x16xf32, #tpu.memory_space<vmem>>, vector<1x1x16xf32>
    %180 = vector.shape_cast %179 : vector<1x1x16xf32> to vector<1x16xf32>
    %181 = vector.broadcast %180 : vector<1x16xf32> to vector<64x16xf32>
    %182 = arith.addf %178, %181 : vector<64x16xf32>
    %183 = arith.addf %129, %182 : vector<64x16xf32>
    %c0_88 = arith.constant 0 : index
    %c0_89 = arith.constant 0 : index
    %184 = vector.load %arg29[%c0_88, %c0_89] : memref<64x16xf32, #tpu.memory_space<vmem>>, vector<64x16xf32>
    tpu.vector_store %arg29[%c0_88, %c0_89], %183 {strides = array<i32>} : memref<64x16xf32, #tpu.memory_space<vmem>>, vector<64x16xf32>,
    %c1_i32 = arith.constant 1 : i32
    %185 = arith.cmpi eq, %arg0, %c1_i32 : i32
    %186 = arith.extui %185 : i1 to i32
    %c0_i32_90 = arith.constant 0 : i32
    %187 = arith.cmpi ne, %186, %c0_i32_90 : i32
    scf.if %187 {
      %c0_91 = arith.constant 0 : index
      %c0_92 = arith.constant 0 : index
      %188 = vector.load %arg25[%c0_91, %c0_92] : memref<16x3xf32, #tpu.memory_space<vmem>>, vector<16x3xf32>
      %cst_93 = arith.constant dense<0.000000e+00> : vector<64x3xf32>
      %189 = tpu.matmul %183, %188, %cst_93 {dimension_numbers = #tpu.dot_dimension_numbers<[1], [0], [0], [1], [0, 0, 1, 1], [], []>} : vector<64x16xf32>, vector<16x3xf32>, vector<64x3xf32> -> vector<64x3xf32>
      %c0_94 = arith.constant 0 : index
      %c0_95 = arith.constant 0 : index
      %190 = vector.load %arg26[%c0_94, %c0_95] : memref<1x3xf32, #tpu.memory_space<vmem>>, vector<1x3xf32>
      %191 = vector.broadcast %190 : vector<1x3xf32> to vector<64x3xf32>
      %192 = arith.addf %189, %191 : vector<64x3xf32>
      %c0_96 = arith.constant 0 : index
      %c0_97 = arith.constant 0 : index
      %193 = vector.load %arg27[%c0_96, %c0_97] : memref<64x3xf32, #tpu.memory_space<vmem>>, vector<64x3xf32>
      tpu.vector_store %arg27[%c0_96, %c0_97], %192 {strides = array<i32>} : memref<64x3xf32, #tpu.memory_space<vmem>>, vector<64x3xf32>,
      %c0_98 = arith.constant 0 : index
      %c0_99 = arith.constant 0 : index
      %194 = vector.load %arg7[%c0_98, %c0_99] : memref<64x1xf32, #tpu.memory_space<vmem>>, vector<64x1xf32>
      %195 = vector.extract_strided_slice %192 {offsets = [0, 0], sizes = [64, 2], strides = [1, 1]} : vector<64x3xf32> to vector<64x2xf32>
      %c0_100 = arith.constant 0 : index
      %c0_101 = arith.constant 0 : index
      %196 = vector.load %arg3[%c0_100, %c0_101] : memref<64x2xf32, #tpu.memory_space<vmem>>, vector<64x2xf32>
      %197 = arith.subf %195, %196 : vector<64x2xf32>
      %198 = arith.mulf %197, %197 : vector<64x2xf32>
      %199 = vector.broadcast %194 : vector<64x1xf32> to vector<64x2xf32>
      %200 = arith.mulf %198, %199 : vector<64x2xf32>
      %201 = vector.shape_cast %200 : vector<64x2xf32> to vector<1x64x2xf32>
      %cst_102 = arith.constant dense<0.000000e+00> : vector<1xf32>
      %202 = vector.multi_reduction <add>, %201, %cst_102 [1, 2] : vector<1x64x2xf32> to vector<1xf32>
      %203 = vector.shape_cast %202 : vector<1xf32> to vector<1x1x1xf32>
      %204 = vector.extract %203[0, 0, 0] : f32 from vector<1x1x1xf32>
      %205 = vector.shape_cast %194 : vector<64x1xf32> to vector<1x64x1xf32>
      %cst_103 = arith.constant dense<0.000000e+00> : vector<1xf32>
      %206 = vector.multi_reduction <add>, %205, %cst_103 [1, 2] : vector<1x64x1xf32> to vector<1xf32>
      %207 = vector.shape_cast %206 : vector<1xf32> to vector<1x1x1xf32>
      %208 = vector.extract %207[0, 0, 0] : f32 from vector<1x1x1xf32>
      %cst_104 = arith.constant 1.000000e+00 : f32
      %209 = arith.maximumf %208, %cst_104 : f32
      %cst_105 = arith.constant 2.000000e+00 : f32
      %210 = arith.mulf %209, %cst_105 : f32
      %211 = arith.divf %204, %210 : f32
      %212 = vector.extract_strided_slice %192 {offsets = [0, 2], sizes = [64, 1], strides = [1, 1]} : vector<64x3xf32> to vector<64x1xf32>
      %c0_106 = arith.constant 0 : index
      %c0_107 = arith.constant 0 : index
      %213 = vector.load %arg8[%c0_106, %c0_107] : memref<64x1xf32, #tpu.memory_space<vmem>>, vector<64x1xf32>
      %cst_108 = arith.constant 0.000000e+00 : f32
      %214 = vector.broadcast %cst_108 : f32 to vector<64x1xf32>
      %215 = arith.subf %214, %212 : vector<64x1xf32>
      %cst_109 = arith.constant 0.000000e+00 : f32
      %216 = vector.broadcast %cst_109 : f32 to vector<64x1xf32>
      %217 = arith.maximumf %215, %216 : vector<64x1xf32>
      %218 = math.absf %212 : vector<64x1xf32>
      %cst_110 = arith.constant 0.000000e+00 : f32
      %219 = vector.broadcast %cst_110 : f32 to vector<64x1xf32>
      %220 = arith.subf %219, %218 : vector<64x1xf32>
      %221 = math.exp %220 : vector<64x1xf32>
      %222 = math.log1p %221 : vector<64x1xf32>
      %223 = arith.addf %217, %222 : vector<64x1xf32>
      %cst_111 = arith.constant 0.000000e+00 : f32
      %224 = vector.broadcast %cst_111 : f32 to vector<64x1xf32>
      %225 = arith.maximumf %212, %224 : vector<64x1xf32>
      %226 = math.absf %212 : vector<64x1xf32>
      %cst_112 = arith.constant 0.000000e+00 : f32
      %227 = vector.broadcast %cst_112 : f32 to vector<64x1xf32>
      %228 = arith.subf %227, %226 : vector<64x1xf32>
      %229 = math.exp %228 : vector<64x1xf32>
      %230 = math.log1p %229 : vector<64x1xf32>
      %231 = arith.addf %225, %230 : vector<64x1xf32>
      %cst_113 = arith.constant 2.000000e+01 : f32
      %232 = vector.broadcast %cst_113 : f32 to vector<64x1xf32>
      %233 = arith.mulf %232, %213 : vector<64x1xf32>
      %234 = arith.mulf %233, %223 : vector<64x1xf32>
      %cst_114 = arith.constant 1.000000e+00 : f32
      %235 = vector.broadcast %cst_114 : f32 to vector<64x1xf32>
      %236 = arith.subf %235, %213 : vector<64x1xf32>
      %237 = arith.mulf %236, %231 : vector<64x1xf32>
      %238 = arith.addf %234, %237 : vector<64x1xf32>
      %239 = tpu.iota {dimensions = array<i32: 0>} : vector<64x1xi32>
      %c64_i32 = arith.constant 64 : i32
      %240 = vector.broadcast %c64_i32 : i32 to vector<64x1xi32>
      %241 = arith.cmpi slt, %239, %240 : vector<64x1xi32>
      %242 = arith.extui %241 : vector<64x1xi1> to vector<64x1xi32>
      %243 = arith.sitofp %242 : vector<64x1xi32> to vector<64x1xf32>
      %244 = arith.mulf %238, %243 : vector<64x1xf32>
      %245 = vector.shape_cast %244 : vector<64x1xf32> to vector<1x64x1xf32>
      %cst_115 = arith.constant dense<0.000000e+00> : vector<1xf32>
      %246 = vector.multi_reduction <add>, %245, %cst_115 [1, 2] : vector<1x64x1xf32> to vector<1xf32>
      %247 = vector.shape_cast %246 : vector<1xf32> to vector<1x1x1xf32>
      %248 = vector.extract %247[0, 0, 0] : f32 from vector<1x1x1xf32>
      %cst_116 = arith.constant 6.400000e+01 : f32
      %249 = arith.divf %248, %cst_116 : f32
      %c0_117 = arith.constant 0 : index
      %c0_118 = arith.constant 0 : index
      %250 = vector.load %arg9[%c0_117, %c0_118] : memref<8x1xf32, #tpu.memory_space<vmem>>, vector<8x1xf32>
      %c0_119 = arith.constant 0 : index
      %c0_120 = arith.constant 0 : index
      %251 = vector.load %arg10[%c0_119, %c0_120] : memref<8x1xf32, #tpu.memory_space<vmem>>, vector<8x1xf32>
      %252 = arith.subf %250, %251 : vector<8x1xf32>
      %253 = math.absf %252 : vector<8x1xf32>
      %254 = vector.shape_cast %253 : vector<8x1xf32> to vector<1x8x1xf32>
      %cst_121 = arith.constant dense<0.000000e+00> : vector<1xf32>
      %255 = vector.multi_reduction <add>, %254, %cst_121 [1, 2] : vector<1x8x1xf32> to vector<1xf32>
      %256 = vector.shape_cast %255 : vector<1xf32> to vector<1x1x1xf32>
      %257 = vector.extract %256[0, 0, 0] : f32 from vector<1x1x1xf32>
      %cst_122 = arith.constant 8.000000e+00 : f32
      %258 = arith.divf %257, %cst_122 : f32
      %259 = tpu.iota {dimensions = array<i32: 1>} : vector<1x3xi32>
      %c0_i32_123 = arith.constant 0 : i32
      %260 = vector.broadcast %c0_i32_123 : i32 to vector<1x3xi32>
      %261 = arith.cmpi eq, %259, %260 : vector<1x3xi32>
      %c1_i32_124 = arith.constant 1 : i32
      %262 = vector.broadcast %c1_i32_124 : i32 to vector<1x3xi32>
      %263 = arith.cmpi eq, %259, %262 : vector<1x3xi32>
      %264 = vector.broadcast %249 : f32 to vector<1x3xf32>
      %265 = vector.broadcast %258 : f32 to vector<1x3xf32>
      %266 = arith.select %263, %264, %265 : vector<1x3xi1>, vector<1x3xf32>
      %267 = vector.broadcast %211 : f32 to vector<1x3xf32>
      %268 = arith.select %261, %267, %266 : vector<1x3xi1>, vector<1x3xf32>
      %c0_125 = arith.constant 0 : index
      %c0_126 = arith.constant 0 : index
      %269 = vector.load %arg28[%c0_125, %c0_126] : memref<1x3xf32, #tpu.memory_space<vmem>>, vector<1x3xf32>
      tpu.vector_store %arg28[%c0_125, %c0_126], %268 {strides = array<i32>} : memref<1x3xf32, #tpu.memory_space<vmem>>, vector<1x3xf32>,
    } else {
    }
    return
  }
  func.func @transform_0(%arg0: i32) -> (i32, i32) {
    %c0_i32 = arith.constant 0 : i32
    %c0_i32_0 = arith.constant 0 : i32
    %c0_i32_1 = arith.constant 0 : i32
    return %c0_i32, %c0_i32_0 : i32, i32
  }
  func.func @transform_1(%arg0: i32) -> (i32, i32) {
    %c0_i32 = arith.constant 0 : i32
    %c0_i32_0 = arith.constant 0 : i32
    %c0_i32_1 = arith.constant 0 : i32
    return %c0_i32, %c0_i32_0 : i32, i32
  }
  func.func @transform_2(%arg0: i32) -> (i32, i32) {
    %c0_i32 = arith.constant 0 : i32
    %c0_i32_0 = arith.constant 0 : i32
    %c0_i32_1 = arith.constant 0 : i32
    return %c0_i32, %c0_i32_0 : i32, i32
  }
  func.func @transform_3(%arg0: i32) -> (i32, i32) {
    %c0_i32 = arith.constant 0 : i32
    %c0_i32_0 = arith.constant 0 : i32
    %c0_i32_1 = arith.constant 0 : i32
    return %c0_i32, %c0_i32_0 : i32, i32
  }
  func.func @transform_4(%arg0: i32) -> (i32, i32) {
    %c0_i32 = arith.constant 0 : i32
    %c0_i32_0 = arith.constant 0 : i32
    %c0_i32_1 = arith.constant 0 : i32
    return %c0_i32, %c0_i32_0 : i32, i32
  }
  func.func @transform_5(%arg0: i32) -> (i32, i32) {
    %c0_i32 = arith.constant 0 : i32
    %c0_i32_0 = arith.constant 0 : i32
    %c0_i32_1 = arith.constant 0 : i32
    return %c0_i32, %c0_i32_0 : i32, i32
  }
  func.func @transform_6(%arg0: i32) -> (i32, i32) {
    %c0_i32 = arith.constant 0 : i32
    %c0_i32_0 = arith.constant 0 : i32
    %c0_i32_1 = arith.constant 0 : i32
    return %c0_i32, %c0_i32_0 : i32, i32
  }
  func.func @transform_7(%arg0: i32) -> (i32, i32) {
    %c0_i32 = arith.constant 0 : i32
    %c0_i32_0 = arith.constant 0 : i32
    %c0_i32_1 = arith.constant 0 : i32
    return %c0_i32, %c0_i32_0 : i32, i32
  }
  func.func @transform_8(%arg0: i32) -> (i32, i32) {
    %c0_i32 = arith.constant 0 : i32
    %c0_i32_0 = arith.constant 0 : i32
    %c0_i32_1 = arith.constant 0 : i32
    return %c0_i32, %c0_i32_0 : i32, i32
  }
  func.func @transform_9(%arg0: i32) -> (i32, i32) {
    %c0_i32 = arith.constant 0 : i32
    %c0_i32_0 = arith.constant 0 : i32
    %c0_i32_1 = arith.constant 0 : i32
    return %c0_i32, %c0_i32_0 : i32, i32
  }
  func.func @transform_10(%arg0: i32) -> (i32, i32) {
    %c0_i32 = arith.constant 0 : i32
    %c0_i32_0 = arith.constant 0 : i32
    %c0_i32_1 = arith.constant 0 : i32
    return %c0_i32, %c0_i32_0 : i32, i32
  }
  func.func @transform_11(%arg0: i32) -> (i32, i32) {
    %c0_i32 = arith.constant 0 : i32
    %c0_i32_0 = arith.constant 0 : i32
    %c0_i32_1 = arith.constant 0 : i32
    return %c0_i32, %c0_i32_0 : i32, i32
  }
  func.func @transform_12(%arg0: i32) -> (i32, i32, i32) {
    %c0_i32 = arith.constant 0 : i32
    %c0_i32_0 = arith.constant 0 : i32
    %c0_i32_1 = arith.constant 0 : i32
    return %arg0, %c0_i32, %c0_i32_0 : i32, i32, i32
  }
  func.func @transform_13(%arg0: i32) -> (i32, i32, i32) {
    %c0_i32 = arith.constant 0 : i32
    %c0_i32_0 = arith.constant 0 : i32
    %c0_i32_1 = arith.constant 0 : i32
    return %arg0, %c0_i32, %c0_i32_0 : i32, i32, i32
  }
  func.func @transform_14(%arg0: i32) -> (i32, i32, i32) {
    %c0_i32 = arith.constant 0 : i32
    %c0_i32_0 = arith.constant 0 : i32
    %c0_i32_1 = arith.constant 0 : i32
    return %arg0, %c0_i32, %c0_i32_0 : i32, i32, i32
  }
  func.func @transform_15(%arg0: i32) -> (i32, i32, i32) {
    %c0_i32 = arith.constant 0 : i32
    %c0_i32_0 = arith.constant 0 : i32
    %c0_i32_1 = arith.constant 0 : i32
    return %arg0, %c0_i32, %c0_i32_0 : i32, i32, i32
  }
  func.func @transform_16(%arg0: i32) -> (i32, i32, i32) {
    %c0_i32 = arith.constant 0 : i32
    %c0_i32_0 = arith.constant 0 : i32
    %c0_i32_1 = arith.constant 0 : i32
    return %arg0, %c0_i32, %c0_i32_0 : i32, i32, i32
  }
  func.func @transform_17(%arg0: i32) -> (i32, i32, i32) {
    %c0_i32 = arith.constant 0 : i32
    %c0_i32_0 = arith.constant 0 : i32
    %c0_i32_1 = arith.constant 0 : i32
    return %arg0, %c0_i32, %c0_i32_0 : i32, i32, i32
  }
  func.func @transform_18(%arg0: i32) -> (i32, i32, i32) {
    %c0_i32 = arith.constant 0 : i32
    %c0_i32_0 = arith.constant 0 : i32
    %c0_i32_1 = arith.constant 0 : i32
    return %arg0, %c0_i32, %c0_i32_0 : i32, i32, i32
  }
  func.func @transform_19(%arg0: i32) -> (i32, i32, i32) {
    %c0_i32 = arith.constant 0 : i32
    %c0_i32_0 = arith.constant 0 : i32
    %c0_i32_1 = arith.constant 0 : i32
    return %arg0, %c0_i32, %c0_i32_0 : i32, i32, i32
  }
  func.func @transform_20(%arg0: i32) -> (i32, i32, i32) {
    %c0_i32 = arith.constant 0 : i32
    %c0_i32_0 = arith.constant 0 : i32
    %c0_i32_1 = arith.constant 0 : i32
    return %arg0, %c0_i32, %c0_i32_0 : i32, i32, i32
  }
  func.func @transform_21(%arg0: i32) -> (i32, i32, i32) {
    %c0_i32 = arith.constant 0 : i32
    %c0_i32_0 = arith.constant 0 : i32
    %c0_i32_1 = arith.constant 0 : i32
    return %arg0, %c0_i32, %c0_i32_0 : i32, i32, i32
  }
  func.func @transform_22(%arg0: i32) -> (i32, i32, i32) {
    %c0_i32 = arith.constant 0 : i32
    %c0_i32_0 = arith.constant 0 : i32
    %c0_i32_1 = arith.constant 0 : i32
    return %arg0, %c0_i32, %c0_i32_0 : i32, i32, i32
  }
  func.func @transform_23(%arg0: i32) -> (i32, i32, i32) {
    %c0_i32 = arith.constant 0 : i32
    %c0_i32_0 = arith.constant 0 : i32
    %c0_i32_1 = arith.constant 0 : i32
    return %arg0, %c0_i32, %c0_i32_0 : i32, i32, i32
  }
  func.func @transform_24(%arg0: i32) -> (i32, i32) {
    %c0_i32 = arith.constant 0 : i32
    %c0_i32_0 = arith.constant 0 : i32
    %c0_i32_1 = arith.constant 0 : i32
    return %c0_i32, %c0_i32_0 : i32, i32
  }
  func.func @transform_25(%arg0: i32) -> (i32, i32) {
    %c0_i32 = arith.constant 0 : i32
    %c0_i32_0 = arith.constant 0 : i32
    %c0_i32_1 = arith.constant 0 : i32
    return %c0_i32, %c0_i32_0 : i32, i32
  }
  func.func @transform_26(%arg0: i32) -> (i32, i32) {
    %c0_i32 = arith.constant 0 : i32
    %c0_i32_0 = arith.constant 0 : i32
    %c0_i32_1 = arith.constant 0 : i32
    return %c0_i32, %c0_i32_0 : i32, i32
  }
  func.func @transform_27(%arg0: i32) -> (i32, i32) {
    %c0_i32 = arith.constant 0 : i32
    %c0_i32_0 = arith.constant 0 : i32
    %c0_i32_1 = arith.constant 0 : i32
    return %c0_i32, %c0_i32_0 : i32, i32
  }
}

</mosaic_0001>

<bundles_post_ra>
// kernel: mage_forward.4
= control target key start
LH: loop header
LB: loop body
LE: loop exit
PB: predicated region body
PF: predicated region fallthrough
CT: control target
= control target key end

     0   :  { %s3510_s0 = inlined_call_operand.vmem [shape: f32[16,32], index: 0, kind: input, shape index: {}]   ;;  %s3511_s1 = inlined_call_operand.vmem [shape: f32[16,16], index: 1, kind: input, shape index: {}]   ;;  %s3512_s2 = inlined_call_operand.vmem [shape: s32[16,1], index: 2, kind: input, shape index: {}]   ;;  %s3513_s3 = inlined_call_operand.vmem [shape: s32[1,16], index: 3, kind: input, shape index: {}]   ;;  %s3514_s4 = inlined_call_operand.vmem [shape: f32[32,16], index: 4, kind: input, shape index: {}]   ;;  %s3515_s5 = inlined_call_operand.vmem [shape: f32[1,16], index: 5, kind: input, shape index: {}]   ;;  %s3516_s6 = inlined_call_operand.vmem [shape: f32[2,16,48], index: 6, kind: input, shape index: {}]   ;;  %s3517_s7 = inlined_call_operand.vmem [shape: f32[2,1,48], index: 7, kind: input, shape index: {}]   ;;  %s3518_s8 = inlined_call_operand.vmem [shape: f32[2,16,16], index: 8, kind: input, shape index: {}]   ;;  %s3519_s9 = inlined_call_operand.vmem [shape: f32[2,1,16], index: 9, kind: input, shape index: {}]   ;;  %s3520_s10 = inlined_call_operand.vmem [shape: f32[2,1,16], index: 10, kind: input, shape index: {}]   ;;  %s3521_s11 = inlined_call_operand.vmem [shape: f32[2,1,16], index: 11, kind: input, shape index: {}]   ;;  %s3522_s12 = inlined_call_operand.vmem [shape: f32[2,1,16], index: 12, kind: input, shape index: {}]   ;;  %s3523_s13 = inlined_call_operand.vmem [shape: f32[2,1,16], index: 13, kind: input, shape index: {}]   ;;  %s3524_s14 = inlined_call_operand.vmem [shape: f32[2,16,64], index: 14, kind: input, shape index: {}]   ;;  %s3525_s15 = inlined_call_operand.vmem [shape: f32[2,1,64], index: 15, kind: input, shape index: {}]   ;;  %s3526_s16 = inlined_call_operand.vmem [shape: f32[2,64,16], index: 16, kind: input, shape index: {}]   ;;  %s3527_s17 = inlined_call_operand.vmem [shape: f32[2,1,16], index: 17, kind: input, shape index: {}]   ;;  %s3528_s18 = inlined_call_operand.vmem [shape: f32[1,16], index: 18, kind: input, shape index: {}]   ;;  %s3529_s19 = inlined_call_operand.vmem [shape: f32[1,16], index: 19, kind: input, shape index: {}]   ;;  %s3530_s20 = inlined_call_operand.vmem [shape: f32[16,16], index: 20, kind: input, shape index: {}]   ;;  %s3531_s21 = inlined_call_operand.vmem [shape: f32[1,16], index: 21, kind: input, shape index: {}]   ;;  %s3532_s22 = inlined_call_operand.vmem [shape: f32[1,16], index: 22, kind: input, shape index: {}]   ;;  %s3533_s23 = inlined_call_operand.<no memory space> [shape: f32[1,1], index: 23, kind: input, shape index: {}]   ;;  %s3534_s24 = inlined_call_operand.vmem [shape: f32[16,16], index: 24, kind: output, shape index: {0}]   ;;  %s3535_s25 = inlined_call_operand.vmem [shape: f32[16,1], index: 25, kind: output, shape index: {1}]  }
   0x1   :  { %3544 = sst [smem:[#allocation6_spill]] %s3510_s0  ;;  %v31_v0 = vstv %s3533_s23 }
   0x2   :  { %3545 = sst [smem:[#allocation7_spill]] %s3511_s1  ;;  %32 = vst [vmem:[#allocation4] sm:$0x1] %v31_v0 }
   0x3   :  { %3546 = sst [smem:[#allocation8_spill]] %s3512_s2 }
   0x4   :  { %3547 = sst [smem:[#allocation9_spill]] %s3513_s3 }
   0x5   :  { %3548 = sst [smem:[#allocation10_spill]] %s3514_s4 }
   0x6   :  { %3549 = sst [smem:[#allocation11_spill]] %s3515_s5 }
   0x7   :  { %3550 = sst [smem:[#allocation12_spill]] %s3516_s6  ;;  %s3173_s6 = smov 0  }
   0x8   :  { %3551 = sst [smem:[#allocation13_spill]] %s3517_s7 }
   0x9   :  { %3552 = sst [smem:[#allocation14_spill]] %s3518_s8 }
   0xa   :  { %3553 = sst [smem:[#allocation15_spill]] %s3519_s9 }
   0xb   :  { %3554 = sst [smem:[#allocation16_spill]] %s3528_s18 }
   0xc   :  { %3555 = sst [smem:[#allocation17_spill]] %s3529_s19 }
   0xd   :  { %3556 = sst [smem:[#allocation18_spill]] %s3530_s20 }
   0xe   :  { %3557 = sst [smem:[#allocation19_spill]] %s3531_s21 }
   0xf   :  { %3558 = sst [smem:[#allocation20_spill]] %s3532_s22 }
  0x10   :  { %3559 = sst [smem:[#allocation21_spill]] %s3534_s24 }
  0x11   :  { %3560 = sst [smem:[#allocation22_spill]] %s3535_s25 }
  0x12 LB: > { %3561 = sst [smem:[#allocation5_spill]] %s3022_s6  ;;  %s3179_s30 = sadd.s32 4294967295, %s3022_s6   ;;  %s3022_s6 = sphi %s3173_s6, %s38_s6  }
  0x13   : > { %p2696_p0 = scmp.ge.s32.totalorder %s3022_s6, 1  ;;  %p776_p1 = scmp.lt.s32.totalorder %s3022_s6, 3 }
  0x15   : > { %p777_p2 = pnand %p2696_p0, %p776_p1 }
  0x16   : > { %p878_p3 = scmp.lt.s32.totalorder (!%p777_p2), %s3179_s30, 1  ;;  %s3563_s28 = sld [smem:[#allocation12_spill]] (!%p777_p2) }
  0x17   : > { %780 = sbr.rel (%p777_p2) target bundleno = 4736 (0x1280), region = 116  ;;  %s3564_s29 = sld [smem:[#allocation14_spill]] (!%p777_p2) }
  0x18   : > { %p2705_p4 = scmp.ne.s32.totalorder (!%p777_p2), %s3179_s30, 0 }
  0x1c   : > { %s3185_s23 = scalar_select %p878_p3, %s3179_s30, 1 }
  0x1d   : > { %s3566_s5 = sld [smem:[#allocation10_spill]] (!%p2705_p4) }
  0x1e   : > { %s2760_s7 = sshll.u32 %s3185_s23, 4  ;;  %s896_s18 = scalar_lea.vmem %s3520_s10, %s3185_s23 }
  0x1f   : > { %s3195_s9 = scalar_lea.vmem %s3563_s28, %s2760_s7  ;;  %s3200_s2 = scalar_lea.vmem %s3564_s29, %s2760_s7 }
  0x20   : > { %s899_s1 = scalar_lea.vmem %s3521_s11, %s3185_s23  ;;  %s902_s28 = scalar_lea.vmem %s3522_s12, %s3185_s23 }
  0x21   : > { %s905_s0 = scalar_lea.vmem %s3523_s13, %s3185_s23  ;;  %s3225_s21 = scalar_lea.vmem %s3524_s14, %s2760_s7 }
  0x22   : > { %s913_s22 = scalar_lea.vmem %s3525_s15, %s3185_s23  ;;  %s2763_s6 = sshll.u32 %s3185_s23, 6 }
  0x23   : > { %s3235_s25 = scalar_lea.vmem %s3526_s16, %s2763_s6  ;;  %925 = sbr.rel (%p2705_p4) target bundleno = 251 (0xfb), region = 120 }
  0x24   : > { %s3567_s3 = sld [smem:[#allocation6_spill]] (!%p2705_p4) }
  0x25   : > { %s3568_s6 = sld [smem:[#allocation11_spill]] (!%p2705_p4) }
  0x26   : > { %s3569_s8 = sld [smem:[#allocation7_spill]] (!%p2705_p4) }
  0x28   : > { %v931_v1 = vld [vmem:[%s3566_s5 + $0x18] sm:$0xff]  ;;  %v930_v2 = vld [vmem:[%s3566_s5 + $0x10] sm:$0xff]  ;;  %vm939_vm0 = vcmask 261120   ;;  %v929_v4 = vld [vmem:[%s3566_s5 + $0x8] sm:$0xff]  ;;  %vm1027_vm1 = vcmask 130048  }
  0x29   : > { %2828 = vmatprep.subr.mxu0 %v931_v1  ;;  %v928_v5 = vld [vmem:[%s3566_s5] sm:$0xff] }
  0x2a   : > { %v926_v3 = vld [vmem:[%s3567_s3] sm:$0xff]  ;;  %2829 = vmatpush3.msra.mxu0 %v931_v1  ;;  %v927_v6 = vld [vmem:[%s3567_s3 + $0x8] sm:$0xff] }
  0x2b   : > { %2836 = vmatprep.mubr.msk.f32.mxu0 %vm939_vm0, %v926_v3  ;;  %2830 = vmatprep.subr.mxu0 %v930_v2  ;;  %v2706_v7 = vld [vmem:[%s3568_s6] ss:$0 sm:$0xff] }
  0x2c   : > { %2831 = vmatpush3.msra.mxu0 %v930_v2  ;;  %v1024_v10 = vld [vmem:[%s3569_s8 + $0x8] sm:$0xff]  ;;  %v1023_v14 = vld [vmem:[%s3569_s8] sm:$0xff] }
  0x2d   : > { %2832 = vmatprep.subr.mxu0 %v929_v4 }
  0x2e   : > { %2833 = vmatpush3.msra.mxu0 %v929_v4 }
  0x2f   : > { %2834 = vmatprep.subr.mxu0 %v928_v5 }
  0x30   : > { %2835 = vmatpush3.msra.mxu0 %v928_v5 }
  0x31   : > { %2837 = vmatmul.mubr.msk.f32.vlgmr.msra.gmra.mxu0 %vm939_vm0, %v927_v6 }
  0xf1   : > { %v2838_v8 = vpop.f32.mrf.mxu0 }
  0xf2   : > { %v1018_v9 = vadd.f32 %v2838_v8, %v2706_v7 }
  0xf3   : > { %v1012_v11 = vpop.f32.mrf.mxu0 }
  0xf4   : > { %v1022_v12 = vmax.f32 %v1018_v9, 0.0  ;;  %v1013_v13 = vadd.f32 %v2706_v7, %v1012_v11 }
  0xf6   : > { %v1026_v15 = vadd.f32 %v1024_v10, %v1022_v12  ;;  %v1021_v16 = vmax.f32 %v1013_v13, 0.0 }
  0xf8   : > { %1029 = vst.msk [vmem:[#allocation2 + $0x8] sm:$0xff] %vm1027_vm1, %v1026_v15  ;;  %v1025_v17 = vadd.f32 %v1023_v14, %v1021_v16 }
  0xfa   : > { %1028 = vst.msk [vmem:[#allocation2] sm:$0xff] %vm1027_vm1, %v1025_v17 }
  0xfb PF: > { %vm1051_vm2 = vcmask 130048   ;;  %v1096_v32 = vld [vmem:[%s3195_s9 + $0x8] sm:$0xff]  ;;  %v1095_v33 = vld [vmem:[%s3195_s9] sm:$0xff]  ;;  %s3570_s26 = sld [smem:[#allocation13_spill]]  ;;  %v3024_v51 = vmov 0   ;;  %vm1191_vm3 = vcmask 31744  }
  0xfc   : > { %2839 = vmatprep.subr.mxu0 %v1096_v32  ;;  %v2710_v41 = vld [vmem:[%s896_s18] ss:$0 sm:$0xff]  ;;  %2966 = vset.pattern.permute.xlu1 %v3024_v51  ;;  %s3572_s20 = sld [smem:[#allocation8_spill]]  ;;  %v3026_v1 = vmov -1e+30   ;;  %s3027_s6 = smov 96  }
  0xfd   : > { %2840 = vmatpush3.msra.mxu0 %v1096_v32  ;;  %v2711_v43 = vld [vmem:[%s899_s1] ss:$0 sm:$0xff]  ;;  %2967 = vset.pattern.permute.xlu0 %v3024_v51  ;;  %s3025_s1 = smov 112   ;;  %s3573_s19 = sld [smem:[#allocation9_spill]]  ;;  %vm1602_vm6 = vcmask 64544   ;;  %vm1817_vm7 = vcmask 97344  }
  0xfe   : > { %2841 = vmatprep.subr.mxu0 %v1095_v33  ;;  %s3031_s27 = smov 104   ;;  %s3032_s4 = smov 120   ;;  %vm2032_vm8 = vcmask 130144   ;;  %vm2298_vm9 = vcmask 523264  }
  0xff   : > { %v3271_v19 = vld [vmem:[#allocation2 + $0x8] sm:$0xff]  ;;  %2842 = vmatpush3.msra.mxu0 %v1095_v33  ;;  %s3033_s7 = smov 88   ;;  %s3034_s29 = smov 100  }
 0x100   : > { %v1055_v21 = vsel %vm1051_vm2, %v3271_v19, 0.0  ;;  %s3035_s24 = smov 116   ;;  %s3036_s9 = smov 84  }
 0x101   : > { %v3269_v18 = vld [vmem:[#allocation2] sm:$0xff]  ;;  %s3571_s18 = scalar_lea.vmem %s3570_s26, %s3185_s23  ;;  %s3028_s26 = smov 108  }
 0x102   : > { %v1052_v20 = vsel %vm1051_vm2, %v3269_v18, 0.0  ;;  %v2712_v50 = vld [vmem:[%s3571_s18] ss:$0 sm:$0xff]  ;;  %v1031_v57 = vld [vmem:[%s3572_s20 + $0x8] sm:$0xff]  ;;  %s3029_s18 = smov 124   ;;  %p2750_p5 = scmp.ne.s32.totalorder %s3179_s30, 1 }
 0x103   : > { %1053 = vadd.xlane.f32.xlu0 %v1052_v20  ;;  %v1030_v56 = vld [vmem:[%s3572_s20] sm:$0xff] }
 0x104   : > { %v2709_v61 = vld [vmem:[%s3573_s19] ss:$0 sm:$0xff]  ;;  %s3037_s19 = smov 4  }
 0x107   : > { %1056 = vadd.xlane.f32.xlu0 %v1055_v21 }
 0x18c   : > { %v1054_v22 = vpop.xlane.xlu0 %1053 }
 0x18d   : > { %v1059_v23 = vmul.f32 0.0625, %v1054_v22 }
 0x18f   : > { %v1061_v24 = vsub.f32 %v3269_v18, %v1059_v23 }
 0x190   : > { %v1057_v25 = vpop.xlane.xlu0 %1056 }
 0x191   : > { %v1060_v26 = vmul.f32 0.0625, %v1057_v25  ;;  %v1063_v27 = vmul.f32 %v1061_v24, %v1061_v24 }
 0x193   : > { %v1062_v28 = vsub.f32 %v3271_v19, %v1060_v26  ;;  %v1065_v29 = vsel %vm1051_vm2, %v1063_v27, 0.0 }
 0x194   : > { %1066 = vadd.xlane.f32.xlu1 %v1065_v29 }
 0x195   : > { %v1064_v30 = vmul.f32 %v1062_v28, %v1062_v28 }
 0x197   : > { %v1068_v31 = vsel %vm1051_vm2, %v1064_v30, 0.0 }
 0x198   : > { %1069 = vadd.xlane.f32.xlu1 %v1068_v31 }
 0x21d   : > { %v1067_v34 = vpop.xlane.xlu1 %1066 }
 0x21e   : > { %v1071_v35 = vmul.f32 0.0625, %v1067_v34 }
 0x220   : > { %v1073_v36 = vadd.f32 1e-05, %v1071_v35 }
 0x221   : > { %v1070_v37 = vpop.xlane.xlu1 %1069 }
 0x222   : > { %2968 = vrsqrt.f32 %v1073_v36  ;;  %v1072_v38 = vmul.f32 0.0625, %v1070_v37 }
 0x224   : > { %v1074_v39 = vadd.f32 1e-05, %v1072_v38 }
 0x226   : > { %2970 = vrsqrt.f32 %v1074_v39 }
 0x22f   : > { %v2969_v40 = vpop.eup %2968 }
 0x230   : > { %v1077_v42 = vmul.f32 %v2969_v40, %v1061_v24 }
 0x232   : > { %v1085_v44 = vmul.f32 %v2710_v41, %v1077_v42 }
 0x233   : > { %v2971_v45 = vpop.eup %2970 }
 0x234   : > { %v1078_v46 = vmul.f32 %v2971_v45, %v1062_v28  ;;  %v1093_v47 = vadd.f32 %v2711_v43, %v1085_v44 }
 0x236   : > { %v1086_v48 = vmul.f32 %v2710_v41, %v1078_v46  ;;  %2843 = vmatprep.mubr.msk.f32.mxu0 %vm1051_vm2, %v1093_v47 }
 0x238   : > { %v1094_v49 = vadd.f32 %v2711_v43, %v1086_v48 }
 0x23a   : > { %2844 = vmatmul.mubr.msk.f32.vlgmr.msra.gmra.mxu0 %vm1051_vm2, %v1094_v49 }
 0x2fa   : > { %v2845_v52 = vpop.f32.mrf.mxu0 }
 0x2fb   : > { %v3300_v53 = vadd.f32 %v2845_v52, %v2712_v50 }
 0x2fc   : > { %v1176_v54 = vpop.f32.mrf.mxu0 }
 0x2fd   : > { %v3302_v55 = vadd.f32 %v2712_v50, %v1176_v54  ;;  %1189 = vrot.lane.b32.xlu0 %v3300_v53, %s3025_s1 }
 0x2ff   : > { %1187 = vrot.lane.b32.xlu1 %v3302_v55, %s3025_s1  ;;  %2850 = vmatprep.mubr.msk.f32.mxu0 %vm1191_vm3, %v3302_v55  ;;  %s3030_s1 = smov 92  }
 0x303   : > { %1034 = vperm.xlu1 %2966, %v1030_v56  }
 0x307   : > { %1037 = vperm.xlu1 %2966, %v1031_v57  }
 0x36f   : > { %v1190_v58 = vpop.permute.xlu0 %1189 }
 0x370   : > { %2846 = vmatprep.subr.msk.mxu0 %vm1191_vm3, %v1190_v58 }
 0x371   : > { %2847 = vmatpush3.xpose.msk.msra.mxu0 %vm1191_vm3, %v1190_v58  ;;  %v1188_v59 = vpop.permute.xlu1 %1187 }
 0x372   : > { %2848 = vmatprep.subr.msk.mxu0 %vm1191_vm3, %v1188_v59 }
 0x375   : > { %2849 = vmatpush3.xpose.msk.msra.mxu0 %vm1191_vm3, %v1188_v59 }
 0x378   : > { %2851 = vmatmul.mubr.msk.f32.vlgmr.msra.gmra.mxu0 %vm1191_vm3, %v3300_v53 }
 0x37e   : > { %v1035_v60 = vpop.permute.xlu1 %1034 }
 0x37f   : > { %vm1043_vm5 = vcmp.eq.s32.totalorder %v1035_v60, %v2709_v61 }
 0x380   : > { %v3326_v6 = vsel %vm1043_vm5, 0.0, %v3026_v1 }
 0x382   : > { %v1038_v62 = vpop.permute.xlu1 %1037 }
 0x383   : > { %vm1044_vm4 = vcmp.eq.s32.totalorder %v1038_v62, %v2709_v61 }
 0x384   : > { %v3323_v2 = vsel %vm1044_vm4, 0.0, %v3026_v1 }
 0x438   : > { %v2852_v63 = vpop.f32.mrf.mxu0 }
 0x439   : > { %v1276_v0 = vmul.f32 0.5, %v2852_v63 }
 0x43a   : > { %v1266_v3 = vpop.f32.mrf.mxu0 }
 0x43b   : > { %v1275_v4 = vmul.f32 0.5, %v1266_v3  ;;  %v1278_v5 = vadd.f32 %v1276_v0, %v3323_v2 }
 0x43d   : > { %v1282_v7 = vsel %vm1051_vm2, %v1278_v5, -inf  ;;  %v1277_v8 = vadd.f32 %v1275_v4, %v3326_v6 }
 0x43e   : > { %1283 = vmax.xlane.f32.xlu1 %v1282_v7 }
 0x43f   : > { %v1279_v9 = vsel %vm1051_vm2, %v1277_v8, -inf }
 0x440   : > { %1280 = vmax.xlane.f32.xlu0 %v1279_v9 }
 0x44f   : > { %1301 = vrot.lane.b32.xlu1 %v3302_v55, %s3027_s6 }
 0x453   : > { %1396 = vrot.lane.b32.xlu1 %v3300_v53, %s3028_s26 }
 0x457   : > { %1394 = vrot.lane.b32.xlu1 %v3302_v55, %s3028_s26  ;;  %s3039_s26 = smov 12  }
 0x45b   : > { %1392 = vrot.lane.b32.xlu1 %v3300_v53, %s3029_s18 }
 0x4c7   : > { %v1284_v10 = vpop.xlane.xlu1 %1283 }
 0x4c8   : > { %v1286_v11 = vsub.f32 %v1278_v5, %v1284_v10 }
 0x4c9   : > { %v1281_v12 = vpop.xlane.xlu0 %1280 }
 0x4ca   : > { %v1289_v13 = vmul.f32 1.442695, %v1286_v11  ;;  %v1285_v14 = vsub.f32 %v1277_v8, %v1281_v12 }
 0x4cb   : > { %v1302_v24 = vpop.permute.xlu1 %1301 }
 0x4cc   : > { %2972 = vpow2.f32 %v1289_v13  ;;  %v1287_v15 = vmul.f32 1.442695, %v1285_v14 }
 0x4ce   : > { %2974 = vpow2.f32 %v1287_v15 }
 0x4cf   : > { %v1397_v26 = vpop.permute.xlu1 %1396 }
 0x4d3   : > { %v1395_v32 = vpop.permute.xlu1 %1394 }
 0x4d7   : > { %v1393_v33 = vpop.permute.xlu1 %1392 }
 0x4d9   : > { %v2973_v16 = vpop.eup %2972 }
 0x4da   : > { %v1294_v17 = vsel %vm1051_vm2, %v2973_v16, 0.0 }
 0x4db   : > { %v2975_v20 = vpop.eup %2974  ;;  %1295 = vadd.xlane.f32.xlu0 %v1294_v17 }
 0x4dc   : > { %v1291_v21 = vsel %vm1051_vm2, %v2975_v20, 0.0 }
 0x4df   : > { %1292 = vadd.xlane.f32.xlu0 %v1291_v21 }
 0x4f5   : > { %1303 = vrot.lane.b32.xlu0 %v3300_v53, %s3027_s6  ;;  %s3038_s6 = smov 8  }
 0x4f9   : > { %1390 = vrot.lane.b32.xlu0 %v3302_v55, %s3029_s18  ;;  %s3578_s18 = sld [smem:[#allocation16_spill]] (!%p2750_p5) }
 0x564   : > { %v1296_v22 = vpop.xlane.xlu0 %1295 }
 0x565   : > { %2976 = vrcp.f32 %v1296_v22 }
 0x568   : > { %v1293_v23 = vpop.xlane.xlu0 %1292 }
 0x569   : > { %2978 = vrcp.f32 %v1293_v23 }
 0x56c   : > { %v1304_v25 = vpop.permute.xlu0 %1303 }
 0x56d   : > { %2853 = vmatprep.subr.mxu0 %v1304_v25 }
 0x56e   : > { %2854 = vmatpush3.msra.mxu0 %v1304_v25 }
 0x56f   : > { %2855 = vmatprep.subr.mxu0 %v1302_v24 }
 0x570   : > { %2856 = vmatpush3.msra.mxu0 %v1302_v24  ;;  %v1391_v31 = vpop.permute.xlu0 %1390 }
 0x571   : > { %2860 = vmatprep.subr.msk.mxu0 %vm1191_vm3, %v1397_v26 }
 0x572   : > { %v2977_v27 = vpop.eup %2976 }
 0x573   : > { %v1300_v30 = vmul.f32 %v2977_v27, %v2973_v16 }
 0x576   : > { %v2979_v28 = vpop.eup %2978 }
 0x577   : > { %v1298_v29 = vmul.f32 %v2979_v28, %v2975_v20 }
 0x579   : > { %2857 = vmatprep.mubr.msk.f32.mxu0 %vm1051_vm2, %v1298_v29 }
 0x57a   : > { %2858 = vmatmul.mubr.msk.f32.vlgmr.msra.gmra.mxu0 %vm1051_vm2, %v1300_v30 }
 0x57b   : > { %2861 = vmatpush3.xpose.msk.msra.mxu0 %vm1191_vm3, %v1397_v26  ;;  %2864 = vmatprep.mubr.msk.f32.mxu0 %vm1191_vm3, %v1391_v31 }
 0x57c   : > { %2862 = vmatprep.subr.msk.mxu0 %vm1191_vm3, %v1395_v32 }
 0x57f   : > { %2863 = vmatpush3.xpose.msk.msra.mxu0 %vm1191_vm3, %v1395_v32 }
 0x582   : > { %2865 = vmatmul.mubr.msk.f32.vlgmr.msra.gmra.mxu0 %vm1191_vm3, %v1393_v33 }
 0x63a   : > { %v2859_v34 = vpop.f32.mrf.mxu0 }
 0x63b   : > { %1389 = vst.msk [vmem:[#allocation3 + $0x8] sm:$0xff] %vm1191_vm3, %v2859_v34 }
 0x63c   : > { %v1379_v35 = vpop.f32.mrf.mxu0 }
 0x63d   : > { %1388 = vst.msk [vmem:[#allocation3] sm:$0xff] %vm1191_vm3, %v1379_v35 }
 0x642   : > { %v2866_v36 = vpop.f32.mrf.mxu0 }
 0x643   : > { %v1482_v37 = vmul.f32 0.5, %v2866_v36 }
 0x644   : > { %v1472_v38 = vpop.f32.mrf.mxu0 }
 0x645   : > { %v1481_v39 = vmul.f32 0.5, %v1472_v38  ;;  %v1484_v40 = vadd.f32 %v1482_v37, %v3323_v2 }
 0x647   : > { %v1488_v41 = vsel %vm1051_vm2, %v1484_v40, -inf  ;;  %v1483_v42 = vadd.f32 %v1481_v39, %v3326_v6 }
 0x648   : > { %1489 = vmax.xlane.f32.xlu1 %v1488_v41 }
 0x649   : > { %v1485_v43 = vsel %vm1051_vm2, %v1483_v42, -inf }
 0x64a   : > { %1486 = vmax.xlane.f32.xlu0 %v1485_v43 }
 0x659   : > { %1507 = vrot.lane.b32.xlu1 %v3302_v55, %s3030_s1 }
 0x65d   : > { %1611 = vrot.lane.b32.xlu1 %v3300_v53, %s3031_s27 }
 0x661   : > { %1609 = vrot.lane.b32.xlu1 %v3302_v55, %s3031_s27 }
 0x665   : > { %1607 = vrot.lane.b32.xlu1 %v3300_v53, %s3032_s4 }
 0x6d1   : > { %v1490_v44 = vpop.xlane.xlu1 %1489 }
 0x6d2   : > { %v1492_v45 = vsub.f32 %v1484_v40, %v1490_v44 }
 0x6d3   : > { %v1487_v46 = vpop.xlane.xlu0 %1486 }
 0x6d4   : > { %v1495_v47 = vmul.f32 1.442695, %v1492_v45  ;;  %v1491_v48 = vsub.f32 %v1483_v42, %v1487_v46 }
 0x6d5   : > { %v1508_v58 = vpop.permute.xlu1 %1507 }
 0x6d6   : > { %2980 = vpow2.f32 %v1495_v47  ;;  %v1493_v49 = vmul.f32 1.442695, %v1491_v48 }
 0x6d8   : > { %2982 = vpow2.f32 %v1493_v49 }
 0x6d9   : > { %v1612_v60 = vpop.permute.xlu1 %1611 }
 0x6dd   : > { %v1610_v3 = vpop.permute.xlu1 %1609 }
 0x6e1   : > { %v1608_v4 = vpop.permute.xlu1 %1607 }
 0x6e3   : > { %v2981_v50 = vpop.eup %2980 }
 0x6e4   : > { %v1500_v51 = vsel %vm1051_vm2, %v2981_v50, 0.0 }
 0x6e5   : > { %v2983_v52 = vpop.eup %2982  ;;  %1501 = vadd.xlane.f32.xlu0 %v1500_v51 }
 0x6e6   : > { %v1497_v54 = vsel %vm1051_vm2, %v2983_v52, 0.0 }
 0x6e9   : > { %1498 = vadd.xlane.f32.xlu0 %v1497_v54 }
 0x6ff   : > { %1509 = vrot.lane.b32.xlu0 %v3300_v53, %s3030_s1  ;;  %s3574_s1 = sld [smem:[#allocation15_spill]] }
 0x703   : > { %1605 = vrot.lane.b32.xlu0 %v3302_v55, %s3032_s4  ;;  %s3579_s4 = sld [smem:[#allocation17_spill]] (!%p2750_p5) }
 0x705   : > { %s3575_s27 = scalar_lea.vmem %s3574_s1, %s3185_s23 }
 0x76e   : > { %v1502_v56 = vpop.xlane.xlu0 %1501 }
 0x76f   : > { %2984 = vrcp.f32 %v1502_v56 }
 0x772   : > { %v1499_v57 = vpop.xlane.xlu0 %1498 }
 0x773   : > { %2986 = vrcp.f32 %v1499_v57 }
 0x776   : > { %v1510_v59 = vpop.permute.xlu0 %1509 }
 0x777   : > { %2867 = vmatprep.subr.mxu1 %v1510_v59 }
 0x778   : > { %2868 = vmatpush3.msra.mxu1 %v1510_v59 }
 0x779   : > { %2869 = vmatprep.subr.mxu1 %v1508_v58 }
 0x77a   : > { %2870 = vmatpush3.msra.mxu1 %v1508_v58  ;;  %v1606_v1 = vpop.permute.xlu0 %1605 }
 0x77b   : > { %2874 = vmatprep.subr.msk.mxu1 %vm1191_vm3, %v1612_v60 }
 0x77c   : > { %v2985_v61 = vpop.eup %2984 }
 0x77d   : > { %v1506_v0 = vmul.f32 %v2985_v61, %v2981_v50 }
 0x780   : > { %v2987_v62 = vpop.eup %2986 }
 0x781   : > { %v1504_v63 = vmul.f32 %v2987_v62, %v2983_v52 }
 0x783   : > { %2871 = vmatprep.mubr.msk.f32.mxu1 %vm1051_vm2, %v1504_v63 }
 0x784   : > { %2872 = vmatmul.mubr.msk.f32.vlgmr.msra.gmra.mxu1 %vm1051_vm2, %v1506_v0 }
 0x785   : > { %2875 = vmatpush3.xpose.msk.msra.mxu1 %vm1191_vm3, %v1612_v60  ;;  %2878 = vmatprep.mubr.msk.f32.mxu1 %vm1191_vm3, %v1606_v1 }
 0x786   : > { %2876 = vmatprep.subr.msk.mxu1 %vm1191_vm3, %v1610_v3 }
 0x789   : > { %2877 = vmatpush3.xpose.msk.msra.mxu1 %vm1191_vm3, %v1610_v3 }
 0x78c   : > { %2879 = vmatmul.mubr.msk.f32.vlgmr.msra.gmra.mxu1 %vm1191_vm3, %v1608_v4 }
 0x844   : > { %v3369_v5 = vpop.f32.mrf.mxu1 }
 0x846   : > { %v3371_v7 = vpop.f32.mrf.mxu1 }
 0x84c   : > { %v2880_v8 = vpop.f32.mrf.mxu1 }
 0x84d   : > { %v1697_v9 = vmul.f32 0.5, %v2880_v8 }
 0x84e   : > { %v1687_v10 = vpop.f32.mrf.mxu1 }
 0x84f   : > { %v1696_v11 = vmul.f32 0.5, %v1687_v10  ;;  %v1699_v12 = vadd.f32 %v1697_v9, %v3323_v2  ;;  %v2037_v9 = vld [vmem:[%s3200_s2] sm:$0xff] }
 0x851   : > { %v1703_v13 = vsel %vm1051_vm2, %v1699_v12, -inf  ;;  %v1698_v14 = vadd.f32 %v1696_v11, %v3326_v6 }
 0x852   : > { %1704 = vmax.xlane.f32.xlu1 %v1703_v13 }
 0x853   : > { %v1700_v15 = vsel %vm1051_vm2, %v1698_v14, -inf }
 0x854   : > { %1701 = vmax.xlane.f32.xlu0 %v1700_v15 }
 0x863   : > { %1722 = vrot.lane.b32.xlu1 %v3302_v55, %s3033_s7 }
 0x867   : > { %1826 = vrot.lane.b32.xlu1 %v3300_v53, %s3034_s29 }
 0x86b   : > { %1824 = vrot.lane.b32.xlu1 %v3302_v55, %s3034_s29  ;;  %s3580_s29 = sld [smem:[#allocation20_spill]] (!%p2750_p5) }
 0x86f   : > { %1822 = vrot.lane.b32.xlu1 %v3300_v53, %s3035_s24 }
 0x8db   : > { %v1705_v16 = vpop.xlane.xlu1 %1704 }
 0x8dc   : > { %v1707_v17 = vsub.f32 %v1699_v12, %v1705_v16 }
 0x8dd   : > { %v1702_v20 = vpop.xlane.xlu0 %1701 }
 0x8de   : > { %v1710_v21 = vmul.f32 1.442695, %v1707_v17  ;;  %v1706_v22 = vsub.f32 %v1698_v14, %v1702_v20  ;;  %v2741_v17 = vld [vmem:[%s3575_s27] ss:$0 sm:$0xff] }
 0x8df   : > { %v1723_v30 = vpop.permute.xlu1 %1722 }
 0x8e0   : > { %2988 = vpow2.f32 %v1710_v21  ;;  %v1708_v23 = vmul.f32 1.442695, %v1706_v22 }
 0x8e2   : > { %2990 = vpow2.f32 %v1708_v23 }
 0x8e3   : > { %v1827_v32 = vpop.permute.xlu1 %1826 }
 0x8e7   : > { %v1825_v38 = vpop.permute.xlu1 %1824 }
 0x8eb   : > { %v1823_v39 = vpop.permute.xlu1 %1822 }
 0x8ed   : > { %v2989_v24 = vpop.eup %2988 }
 0x8ee   : > { %v1715_v25 = vsel %vm1051_vm2, %v2989_v24, 0.0 }
 0x8ef   : > { %v2991_v26 = vpop.eup %2990  ;;  %1716 = vadd.xlane.f32.xlu0 %v1715_v25 }
 0x8f0   : > { %v1712_v27 = vsel %vm1051_vm2, %v2991_v26, 0.0 }
 0x8f3   : > { %1713 = vadd.xlane.f32.xlu0 %v1712_v27 }
 0x909   : > { %1724 = vrot.lane.b32.xlu0 %v3300_v53, %s3033_s7 }
 0x90d   : > { %1820 = vrot.lane.b32.xlu0 %v3302_v55, %s3035_s24  ;;  %s3576_s24 = scalar_lea.vmem %s3527_s17, %s3185_s23 }
 0x978   : > { %v1717_v28 = vpop.xlane.xlu0 %1716 }
 0x979   : > { %2992 = vrcp.f32 %v1717_v28 }
 0x97c   : > { %v1714_v29 = vpop.xlane.xlu0 %1713 }
 0x97d   : > { %2994 = vrcp.f32 %v1714_v29 }
 0x980   : > { %v1725_v31 = vpop.permute.xlu0 %1724 }
 0x981   : > { %2881 = vmatprep.subr.mxu0 %v1725_v31 }
 0x982   : > { %2882 = vmatpush3.msra.mxu0 %v1725_v31 }
 0x983   : > { %2883 = vmatprep.subr.mxu0 %v1723_v30 }
 0x984   : > { %2884 = vmatpush3.msra.mxu0 %v1723_v30  ;;  %v1821_v37 = vpop.permute.xlu0 %1820 }
 0x985   : > { %2888 = vmatprep.subr.msk.mxu0 %vm1191_vm3, %v1827_v32 }
 0x986   : > { %v2993_v33 = vpop.eup %2992 }
 0x987   : > { %v1721_v36 = vmul.f32 %v2993_v33, %v2989_v24 }
 0x98a   : > { %v2995_v34 = vpop.eup %2994 }
 0x98b   : > { %v1719_v35 = vmul.f32 %v2995_v34, %v2991_v26 }
 0x98d   : > { %2885 = vmatprep.mubr.msk.f32.mxu0 %vm1051_vm2, %v1719_v35  ;;  %v2176_v35 = vld [vmem:[%s3225_s21 + $0x8] sm:$0xff] }
 0x98e   : > { %2886 = vmatmul.mubr.msk.f32.vlgmr.msra.gmra.mxu0 %vm1051_vm2, %v1721_v36  ;;  %v2175_v36 = vld [vmem:[%s3225_s21] sm:$0xff] }
 0x98f   : > { %2889 = vmatpush3.xpose.msk.msra.mxu0 %vm1191_vm3, %v1827_v32  ;;  %2892 = vmatprep.mubr.msk.f32.mxu0 %vm1191_vm3, %v1821_v37 }
 0x990   : > { %2890 = vmatprep.subr.msk.mxu0 %vm1191_vm3, %v1825_v38 }
 0x993   : > { %2891 = vmatpush3.xpose.msk.msra.mxu0 %vm1191_vm3, %v1825_v38 }
 0x994   : > { %2909 = vmatprep.subr.mxu0 %v2176_v35 }
 0x996   : > { %2893 = vmatmul.mubr.msk.f32.vlgmr.msra.gmra.mxu0 %vm1191_vm3, %v1823_v39 }
 0x997   : > { %2910 = vmatpush3.msra.mxu0 %v2176_v35 }
 0x998   : > { %2911 = vmatprep.subr.mxu0 %v2175_v36 }
 0x999   : > { %2912 = vmatpush3.msra.mxu0 %v2175_v36 }
 0xa4e   : > { %v2887_v40 = vpop.f32.mrf.mxu0 }
 0xa50   : > { %v1800_v41 = vpop.f32.mrf.mxu0 }
 0xa56   : > { %v2894_v42 = vpop.f32.mrf.mxu0 }
 0xa57   : > { %v1912_v43 = vmul.f32 0.5, %v2894_v42 }
 0xa58   : > { %v1902_v44 = vpop.f32.mrf.mxu0 }
 0xa59   : > { %v1911_v45 = vmul.f32 0.5, %v1902_v44  ;;  %v1914_v46 = vadd.f32 %v1912_v43, %v3323_v2  ;;  %v2742_v44 = vld [vmem:[%s902_s28] ss:$0 sm:$0xff] }
 0xa5b   : > { %v1918_v47 = vsel %vm1051_vm2, %v1914_v46, -inf  ;;  %v1913_v48 = vadd.f32 %v1911_v45, %v3326_v6 }
 0xa5c   : > { %1919 = vmax.xlane.f32.xlu1 %v1918_v47 }
 0xa5d   : > { %v1915_v49 = vsel %vm1051_vm2, %v1913_v48, -inf }
 0xa5e   : > { %1916 = vmax.xlane.f32.xlu0 %v1915_v49 }
 0xa6d   : > { %1937 = vrot.lane.b32.xlu1 %v3302_v55, %s3036_s9 }
 0xa71   : > { %1596 = vrot.lane.b32.xlu1 %v3371_v7, %s3037_s19 }
 0xa75   : > { %1598 = vrot.lane.b32.xlu1 %v3369_v5, %s3037_s19  ;;  %s3582_s19 = sld [smem:[#allocation19_spill]] (!%p2750_p5) }
 0xa79   : > { %1813 = vrot.lane.b32.xlu1 %v2887_v40, %s3038_s6 }
 0xae5   : > { %v1920_v50 = vpop.xlane.xlu1 %1919 }
 0xae6   : > { %v1922_v2 = vsub.f32 %v1914_v46, %v1920_v50  ;;  %v2743_v46 = vld [vmem:[%s905_s0] ss:$0 sm:$0xff] }
 0xae7   : > { %v1917_v51 = vpop.xlane.xlu0 %1916 }
 0xae8   : > { %v1925_v52 = vmul.f32 1.442695, %v1922_v2  ;;  %v1921_v54 = vsub.f32 %v1913_v48, %v1917_v51 }
 0xae9   : > { %v1938_v6 = vpop.permute.xlu1 %1937 }
 0xaea   : > { %2996 = vpow2.f32 %v1925_v52  ;;  %v1923_v56 = vmul.f32 1.442695, %v1921_v54  ;;  %v2290_v52 = vld [vmem:[%s3235_s25 + $0x38] sm:$0xff]  ;;  %v2289_v54 = vld [vmem:[%s3235_s25 + $0x30] sm:$0xff] }
 0xaec   : > { %2998 = vpow2.f32 %v1923_v56  ;;  %v2287_v56 = vld [vmem:[%s3235_s25 + $0x20] sm:$0xff] }
 0xaed   : > { %v1597_v57 = vpop.permute.xlu1 %1596 }
 0xaee   : > { %1603 = vst.msk [vmem:[#allocation3] sm:$0xff] %vm1602_vm6, %v1597_v57  ;;  %v2286_v57 = vld [vmem:[%s3235_s25 + $0x18] sm:$0xff] }
 0xaf1   : > { %v1599_v55 = vpop.permute.xlu1 %1598 }
 0xaf2   : > { %1604 = vst.msk [vmem:[#allocation3 + $0x8] sm:$0xff] %vm1602_vm6, %v1599_v55  ;;  %v2285_v55 = vld [vmem:[%s3235_s25 + $0x10] sm:$0xff] }
 0xaf5   : > { %v1814_v58 = vpop.permute.xlu1 %1813 }
 0xaf6   : > { %1819 = vst.msk [vmem:[#allocation3 + $0x8] sm:$0xff] %vm1817_vm7, %v1814_v58  ;;  %v2284_v58 = vld [vmem:[%s3235_s25 + $0x8] sm:$0xff] }
 0xaf7   : > { %v2997_v59 = vpop.eup %2996 }
 0xaf8   : > { %v1930_v60 = vsel %vm1051_vm2, %v2997_v59, 0.0 }
 0xaf9   : > { %v2999_v61 = vpop.eup %2998  ;;  %1931 = vadd.xlane.f32.xlu0 %v1930_v60  ;;  %v2744_v60 = vld [vmem:[%s913_s22] ss:$0 sm:$0xff] }
 0xafa   : > { %v1927_v62 = vsel %vm1051_vm2, %v2999_v61, 0.0 }
 0xafd   : > { %1928 = vadd.xlane.f32.xlu0 %v1927_v62 }
 0xb13   : > { %1939 = vrot.lane.b32.xlu0 %v3300_v53, %s3036_s9  ;;  %v2038_v53 = vld [vmem:[%s3200_s2 + $0x8] sm:$0xff]  ;;  %s3577_s9 = sld [smem:[#allocation18_spill]] (!%p2750_p5) }
 0xb14   : > { %s3583_s2 = sld [smem:[#allocation21_spill]] (!%p2750_p5) }
 0xb17   : > { %1811 = vrot.lane.b32.xlu0 %v1800_v41, %s3038_s6 }
 0xb82   : > { %v1932_v63 = vpop.xlane.xlu0 %1931 }
 0xb83   : > { %3000 = vrcp.f32 %v1932_v63 }
 0xb86   : > { %v1929_v0 = vpop.xlane.xlu0 %1928 }
 0xb87   : > { %3002 = vrcp.f32 %v1929_v0 }
 0xb8a   : > { %v1940_v1 = vpop.permute.xlu0 %1939 }
 0xb8b   : > { %2895 = vmatprep.subr.mxu1 %v1940_v1 }
 0xb8c   : > { %2896 = vmatpush3.msra.mxu1 %v1940_v1 }
 0xb8d   : > { %2897 = vmatprep.subr.mxu1 %v1938_v6 }
 0xb8e   : > { %2898 = vmatpush3.msra.mxu1 %v1938_v6  ;;  %v1812_v3 = vpop.permute.xlu0 %1811  ;;  %v2288_v6 = vld [vmem:[%s3235_s25 + $0x28] sm:$0xff] }
 0xb8f   : > { %1818 = vst.msk [vmem:[#allocation3] sm:$0xff] %vm1817_vm7, %v1812_v3  ;;  %2902 = vmatprep.subr.mxu1 %v2038_v53 }
 0xb90   : > { %v3001_v4 = vpop.eup %3000 }
 0xb91   : > { %v1936_v8 = vmul.f32 %v3001_v4, %v2997_v59  ;;  %v2283_v59 = vld [vmem:[%s3235_s25] sm:$0xff]  ;;  %s3581_s25 = sld [smem:[#allocation22_spill]] (!%p2750_p5) }
 0xb94   : > { %v3003_v5 = vpop.eup %3002 }
 0xb95   : > { %v1934_v7 = vmul.f32 %v3003_v5, %v2999_v61 }
 0xb97   : > { %2899 = vmatprep.mubr.msk.f32.mxu1 %vm1051_vm2, %v1934_v7 }
 0xb98   : > { %2900 = vmatmul.mubr.msk.f32.vlgmr.msra.gmra.mxu1 %vm1051_vm2, %v1936_v8 }
 0xb99   : > { %2903 = vmatpush3.msra.mxu1 %v2038_v53 }
 0xb9a   : > { %2904 = vmatprep.subr.mxu1 %v2037_v9 }
 0xb9b   : > { %2905 = vmatpush3.msra.mxu1 %v2037_v9 }
 0xb9c   : > { %2916 = vmatprep.subr.mxu1 %v2290_v52 }
 0xc58   : > { %v2901_v10 = vpop.f32.mrf.mxu1 }
 0xc59   : > { %2028 = vrot.lane.b32.xlu1 %v2901_v10, %s3039_s26 }
 0xc5a   : > { %v2015_v11 = vpop.f32.mrf.mxu1 }
 0xc5b   : > { %2026 = vrot.lane.b32.xlu0 %v2015_v11, %s3039_s26 }
 0xccb   : > { %v2029_v12 = vpop.permute.xlu1 %2028 }
 0xccc   : > { %2034 = vst.msk [vmem:[#allocation3 + $0x8] sm:$0xff] %vm2032_vm8, %v2029_v12 }
 0xccd   : > { %v2027_v13 = vpop.permute.xlu0 %2026 }
 0xcce   : > { %2033 = vst.msk [vmem:[#allocation3] sm:$0xff] %vm2032_vm8, %v2027_v13 }
 0xcd3   : > { %v2036_v15 = vld [vmem:[#allocation3 + $0x8] sm:$0xff] }
 0xcd5   : > { %v2035_v14 = vld [vmem:[#allocation3] sm:$0xff] }
 0xcd6   : > { %2906 = vmatprep.mubr.msk.f32.mxu1 %vm1051_vm2, %v2035_v14 }
 0xcd7   : > { %2907 = vmatmul.mubr.msk.f32.vlgmr.msra.gmra.mxu1 %vm1051_vm2, %v2036_v15 }
 0xcd8   : > { %2917 = vmatpush3.msra.mxu1 %v2290_v52 }
 0xcd9   : > { %2918 = vmatprep.subr.mxu1 %v2289_v54 }
 0xcda   : > { %2919 = vmatpush3.msra.mxu1 %v2289_v54 }
 0xcdb   : > { %2920 = vmatprep.subr.mxu1 %v2288_v6 }
 0xcdc   : > { %2921 = vmatpush3.msra.mxu1 %v2288_v6 }
 0xcdd   : > { %2922 = vmatprep.subr.mxu1 %v2287_v56 }
 0xcde   : > { %2923 = vmatpush3.msra.mxu1 %v2287_v56 }
 0xcdf   : > { %2924 = vmatprep.subr.mxu1 %v2286_v57 }
 0xce0   : > { %2925 = vmatpush3.msra.mxu1 %v2286_v57 }
 0xce1   : > { %2926 = vmatprep.subr.mxu1 %v2285_v55 }
 0xce2   : > { %2927 = vmatpush3.msra.mxu1 %v2285_v55 }
 0xce3   : > { %2928 = vmatprep.subr.mxu1 %v2284_v58 }
 0xce4   : > { %2929 = vmatpush3.msra.mxu1 %v2284_v58 }
 0xce5   : > { %2930 = vmatprep.subr.mxu1 %v2283_v59 }
 0xce6   : > { %2931 = vmatpush3.msra.mxu1 %v2283_v59 }
 0xd97   : > { %v2908_v16 = vpop.f32.mrf.mxu1 }
 0xd98   : > { %v2121_v20 = vadd.f32 %v2908_v16, %v3271_v19 }
 0xd99   : > { %v2111_v21 = vpop.f32.mrf.mxu1 }
 0xd9a   : > { %v3417_v22 = vadd.f32 %v2741_v17, %v2121_v20  ;;  %v2120_v23 = vadd.f32 %v2111_v21, %v3269_v18 }
 0xd9c   : > { %v3420_v24 = vadd.f32 %v2741_v17, %v2120_v23  ;;  %v2136_v25 = vsel %vm1051_vm2, %v3417_v22, 0.0  ;;  %v2747_v23 = vld [vmem:[%s3576_s24] ss:$0 sm:$0xff] }
 0xd9d   : > { %2137 = vadd.xlane.f32.xlu1 %v2136_v25 }
 0xd9e   : > { %v2133_v26 = vsel %vm1051_vm2, %v3420_v24, 0.0 }
 0xd9f   : > { %2134 = vadd.xlane.f32.xlu0 %v2133_v26 }
 0xe26   : > { %v2138_v27 = vpop.xlane.xlu1 %2137 }
 0xe27   : > { %v2140_v28 = vmul.f32 0.0625, %v2138_v27 }
 0xe28   : > { %v2135_v19 = vpop.xlane.xlu0 %2134 }
 0xe29   : > { %v2139_v29 = vmul.f32 0.0625, %v2135_v19  ;;  %v2142_v30 = vsub.f32 %v3417_v22, %v2140_v28 }
 0xe2b   : > { %v2141_v18 = vsub.f32 %v3420_v24, %v2139_v29  ;;  %v2144_v33 = vmul.f32 %v2142_v30, %v2142_v30 }
 0xe2d   : > { %v2143_v31 = vmul.f32 %v2141_v18, %v2141_v18  ;;  %v2148_v34 = vsel %vm1051_vm2, %v2144_v33, 0.0 }
 0xe2f   : > { %v2145_v32 = vsel %vm1051_vm2, %v2143_v31, 0.0 }
 0xe30   : > { %2146 = vadd.xlane.f32.xlu0 %v2145_v32 }
 0xe34   : > { %2149 = vadd.xlane.f32.xlu0 %v2148_v34 }
 0xeb9   : > { %v2147_v37 = vpop.xlane.xlu0 %2146 }
 0xeba   : > { %v2151_v38 = vmul.f32 0.0625, %v2147_v37 }
 0xebc   : > { %v2153_v39 = vadd.f32 1e-05, %v2151_v38 }
 0xebd   : > { %v2150_v40 = vpop.xlane.xlu0 %2149 }
 0xebe   : > { %3004 = vrsqrt.f32 %v2153_v39  ;;  %v2152_v41 = vmul.f32 0.0625, %v2150_v40 }
 0xec0   : > { %v2154_v42 = vadd.f32 1e-05, %v2152_v41 }
 0xec2   : > { %3006 = vrsqrt.f32 %v2154_v42 }
 0xecb   : > { %v3005_v43 = vpop.eup %3004 }
 0xecc   : > { %v2157_v45 = vmul.f32 %v3005_v43, %v2141_v18 }
 0xece   : > { %v2165_v47 = vmul.f32 %v2742_v44, %v2157_v45 }
 0xecf   : > { %v3007_v48 = vpop.eup %3006 }
 0xed0   : > { %v2158_v49 = vmul.f32 %v3007_v48, %v2142_v30  ;;  %v2173_v50 = vadd.f32 %v2743_v46, %v2165_v47 }
 0xed2   : > { %v2166_v2 = vmul.f32 %v2742_v44, %v2158_v49  ;;  %2913 = vmatprep.mubr.msk.f32.mxu0 %vm1051_vm2, %v2173_v50 }
 0xed4   : > { %v2174_v51 = vadd.f32 %v2743_v46, %v2166_v2 }
 0xed6   : > { %2914 = vmatmul.mubr.msk.f32.vlgmr.msra.gmra.mxu0 %vm1051_vm2, %v2174_v51 }
 0xf96   : > { %v2915_v61 = vpop.f32.mrf.mxu0 }
 0xf97   : > { %v2262_v62 = vadd.f32 %v2915_v61, %v2744_v60 }
 0xf98   : > { %v2256_v63 = vpop.f32.mrf.mxu0 }
 0xf99   : > { %v2266_v0 = vmul.f32 %v2262_v62, %v2262_v62  ;;  %v2257_v1 = vadd.f32 %v2744_v60, %v2256_v63 }
 0xf9b   : > { %v2268_v3 = vmul.f32 %v2266_v0, %v2262_v62  ;;  %v2265_v4 = vmul.f32 %v2257_v1, %v2257_v1 }
 0xf9d   : > { %v2270_v5 = vmul.f32 0.044715, %v2268_v3  ;;  %v2267_v7 = vmul.f32 %v2265_v4, %v2257_v1 }
 0xf9f   : > { %v2272_v8 = vadd.f32 %v2270_v5, %v2262_v62  ;;  %v2269_v53 = vmul.f32 0.044715, %v2267_v7 }
 0xfa1   : > { %v2274_v9 = vmul.f32 0.7978846, %v2272_v8  ;;  %v2271_v10 = vadd.f32 %v2269_v53, %v2257_v1 }
 0xfa3   : > { %3008 = vtanh.f32 %v2274_v9  ;;  %v2273_v11 = vmul.f32 0.7978846, %v2271_v10 }
 0xfa5   : > { %3010 = vtanh.f32 %v2273_v11 }
 0xfb0   : > { %v3009_v12 = vpop.eup %3008 }
 0xfb1   : > { %v2278_v13 = vadd.f32 1.0, %v3009_v12 }
 0xfb2   : > { %v3011_v14 = vpop.eup %3010 }
 0xfb3   : > { %v2277_v15 = vadd.f32 1.0, %v3011_v14  ;;  %v2280_v16 = vmul.f32 0.5, %v2278_v13 }
 0xfb5   : > { %v2279_v17 = vmul.f32 0.5, %v2277_v15  ;;  %v2282_v21 = vmul.f32 %v2280_v16, %v2262_v62 }
 0xfb7   : > { %v2281_v20 = vmul.f32 %v2279_v17, %v2257_v1 }
 0xfb9   : > { %2932 = vmatprep.mubr.msk.f32.mxu1 %vm2298_vm9, %v2281_v20 }
 0xfba   : > { %2933 = vmatmul.mubr.msk.f32.vlgmr.msra.gmra.mxu1 %vm2298_vm9, %v2282_v21 }
0x107a   : > { %v2934_v25 = vpop.f32.mrf.mxu1 }
0x107b   : > { %v2377_v26 = vadd.f32 %v2934_v25, %v2747_v23 }
0x107c   : > { %v2371_v27 = vpop.f32.mrf.mxu1 }
0x107d   : > { %v2381_v28 = vadd.f32 %v2377_v26, %v3417_v22  ;;  %v2372_v19 = vadd.f32 %v2747_v23, %v2371_v27  ;;  %2387 = sbr.rel (%p2750_p5) target bundleno = 4736 (0x1280), region = 124 }
0x107f   : > { %2383 = vst.msk [vmem:[#allocation2 + $0x8] sm:$0xff] %vm1051_vm2, %v2381_v28  ;;  %v2380_v29 = vadd.f32 %v2372_v19, %v3420_v24 }
0x1081   : > { %2382 = vst.msk [vmem:[#allocation2] sm:$0xff] %vm1051_vm2, %v2380_v29 }
0x1082   : > { %v2390_v30 = vsel %vm1051_vm2, %v2380_v29, 0.0  ;;  %v2393_v18 = vsel %vm1051_vm2, %v2381_v28, 0.0  ;;  %v2433_v39 = vld [vmem:[%s3577_s9 + $0x8] sm:$0xff]  ;;  %v2432_v40 = vld [vmem:[%s3577_s9] sm:$0xff]  ;;  %vm2548_vm10 = vcmask 7168  }
0x1083   : > { %2391 = vadd.xlane.f32.xlu0 %v2390_v30  ;;  %2935 = vmatprep.subr.mxu0 %v2433_v39  ;;  %v2751_v48 = vld [vmem:[%s3578_s18] ss:$0 sm:$0xff] }
0x1084   : > { %2936 = vmatpush3.msra.mxu0 %v2433_v39  ;;  %v2752_v50 = vld [vmem:[%s3579_s4] ss:$0 sm:$0xff] }
0x1085   : > { %2937 = vmatprep.subr.mxu0 %v2432_v40  ;;  %v2756_v52 = vld [vmem:[%s3580_s29] ss:$0 sm:$0xff] }
0x1086   : > { %2938 = vmatpush3.msra.mxu0 %v2432_v40  ;;  %v2757_v61 = vld [vmem:[#allocation4] ss:$0 sm:$0xff] }
0x1087   : > { %2394 = vadd.xlane.f32.xlu0 %v2393_v18  ;;  %v2753_v3 = vld [vmem:[%s3582_s19] ss:$0 sm:$0xff] }
0x110c   : > { %v2392_v31 = vpop.xlane.xlu0 %2391 }
0x110d   : > { %v2396_v32 = vmul.f32 0.0625, %v2392_v31 }
0x110f   : > { %v2398_v33 = vsub.f32 %v2380_v29, %v2396_v32 }
0x1110   : > { %v2395_v22 = vpop.xlane.xlu0 %2394 }
0x1111   : > { %v2397_v34 = vmul.f32 0.0625, %v2395_v22  ;;  %v2400_v35 = vmul.f32 %v2398_v33, %v2398_v33 }
0x1113   : > { %v2399_v36 = vsub.f32 %v2381_v28, %v2397_v34  ;;  %v2402_v24 = vsel %vm1051_vm2, %v2400_v35, 0.0 }
0x1114   : > { %2403 = vadd.xlane.f32.xlu1 %v2402_v24 }
0x1115   : > { %v2401_v37 = vmul.f32 %v2399_v36, %v2399_v36 }
0x1117   : > { %v2405_v38 = vsel %vm1051_vm2, %v2401_v37, 0.0 }
0x1118   : > { %2406 = vadd.xlane.f32.xlu1 %v2405_v38 }
0x119d   : > { %v2404_v41 = vpop.xlane.xlu1 %2403 }
0x119e   : > { %v2408_v42 = vmul.f32 0.0625, %v2404_v41 }
0x11a0   : > { %v2410_v43 = vadd.f32 1e-05, %v2408_v42 }
0x11a1   : > { %v2407_v44 = vpop.xlane.xlu1 %2406 }
0x11a2   : > { %3012 = vrsqrt.f32 %v2410_v43  ;;  %v2409_v45 = vmul.f32 0.0625, %v2407_v44 }
0x11a4   : > { %v2411_v46 = vadd.f32 1e-05, %v2409_v45 }
0x11a6   : > { %3014 = vrsqrt.f32 %v2411_v46 }
0x11af   : > { %v3013_v47 = vpop.eup %3012 }
0x11b0   : > { %v2414_v49 = vmul.f32 %v3013_v47, %v2398_v33 }
0x11b2   : > { %v2422_v2 = vmul.f32 %v2751_v48, %v2414_v49 }
0x11b3   : > { %v3015_v51 = vpop.eup %3014 }
0x11b4   : > { %v2415_v54 = vmul.f32 %v3015_v51, %v2399_v36  ;;  %v2430_v6 = vadd.f32 %v2752_v50, %v2422_v2 }
0x11b6   : > { %v2423_v56 = vmul.f32 %v2751_v48, %v2415_v54  ;;  %2939 = vmatprep.mubr.msk.f32.mxu0 %vm1051_vm2, %v2430_v6  ;;  %v2531_v57 = vmul.f32 %v2756_v52, %v2430_v6 }
0x11b8   : > { %v2431_v55 = vadd.f32 %v2752_v50, %v2423_v56  ;;  %v2533_v58 = vsel %vm1051_vm2, %v2531_v57, 0.0 }
0x11b9   : > { %2534 = vadd.xlane.f32.xlu0 %v2533_v58 }
0x11ba   : > { %2940 = vmatmul.mubr.msk.f32.vlgmr.msra.gmra.mxu0 %vm1051_vm2, %v2431_v55  ;;  %v2532_v59 = vmul.f32 %v2756_v52, %v2431_v55 }
0x11bc   : > { %v2536_v60 = vsel %vm1051_vm2, %v2532_v59, 0.0 }
0x11bd   : > { %2537 = vadd.xlane.f32.xlu1 %v2536_v60 }
0x1242   : > { %v2535_v62 = vpop.xlane.xlu0 %2534 }
0x1243   : > { %v2546_v63 = vadd.f32 %v2757_v61, %v2535_v62 }
0x1245   : > { %2549 = vst.msk [vmem:[%s3581_s25] sm:$0xff] %vm2548_vm10, %v2546_v63 }
0x1246   : > { %v2538_v0 = vpop.xlane.xlu1 %2537 }
0x1247   : > { %v2547_v1 = vadd.f32 %v2757_v61, %v2538_v0 }
0x1249   : > { %2550 = vst.msk [vmem:[%s3581_s25 + $0x8] sm:$0xff] %vm2548_vm10, %v2547_v1 }
0x127a   : > { %v2941_v4 = vpop.f32.mrf.mxu0 }
0x127b   : > { %v2519_v5 = vadd.f32 %v2941_v4, %v2753_v3 }
0x127c   : > { %v2513_v7 = vpop.f32.mrf.mxu0 }
0x127d   : > { %2523 = vst.msk [vmem:[%s3583_s2 + $0x8] sm:$0xff] %vm1051_vm2, %v2519_v5  ;;  %v2514_v8 = vadd.f32 %v2753_v3, %v2513_v7 }
0x127f   : > { %2522 = vst.msk [vmem:[%s3583_s2] sm:$0xff] %vm1051_vm2, %v2514_v8 }
0x1280 PF: > { %s3584_s27 = sld [smem:[#allocation5_spill]] }
0x1286   : > { %s38_s6 = sadd.s32 1, %s3584_s27  }
0x1287   : > { %p35_p6 = scmp.ge.s32.totalorder %s38_s6, 4  }
0x1289   :  { %37 = sbr.rel (!%p35_p6) target bundleno = 18 (0x12), region = 191 }

// kernel: mage_forward.3
= control target key start
LH: loop header
LB: loop body
LE: loop exit
PB: predicated region body
PF: predicated region fallthrough
CT: control target
= control target key end

     0   :  { %s3690_s0 = inlined_call_operand.vmem [shape: f32[16,16], index: 0, kind: input, shape index: {}]   ;;  %s3691_s1 = inlined_call_operand.vmem [shape: f32[16,1], index: 1, kind: input, shape index: {}]   ;;  %s3692_s2 = inlined_call_operand.vmem [shape: f32[16,32], index: 2, kind: input, shape index: {}]   ;;  %s3693_s3 = inlined_call_operand.vmem [shape: f32[16,1], index: 3, kind: input, shape index: {}]   ;;  %s3694_s4 = inlined_call_operand.vmem [shape: s32[16,1], index: 4, kind: input, shape index: {}]   ;;  %s3695_s5 = inlined_call_operand.vmem [shape: s32[1,16], index: 5, kind: input, shape index: {}]   ;;  %s3696_s6 = inlined_call_operand.vmem [shape: f32[16,32], index: 6, kind: input, shape index: {}]   ;;  %s3697_s7 = inlined_call_operand.vmem [shape: f32[1,32], index: 7, kind: input, shape index: {}]   ;;  %s3698_s8 = inlined_call_operand.vmem [shape: f32[32,32], index: 8, kind: input, shape index: {}]   ;;  %s3699_s9 = inlined_call_operand.vmem [shape: f32[1,32], index: 9, kind: input, shape index: {}]   ;;  %s3700_s10 = inlined_call_operand.vmem [shape: f32[1,32], index: 10, kind: input, shape index: {}]   ;;  %s3701_s11 = inlined_call_operand.vmem [shape: f32[1,32], index: 11, kind: input, shape index: {}]   ;;  %s3702_s12 = inlined_call_operand.vmem [shape: f32[1,32], index: 12, kind: input, shape index: {}]   ;;  %s3703_s13 = inlined_call_operand.vmem [shape: f32[2,32,96], index: 13, kind: input, shape index: {}]   ;;  %s3704_s14 = inlined_call_operand.vmem [shape: f32[2,1,96], index: 14, kind: input, shape index: {}]   ;;  %s3705_s15 = inlined_call_operand.vmem [shape: f32[2,32,32], index: 15, kind: input, shape index: {}]   ;;  %s3706_s16 = inlined_call_operand.vmem [shape: f32[2,1,32], index: 16, kind: input, shape index: {}]   ;;  %s3707_s17 = inlined_call_operand.vmem [shape: f32[2,1,32], index: 17, kind: input, shape index: {}]   ;;  %s3708_s18 = inlined_call_operand.vmem [shape: f32[2,1,32], index: 18, kind: input, shape index: {}]   ;;  %s3709_s19 = inlined_call_operand.vmem [shape: f32[2,1,32], index: 19, kind: input, shape index: {}]   ;;  %s3710_s20 = inlined_call_operand.vmem [shape: f32[2,1,32], index: 20, kind: input, shape index: {}]   ;;  %s3711_s21 = inlined_call_operand.vmem [shape: f32[2,32,128], index: 21, kind: input, shape index: {}]   ;;  %s3712_s22 = inlined_call_operand.vmem [shape: f32[2,1,128], index: 22, kind: input, shape index: {}]   ;;  %s3713_s23 = inlined_call_operand.vmem [shape: f32[2,128,32], index: 23, kind: input, shape index: {}]   ;;  %s3714_s24 = inlined_call_operand.vmem [shape: f32[2,1,32], index: 24, kind: input, shape index: {}]   ;;  %s3715_s25 = inlined_call_operand.vmem [shape: f32[1,32], index: 25, kind: input, shape index: {}]   ;;  %s3716_s26 = inlined_call_operand.vmem [shape: f32[1,32], index: 26, kind: input, shape index: {}]   ;;  %s3717_s27 = inlined_call_operand.vmem [shape: f32[16,32], index: 27, kind: output, shape index: {}]  }
   0x1   :  { %3728 = sst [smem:[#allocation6_spill]] %s3690_s0 }
   0x2   :  { %3729 = sst [smem:[#allocation7_spill]] %s3691_s1 }
   0x3   :  { %3730 = sst [smem:[#allocation8_spill]] %s3692_s2 }
   0x4   :  { %3731 = sst [smem:[#allocation9_spill]] %s3693_s3 }
   0x5   :  { %3732 = sst [smem:[#allocation10_spill]] %s3694_s4 }
   0x6   :  { %3733 = sst [smem:[#allocation11_spill]] %s3695_s5 }
   0x7   :  { %3734 = sst [smem:[#allocation12_spill]] %s3696_s6 }
   0x8   :  { %3735 = sst [smem:[#allocation13_spill]] %s3697_s7  ;;  %s3325_s7 = smov 0  }
   0x9   :  { %3736 = sst [smem:[#allocation14_spill]] %s3698_s8 }
   0xa   :  { %3737 = sst [smem:[#allocation15_spill]] %s3699_s9 }
   0xb   :  { %3738 = sst [smem:[#allocation16_spill]] %s3700_s10 }
   0xc   :  { %3739 = sst [smem:[#allocation17_spill]] %s3701_s11 }
   0xd   :  { %3740 = sst [smem:[#allocation18_spill]] %s3703_s13 }
   0xe   :  { %3741 = sst [smem:[#allocation19_spill]] %s3704_s14 }
   0xf   :  { %3742 = sst [smem:[#allocation20_spill]] %s3705_s15 }
  0x10   :  { %3743 = sst [smem:[#allocation21_spill]] %s3715_s25 }
  0x11   :  { %3744 = sst [smem:[#allocation22_spill]] %s3716_s26 }
  0x12   :  { %3745 = sst [smem:[#allocation23_spill]] %s3717_s27 }
  0x13 LB: > { %3746 = sst [smem:[#allocation4_spill]] %s3166_s7  ;;  %s3331_s4 = sadd.s32 4294967295, %s3166_s7   ;;  %s3166_s7 = sphi %s3325_s7, %s37_s7  }
  0x14   : > { %p2796_p0 = scmp.ge.s32.totalorder %s3166_s7, 1  ;;  %p826_p1 = scmp.lt.s32.totalorder %s3166_s7, 3 }
  0x16   : > { %p827_p2 = pnand %p2796_p0, %p826_p1 }
  0x18   : > { %830 = sbr.rel (%p827_p2) target bundleno = 3715 (0xe83), region = 128 }
  0x1d   : > { %p932_p3 = scmp.lt.s32.totalorder %s3331_s4, 1  ;;  %s3748_s13 = sld [smem:[#allocation18_spill]] }
  0x1e   : > { %s3749_s15 = sld [smem:[#allocation20_spill]]  ;;  %p2805_p4 = scmp.ne.s32.totalorder %s3331_s4, 0 }
  0x1f   : > { %s3337_s8 = scalar_select %p932_p3, %s3331_s4, 1 }
  0x20   : > { %s3752_s9 = sld [smem:[#allocation6_spill]] (!%p2805_p4) }
  0x21   : > { %s2859_s30 = sshll.u32 %s3337_s8, 5  ;;  %s950_s25 = scalar_lea.vmem %s3707_s17, %s3337_s8 }
  0x22   : > { %s3377_s2 = scalar_lea.vmem %s3711_s21, %s2859_s30  ;;  %s2862_s7 = sshll.u32 %s3337_s8, 7 }
  0x23   : > { %s3347_s29 = scalar_lea.vmem %s3748_s13, %s2859_s30  ;;  %s956_s13 = scalar_lea.vmem %s3709_s19, %s3337_s8 }
  0x24   : > { %s3352_s11 = scalar_lea.vmem %s3749_s15, %s2859_s30  ;;  %s3387_s28 = scalar_lea.vmem %s3713_s23, %s2862_s7 }
  0x25   : > { %3750 = sst [smem:[#allocation5_spill]] %s3352_s11  ;;  %979 = sbr.rel (%p2805_p4) target bundleno = 457 (0x1c9), region = 132 }
  0x26   : > { %s3751_s11 = sld [smem:[#allocation12_spill]] (!%p2805_p4) }
  0x27   : > { %s3753_s15 = sld [smem:[#allocation14_spill]] (!%p2805_p4) }
  0x28   : > { %s3754_s10 = sld [smem:[#allocation7_spill]] (!%p2805_p4) }
  0x29   : > { %s3755_s14 = sld [smem:[#allocation9_spill]] (!%p2805_p4) }
  0x2a   : > { %v980_v2 = vld [vmem:[%s3752_s9] sm:$0xff]  ;;  %vm991_vm0 = vcmask 130048   ;;  %v981_v3 = vld [vmem:[%s3752_s9 + $0x8] sm:$0xff]  ;;  %v3168_v10 = vmov 0   ;;  %s3756_s30 = sld [smem:[#allocation13_spill]]  ;;  %vm1086_vm1 = vcmask 261120  }
  0x2b   : > { %2945 = vmatprep.mubr.msk.f32.mxu0 %vm991_vm0, %v980_v2  ;;  %3108 = vset.pattern.permute.xlu0 %v3168_v10  ;;  %s3757_s3 = sld [smem:[#allocation16_spill]]  ;;  %v2814_v41 = vld [vmem:[%s3702_s12] ss:$0 sm:$0xff] }
  0x2c   : > { %v983_v0 = vld [vmem:[%s3751_s11 + $0x8] sm:$0xff]  ;;  %v982_v1 = vld [vmem:[%s3751_s11] sm:$0xff]  ;;  %3109 = vset.pattern.permute.xlu1 %v3168_v10  ;;  %s3758_s5 = sld [smem:[#allocation17_spill]] }
  0x2d   : > { %2941 = vmatprep.subr.mxu0 %v983_v0  ;;  %v1078_v4 = vld [vmem:[%s3753_s15 + $0x18] sm:$0xff]  ;;  %v1077_v5 = vld [vmem:[%s3753_s15 + $0x10] sm:$0xff]  ;;  %v1076_v6 = vld [vmem:[%s3753_s15 + $0x8] sm:$0xff]  ;;  %s3759_s6 = sld [smem:[#allocation15_spill]] }
  0x2e   : > { %2942 = vmatpush3.msra.mxu0 %v983_v0  ;;  %2948 = vmatprep.subr.mxu1 %v1078_v4  ;;  %v1075_v7 = vld [vmem:[%s3753_s15] sm:$0xff]  ;;  %v1169_v11 = vld [vmem:[%s3754_s10 + $0x8] sm:$0xff] }
  0x2f   : > { %2943 = vmatprep.subr.mxu0 %v982_v1  ;;  %2949 = vmatpush3.msra.mxu1 %v1078_v4  ;;  %v1168_v8 = vld [vmem:[%s3754_s10] sm:$0xff]  ;;  %v1207_v12 = vld [vmem:[%s3755_s14 + $0x8] sm:$0xff] }
  0x30   : > { %2944 = vmatpush3.msra.mxu0 %v982_v1  ;;  %2950 = vmatprep.subr.mxu1 %v1077_v5  ;;  %v1206_v9 = vld [vmem:[%s3755_s14] sm:$0xff]  ;;  %v1228_v14 = vsub.f32 1.0, %v1207_v12 }
  0x31   : > { %2946 = vmatmul.mubr.msk.f32.vlgmr.msra.gmra.mxu0 %vm991_vm0, %v981_v3  ;;  %2951 = vmatpush3.msra.mxu1 %v1077_v5  ;;  %v1227_v13 = vsub.f32 1.0, %v1206_v9  ;;  %v2806_v15 = vld [vmem:[%s3756_s30] ss:$0 sm:$0xff] }
  0x32   : > { %2952 = vmatprep.subr.mxu1 %v1076_v6  ;;  %1173 = vperm.xlu0 %3108, %v1168_v8   ;;  %v2812_v23 = vld [vmem:[%s3757_s3] ss:$0 sm:$0xff]  ;;  %s3760_s3 = sld [smem:[#allocation8_spill]] }
  0x33   : > { %2953 = vmatpush3.msra.mxu1 %v1076_v6  ;;  %1211 = vperm.xlu1 %3109, %v1206_v9   ;;  %v2813_v27 = vld [vmem:[%s3758_s5] ss:$0 sm:$0xff] }
  0x34   : > { %2954 = vmatprep.subr.mxu1 %v1075_v7  ;;  %v2809_v28 = vld [vmem:[%s3759_s6] ss:$0 sm:$0xff] }
  0x35   : > { %2955 = vmatpush3.msra.mxu1 %v1075_v7 }
  0x36   : > { %1178 = vperm.xlu0 %3108, %v1169_v11  }
  0x37   : > { %1216 = vperm.xlu1 %3109, %v1207_v12  }
  0x38   : > { %v1203_v38 = vld [vmem:[%s3760_s3 + $0x8] sm:$0xff]  ;;  %v1202_v42 = vld [vmem:[%s3760_s3] sm:$0xff] }
  0x3a   : > { %1231 = vperm.xlu0 %3108, %v1227_v13  }
  0x3b   : > { %1236 = vperm.xlu1 %3109, %v1228_v14  }
  0xad   : > { %v1174_v22 = vpop.permute.xlu0 %1173 }
  0xae   : > { %v1212_v25 = vpop.permute.xlu1 %1211  ;;  %v1187_v29 = vmul.f32 %v2812_v23, %v1174_v22 }
  0xaf   : > { %v1225_v50 = vmul.f32 %v2814_v41, %v1212_v25 }
  0xb0   : > { %v1196_v35 = vadd.f32 %v2813_v27, %v1187_v29 }
  0xb1   : > { %v1179_v24 = vpop.permute.xlu0 %1178 }
  0xb2   : > { %v1188_v26 = vmul.f32 %v2812_v23, %v1179_v24  ;;  %v1217_v33 = vpop.permute.xlu1 %1216 }
  0xb3   : > { %v1226_v46 = vmul.f32 %v2814_v41, %v1217_v33 }
  0xb4   : > { %v1197_v31 = vadd.f32 %v2813_v27, %v1188_v26 }
  0xb5   : > { %v1232_v49 = vpop.permute.xlu0 %1231 }
  0xb6   : > { %v1237_v45 = vpop.permute.xlu1 %1236 }
  0xf1   : > { %v2947_v16 = vpop.f32.mrf.mxu0 }
  0xf2   : > { %v1070_v17 = vadd.f32 %v2947_v16, %v2806_v15 }
  0xf3   : > { %v1064_v18 = vpop.f32.mrf.mxu0 }
  0xf4   : > { %v1065_v19 = vadd.f32 %v2806_v15, %v1064_v18  ;;  %v1074_v21 = vmax.f32 %v1070_v17, 0.0 }
  0xf6   : > { %v1073_v20 = vmax.f32 %v1065_v19, 0.0 }
  0xf8   : > { %2956 = vmatprep.mubr.msk.f32.mxu1 %vm1086_vm1, %v1073_v20 }
  0xf9   : > { %2957 = vmatmul.mubr.msk.f32.vlgmr.msra.gmra.mxu1 %vm1086_vm1, %v1074_v21 }
 0x1b9   : > { %v2958_v30 = vpop.f32.mrf.mxu1 }
 0x1ba   : > { %v1165_v32 = vadd.f32 %v2958_v30, %v2809_v28 }
 0x1bb   : > { %v1159_v34 = vpop.f32.mrf.mxu1 }
 0x1bc   : > { %v1199_v36 = vadd.f32 %v1197_v31, %v1165_v32  ;;  %v1160_v37 = vadd.f32 %v2809_v28, %v1159_v34 }
 0x1be   : > { %v1201_v39 = vmax.f32 %v1199_v36, 0.0  ;;  %v1198_v40 = vadd.f32 %v1196_v35, %v1160_v37 }
 0x1c0   : > { %v1205_v43 = vadd.f32 %v1203_v38, %v1201_v39  ;;  %v1200_v44 = vmax.f32 %v1198_v40, 0.0 }
 0x1c2   : > { %v1240_v47 = vmul.f32 %v1237_v45, %v1205_v43  ;;  %v1204_v48 = vadd.f32 %v1202_v42, %v1200_v44 }
 0x1c4   : > { %v1242_v51 = vadd.f32 %v1240_v47, %v1226_v46  ;;  %v1239_v52 = vmul.f32 %v1232_v49, %v1204_v48 }
 0x1c6   : > { %1244 = vst.msk [vmem:[#allocation2 + $0x8] sm:$0xff] %vm1086_vm1, %v1242_v51  ;;  %v1241_v53 = vadd.f32 %v1239_v52, %v1225_v50 }
 0x1c8   : > { %1243 = vst.msk [vmem:[#allocation2] sm:$0xff] %vm1086_vm1, %v1241_v53 }
 0x1c9 PF: > { %vm1266_vm2 = vcmask 261120   ;;  %v1313_v4 = vld [vmem:[%s3347_s29 + $0x18] sm:$0xff]  ;;  %v1312_v5 = vld [vmem:[%s3347_s29 + $0x10] sm:$0xff]  ;;  %v1311_v6 = vld [vmem:[%s3347_s29 + $0x8] sm:$0xff]  ;;  %s3761_s1 = scalar_lea.vmem %s3708_s18, %s3337_s8  ;;  %s3762_s6 = sld [smem:[#allocation19_spill]]  ;;  %vm1408_vm3 = vcmask 64512  }
 0x1ca   : > { %2959 = vmatprep.subr.mxu1 %v1313_v4  ;;  %v1310_v7 = vld [vmem:[%s3347_s29] sm:$0xff]  ;;  %s3169_s5 = smov 96   ;;  %s3170_s0 = smov 120   ;;  %v3173_v29 = vmov 0   ;;  %v3175_v51 = vmov -1e+30  }
 0x1cb   : > { %2960 = vmatpush3.msra.mxu1 %v1313_v4  ;;  %v2816_v15 = vld [vmem:[%s950_s25] ss:$0 sm:$0xff]  ;;  %s3171_s30 = smov 88   ;;  %s3172_s27 = smov 112   ;;  %3111 = vset.pattern.permute.xlu1 %v3173_v29  ;;  %vm1496_vm6 = vcmask 130048   ;;  %vm1820_vm7 = vcmask 130112  }
 0x1cc   : > { %2961 = vmatprep.subr.mxu1 %v1312_v5  ;;  %v2817_v17 = vld [vmem:[%s3761_s1] ss:$0 sm:$0xff]  ;;  %3110 = vset.pattern.permute.xlu0 %v3173_v29  ;;  %s3764_s26 = sld [smem:[#allocation10_spill]]  ;;  %s3174_s7 = smov 80   ;;  %vm2035_vm8 = vcmask 195712   ;;  %vm2250_vm9 = vcmask 261312  }
 0x1cd   : > { %v3457_v55 = vld [vmem:[#allocation2 + $0x8] sm:$0xff]  ;;  %2962 = vmatpush3.msra.mxu1 %v1312_v5  ;;  %s3177_s29 = smov 72   ;;  %s3178_s1 = smov 104  }
 0x1ce   : > { %v1270_v57 = vsel %vm1266_vm2, %v3457_v55, 0.0  ;;  %2963 = vmatprep.subr.mxu1 %v1311_v6  ;;  %p2854_p5 = scmp.ne.s32.totalorder %s3331_s4, 1 }
 0x1cf   : > { %v3455_v54 = vld [vmem:[#allocation2] sm:$0xff]  ;;  %2964 = vmatpush3.msra.mxu1 %v1311_v6  ;;  %s3763_s25 = scalar_lea.vmem %s3762_s6, %s3337_s8  ;;  %s3180_s6 = smov 56  }
 0x1d0   : > { %v1267_v56 = vsel %vm1266_vm2, %v3455_v54, 0.0  ;;  %2965 = vmatprep.subr.mxu1 %v1310_v7  ;;  %v2818_v24 = vld [vmem:[%s3763_s25] ss:$0 sm:$0xff]  ;;  %s3181_s25 = smov 40  }
 0x1d1   : > { %1268 = vadd.xlane.f32.xlu0 %v1267_v56  ;;  %2966 = vmatpush3.msra.mxu1 %v1310_v7 }
 0x1d2   : > { %v1245_v30 = vld [vmem:[%s3764_s26] sm:$0xff]  ;;  %v1246_v31 = vld [vmem:[%s3764_s26 + $0x8] sm:$0xff] }
 0x1d5   : > { %1271 = vadd.xlane.f32.xlu0 %v1270_v57 }
 0x25a   : > { %v1269_v58 = vpop.xlane.xlu0 %1268 }
 0x25b   : > { %v1274_v59 = vmul.f32 0.03125, %v1269_v58 }
 0x25d   : > { %v1276_v60 = vsub.f32 %v3455_v54, %v1274_v59 }
 0x25e   : > { %v1272_v61 = vpop.xlane.xlu0 %1271 }
 0x25f   : > { %v1275_v62 = vmul.f32 0.03125, %v1272_v61  ;;  %v1278_v63 = vmul.f32 %v1276_v60, %v1276_v60 }
 0x261   : > { %v1277_v0 = vsub.f32 %v3457_v55, %v1275_v62  ;;  %v1280_v1 = vsel %vm1266_vm2, %v1278_v63, 0.0 }
 0x262   : > { %1281 = vadd.xlane.f32.xlu1 %v1280_v1 }
 0x263   : > { %v1279_v2 = vmul.f32 %v1277_v0, %v1277_v0 }
 0x265   : > { %v1283_v3 = vsel %vm1266_vm2, %v1279_v2, 0.0 }
 0x266   : > { %1284 = vadd.xlane.f32.xlu1 %v1283_v3 }
 0x2eb   : > { %v1282_v8 = vpop.xlane.xlu1 %1281 }
 0x2ec   : > { %v1286_v9 = vmul.f32 0.03125, %v1282_v8 }
 0x2ee   : > { %v1288_v10 = vadd.f32 1e-05, %v1286_v9 }
 0x2ef   : > { %v1285_v11 = vpop.xlane.xlu1 %1284 }
 0x2f0   : > { %3112 = vrsqrt.f32 %v1288_v10  ;;  %v1287_v12 = vmul.f32 0.03125, %v1285_v11 }
 0x2f2   : > { %v1289_v13 = vadd.f32 1e-05, %v1287_v12 }
 0x2f4   : > { %3114 = vrsqrt.f32 %v1289_v13 }
 0x2fd   : > { %v3113_v14 = vpop.eup %3112 }
 0x2fe   : > { %v1292_v16 = vmul.f32 %v3113_v14, %v1276_v60 }
 0x300   : > { %v1300_v18 = vmul.f32 %v2816_v15, %v1292_v16 }
 0x301   : > { %v3115_v19 = vpop.eup %3114 }
 0x302   : > { %v1293_v20 = vmul.f32 %v3115_v19, %v1277_v0  ;;  %v1308_v21 = vadd.f32 %v2817_v17, %v1300_v18 }
 0x304   : > { %v1301_v22 = vmul.f32 %v2816_v15, %v1293_v20  ;;  %2967 = vmatprep.mubr.msk.f32.mxu1 %vm1266_vm2, %v1308_v21 }
 0x306   : > { %v1309_v23 = vadd.f32 %v2817_v17, %v1301_v22 }
 0x308   : > { %2968 = vmatmul.mubr.msk.f32.vlgmr.msra.gmra.mxu1 %vm1266_vm2, %v1309_v23 }
 0x3c8   : > { %v2969_v25 = vpop.f32.mrf.mxu1 }
 0x3c9   : > { %v3488_v26 = vadd.f32 %v2969_v25, %v2818_v24 }
 0x3ca   : > { %v1393_v27 = vpop.f32.mrf.mxu1 }
 0x3cb   : > { %v3490_v28 = vadd.f32 %v2818_v24, %v1393_v27  ;;  %1406 = vrot.lane.b32.xlu0 %v3488_v26, %s3169_s5 }
 0x3cd   : > { %1404 = vrot.lane.b32.xlu1 %v3490_v28, %s3169_s5  ;;  %2974 = vmatprep.mubr.msk.f32.mxu1 %vm1408_vm3, %v3490_v28  ;;  %s3182_s5 = smov 8  }
 0x3cf   : > { %1608 = vrot.lane.b32.xlu0 %v3490_v28, %s3170_s0 }
 0x3d1   : > { %1614 = vrot.lane.b32.xlu1 %v3488_v26, %s3171_s30 }
 0x3d3   : > { %1610 = vrot.lane.b32.xlu0 %v3488_v26, %s3170_s0  ;;  %s3766_s0 = sld [smem:[#allocation5_spill]] }
 0x3d5   : > { %1612 = vrot.lane.b32.xlu1 %v3490_v28, %s3171_s30  ;;  %s3765_s30 = sld [smem:[#allocation11_spill]] }
 0x3d7   : > { %1823 = vrot.lane.b32.xlu0 %v3490_v28, %s3172_s27 }
 0x3d9   : > { %1829 = vrot.lane.b32.xlu1 %v3488_v26, %s3174_s7 }
 0x3db   : > { %1249 = vperm.xlu0 %3110, %v1245_v30   ;;  %v2815_v45 = vld [vmem:[%s3765_s30] ss:$0 sm:$0xff]  ;;  %s3183_s30 = smov 16  }
 0x3dd   : > { %1827 = vrot.lane.b32.xlu1 %v3490_v28, %s3174_s7  ;;  %s3179_s7 = smov 64  }
 0x3e1   : > { %1825 = vrot.lane.b32.xlu1 %v3488_v26, %s3172_s27  ;;  %s3176_s27 = smov 48  }
 0x3e5   : > { %1252 = vperm.xlu1 %3111, %v1246_v31  }
 0x43d   : > { %v1407_v32 = vpop.permute.xlu0 %1406 }
 0x43e   : > { %2970 = vmatprep.subr.msk.mxu1 %vm1408_vm3, %v1407_v32 }
 0x43f   : > { %2971 = vmatpush3.xpose.msk.msra.mxu1 %vm1408_vm3, %v1407_v32  ;;  %v1405_v33 = vpop.permute.xlu1 %1404 }
 0x440   : > { %2972 = vmatprep.subr.msk.mxu1 %vm1408_vm3, %v1405_v33 }
 0x441   : > { %v1609_v34 = vpop.permute.xlu0 %1608 }
 0x443   : > { %2973 = vmatpush3.xpose.msk.msra.mxu1 %vm1408_vm3, %v1405_v33  ;;  %v1615_v35 = vpop.permute.xlu1 %1614 }
 0x444   : > { %2984 = vmatprep.subr.msk.mxu1 %vm1408_vm3, %v1615_v35 }
 0x445   : > { %v1611_v37 = vpop.permute.xlu0 %1610 }
 0x446   : > { %2975 = vmatmul.mubr.msk.f32.vlgmr.msra.gmra.mxu1 %vm1408_vm3, %v3488_v26 }
 0x447   : > { %v1613_v36 = vpop.permute.xlu1 %1612  ;;  %2985 = vmatpush3.xpose.msk.msra.mxu1 %vm1408_vm3, %v1615_v35  ;;  %2988 = vmatprep.mubr.msk.f32.mxu1 %vm1408_vm3, %v1609_v34 }
 0x448   : > { %2986 = vmatprep.subr.msk.mxu1 %vm1408_vm3, %v1613_v36 }
 0x449   : > { %v1824_v39 = vpop.permute.xlu0 %1823 }
 0x44b   : > { %v1830_v38 = vpop.permute.xlu1 %1829  ;;  %2987 = vmatpush3.xpose.msk.msra.mxu1 %vm1408_vm3, %v1613_v36 }
 0x44c   : > { %2998 = vmatprep.subr.msk.mxu1 %vm1408_vm3, %v1830_v38 }
 0x44e   : > { %2989 = vmatmul.mubr.msk.f32.vlgmr.msra.gmra.mxu1 %vm1408_vm3, %v1611_v37 }
 0x44f   : > { %v1828_v40 = vpop.permute.xlu1 %1827  ;;  %2999 = vmatpush3.xpose.msk.msra.mxu1 %vm1408_vm3, %v1830_v38  ;;  %3002 = vmatprep.mubr.msk.f32.mxu1 %vm1408_vm3, %v1824_v39 }
 0x450   : > { %3000 = vmatprep.subr.msk.mxu1 %vm1408_vm3, %v1828_v40 }
 0x453   : > { %3001 = vmatpush3.xpose.msk.msra.mxu1 %vm1408_vm3, %v1828_v40  ;;  %v1826_v41 = vpop.permute.xlu1 %1825 }
 0x456   : > { %3003 = vmatmul.mubr.msk.f32.vlgmr.msra.gmra.mxu1 %vm1408_vm3, %v1826_v41  ;;  %v1250_v47 = vpop.permute.xlu0 %1249 }
 0x457   : > { %vm1258_vm5 = vcmp.eq.s32.totalorder %v1250_v47, %v2815_v45 }
 0x458   : > { %v3534_v58 = vsel %vm1258_vm5, 0.0, %v3175_v51 }
 0x460   : > { %v1253_v46 = vpop.permute.xlu1 %1252 }
 0x461   : > { %vm1259_vm4 = vcmp.eq.s32.totalorder %v1253_v46, %v2815_v45 }
 0x462   : > { %v3531_v52 = vsel %vm1259_vm4, 0.0, %v3175_v51 }
 0x506   : > { %v2976_v42 = vpop.f32.mrf.mxu1 }
 0x507   : > { %v1493_v12 = vmul.f32 0.35355338, %v2976_v42 }
 0x508   : > { %v1483_v43 = vpop.f32.mrf.mxu1 }
 0x509   : > { %v1492_v62 = vmul.f32 0.35355338, %v1483_v43  ;;  %v1495_v14 = vadd.f32 %v1493_v12, %v3531_v52 }
 0x50b   : > { %v3544_v63 = vadd.f32 %v1492_v62, %v3534_v58  ;;  %v1500_v16 = vsel %vm1496_vm6, %v1495_v14, -inf }
 0x50d   : > { %v1497_v0 = vsel %vm1496_vm6, %v3544_v63, -inf }
 0x50e   : > { %v2990_v44 = vpop.f32.mrf.mxu1 }
 0x50f   : > { %v1700_v15 = vmul.f32 0.35355338, %v2990_v44 }
 0x510   : > { %v1690_v48 = vpop.f32.mrf.mxu1 }
 0x511   : > { %v1699_v13 = vmul.f32 0.35355338, %v1690_v48  ;;  %v1702_v19 = vadd.f32 %v1700_v15, %v3531_v52 }
 0x513   : > { %v1701_v17 = vadd.f32 %v1699_v13, %v3534_v58  ;;  %v1706_v20 = vsel %vm1496_vm6, %v1702_v19, -inf }
 0x515   : > { %v1703_v18 = vsel %vm1496_vm6, %v1701_v17, -inf }
 0x516   : > { %v3004_v49 = vpop.f32.mrf.mxu1 }
 0x517   : > { %v1915_v50 = vmul.f32 0.35355338, %v3004_v49 }
 0x518   : > { %v1905_v53 = vpop.f32.mrf.mxu1 }
 0x519   : > { %v1914_v56 = vmul.f32 0.35355338, %v1905_v53  ;;  %v1917_v57 = vadd.f32 %v1915_v50, %v3531_v52 }
 0x51b   : > { %v1921_v59 = vsel %vm1496_vm6, %v1917_v57, -inf  ;;  %v1916_v60 = vadd.f32 %v1914_v56, %v3534_v58 }
 0x51c   : > { %1922 = vmax.xlane.f32.xlu0 %v1921_v59 }
 0x51d   : > { %v1918_v61 = vsel %vm1496_vm6, %v1916_v60, -inf }
 0x51e   : > { %1919 = vmax.xlane.f32.xlu1 %v1918_v61 }
 0x52f   : > { %1942 = vrot.lane.b32.xlu1 %v3488_v26, %s3176_s27 }
 0x533   : > { %2044 = vrot.lane.b32.xlu1 %v3488_v26, %s3177_s29 }
 0x537   : > { %2042 = vrot.lane.b32.xlu1 %v3490_v28, %s3177_s29 }
 0x53b   : > { %2038 = vrot.lane.b32.xlu1 %v3490_v28, %s3178_s1 }
 0x55f   : > { %1498 = vmax.xlane.f32.xlu1 %v1497_v0 }
 0x5a5   : > { %v1923_v1 = vpop.xlane.xlu0 %1922 }
 0x5a6   : > { %v1925_v2 = vsub.f32 %v1917_v57, %v1923_v1 }
 0x5a7   : > { %v1920_v3 = vpop.xlane.xlu1 %1919 }
 0x5a8   : > { %v1928_v4 = vmul.f32 1.442695, %v1925_v2  ;;  %v1924_v5 = vsub.f32 %v1916_v60, %v1920_v3 }
 0x5aa   : > { %3116 = vpow2.f32 %v1928_v4  ;;  %v1926_v6 = vmul.f32 1.442695, %v1924_v5 }
 0x5ab   : > { %v1943_v7 = vpop.permute.xlu1 %1942 }
 0x5ac   : > { %3118 = vpow2.f32 %v1926_v6  ;;  %3005 = vmatprep.subr.mxu1 %v1943_v7 }
 0x5ad   : > { %3006 = vmatpush3.msra.mxu1 %v1943_v7 }
 0x5af   : > { %v2045_v24 = vpop.permute.xlu1 %2044 }
 0x5b3   : > { %v2043_v25 = vpop.permute.xlu1 %2042 }
 0x5b7   : > { %v3117_v8 = vpop.eup %3116  ;;  %v2039_v32 = vpop.permute.xlu1 %2038 }
 0x5b8   : > { %v1933_v9 = vsel %vm1496_vm6, %v3117_v8, 0.0 }
 0x5b9   : > { %v3119_v10 = vpop.eup %3118  ;;  %1934 = vadd.xlane.f32.xlu0 %v1933_v9 }
 0x5ba   : > { %v1930_v11 = vsel %vm1496_vm6, %v3119_v10, 0.0 }
 0x5bd   : > { %1931 = vadd.xlane.f32.xlu0 %v1930_v11 }
 0x5d3   : > { %1940 = vrot.lane.b32.xlu0 %v3490_v28, %s3176_s27  ;;  %s3184_s27 = smov 24  }
 0x5d7   : > { %2040 = vrot.lane.b32.xlu0 %v3488_v26, %s3178_s1  ;;  %s3770_s1 = scalar_lea.vmem %s3714_s24, %s3337_s8 }
 0x5e8   : > { %v1499_v36 = vpop.xlane.xlu1 %1498 }
 0x5e9   : > { %v1503_v39 = vsub.f32 %v3544_v63, %v1499_v36 }
 0x5eb   : > { %v1505_v42 = vmul.f32 1.442695, %v1503_v39 }
 0x5f6   : > { %1501 = vmax.xlane.f32.xlu0 %v1500_v16 }
 0x5fa   : > { %1704 = vmax.xlane.f32.xlu0 %v1703_v18 }
 0x5fe   : > { %1707 = vmax.xlane.f32.xlu0 %v1706_v20 }
 0x642   : > { %v1935_v21 = vpop.xlane.xlu0 %1934 }
 0x643   : > { %3120 = vrcp.f32 %v1935_v21 }
 0x646   : > { %v1932_v22 = vpop.xlane.xlu0 %1931 }
 0x647   : > { %3122 = vrcp.f32 %v1932_v22 }
 0x64a   : > { %v1941_v23 = vpop.permute.xlu0 %1940 }
 0x64b   : > { %3007 = vmatprep.subr.mxu1 %v1941_v23 }
 0x64c   : > { %3008 = vmatpush3.msra.mxu1 %v1941_v23 }
 0x64d   : > { %3012 = vmatprep.subr.msk.mxu1 %vm1408_vm3, %v2045_v24 }
 0x64e   : > { %v2041_v33 = vpop.permute.xlu0 %2040 }
 0x650   : > { %v3121_v27 = vpop.eup %3120 }
 0x651   : > { %v1939_v31 = vmul.f32 %v3121_v27, %v3117_v8 }
 0x654   : > { %v3123_v29 = vpop.eup %3122 }
 0x655   : > { %v1937_v30 = vmul.f32 %v3123_v29, %v3119_v10 }
 0x657   : > { %3009 = vmatprep.mubr.msk.f32.mxu1 %vm1496_vm6, %v1937_v30 }
 0x658   : > { %3010 = vmatmul.mubr.msk.f32.vlgmr.msra.gmra.mxu1 %vm1496_vm6, %v1939_v31 }
 0x659   : > { %3013 = vmatpush3.xpose.msk.msra.mxu1 %vm1408_vm3, %v2045_v24  ;;  %3016 = vmatprep.mubr.msk.f32.mxu1 %vm1408_vm3, %v2039_v32 }
 0x65a   : > { %3014 = vmatprep.subr.msk.mxu1 %vm1408_vm3, %v2043_v25 }
 0x65d   : > { %3015 = vmatpush3.xpose.msk.msra.mxu1 %vm1408_vm3, %v2043_v25 }
 0x660   : > { %3017 = vmatmul.mubr.msk.f32.vlgmr.msra.gmra.mxu1 %vm1408_vm3, %v2041_v33 }
 0x67f   : > { %v1502_v34 = vpop.xlane.xlu0 %1501 }
 0x680   : > { %v1504_v37 = vsub.f32 %v1495_v14, %v1502_v34 }
 0x682   : > { %v1507_v40 = vmul.f32 1.442695, %v1504_v37 }
 0x683   : > { %v1705_v35 = vpop.xlane.xlu0 %1704 }
 0x684   : > { %v1709_v43 = vsub.f32 %v1701_v17, %v1705_v35  ;;  %3124 = vpow2.f32 %v1507_v40 }
 0x685   : > { %3126 = vpow2.f32 %v1505_v42 }
 0x686   : > { %v1711_v46 = vmul.f32 1.442695, %v1709_v43 }
 0x687   : > { %v1708_v38 = vpop.xlane.xlu0 %1707 }
 0x688   : > { %v1710_v41 = vsub.f32 %v1702_v19, %v1708_v38 }
 0x68a   : > { %v1713_v44 = vmul.f32 1.442695, %v1710_v41 }
 0x68c   : > { %3128 = vpow2.f32 %v1713_v44  ;;  %v2258_v44 = vld [vmem:[%s3766_s0 + $0x18] sm:$0xff] }
 0x68d   : > { %3130 = vpow2.f32 %v1711_v46  ;;  %v2257_v46 = vld [vmem:[%s3766_s0 + $0x10] sm:$0xff] }
 0x691   : > { %v3125_v59 = vpop.eup %3124 }
 0x692   : > { %v3127_v61 = vpop.eup %3126  ;;  %v1512_v62 = vsel %vm1496_vm6, %v3125_v59, 0.0 }
 0x693   : > { %v1509_v0 = vsel %vm1496_vm6, %v3127_v61, 0.0 }
 0x699   : > { %v3129_v63 = vpop.eup %3128 }
 0x69a   : > { %v3131_v1 = vpop.eup %3130 }
 0x69b   : > { %v1715_v2 = vsel %vm1496_vm6, %v3131_v1, 0.0 }
 0x718   : > { %v3567_v45 = vpop.f32.mrf.mxu1 }
 0x71a   : > { %v3569_v47 = vpop.f32.mrf.mxu1 }
 0x720   : > { %v3018_v48 = vpop.f32.mrf.mxu1 }
 0x721   : > { %v2130_v49 = vmul.f32 0.35355338, %v3018_v48  ;;  %v2256_v48 = vld [vmem:[%s3766_s0 + $0x8] sm:$0xff] }
 0x722   : > { %v2120_v50 = vpop.f32.mrf.mxu1 }
 0x723   : > { %v2129_v51 = vmul.f32 0.35355338, %v2120_v50  ;;  %v2132_v53 = vadd.f32 %v2130_v49, %v3531_v52  ;;  %v1718_v52 = vsel %vm1496_vm6, %v3129_v63, 0.0 }
 0x725   : > { %v2136_v56 = vsel %vm1496_vm6, %v2132_v53, -inf  ;;  %v2131_v57 = vadd.f32 %v2129_v51, %v3534_v58 }
 0x726   : > { %2137 = vmax.xlane.f32.xlu0 %v2136_v56 }
 0x727   : > { %v2133_v60 = vsel %vm1496_vm6, %v2131_v57, -inf }
 0x728   : > { %2134 = vmax.xlane.f32.xlu1 %v2133_v60 }
 0x72a   : > { %1513 = vadd.xlane.f32.xlu0 %v1512_v62 }
 0x72c   : > { %1510 = vadd.xlane.f32.xlu1 %v1509_v0 }
 0x72e   : > { %1719 = vadd.xlane.f32.xlu0 %v1718_v52 }
 0x730   : > { %1716 = vadd.xlane.f32.xlu1 %v1715_v2 }
 0x741   : > { %1521 = vrot.lane.b32.xlu1 %v3488_v26, %s3179_s7 }
 0x744   : > { %1519 = vrot.lane.b32.xlu0 %v3490_v28, %s3179_s7  ;;  %s3767_s7 = scalar_lea.vmem %s3706_s16, %s3337_s8 }
 0x745   : > { %1727 = vrot.lane.b32.xlu1 %v3488_v26, %s3180_s6 }
 0x749   : > { %1725 = vrot.lane.b32.xlu1 %v3490_v28, %s3180_s6 }
 0x7af   : > { %v2138_v58 = vpop.xlane.xlu0 %2137 }
 0x7b0   : > { %v2140_v3 = vsub.f32 %v2132_v53, %v2138_v58 }
 0x7b1   : > { %v2135_v4 = vpop.xlane.xlu1 %2134 }
 0x7b2   : > { %v2143_v5 = vmul.f32 1.442695, %v2140_v3  ;;  %v2139_v6 = vsub.f32 %v2131_v57, %v2135_v4 }
 0x7b3   : > { %v1514_v7 = vpop.xlane.xlu0 %1513 }
 0x7b4   : > { %3132 = vpow2.f32 %v2143_v5  ;;  %v2141_v8 = vmul.f32 1.442695, %v2139_v6 }
 0x7b5   : > { %3134 = vrcp.f32 %v1514_v7  ;;  %v1511_v9 = vpop.xlane.xlu1 %1510 }
 0x7b6   : > { %3136 = vpow2.f32 %v2141_v8 }
 0x7b7   : > { %3138 = vrcp.f32 %v1511_v9  ;;  %v1720_v10 = vpop.xlane.xlu0 %1719  ;;  %v2398_v9 = vld [vmem:[%s3377_s2 + $0x18] sm:$0xff] }
 0x7b8   : > { %3140 = vrcp.f32 %v1720_v10  ;;  %v2397_v10 = vld [vmem:[%s3377_s2 + $0x10] sm:$0xff]  ;;  %3037 = vmatprep.subr.mxu1 %v2398_v9 }
 0x7b9   : > { %v1717_v11 = vpop.xlane.xlu1 %1716  ;;  %3038 = vmatpush3.msra.mxu1 %v2398_v9 }
 0x7ba   : > { %3142 = vrcp.f32 %v1717_v11  ;;  %v2396_v11 = vld [vmem:[%s3377_s2 + $0x8] sm:$0xff]  ;;  %3039 = vmatprep.subr.mxu1 %v2397_v10 }
 0x7bb   : > { %v1520_v13 = vpop.permute.xlu0 %1519  ;;  %3040 = vmatpush3.msra.mxu1 %v2397_v10 }
 0x7bc   : > { %3041 = vmatprep.subr.mxu1 %v2396_v11 }
 0x7bd   : > { %v1522_v12 = vpop.permute.xlu1 %1521  ;;  %3042 = vmatpush3.msra.mxu1 %v2396_v11 }
 0x7be   : > { %2977 = vmatprep.subr.mxu0 %v1522_v12 }
 0x7bf   : > { %2978 = vmatpush3.msra.mxu0 %v1522_v12  ;;  %v2395_v12 = vld [vmem:[%s3377_s2] sm:$0xff]  ;;  %s3772_s2 = sld [smem:[#allocation22_spill]] (!%p2854_p5) }
 0x7c0   : > { %2979 = vmatprep.subr.mxu0 %v1520_v13  ;;  %3043 = vmatprep.subr.mxu1 %v2395_v12 }
 0x7c1   : > { %v3133_v14 = vpop.eup %3132  ;;  %v1728_v15 = vpop.permute.xlu1 %1727  ;;  %2980 = vmatpush3.msra.mxu0 %v1520_v13  ;;  %3044 = vmatpush3.msra.mxu1 %v2395_v12 }
 0x7c2   : > { %v3135_v16 = vpop.eup %3134  ;;  %2991 = vmatprep.subr.mxu0 %v1728_v15  ;;  %v2148_v17 = vsel %vm1496_vm6, %v3133_v14, 0.0 }
 0x7c3   : > { %v3137_v18 = vpop.eup %3136  ;;  %2149 = vadd.xlane.f32.xlu0 %v2148_v17  ;;  %v1518_v23 = vmul.f32 %v3135_v16, %v3125_v59  ;;  %v2847_v59 = vld [vmem:[%s3767_s7] ss:$0 sm:$0xff]  ;;  %s3771_s7 = sld [smem:[#allocation21_spill]] (!%p2854_p5) }
 0x7c4   : > { %v3139_v19 = vpop.eup %3138  ;;  %v2145_v20 = vsel %vm1496_vm6, %v3137_v18, 0.0 }
 0x7c5   : > { %2146 = vadd.xlane.f32.xlu1 %v2145_v20  ;;  %v1516_v21 = vmul.f32 %v3139_v19, %v3127_v61  ;;  %v3141_v22 = vpop.eup %3140  ;;  %v1726_v27 = vpop.permute.xlu1 %1725  ;;  %v2848_v20 = vld [vmem:[%s956_s13] ss:$0 sm:$0xff]  ;;  %s3773_s13 = sld [smem:[#allocation23_spill]] (!%p2854_p5) }
 0x7c6   : > { %v1724_v29 = vmul.f32 %v3141_v22, %v3129_v63 }
 0x7c7   : > { %v3143_v24 = vpop.eup %3142  ;;  %2981 = vmatprep.mubr.msk.f32.mxu0 %vm1496_vm6, %v1516_v21 }
 0x7c8   : > { %2982 = vmatmul.mubr.msk.f32.vlgmr.msra.gmra.mxu0 %vm1496_vm6, %v1518_v23  ;;  %v1722_v25 = vmul.f32 %v3143_v24, %v3131_v1 }
 0x7c9   : > { %2992 = vmatpush3.msra.mxu0 %v1728_v15 }
 0x7ca   : > { %2993 = vmatprep.subr.mxu0 %v1726_v27  ;;  %2995 = vmatprep.mubr.msk.f32.mxu0 %vm1496_vm6, %v1722_v25 }
 0x7cb   : > { %2994 = vmatpush3.msra.mxu0 %v1726_v27 }
 0x7cc   : > { %2996 = vmatmul.mubr.msk.f32.vlgmr.msra.gmra.mxu0 %vm1496_vm6, %v1724_v29 }
 0x7d6   : > { %2157 = vrot.lane.b32.xlu1 %v3488_v26, %s3181_s25 }
 0x7d9   : > { %2155 = vrot.lane.b32.xlu0 %v3490_v28, %s3181_s25 }
 0x84c   : > { %v2150_v30 = vpop.xlane.xlu0 %2149 }
 0x84d   : > { %3144 = vrcp.f32 %v2150_v30 }
 0x84e   : > { %v2147_v31 = vpop.xlane.xlu1 %2146 }
 0x84f   : > { %3146 = vrcp.f32 %v2147_v31  ;;  %v2520_v31 = vld [vmem:[%s3387_s28 + $0x78] sm:$0xff] }
 0x850   : > { %v2156_v33 = vpop.permute.xlu0 %2155 }
 0x852   : > { %v2158_v32 = vpop.permute.xlu1 %2157 }
 0x853   : > { %3019 = vmatprep.subr.mxu0 %v2158_v32 }
 0x854   : > { %3020 = vmatpush3.msra.mxu0 %v2158_v32  ;;  %v2519_v32 = vld [vmem:[%s3387_s28 + $0x70] sm:$0xff] }
 0x855   : > { %3021 = vmatprep.subr.mxu0 %v2156_v33 }
 0x856   : > { %3022 = vmatpush3.msra.mxu0 %v2156_v33  ;;  %v2518_v33 = vld [vmem:[%s3387_s28 + $0x68] sm:$0xff] }
 0x857   : > { %3026 = vmatprep.subr.mxu0 %v2258_v44 }
 0x85a   : > { %v3145_v34 = vpop.eup %3144 }
 0x85b   : > { %v2154_v37 = vmul.f32 %v3145_v34, %v3133_v14  ;;  %v2517_v34 = vld [vmem:[%s3387_s28 + $0x60] sm:$0xff] }
 0x85c   : > { %v3147_v35 = vpop.eup %3146 }
 0x85d   : > { %v2152_v36 = vmul.f32 %v3147_v35, %v3137_v18  ;;  %v2516_v35 = vld [vmem:[%s3387_s28 + $0x58] sm:$0xff] }
 0x85f   : > { %3023 = vmatprep.mubr.msk.f32.mxu0 %vm1496_vm6, %v2152_v36  ;;  %v2515_v36 = vld [vmem:[%s3387_s28 + $0x50] sm:$0xff] }
 0x860   : > { %3024 = vmatmul.mubr.msk.f32.vlgmr.msra.gmra.mxu0 %vm1496_vm6, %v2154_v37  ;;  %v2514_v37 = vld [vmem:[%s3387_s28 + $0x48] sm:$0xff] }
 0x861   : > { %3027 = vmatpush3.msra.mxu0 %v2258_v44  ;;  %v2505_v44 = vld [vmem:[%s3387_s28] sm:$0xff] }
 0x862   : > { %3028 = vmatprep.subr.mxu0 %v2257_v46 }
 0x863   : > { %3029 = vmatpush3.msra.mxu0 %v2257_v46 }
 0x864   : > { %3030 = vmatprep.subr.mxu0 %v2256_v48 }
 0x865   : > { %3031 = vmatpush3.msra.mxu0 %v2256_v48 }
 0x888   : > { %v2983_v26 = vpop.f32.mrf.mxu0 }
 0x889   : > { %1607 = vst.msk [vmem:[#allocation3 + $0x8] sm:$0xff] %vm1408_vm3, %v2983_v26  ;;  %v2513_v26 = vld [vmem:[%s3387_s28 + $0x40] sm:$0xff] }
 0x88a   : > { %v1597_v28 = vpop.f32.mrf.mxu0 }
 0x88b   : > { %1606 = vst.msk [vmem:[#allocation3] sm:$0xff] %vm1408_vm3, %v1597_v28  ;;  %v2512_v28 = vld [vmem:[%s3387_s28 + $0x38] sm:$0xff] }
 0x88c   : > { %v2997_v38 = vpop.f32.mrf.mxu0 }
 0x88d   : > { %1816 = vrot.lane.b32.xlu0 %v2997_v38, %s3182_s5  ;;  %v2511_v38 = vld [vmem:[%s3387_s28 + $0x30] sm:$0xff] }
 0x88e   : > { %v1803_v39 = vpop.f32.mrf.mxu0 }
 0x88f   : > { %1814 = vrot.lane.b32.xlu1 %v1803_v39, %s3182_s5  ;;  %v2510_v39 = vld [vmem:[%s3387_s28 + $0x28] sm:$0xff] }
 0x891   : > { %2031 = vrot.lane.b32.xlu0 %v3567_v45, %s3183_s30  ;;  %v2255_v45 = vld [vmem:[%s3766_s0] sm:$0xff]  ;;  %s3768_s0 = scalar_lea.vmem %s3710_s20, %s3337_s8 }
 0x892   : > { %3032 = vmatprep.subr.mxu0 %v2255_v45  ;;  %v2849_v22 = vld [vmem:[%s3768_s0] ss:$0 sm:$0xff] }
 0x893   : > { %2029 = vrot.lane.b32.xlu1 %v3569_v47, %s3183_s30  ;;  %3033 = vmatpush3.msra.mxu0 %v2255_v45 }
 0x894   : > { %3048 = vmatprep.subr.mxu0 %v2520_v31 }
 0x8ff   : > { %v1817_v40 = vpop.permute.xlu0 %1816 }
 0x900   : > { %1822 = vst.msk [vmem:[#allocation3 + $0x8] sm:$0xff] %vm1820_vm7, %v1817_v40  ;;  %v2509_v40 = vld [vmem:[%s3387_s28 + $0x20] sm:$0xff] }
 0x901   : > { %v1815_v41 = vpop.permute.xlu1 %1814 }
 0x902   : > { %1821 = vst.msk [vmem:[#allocation3] sm:$0xff] %vm1820_vm7, %v1815_v41  ;;  %v2508_v41 = vld [vmem:[%s3387_s28 + $0x18] sm:$0xff] }
 0x903   : > { %v2032_v42 = vpop.permute.xlu0 %2031 }
 0x904   : > { %2037 = vst.msk [vmem:[#allocation3 + $0x8] sm:$0xff] %vm2035_vm8, %v2032_v42  ;;  %v2507_v42 = vld [vmem:[%s3387_s28 + $0x10] sm:$0xff] }
 0x905   : > { %v2030_v43 = vpop.permute.xlu1 %2029 }
 0x906   : > { %2036 = vst.msk [vmem:[#allocation3] sm:$0xff] %vm2035_vm8, %v2030_v43  ;;  %v2506_v43 = vld [vmem:[%s3387_s28 + $0x8] sm:$0xff] }
 0x920   : > { %v3025_v47 = vpop.f32.mrf.mxu0 }
 0x921   : > { %2246 = vrot.lane.b32.xlu0 %v3025_v47, %s3184_s27 }
 0x922   : > { %v2233_v49 = vpop.f32.mrf.mxu0 }
 0x923   : > { %2244 = vrot.lane.b32.xlu1 %v2233_v49, %s3184_s27  ;;  %s3769_s27 = scalar_lea.vmem %s3712_s22, %s3337_s8 }
 0x924   : > { %v2850_v46 = vld [vmem:[%s3769_s27] ss:$0 sm:$0xff] }
 0x993   : > { %v2247_v50 = vpop.permute.xlu0 %2246 }
 0x994   : > { %2252 = vst.msk [vmem:[#allocation3 + $0x8] sm:$0xff] %vm2250_vm9, %v2247_v50 }
 0x995   : > { %v2245_v51 = vpop.permute.xlu1 %2244 }
 0x996   : > { %2251 = vst.msk [vmem:[#allocation3] sm:$0xff] %vm2250_vm9, %v2245_v51 }
 0x99b   : > { %v2254_v56 = vld [vmem:[#allocation3 + $0x8] sm:$0xff] }
 0x99d   : > { %v2253_v53 = vld [vmem:[#allocation3] sm:$0xff] }
 0x99e   : > { %3034 = vmatprep.mubr.msk.f32.mxu0 %vm1266_vm2, %v2253_v53 }
 0x99f   : > { %3035 = vmatmul.mubr.msk.f32.vlgmr.msra.gmra.mxu0 %vm1266_vm2, %v2254_v56 }
 0x9a0   : > { %3049 = vmatpush3.msra.mxu0 %v2520_v31 }
 0x9a1   : > { %3050 = vmatprep.subr.mxu0 %v2519_v32 }
 0x9a2   : > { %3051 = vmatpush3.msra.mxu0 %v2519_v32 }
 0x9a3   : > { %3052 = vmatprep.subr.mxu0 %v2518_v33 }
 0x9a4   : > { %3053 = vmatpush3.msra.mxu0 %v2518_v33 }
 0x9a5   : > { %3054 = vmatprep.subr.mxu0 %v2517_v34 }
 0x9a6   : > { %3055 = vmatpush3.msra.mxu0 %v2517_v34 }
 0x9a7   : > { %3056 = vmatprep.subr.mxu0 %v2516_v35 }
 0x9a8   : > { %3057 = vmatpush3.msra.mxu0 %v2516_v35 }
 0x9a9   : > { %3058 = vmatprep.subr.mxu0 %v2515_v36 }
 0x9aa   : > { %3059 = vmatpush3.msra.mxu0 %v2515_v36 }
 0x9ab   : > { %3060 = vmatprep.subr.mxu0 %v2514_v37 }
 0x9ac   : > { %3061 = vmatpush3.msra.mxu0 %v2514_v37 }
 0x9ad   : > { %3062 = vmatprep.subr.mxu0 %v2513_v26 }
 0x9ae   : > { %3063 = vmatpush3.msra.mxu0 %v2513_v26 }
 0x9af   : > { %3064 = vmatprep.subr.mxu0 %v2512_v28 }
 0x9b0   : > { %3065 = vmatpush3.msra.mxu0 %v2512_v28 }
 0x9b1   : > { %3066 = vmatprep.subr.mxu0 %v2511_v38 }
 0x9b2   : > { %3067 = vmatpush3.msra.mxu0 %v2511_v38 }
 0x9b3   : > { %3068 = vmatprep.subr.mxu0 %v2510_v39 }
 0x9b4   : > { %3069 = vmatpush3.msra.mxu0 %v2510_v39 }
 0x9b5   : > { %3070 = vmatprep.subr.mxu0 %v2509_v40 }
 0x9b6   : > { %3071 = vmatpush3.msra.mxu0 %v2509_v40 }
 0x9b7   : > { %3072 = vmatprep.subr.mxu0 %v2508_v41 }
 0x9b8   : > { %3073 = vmatpush3.msra.mxu0 %v2508_v41 }
 0x9b9   : > { %3074 = vmatprep.subr.mxu0 %v2507_v42 }
 0x9ba   : > { %3075 = vmatpush3.msra.mxu0 %v2507_v42 }
 0x9bb   : > { %3076 = vmatprep.subr.mxu0 %v2506_v43 }
 0x9bc   : > { %3077 = vmatpush3.msra.mxu0 %v2506_v43 }
 0x9bd   : > { %3078 = vmatprep.subr.mxu0 %v2505_v44 }
 0x9be   : > { %3079 = vmatpush3.msra.mxu0 %v2505_v44 }
 0xa5f   : > { %v3036_v57 = vpop.f32.mrf.mxu0 }
 0xa60   : > { %v2341_v60 = vadd.f32 %v3036_v57, %v3457_v55 }
 0xa61   : > { %v2331_v61 = vpop.f32.mrf.mxu0 }
 0xa62   : > { %v3609_v62 = vadd.f32 %v2847_v59, %v2341_v60  ;;  %v2340_v63 = vadd.f32 %v2331_v61, %v3455_v54 }
 0xa64   : > { %v3612_v0 = vadd.f32 %v2847_v59, %v2340_v63  ;;  %v2356_v1 = vsel %vm1266_vm2, %v3609_v62, 0.0 }
 0xa65   : > { %2357 = vadd.xlane.f32.xlu0 %v2356_v1 }
 0xa66   : > { %v2353_v52 = vsel %vm1266_vm2, %v3612_v0, 0.0 }
 0xa67   : > { %2354 = vadd.xlane.f32.xlu1 %v2353_v52 }
 0xaee   : > { %v2358_v2 = vpop.xlane.xlu0 %2357 }
 0xaef   : > { %v2360_v55 = vmul.f32 0.03125, %v2358_v2 }
 0xaf0   : > { %v2355_v58 = vpop.xlane.xlu1 %2354 }
 0xaf1   : > { %v2359_v3 = vmul.f32 0.03125, %v2355_v58  ;;  %v2362_v4 = vsub.f32 %v3609_v62, %v2360_v55 }
 0xaf3   : > { %v2361_v54 = vsub.f32 %v3612_v0, %v2359_v3  ;;  %v2364_v7 = vmul.f32 %v2362_v4, %v2362_v4 }
 0xaf5   : > { %v2363_v5 = vmul.f32 %v2361_v54, %v2361_v54  ;;  %v2368_v8 = vsel %vm1266_vm2, %v2364_v7, 0.0 }
 0xaf7   : > { %v2365_v6 = vsel %vm1266_vm2, %v2363_v5, 0.0 }
 0xaf8   : > { %2366 = vadd.xlane.f32.xlu0 %v2365_v6  ;;  %v2853_v6 = vld [vmem:[%s3770_s1] ss:$0 sm:$0xff] }
 0xafc   : > { %2369 = vadd.xlane.f32.xlu0 %v2368_v8 }
 0xb81   : > { %v2367_v13 = vpop.xlane.xlu0 %2366 }
 0xb82   : > { %v2371_v14 = vmul.f32 0.03125, %v2367_v13 }
 0xb84   : > { %v2373_v15 = vadd.f32 1e-05, %v2371_v14 }
 0xb85   : > { %v2370_v16 = vpop.xlane.xlu0 %2369 }
 0xb86   : > { %3148 = vrsqrt.f32 %v2373_v15  ;;  %v2372_v17 = vmul.f32 0.03125, %v2370_v16 }
 0xb88   : > { %v2374_v18 = vadd.f32 1e-05, %v2372_v17 }
 0xb8a   : > { %3150 = vrsqrt.f32 %v2374_v18 }
 0xb93   : > { %v3149_v19 = vpop.eup %3148 }
 0xb94   : > { %v2377_v21 = vmul.f32 %v3149_v19, %v2361_v54 }
 0xb96   : > { %v2385_v23 = vmul.f32 %v2848_v20, %v2377_v21 }
 0xb97   : > { %v3151_v24 = vpop.eup %3150 }
 0xb98   : > { %v2378_v25 = vmul.f32 %v3151_v24, %v2362_v4  ;;  %v2393_v27 = vadd.f32 %v2849_v22, %v2385_v23 }
 0xb9a   : > { %v2386_v29 = vmul.f32 %v2848_v20, %v2378_v25  ;;  %3045 = vmatprep.mubr.msk.f32.mxu1 %vm1266_vm2, %v2393_v27 }
 0xb9c   : > { %v2394_v30 = vadd.f32 %v2849_v22, %v2386_v29 }
 0xb9e   : > { %3046 = vmatmul.mubr.msk.f32.vlgmr.msra.gmra.mxu1 %vm1266_vm2, %v2394_v30 }
 0xc5e   : > { %v3047_v48 = vpop.f32.mrf.mxu1 }
 0xc5f   : > { %v2484_v45 = vadd.f32 %v3047_v48, %v2850_v46 }
 0xc60   : > { %v2478_v47 = vpop.f32.mrf.mxu1 }
 0xc61   : > { %v2488_v49 = vmul.f32 %v2484_v45, %v2484_v45  ;;  %v2479_v50 = vadd.f32 %v2850_v46, %v2478_v47 }
 0xc63   : > { %v2490_v51 = vmul.f32 %v2488_v49, %v2484_v45  ;;  %v2487_v53 = vmul.f32 %v2479_v50, %v2479_v50 }
 0xc65   : > { %v2492_v56 = vmul.f32 0.044715, %v2490_v51  ;;  %v2489_v57 = vmul.f32 %v2487_v53, %v2479_v50 }
 0xc67   : > { %v2494_v59 = vadd.f32 %v2492_v56, %v2484_v45  ;;  %v2491_v60 = vmul.f32 0.044715, %v2489_v57 }
 0xc69   : > { %v2496_v61 = vmul.f32 0.7978846, %v2494_v59  ;;  %v2493_v63 = vadd.f32 %v2491_v60, %v2479_v50 }
 0xc6b   : > { %3152 = vtanh.f32 %v2496_v61  ;;  %v2495_v1 = vmul.f32 0.7978846, %v2493_v63 }
 0xc6d   : > { %3154 = vtanh.f32 %v2495_v1 }
 0xc78   : > { %v3153_v52 = vpop.eup %3152 }
 0xc79   : > { %v2500_v2 = vadd.f32 1.0, %v3153_v52 }
 0xc7a   : > { %v3155_v55 = vpop.eup %3154 }
 0xc7b   : > { %v2499_v58 = vadd.f32 1.0, %v3155_v55  ;;  %v2502_v3 = vmul.f32 0.5, %v2500_v2 }
 0xc7d   : > { %v2501_v4 = vmul.f32 0.5, %v2499_v58  ;;  %v2504_v5 = vmul.f32 %v2502_v3, %v2484_v45 }
 0xc7f   : > { %v2503_v54 = vmul.f32 %v2501_v4, %v2479_v50 }
 0xc81   : > { %3080 = vmatprep.mubr.f32.mxu0 %v2503_v54 }
 0xc82   : > { %3081 = vmatmul.mubr.f32.vlgmr.msra.gmra.mxu0 %v2504_v5 }
 0xd42   : > { %v3082_v7 = vpop.f32.mrf.mxu0 }
 0xd43   : > { %v2600_v8 = vadd.f32 %v3082_v7, %v2853_v6 }
 0xd44   : > { %v2594_v9 = vpop.f32.mrf.mxu0 }
 0xd45   : > { %v2604_v10 = vadd.f32 %v2600_v8, %v3609_v62  ;;  %v2595_v11 = vadd.f32 %v2853_v6, %v2594_v9  ;;  %2610 = sbr.rel (%p2854_p5) target bundleno = 3715 (0xe83), region = 136 }
 0xd47   : > { %2606 = vst.msk [vmem:[#allocation2 + $0x8] sm:$0xff] %vm1266_vm2, %v2604_v10  ;;  %v2603_v12 = vadd.f32 %v2595_v11, %v3612_v0 }
 0xd49   : > { %2605 = vst.msk [vmem:[#allocation2] sm:$0xff] %vm1266_vm2, %v2603_v12 }
 0xd4a   : > { %v2613_v13 = vsel %vm1266_vm2, %v2603_v12, 0.0  ;;  %v2616_v14 = vsel %vm1266_vm2, %v2604_v10, 0.0  ;;  %v2855_v32 = vld [vmem:[%s3771_s7] ss:$0 sm:$0xff] }
 0xd4b   : > { %2614 = vadd.xlane.f32.xlu0 %v2613_v13  ;;  %v2856_v34 = vld [vmem:[%s3772_s2] ss:$0 sm:$0xff] }
 0xd4f   : > { %2617 = vadd.xlane.f32.xlu0 %v2616_v14 }
 0xdd4   : > { %v2615_v15 = vpop.xlane.xlu0 %2614 }
 0xdd5   : > { %v2619_v16 = vmul.f32 0.03125, %v2615_v15 }
 0xdd7   : > { %v2621_v17 = vsub.f32 %v2603_v12, %v2619_v16 }
 0xdd8   : > { %v2618_v62 = vpop.xlane.xlu0 %2617 }
 0xdd9   : > { %v2620_v18 = vmul.f32 0.03125, %v2618_v62  ;;  %v2623_v19 = vmul.f32 %v2621_v17, %v2621_v17 }
 0xddb   : > { %v2622_v20 = vsub.f32 %v2604_v10, %v2620_v18  ;;  %v2625_v0 = vsel %vm1266_vm2, %v2623_v19, 0.0 }
 0xddc   : > { %2626 = vadd.xlane.f32.xlu1 %v2625_v0 }
 0xddd   : > { %v2624_v21 = vmul.f32 %v2622_v20, %v2622_v20 }
 0xddf   : > { %v2628_v22 = vsel %vm1266_vm2, %v2624_v21, 0.0 }
 0xde0   : > { %2629 = vadd.xlane.f32.xlu1 %v2628_v22 }
 0xe65   : > { %v2627_v23 = vpop.xlane.xlu1 %2626 }
 0xe66   : > { %v2631_v24 = vmul.f32 0.03125, %v2627_v23 }
 0xe68   : > { %v2633_v25 = vadd.f32 1e-05, %v2631_v24 }
 0xe69   : > { %v2630_v27 = vpop.xlane.xlu1 %2629 }
 0xe6a   : > { %3156 = vrsqrt.f32 %v2633_v25  ;;  %v2632_v29 = vmul.f32 0.03125, %v2630_v27 }
 0xe6c   : > { %v2634_v30 = vadd.f32 1e-05, %v2632_v29 }
 0xe6e   : > { %3158 = vrsqrt.f32 %v2634_v30 }
 0xe77   : > { %v3157_v31 = vpop.eup %3156 }
 0xe78   : > { %v2637_v33 = vmul.f32 %v3157_v31, %v2621_v17 }
 0xe7a   : > { %v2645_v35 = vmul.f32 %v2855_v32, %v2637_v33 }
 0xe7b   : > { %v3159_v36 = vpop.eup %3158 }
 0xe7c   : > { %v2653_v37 = vadd.f32 %v2856_v34, %v2645_v35  ;;  %v2638_v26 = vmul.f32 %v3159_v36, %v2622_v20 }
 0xe7e   : > { %2655 = vst.msk [vmem:[%s3773_s13] sm:$0xff] %vm1266_vm2, %v2653_v37  ;;  %v2646_v28 = vmul.f32 %v2855_v32, %v2638_v26 }
 0xe80   : > { %v2654_v38 = vadd.f32 %v2856_v34, %v2646_v28 }
 0xe82   : > { %2656 = vst.msk [vmem:[%s3773_s13 + $0x8] sm:$0xff] %vm1266_vm2, %v2654_v38 }
 0xe83 PF: > { %s3774_s28 = sld [smem:[#allocation4_spill]] }
 0xe89   : > { %s37_s7 = sadd.s32 1, %s3774_s28  }
 0xe8a   : > { %p34_p6 = scmp.ge.s32.totalorder %s37_s7, 4  }
 0xe8c   :  { %36 = sbr.rel (!%p34_p6) target bundleno = 19 (0x13), region = 195 }

// kernel: mage_forward.5
= control target key start
LH: loop header
LB: loop body
LE: loop exit
PB: predicated region body
PF: predicated region fallthrough
CT: control target
= control target key end

     0   :  { %s7794_s0 = inlined_call_operand.vmem [shape: f32[8,16], index: 0, kind: input, shape index: {}]   ;;  %s7795_s1 = inlined_call_operand.vmem [shape: f32[64,2], index: 1, kind: input, shape index: {}]   ;;  %s7796_s2 = inlined_call_operand.vmem [shape: f32[64,2], index: 2, kind: input, shape index: {}]   ;;  %s7797_s3 = inlined_call_operand.vmem [shape: f32[64,1], index: 3, kind: input, shape index: {}]   ;;  %s7798_s4 = inlined_call_operand.vmem [shape: s32[64,1], index: 4, kind: input, shape index: {}]   ;;  %s7799_s5 = inlined_call_operand.vmem [shape: s32[1,64], index: 5, kind: input, shape index: {}]   ;;  %s7800_s6 = inlined_call_operand.vmem [shape: f32[64,1], index: 6, kind: input, shape index: {}]   ;;  %s7801_s7 = inlined_call_operand.vmem [shape: f32[64,1], index: 7, kind: input, shape index: {}]   ;;  %s7802_s8 = inlined_call_operand.vmem [shape: f32[8,1], index: 8, kind: input, shape index: {}]   ;;  %s7803_s9 = inlined_call_operand.vmem [shape: f32[8,1], index: 9, kind: input, shape index: {}]   ;;  %s7804_s10 = inlined_call_operand.vmem [shape: f32[2,16], index: 10, kind: input, shape index: {}]   ;;  %s7805_s11 = inlined_call_operand.vmem [shape: f32[1,16], index: 11, kind: input, shape index: {}]   ;;  %s7806_s12 = inlined_call_operand.vmem [shape: f32[2,16,48], index: 12, kind: input, shape index: {}]   ;;  %s7807_s13 = inlined_call_operand.vmem [shape: f32[2,1,48], index: 13, kind: input, shape index: {}]   ;;  %s7808_s14 = inlined_call_operand.vmem [shape: f32[2,16,16], index: 14, kind: input, shape index: {}]   ;;  %s7809_s15 = inlined_call_operand.vmem [shape: f32[2,1,16], index: 15, kind: input, shape index: {}]   ;;  %s7810_s16 = inlined_call_operand.vmem [shape: f32[2,1,16], index: 16, kind: input, shape index: {}]   ;;  %s7811_s17 = inlined_call_operand.vmem [shape: f32[2,1,16], index: 17, kind: input, shape index: {}]   ;;  %s7812_s18 = inlined_call_operand.vmem [shape: f32[2,1,16], index: 18, kind: input, shape index: {}]   ;;  %s7813_s19 = inlined_call_operand.vmem [shape: f32[2,1,16], index: 19, kind: input, shape index: {}]   ;;  %s7814_s20 = inlined_call_operand.vmem [shape: f32[2,16,64], index: 20, kind: input, shape index: {}]   ;;  %s7815_s21 = inlined_call_operand.vmem [shape: f32[2,1,64], index: 21, kind: input, shape index: {}]   ;;  %s7816_s22 = inlined_call_operand.vmem [shape: f32[2,64,16], index: 22, kind: input, shape index: {}]   ;;  %s7817_s23 = inlined_call_operand.vmem [shape: f32[2,1,16], index: 23, kind: input, shape index: {}]   ;;  %s7818_s24 = inlined_call_operand.vmem [shape: f32[16,3], index: 24, kind: input, shape index: {}]   ;;  %s7819_s25 = inlined_call_operand.vmem [shape: f32[1,3], index: 25, kind: input, shape index: {}]   ;;  %s7820_s26 = inlined_call_operand.vmem [shape: f32[64,3], index: 26, kind: output, shape index: {0}]   ;;  %s7821_s27 = inlined_call_operand.vmem [shape: f32[1,3], index: 27, kind: output, shape index: {1}]  }
   0x1   :  { %7833 = sst [smem:[#allocation6_spill]] %s7794_s0 }
   0x2   :  { %7834 = sst [smem:[#allocation7_spill]] %s7795_s1 }
   0x3   :  { %7835 = sst [smem:[#allocation8_spill]] %s7796_s2 }
   0x4   :  { %7836 = sst [smem:[#allocation9_spill]] %s7797_s3 }
   0x5   :  { %7837 = sst [smem:[#allocation10_spill]] %s7798_s4 }
   0x6   :  { %7838 = sst [smem:[#allocation11_spill]] %s7799_s5 }
   0x7   :  { %7839 = sst [smem:[#allocation12_spill]] %s7800_s6 }
   0x8   :  { %7840 = sst [smem:[#allocation13_spill]] %s7801_s7  ;;  %s6303_s7 = smov 0  }
   0x9   :  { %7841 = sst [smem:[#allocation14_spill]] %s7802_s8 }
   0xa   :  { %7842 = sst [smem:[#allocation15_spill]] %s7803_s9 }
   0xb   :  { %7843 = sst [smem:[#allocation16_spill]] %s7804_s10 }
   0xc   :  { %7844 = sst [smem:[#allocation17_spill]] %s7805_s11 }
   0xd   :  { %7845 = sst [smem:[#allocation18_spill]] %s7806_s12 }
   0xe   :  { %7846 = sst [smem:[#allocation19_spill]] %s7808_s14 }
   0xf   :  { %7847 = sst [smem:[#allocation20_spill]] %s7818_s24 }
  0x10   :  { %7848 = sst [smem:[#allocation21_spill]] %s7819_s25 }
  0x11   :  { %7849 = sst [smem:[#allocation22_spill]] %s7820_s26 }
  0x12   :  { %7850 = sst [smem:[#allocation23_spill]] %s7821_s27 }
  0x13 LB: > { %7851 = sst [smem:[#allocation4_spill]] %s6140_s7  ;;  %s6309_s4 = sadd.s32 4294967295, %s6140_s7   ;;  %s6140_s7 = sphi %s6303_s7, %s38_s7  }
  0x14   : > { %p5124_p0 = scmp.ge.s32.totalorder %s6140_s7, 1  ;;  %p824_p1 = scmp.lt.s32.totalorder %s6140_s7, 3 }
  0x16   : > { %p825_p2 = pnand %p5124_p0, %p824_p1 }
  0x18   : > { %828 = sbr.rel (%p825_p2) target bundleno = 5298 (0x14b2), region = 124 }
  0x1d   : > { %p930_p3 = scmp.lt.s32.totalorder %s6309_s4, 1  ;;  %s7852_s12 = sld [smem:[#allocation18_spill]] }
  0x1e   : > { %s7853_s14 = sld [smem:[#allocation19_spill]]  ;;  %p5133_p4 = scmp.ne.s32.totalorder %s6309_s4, 0 }
  0x1f   : > { %s6315_s8 = scalar_select %p930_p3, %s6309_s4, 1 }
  0x20   : > { %s7856_s26 = sld [smem:[#allocation10_spill]] (!%p5133_p4) }
  0x21   : > { %s5301_s30 = sshll.u32 %s6315_s8, 4  ;;  %s948_s25 = scalar_lea.vmem %s7810_s16, %s6315_s8 }
  0x22   : > { %s957_s6 = scalar_lea.vmem %s7813_s19, %s6315_s8  ;;  %s6355_s2 = scalar_lea.vmem %s7814_s20, %s5301_s30 }
  0x23   : > { %s6325_s29 = scalar_lea.vmem %s7852_s12, %s5301_s30  ;;  %s954_s12 = scalar_lea.vmem %s7812_s18, %s6315_s8 }
  0x24   : > { %s6330_s11 = scalar_lea.vmem %s7853_s14, %s5301_s30  ;;  %s5304_s7 = sshll.u32 %s6315_s8, 6 }
  0x25   : > { %7854 = sst [smem:[#allocation5_spill]] %s6330_s11  ;;  %s6365_s28 = scalar_lea.vmem %s7816_s22, %s5304_s7 }
  0x26   : > { %s973_s24 = scalar_lea.vmem %s7817_s23, %s6315_s8  ;;  %977 = sbr.rel (%p5133_p4) target bundleno = 401 (0x191), region = 128 }
  0x27   : > { %s7855_s11 = sld [smem:[#allocation16_spill]] (!%p5133_p4) }
  0x28   : > { %s7857_s0 = sld [smem:[#allocation7_spill]] (!%p5133_p4) }
  0x29   : > { %s7858_s30 = sld [smem:[#allocation9_spill]] (!%p5133_p4) }
  0x2a   : > { %s7860_s14 = sld [smem:[#allocation17_spill]] (!%p5133_p4) }
  0x2b   : > { %vm1019_vm0 = vcmask 1041408   ;;  %v1139_v1 = vld [vmem:[%s7856_s26 + $0x8] sm:$0xff]  ;;  %v1138_v2 = vld [vmem:[%s7856_s26] sm:$0xff]  ;;  %v6142_v3 = vmov 0   ;;  %vm994_vm1 = vcmask 15360   ;;  %v1140_v16 = vld [vmem:[%s7856_s26 + $0x10] sm:$0xff]  ;;  %v1128_v43 = vlaneseq }
  0x2c   : > { %5911 = vset.pattern.permute.xlu1 %v6142_v3  ;;  %5910 = vset.pattern.permute.xlu0 %v6142_v3  ;;  %v1141_v22 = vld [vmem:[%s7856_s26 + $0x18] sm:$0xff]  ;;  %v1142_v26 = vld [vmem:[%s7856_s26 + $0x20] sm:$0xff]  ;;  %v1143_v29 = vld [vmem:[%s7856_s26 + $0x28] sm:$0xff]  ;;  %vm1243_vm15 = vcmask 64512   ;;  %v6143_v49 = vmov 0.0  }
  0x2d   : > { %v986_v0 = vld [vmem:[%s7855_s11] sm:$0x3]  ;;  %1150 = vperm.xlu1 %5911, %v1139_v1   ;;  %1147 = vperm.xlu0 %5910, %v1138_v2   ;;  %s7859_s11 = sld [smem:[#allocation6_spill]]  ;;  %v1144_v32 = vld [vmem:[%s7856_s26 + $0x30] sm:$0xff]  ;;  %v1145_v34 = vld [vmem:[%s7856_s26 + $0x38] sm:$0xff]  ;;  %v1129_v45 = vand.u32 127, %v1128_v43 }
  0x2e   : > { %v978_v4 = vld [vmem:[%s7857_s0] sm:$0xff]  ;;  %5507 = vmatprep.subr.msk.mxu0 %vm1019_vm0, %v986_v0  ;;  %v979_v6 = vld [vmem:[%s7857_s0 + $0x8] sm:$0xff]  ;;  %v980_v9 = vld [vmem:[%s7857_s0 + $0x10] sm:$0xff] }
  0x2f   : > { %v6389_v5 = vld [vmem:[%s7858_s30 + $0x8] sm:$0xff]  ;;  %v6398_v7 = vld [vmem:[%s7858_s30] sm:$0xff]  ;;  %5508 = vmatpush3.msk.msra.mxu0 %vm1019_vm0, %v986_v0  ;;  %v6408_v10 = vld [vmem:[%s7858_s30 + $0x10] sm:$0xff]  ;;  %5509 = vmatprep.mubr.msk.f32.mxu0 %vm994_vm1, %v978_v4 }
  0x30   : > { %vm1179_vm2 = vcmp.gt.f32.partialorder %v6389_v5, 0.5  ;;  %vm1178_vm3 = vcmp.gt.f32.partialorder %v6398_v7, 0.5  ;;  %vm1180_vm4 = vcmp.gt.f32.partialorder %v6408_v10, 0.5  ;;  %5510 = vmatmul.mubr.msk.f32.vlgmr.msra.gmra.mxu0 %vm994_vm1, %v979_v6  ;;  %v6417_v12 = vld [vmem:[%s7858_s30 + $0x18] sm:$0xff]  ;;  %v982_v15 = vld [vmem:[%s7857_s0 + $0x20] sm:$0xff]  ;;  %v983_v19 = vld [vmem:[%s7857_s0 + $0x28] sm:$0xff] }
  0x31   : > { %v1187_v8 = vsel %vm1179_vm2, 1, %v6142_v3  ;;  %v1186_v11 = vsel %vm1178_vm3, 1, %v6142_v3  ;;  %5512 = vmatprep.mubr.msk.f32.mxu0 %vm994_vm1, %v980_v9  ;;  %v981_v13 = vld [vmem:[%s7857_s0 + $0x18] sm:$0xff]  ;;  %v1188_v14 = vsel %vm1180_vm4, 1, %v6142_v3  ;;  %vm1181_vm5 = vcmp.gt.f32.partialorder %v6417_v12, 0.5  ;;  %v1134_v18 = vld [vmem:[%s7858_s30 + $0x20] sm:$0xff] }
  0x32   : > { %1198 = vperm.xlu1 %5911, %v1187_v8   ;;  %1195 = vperm.xlu0 %5910, %v1186_v11   ;;  %v1189_v20 = vsel %vm1181_vm5, 1, %v6142_v3  ;;  %v984_v21 = vld [vmem:[%s7857_s0 + $0x30] sm:$0xff]  ;;  %vm1182_vm6 = vcmp.gt.f32.partialorder %v1134_v18, 0.5  ;;  %v1135_v23 = vld [vmem:[%s7858_s30 + $0x28] sm:$0xff]  ;;  %v985_v24 = vld [vmem:[%s7857_s0 + $0x38] sm:$0xff]  ;;  %v1422_v35 = vsub.f32 1.0, %v6389_v5 }
  0x33   : > { %v1242_v17 = vld [vmem:[%s7859_s11] sm:$0xff]  ;;  %v1190_v25 = vsel %vm1182_vm6, 1, %v6142_v3  ;;  %vm1183_vm7 = vcmp.gt.f32.partialorder %v1135_v23, 0.5  ;;  %v1136_v27 = vld [vmem:[%s7858_s30 + $0x30] sm:$0xff]  ;;  %v1137_v30 = vld [vmem:[%s7858_s30 + $0x38] sm:$0xff]  ;;  %v1421_v36 = vsub.f32 1.0, %v6398_v7 }
  0x34   : > { %5513 = vmatmul.mubr.msk.f32.gmra.mxu0 %vm994_vm1, %v981_v13  ;;  %5521 = vmatprep.subr.mxu1 %v1242_v17  ;;  %v1191_v28 = vsel %vm1183_vm7, 1, %v6142_v3  ;;  %vm1184_vm8 = vcmp.gt.f32.partialorder %v1136_v27, 0.5  ;;  %vm1185_vm9 = vcmp.gt.f32.partialorder %v1137_v30, 0.5  ;;  %v1424_v37 = vsub.f32 1.0, %v6417_v12 }
  0x35   : > { %5515 = vmatprep.mubr.msk.f32.mxu0 %vm994_vm1, %v982_v15  ;;  %5522 = vmatpush3.msra.mxu1 %v1242_v17  ;;  %v1192_v31 = vsel %vm1184_vm8, 1, %v6142_v3  ;;  %v1193_v33 = vsel %vm1185_vm9, 1, %v6142_v3  ;;  %v1423_v38 = vsub.f32 1.0, %v6408_v10  ;;  %v1426_v39 = vsub.f32 1.0, %v1135_v23 }
  0x36   : > { %1201 = vperm.xlu1 %5911, %v1188_v14   ;;  %1153 = vperm.xlu0 %5910, %v1140_v16   ;;  %v1425_v40 = vsub.f32 1.0, %v1134_v18  ;;  %v1428_v41 = vsub.f32 1.0, %v1137_v30  ;;  %v1427_v42 = vsub.f32 1.0, %v1136_v27  ;;  %v5134_v14 = vld [vmem:[%s7860_s14] ss:$0 sm:$0xff] }
  0x38   : > { %5516 = vmatmul.mubr.msk.f32.gmra.mxu0 %vm994_vm1, %v983_v19 }
  0x39   : > { %5518 = vmatprep.mubr.msk.f32.mxu0 %vm994_vm1, %v984_v21 }
  0x3a   : > { %1204 = vperm.xlu1 %5911, %v1189_v20   ;;  %1156 = vperm.xlu0 %5910, %v1141_v22  }
  0x3c   : > { %5519 = vmatmul.mubr.msk.f32.gmra.mxu0 %vm994_vm1, %v985_v24 }
  0x3e   : > { %1207 = vperm.xlu1 %5911, %v1190_v25   ;;  %1159 = vperm.xlu0 %5910, %v1142_v26  }
  0x42   : > { %1210 = vperm.xlu1 %5911, %v1191_v28   ;;  %1162 = vperm.xlu0 %5910, %v1143_v29  }
  0x46   : > { %1213 = vperm.xlu1 %5911, %v1192_v31   ;;  %1165 = vperm.xlu0 %5910, %v1144_v32  }
  0x4a   : > { %1216 = vperm.xlu1 %5911, %v1193_v33   ;;  %1168 = vperm.xlu0 %5910, %v1145_v34  }
  0x4e   : > { %1380 = vperm.xlu1 %5911, %v6389_v5   ;;  %1375 = vperm.xlu0 %5910, %v6398_v7  }
  0x52   : > { %1390 = vperm.xlu1 %5911, %v6417_v12   ;;  %1385 = vperm.xlu0 %5910, %v6408_v10  }
  0x56   : > { %1400 = vperm.xlu1 %5911, %v1135_v23   ;;  %1395 = vperm.xlu0 %5910, %v1134_v18  }
  0x5a   : > { %1410 = vperm.xlu1 %5911, %v1137_v30   ;;  %1405 = vperm.xlu0 %5910, %v1136_v27  }
  0x5e   : > { %1436 = vperm.xlu1 %5911, %v1422_v35   ;;  %1431 = vperm.xlu0 %5910, %v1421_v36  }
  0x62   : > { %1446 = vperm.xlu1 %5911, %v1424_v37   ;;  %1441 = vperm.xlu0 %5910, %v1423_v38  }
  0x66   : > { %1456 = vperm.xlu1 %5911, %v1426_v39   ;;  %1451 = vperm.xlu0 %5910, %v1425_v40  }
  0x6a   : > { %1466 = vperm.xlu1 %5911, %v1428_v41   ;;  %1461 = vperm.xlu0 %5910, %v1427_v42  }
  0xa8   : > { %v1151_v44 = vpop.permute.xlu1 %1150  ;;  %v1148_v46 = vpop.permute.xlu0 %1147 }
  0xa9   : > { %vm1171_vm10 = vcmp.eq.s32.totalorder %v1151_v44, %v1129_v45  ;;  %vm1170_vm12 = vcmp.eq.s32.totalorder %v1148_v46, %v1129_v45 }
  0xad   : > { %v1199_v47 = vpop.permute.xlu1 %1198  ;;  %v1196_v48 = vpop.permute.xlu0 %1195 }
  0xae   : > { %vm1219_vm11 = vcmp.eq.s32.totalorder %v1199_v47, 1  ;;  %vm1218_vm14 = vcmp.eq.s32.totalorder %v1196_v48, 1 }
  0xaf   : > { %vm1227_vm13 = vmand %vm1171_vm10, %vm1219_vm11 }
  0xb0   : > { %v1235_v50 = vsel %vm1227_vm13, 1.0, %v6143_v49  ;;  %vm1226_vm0 = vmand %vm1170_vm12, %vm1218_vm14 }
  0xb1   : > { %v1202_v51 = vpop.permute.xlu1 %1201  ;;  %v1234_v52 = vsel %vm1226_vm0, 1.0, %v6143_v49  ;;  %v1154_v53 = vpop.permute.xlu0 %1153 }
  0xb2   : > { %vm1220_vm1 = vcmp.eq.s32.totalorder %v1202_v51, 1  ;;  %5523 = vmatprep.mubr.msk.f32.mxu1 %vm1243_vm15, %v1234_v52  ;;  %vm1172_vm2 = vcmp.eq.s32.totalorder %v1154_v53, %v1129_v45 }
  0xb3   : > { %5524 = vmatmul.mubr.msk.f32.vlgmr.msra.gmra.mxu1 %vm1243_vm15, %v1235_v50  ;;  %vm1228_vm3 = vmand %vm1172_vm2, %vm1220_vm1 }
  0xb4   : > { %v1236_v54 = vsel %vm1228_vm3, 1.0, %v6143_v49 }
  0xb5   : > { %v1205_v55 = vpop.permute.xlu1 %1204  ;;  %v1157_v56 = vpop.permute.xlu0 %1156  ;;  %5526 = vmatprep.mubr.msk.f32.mxu1 %vm1243_vm15, %v1236_v54 }
  0xb6   : > { %vm1221_vm4 = vcmp.eq.s32.totalorder %v1205_v55, 1  ;;  %vm1173_vm5 = vcmp.eq.s32.totalorder %v1157_v56, %v1129_v45 }
  0xb7   : > { %vm1229_vm6 = vmand %vm1173_vm5, %vm1221_vm4 }
  0xb8   : > { %v1237_v57 = vsel %vm1229_vm6, 1.0, %v6143_v49 }
  0xb9   : > { %v1208_v58 = vpop.permute.xlu1 %1207  ;;  %v1160_v59 = vpop.permute.xlu0 %1159  ;;  %5527 = vmatmul.mubr.msk.f32.gmra.mxu1 %vm1243_vm15, %v1237_v57 }
  0xba   : > { %vm1222_vm7 = vcmp.eq.s32.totalorder %v1208_v58, 1  ;;  %vm1174_vm8 = vcmp.eq.s32.totalorder %v1160_v59, %v1129_v45 }
  0xbb   : > { %vm1230_vm9 = vmand %vm1174_vm8, %vm1222_vm7 }
  0xbc   : > { %v1238_v60 = vsel %vm1230_vm9, 1.0, %v6143_v49 }
  0xbd   : > { %v1211_v61 = vpop.permute.xlu1 %1210  ;;  %v1163_v62 = vpop.permute.xlu0 %1162  ;;  %5529 = vmatprep.mubr.msk.f32.mxu1 %vm1243_vm15, %v1238_v60 }
  0xbe   : > { %vm1223_vm10 = vcmp.eq.s32.totalorder %v1211_v61, 1  ;;  %vm1175_vm11 = vcmp.eq.s32.totalorder %v1163_v62, %v1129_v45 }
  0xbf   : > { %vm1231_vm12 = vmand %vm1175_vm11, %vm1223_vm10 }
  0xc0   : > { %v1239_v63 = vsel %vm1231_vm12, 1.0, %v6143_v49 }
  0xc1   : > { %v1214_v0 = vpop.permute.xlu1 %1213  ;;  %v1166_v1 = vpop.permute.xlu0 %1165  ;;  %5530 = vmatmul.mubr.msk.f32.gmra.mxu1 %vm1243_vm15, %v1239_v63 }
  0xc2   : > { %vm1224_vm13 = vcmp.eq.s32.totalorder %v1214_v0, 1  ;;  %vm1176_vm14 = vcmp.eq.s32.totalorder %v1166_v1, %v1129_v45 }
  0xc3   : > { %vm1232_vm0 = vmand %vm1176_vm14, %vm1224_vm13 }
  0xc4   : > { %v1240_v2 = vsel %vm1232_vm0, 1.0, %v6143_v49 }
  0xc5   : > { %v1217_v3 = vpop.permute.xlu1 %1216  ;;  %v1169_v4 = vpop.permute.xlu0 %1168  ;;  %5532 = vmatprep.mubr.msk.f32.mxu1 %vm1243_vm15, %v1240_v2 }
  0xc6   : > { %vm1225_vm1 = vcmp.eq.s32.totalorder %v1217_v3, 1  ;;  %vm1177_vm2 = vcmp.eq.s32.totalorder %v1169_v4, %v1129_v45 }
  0xc7   : > { %vm1233_vm3 = vmand %vm1177_vm2, %vm1225_vm1 }
  0xc8   : > { %v1241_v5 = vsel %vm1233_vm3, 1.0, %v6143_v49 }
  0xc9   : > { %5533 = vmatmul.mubr.msk.f32.gmra.mxu1 %vm1243_vm15, %v1241_v5  ;;  %v1381_v6 = vpop.permute.xlu1 %1380  ;;  %v1376_v7 = vpop.permute.xlu0 %1375  ;;  %vm1485_vm15 = vcmask 130048  }
  0xcd   : > { %v1391_v8 = vpop.permute.xlu1 %1390  ;;  %v1386_v9 = vpop.permute.xlu0 %1385 }
  0xd1   : > { %v1401_v10 = vpop.permute.xlu1 %1400  ;;  %v1396_v11 = vpop.permute.xlu0 %1395 }
  0xd5   : > { %v1411_v13 = vpop.permute.xlu1 %1410  ;;  %v1406_v16 = vpop.permute.xlu0 %1405 }
  0xd9   : > { %v1437_v20 = vpop.permute.xlu1 %1436  ;;  %v1432_v24 = vpop.permute.xlu0 %1431 }
  0xdd   : > { %v1447_v32 = vpop.permute.xlu1 %1446  ;;  %v1442_v38 = vpop.permute.xlu0 %1441 }
  0xe1   : > { %v1457_v46 = vpop.permute.xlu1 %1456  ;;  %v1452_v52 = vpop.permute.xlu0 %1451 }
  0xe5   : > { %v1467_v61 = vpop.permute.xlu1 %1466  ;;  %v1462_v1 = vpop.permute.xlu0 %1461 }
  0xf0   : > { %v5511_v12 = vpop.f32.mrf.mxu0 }
  0xf1   : > { %v1095_v17 = vadd.f32 %v5511_v12, %v5134_v14 }
  0xf2   : > { %v1089_v15 = vpop.f32.mrf.mxu0 }
  0xf3   : > { %v1090_v18 = vadd.f32 %v5134_v14, %v1089_v15  ;;  %v1470_v22 = vmul.f32 %v1437_v20, %v1095_v17 }
  0xf4   : > { %v5514_v19 = vpop.f32.mrf.mxu0 }
  0xf5   : > { %v1469_v26 = vmul.f32 %v1432_v24, %v1090_v18  ;;  %v1105_v30 = vadd.f32 %v5514_v19, %v5134_v14 }
  0xf6   : > { %v1099_v27 = vpop.f32.mrf.mxu0 }
  0xf7   : > { %v1100_v33 = vadd.f32 %v5134_v14, %v1099_v27  ;;  %v1472_v36 = vmul.f32 %v1447_v32, %v1105_v30 }
  0xf8   : > { %v5517_v34 = vpop.f32.mrf.mxu0 }
  0xf9   : > { %v1471_v40 = vmul.f32 %v1442_v38, %v1100_v33  ;;  %v1115_v44 = vadd.f32 %v5517_v34, %v5134_v14 }
  0xfa   : > { %v1109_v43 = vpop.f32.mrf.mxu0 }
  0xfb   : > { %v1110_v47 = vadd.f32 %v5134_v14, %v1109_v43  ;;  %v1474_v50 = vmul.f32 %v1457_v46, %v1115_v44 }
  0xfc   : > { %v5520_v48 = vpop.f32.mrf.mxu0 }
  0xfd   : > { %v1473_v54 = vmul.f32 %v1452_v52, %v1110_v47  ;;  %v1125_v58 = vadd.f32 %v5520_v48, %v5134_v14 }
  0xfe   : > { %v1119_v57 = vpop.f32.mrf.mxu0 }
  0xff   : > { %v1120_v60 = vadd.f32 %v5134_v14, %v1119_v57  ;;  %v1476_v63 = vmul.f32 %v1467_v61, %v1125_v58 }
 0x101   : > { %v1475_v3 = vmul.f32 %v1462_v1, %v1120_v60 }
 0x173   : > { %v5525_v21 = vpop.f32.mrf.mxu1 }
 0x174   : > { %v1414_v23 = vmul.f32 %v5525_v21, %v1381_v6 }
 0x175   : > { %v1334_v25 = vpop.f32.mrf.mxu1 }
 0x176   : > { %v1478_v28 = vadd.f32 %v1470_v22, %v1414_v23  ;;  %v1413_v29 = vmul.f32 %v1376_v7, %v1334_v25 }
 0x178   : > { %1487 = vst.msk [vmem:[#allocation2 + $0x8] sm:$0xff] %vm1485_vm15, %v1478_v28  ;;  %v1477_v31 = vadd.f32 %v1469_v26, %v1413_v29 }
 0x179   : > { %v5528_v35 = vpop.f32.mrf.mxu1 }
 0x17a   : > { %1486 = vst.msk [vmem:[#allocation2] sm:$0xff] %vm1485_vm15, %v1477_v31  ;;  %v1416_v37 = vmul.f32 %v5528_v35, %v1391_v8 }
 0x17b   : > { %v1344_v39 = vpop.f32.mrf.mxu1 }
 0x17c   : > { %v1480_v41 = vadd.f32 %v1472_v36, %v1416_v37  ;;  %v1415_v42 = vmul.f32 %v1386_v9, %v1344_v39 }
 0x17e   : > { %1489 = vst.msk [vmem:[#allocation2 + $0x18] sm:$0xff] %vm1485_vm15, %v1480_v41  ;;  %v1479_v45 = vadd.f32 %v1471_v40, %v1415_v42 }
 0x180   : > { %1488 = vst.msk [vmem:[#allocation2 + $0x10] sm:$0xff] %vm1485_vm15, %v1479_v45 }
 0x181   : > { %v5531_v49 = vpop.f32.mrf.mxu1 }
 0x182   : > { %v1418_v51 = vmul.f32 %v5531_v49, %v1401_v10 }
 0x183   : > { %v1354_v53 = vpop.f32.mrf.mxu1 }
 0x184   : > { %v1482_v55 = vadd.f32 %v1474_v50, %v1418_v51  ;;  %v1417_v56 = vmul.f32 %v1396_v11, %v1354_v53 }
 0x186   : > { %1491 = vst.msk [vmem:[#allocation2 + $0x28] sm:$0xff] %vm1485_vm15, %v1482_v55  ;;  %v1481_v59 = vadd.f32 %v1473_v54, %v1417_v56 }
 0x188   : > { %1490 = vst.msk [vmem:[#allocation2 + $0x20] sm:$0xff] %vm1485_vm15, %v1481_v59 }
 0x189   : > { %v5534_v62 = vpop.f32.mrf.mxu1 }
 0x18a   : > { %v1420_v0 = vmul.f32 %v5534_v62, %v1411_v13 }
 0x18b   : > { %v1364_v2 = vpop.f32.mrf.mxu1 }
 0x18c   : > { %v1484_v4 = vadd.f32 %v1476_v63, %v1420_v0  ;;  %v1419_v5 = vmul.f32 %v1406_v16, %v1364_v2 }
 0x18e   : > { %1493 = vst.msk [vmem:[#allocation2 + $0x38] sm:$0xff] %vm1485_vm15, %v1484_v4  ;;  %v1483_v6 = vadd.f32 %v1475_v3, %v1419_v5 }
 0x190   : > { %1492 = vst.msk [vmem:[#allocation2 + $0x30] sm:$0xff] %vm1485_vm15, %v1483_v6 }
 0x191 PF: > { %v1574_v7 = vld [vmem:[#allocation2] sm:$0xff]  ;;  %vm1584_vm4 = vcmask 130048   ;;  %v1576_v8 = vld [vmem:[#allocation2 + $0x10] sm:$0xff]  ;;  %v1575_v9 = vld [vmem:[#allocation2 + $0x8] sm:$0xff]  ;;  %s7861_s3 = scalar_lea.vmem %s7811_s17, %s6315_s8  ;;  %s7862_s7 = scalar_lea.vmem %s7807_s13, %s6315_s8  ;;  %vm1880_vm5 = vcmask 31744   ;;  %vm2034_vm1 = vcmask 523264  }
 0x192   : > { %v1585_v10 = vsel %vm1584_vm4, %v1574_v7, 0.0  ;;  %v1591_v11 = vsel %vm1584_vm4, %v1576_v8, 0.0  ;;  %v1577_v12 = vld [vmem:[#allocation2 + $0x18] sm:$0xff]  ;;  %v1588_v13 = vsel %vm1584_vm4, %v1575_v9, 0.0  ;;  %v1578_v15 = vld [vmem:[#allocation2 + $0x20] sm:$0xff]  ;;  %v1579_v16 = vld [vmem:[#allocation2 + $0x28] sm:$0xff] }
 0x193   : > { %1586 = vadd.xlane.f32.xlu0 %v1585_v10  ;;  %1592 = vadd.xlane.f32.xlu1 %v1591_v11  ;;  %v1594_v14 = vsel %vm1584_vm4, %v1577_v12, 0.0  ;;  %v1597_v17 = vsel %vm1584_vm4, %v1578_v15, 0.0  ;;  %v1600_v18 = vsel %vm1584_vm4, %v1579_v16, 0.0  ;;  %v1719_v63 = vld [vmem:[%s6325_s29 + $0x8] sm:$0xff]  ;;  %v1718_v0 = vld [vmem:[%s6325_s29] sm:$0xff]  ;;  %s6145_s5 = smov 112  }
 0x194   : > { %5535 = vmatprep.subr.mxu0 %v1719_v63  ;;  %s7863_s14 = sld [smem:[#allocation10_spill]]  ;;  %s6150_s26 = smov 92  }
 0x195   : > { %v1581_v20 = vld [vmem:[#allocation2 + $0x38] sm:$0xff]  ;;  %5536 = vmatpush3.msra.mxu0 %v1719_v63  ;;  %s7864_s9 = sld [smem:[#allocation11_spill]]  ;;  %s6151_s10 = smov 104  }
 0x196   : > { %v1606_v22 = vsel %vm1584_vm4, %v1581_v20, 0.0  ;;  %5537 = vmatprep.subr.mxu0 %v1718_v0  ;;  %s6152_s29 = smov 120   ;;  %s6153_s11 = smov 88  }
 0x197   : > { %1589 = vadd.xlane.f32.xlu0 %v1588_v13  ;;  %1595 = vadd.xlane.f32.xlu1 %v1594_v14  ;;  %v1580_v19 = vld [vmem:[#allocation2 + $0x30] sm:$0xff]  ;;  %s6155_s27 = smov 116   ;;  %s6156_s1 = smov 84  }
 0x198   : > { %v1603_v21 = vsel %vm1584_vm4, %v1580_v19, 0.0  ;;  %5538 = vmatpush3.msra.mxu0 %v1718_v0  ;;  %p5289_p5 = scmp.ne.s32.totalorder %s6309_s4, 1 }
 0x19b   : > { %1598 = vadd.xlane.f32.xlu0 %v1597_v17  ;;  %1601 = vadd.xlane.f32.xlu1 %v1600_v18 }
 0x19f   : > { %1604 = vadd.xlane.f32.xlu0 %v1603_v21  ;;  %1607 = vadd.xlane.f32.xlu1 %v1606_v22 }
 0x21c   : > { %v1587_v23 = vpop.xlane.xlu0 %1586  ;;  %v1593_v24 = vpop.xlane.xlu1 %1592 }
 0x21d   : > { %v1610_v25 = vmul.f32 0.0625, %v1587_v23  ;;  %v1612_v26 = vmul.f32 0.0625, %v1593_v24 }
 0x21f   : > { %v6515_v27 = vsub.f32 %v1574_v7, %v1610_v25  ;;  %v6517_v28 = vsub.f32 %v1576_v8, %v1612_v26  ;;  %v5153_v25 = vld [vmem:[%s948_s25] ss:$0 sm:$0xff]  ;;  %s7865_s25 = sld [smem:[#allocation5_spill]] }
 0x220   : > { %v1590_v29 = vpop.xlane.xlu0 %1589  ;;  %v1596_v30 = vpop.xlane.xlu1 %1595 }
 0x221   : > { %v1611_v31 = vmul.f32 0.0625, %v1590_v29  ;;  %v1613_v32 = vmul.f32 0.0625, %v1596_v30  ;;  %v1626_v33 = vmul.f32 %v6515_v27, %v6515_v27  ;;  %v1628_v34 = vmul.f32 %v6517_v28, %v6517_v28  ;;  %v5154_v30 = vld [vmem:[%s7861_s3] ss:$0 sm:$0xff]  ;;  %s6147_s3 = smov 108  }
 0x223   : > { %v6523_v35 = vsub.f32 %v1575_v9, %v1611_v31  ;;  %v6525_v36 = vsub.f32 %v1577_v12, %v1613_v32  ;;  %v1634_v37 = vsel %vm1584_vm4, %v1626_v33, 0.0  ;;  %v1640_v40 = vsel %vm1584_vm4, %v1628_v34, 0.0 }
 0x224   : > { %1635 = vadd.xlane.f32.xlu0 %v1634_v37  ;;  %v1599_v38 = vpop.xlane.xlu0 %1598  ;;  %v1602_v39 = vpop.xlane.xlu1 %1601 }
 0x225   : > { %v1614_v41 = vmul.f32 0.0625, %v1599_v38  ;;  %v1615_v42 = vmul.f32 0.0625, %v1602_v39  ;;  %v1627_v43 = vmul.f32 %v6523_v35, %v6523_v35  ;;  %v1629_v44 = vmul.f32 %v6525_v36, %v6525_v36 }
 0x227   : > { %v6533_v45 = vsub.f32 %v1578_v15, %v1614_v41  ;;  %v6535_v46 = vsub.f32 %v1579_v16, %v1615_v42  ;;  %v1637_v47 = vsel %vm1584_vm4, %v1627_v43, 0.0  ;;  %v1643_v50 = vsel %vm1584_vm4, %v1629_v44, 0.0 }
 0x228   : > { %1641 = vadd.xlane.f32.xlu0 %v1640_v40  ;;  %1638 = vadd.xlane.f32.xlu1 %v1637_v47  ;;  %v1605_v48 = vpop.xlane.xlu0 %1604  ;;  %v1608_v49 = vpop.xlane.xlu1 %1607 }
 0x229   : > { %v1616_v51 = vmul.f32 0.0625, %v1605_v48  ;;  %v1617_v52 = vmul.f32 0.0625, %v1608_v49  ;;  %v1630_v53 = vmul.f32 %v6533_v45, %v6533_v45  ;;  %v1631_v54 = vmul.f32 %v6535_v46, %v6535_v46 }
 0x22b   : > { %v6543_v55 = vsub.f32 %v1580_v19, %v1616_v51  ;;  %v6545_v56 = vsub.f32 %v1581_v20, %v1617_v52  ;;  %v1646_v57 = vsel %vm1584_vm4, %v1630_v53, 0.0  ;;  %v1649_v58 = vsel %vm1584_vm4, %v1631_v54, 0.0 }
 0x22c   : > { %1644 = vadd.xlane.f32.xlu1 %v1643_v50  ;;  %1647 = vadd.xlane.f32.xlu0 %v1646_v57 }
 0x22d   : > { %v1632_v59 = vmul.f32 %v6543_v55, %v6543_v55  ;;  %v1633_v60 = vmul.f32 %v6545_v56, %v6545_v56 }
 0x22f   : > { %v1652_v61 = vsel %vm1584_vm4, %v1632_v59, 0.0  ;;  %v1655_v62 = vsel %vm1584_vm4, %v1633_v60, 0.0 }
 0x230   : > { %1650 = vadd.xlane.f32.xlu1 %v1649_v58  ;;  %1653 = vadd.xlane.f32.xlu0 %v1652_v61 }
 0x234   : > { %1656 = vadd.xlane.f32.xlu1 %v1655_v62  ;;  %v5155_v62 = vld [vmem:[%s7862_s7] ss:$0 sm:$0xff]  ;;  %s6149_s7 = smov 124  }
 0x2ad   : > { %v1636_v1 = vpop.xlane.xlu0 %1635 }
 0x2ae   : > { %v1658_v2 = vmul.f32 0.0625, %v1636_v1 }
 0x2b0   : > { %v1666_v3 = vadd.f32 1e-05, %v1658_v2 }
 0x2b1   : > { %v1639_v4 = vpop.xlane.xlu1 %1638  ;;  %v1642_v5 = vpop.xlane.xlu0 %1641 }
 0x2b2   : > { %5914 = vrsqrt.f32 %v1666_v3  ;;  %v1659_v6 = vmul.f32 0.0625, %v1639_v4  ;;  %v1660_v7 = vmul.f32 0.0625, %v1642_v5 }
 0x2b4   : > { %v1667_v8 = vadd.f32 1e-05, %v1659_v6  ;;  %v1668_v9 = vadd.f32 1e-05, %v1660_v7 }
 0x2b5   : > { %v1645_v10 = vpop.xlane.xlu1 %1644  ;;  %v1648_v11 = vpop.xlane.xlu0 %1647 }
 0x2b6   : > { %5916 = vrsqrt.f32 %v1667_v8  ;;  %v1661_v12 = vmul.f32 0.0625, %v1645_v10  ;;  %v1662_v13 = vmul.f32 0.0625, %v1648_v11 }
 0x2b7   : > { %5918 = vrsqrt.f32 %v1668_v9 }
 0x2b8   : > { %v1669_v14 = vadd.f32 1e-05, %v1661_v12  ;;  %v1670_v15 = vadd.f32 1e-05, %v1662_v13  ;;  %v1494_v12 = vld [vmem:[%s7863_s14] sm:$0xff] }
 0x2b9   : > { %v1651_v16 = vpop.xlane.xlu1 %1650  ;;  %v1654_v17 = vpop.xlane.xlu0 %1653 }
 0x2ba   : > { %5920 = vrsqrt.f32 %v1669_v14  ;;  %v1663_v18 = vmul.f32 0.0625, %v1651_v16  ;;  %v1664_v19 = vmul.f32 0.0625, %v1654_v17  ;;  %v1497_v14 = vld [vmem:[%s7863_s14 + $0x18] sm:$0xff]  ;;  %v1495_v16 = vld [vmem:[%s7863_s14 + $0x8] sm:$0xff] }
 0x2bb   : > { %5922 = vrsqrt.f32 %v1670_v15  ;;  %v1499_v15 = vld [vmem:[%s7863_s14 + $0x28] sm:$0xff]  ;;  %v1501_v17 = vld [vmem:[%s7863_s14 + $0x38] sm:$0xff] }
 0x2bc   : > { %v1671_v20 = vadd.f32 1e-05, %v1663_v18  ;;  %v1672_v21 = vadd.f32 1e-05, %v1664_v19  ;;  %v1496_v18 = vld [vmem:[%s7863_s14 + $0x10] sm:$0xff]  ;;  %v1498_v19 = vld [vmem:[%s7863_s14 + $0x20] sm:$0xff] }
 0x2bd   : > { %v1657_v22 = vpop.xlane.xlu1 %1656 }
 0x2be   : > { %5924 = vrsqrt.f32 %v1671_v20  ;;  %v1665_v23 = vmul.f32 0.0625, %v1657_v22  ;;  %v1500_v20 = vld [vmem:[%s7863_s14 + $0x30] sm:$0xff]  ;;  %s6158_s14 = smov 8  }
 0x2bf   : > { %v5915_v24 = vpop.eup %5914  ;;  %5926 = vrsqrt.f32 %v1672_v21 }
 0x2c0   : > { %v1673_v26 = vadd.f32 1e-05, %v1665_v23  ;;  %v1682_v29 = vmul.f32 %v5915_v24, %v6515_v27 }
 0x2c2   : > { %5928 = vrsqrt.f32 %v1673_v26  ;;  %v1696_v31 = vmul.f32 %v5153_v25, %v1682_v29 }
 0x2c3   : > { %v5917_v32 = vpop.eup %5916 }
 0x2c4   : > { %v5919_v33 = vpop.eup %5918  ;;  %v1710_v34 = vadd.f32 %v5154_v30, %v1696_v31  ;;  %v1683_v37 = vmul.f32 %v5917_v32, %v6523_v35 }
 0x2c5   : > { %v1684_v38 = vmul.f32 %v5919_v33, %v6517_v28 }
 0x2c6   : > { %5539 = vmatprep.mubr.msk.f32.mxu0 %vm1584_vm4, %v1710_v34  ;;  %v1697_v39 = vmul.f32 %v5153_v25, %v1683_v37 }
 0x2c7   : > { %v5921_v40 = vpop.eup %5920  ;;  %v1698_v41 = vmul.f32 %v5153_v25, %v1684_v38 }
 0x2c8   : > { %v5923_v27 = vpop.eup %5922  ;;  %v1711_v42 = vadd.f32 %v5154_v30, %v1697_v39  ;;  %v1685_v43 = vmul.f32 %v5921_v40, %v6525_v36 }
 0x2c9   : > { %v1712_v44 = vadd.f32 %v5154_v30, %v1698_v41  ;;  %v1686_v47 = vmul.f32 %v5923_v27, %v6533_v45 }
 0x2ca   : > { %5540 = vmatmul.mubr.msk.f32.vlgmr.msra.gmra.mxu0 %vm1584_vm4, %v1711_v42  ;;  %v1699_v48 = vmul.f32 %v5153_v25, %v1685_v43 }
 0x2cb   : > { %v5925_v49 = vpop.eup %5924  ;;  %5542 = vmatprep.mubr.msk.f32.mxu0 %vm1584_vm4, %v1712_v44  ;;  %v1700_v35 = vmul.f32 %v5153_v25, %v1686_v47 }
 0x2cc   : > { %v5927_v28 = vpop.eup %5926  ;;  %v1713_v50 = vadd.f32 %v5154_v30, %v1699_v48  ;;  %v1687_v51 = vmul.f32 %v5925_v49, %v6535_v46 }
 0x2cd   : > { %v1714_v52 = vadd.f32 %v5154_v30, %v1700_v35  ;;  %v1688_v53 = vmul.f32 %v5927_v28, %v6543_v55  ;;  %v6144_v55 = vmov 0   ;;  %v1539_v28 = vlaneseq }
 0x2ce   : > { %5543 = vmatmul.mubr.msk.f32.gmra.mxu0 %vm1584_vm4, %v1713_v50  ;;  %v1701_v36 = vmul.f32 %v5153_v25, %v1687_v51  ;;  %5912 = vset.pattern.permute.xlu0 %v6144_v55 }
 0x2cf   : > { %v5929_v54 = vpop.eup %5928  ;;  %5545 = vmatprep.mubr.msk.f32.mxu0 %vm1584_vm4, %v1714_v52  ;;  %v1702_v45 = vmul.f32 %v5153_v25, %v1688_v53  ;;  %5913 = vset.pattern.permute.xlu1 %v6144_v55  ;;  %v1540_v50 = vshrl.u32 %v1539_v28, 7  ;;  %v6698_v51 = vand.u32 127, %v1539_v28  ;;  %v5152_v53 = vld [vmem:[%s7864_s9] ss:$0 sm:$0xff]  ;;  %s6159_s9 = smov 12  }
 0x2d0   : > { %v1715_v57 = vadd.f32 %v5154_v30, %v1701_v36  ;;  %v1689_v58 = vmul.f32 %v5929_v54, %v6545_v56 }
 0x2d1   : > { %v1716_v59 = vadd.f32 %v5154_v30, %v1702_v45  ;;  %v1541_v52 = vadd.s32 8, %v1540_v50  ;;  %vm1550_vm8 = vcmp.le.s32.totalorder %v6698_v51, %v1540_v50  ;;  %v1543_v36 = vadd.s32 24, %v1540_v50 }
 0x2d2   : > { %5546 = vmatmul.mubr.msk.f32.gmra.mxu0 %vm1584_vm4, %v1715_v57  ;;  %v1703_v60 = vmul.f32 %v5153_v25, %v1689_v58  ;;  %v1542_v54 = vadd.s32 16, %v1540_v50  ;;  %v1545_v45 = vadd.s32 40, %v1540_v50  ;;  %v6148_v57 = vmov -1e+30  }
 0x2d3   : > { %5548 = vmatprep.mubr.msk.f32.mxu0 %vm1584_vm4, %v1716_v59  ;;  %vm1551_vm6 = vcmp.le.s32.totalorder %v6698_v51, %v1541_v52  ;;  %vm1553_vm12 = vcmp.le.s32.totalorder %v6698_v51, %v1543_v36  ;;  %v1544_v55 = vadd.s32 32, %v1540_v50 }
 0x2d4   : > { %v1717_v46 = vadd.f32 %v5154_v30, %v1703_v60  ;;  %vm1552_vm14 = vcmp.le.s32.totalorder %v6698_v51, %v1542_v54  ;;  %vm1555_vm3 = vcmp.le.s32.totalorder %v6698_v51, %v1545_v45 }
 0x2d6   : > { %5549 = vmatmul.mubr.msk.f32.gmra.mxu0 %vm1584_vm4, %v1717_v46 }
 0x38a   : > { %v5541_v61 = vpop.f32.mrf.mxu0 }
 0x38b   : > { %v6603_v10 = vadd.f32 %v5541_v61, %v5155_v62 }
 0x38c   : > { %v1817_v63 = vpop.f32.mrf.mxu0 }
 0x38d   : > { %v6588_v56 = vadd.f32 %v5155_v62, %v1817_v63 }
 0x38e   : > { %v5544_v0 = vpop.f32.mrf.mxu0 }
 0x38f   : > { %5567 = vmatprep.mubr.msk.f32.mxu1 %vm1880_vm5, %v6588_v56  ;;  %v6597_v8 = vadd.f32 %v5544_v0, %v5155_v62  ;;  %v1547_v0 = vadd.s32 56, %v1540_v50 }
 0x390   : > { %v1827_v1 = vpop.f32.mrf.mxu0 }
 0x391   : > { %v6613_v13 = vadd.f32 %v5155_v62, %v1827_v1 }
 0x392   : > { %v5547_v2 = vpop.f32.mrf.mxu0 }
 0x393   : > { %v6600_v9 = vadd.f32 %v5547_v2, %v5155_v62 }
 0x394   : > { %v1837_v3 = vpop.f32.mrf.mxu0 }
 0x395   : > { %v6606_v11 = vadd.f32 %v5155_v62, %v1837_v3 }
 0x396   : > { %v5550_v4 = vpop.f32.mrf.mxu0 }
 0x397   : > { %v6592_v5 = vadd.f32 %v5550_v4, %v5155_v62 }
 0x398   : > { %v1847_v6 = vpop.f32.mrf.mxu0 }
 0x399   : > { %v6594_v7 = vadd.f32 %v5155_v62, %v1847_v6  ;;  %1878 = vrot.lane.b32.xlu0 %v6592_v5, %s6145_s5 }
 0x39b   : > { %1876 = vrot.lane.b32.xlu1 %v6594_v7, %s6145_s5 }
 0x39d   : > { %1870 = vrot.lane.b32.xlu0 %v6597_v8, %s6145_s5 }
 0x39f   : > { %1874 = vrot.lane.b32.xlu1 %v6600_v9, %s6145_s5 }
 0x3a1   : > { %1866 = vrot.lane.b32.xlu0 %v6603_v10, %s6145_s5 }
 0x3a3   : > { %1872 = vrot.lane.b32.xlu1 %v6606_v11, %s6145_s5 }
 0x3a5   : > { %1504 = vperm.xlu0 %5912, %v1494_v12   ;;  %v1546_v12 = vadd.s32 48, %v1540_v50 }
 0x3a7   : > { %1868 = vrot.lane.b32.xlu1 %v6613_v13, %s6145_s5 }
 0x3a9   : > { %1513 = vperm.xlu0 %5912, %v1497_v14  }
 0x3ab   : > { %1864 = vrot.lane.b32.xlu1 %v6588_v56, %s6145_s5  ;;  %s6146_s5 = smov 96  }
 0x3ad   : > { %1519 = vperm.xlu0 %5912, %v1499_v15  }
 0x3af   : > { %1507 = vperm.xlu1 %5913, %v1495_v16  }
 0x3b1   : > { %1525 = vperm.xlu0 %5912, %v1501_v17  }
 0x3b3   : > { %1510 = vperm.xlu1 %5913, %v1496_v18  }
 0x3b5   : > { %2129 = vrot.lane.b32.xlu0 %v6597_v8, %s6146_s5 }
 0x3b7   : > { %1516 = vperm.xlu1 %5913, %v1498_v19  }
 0x3b9   : > { %2125 = vrot.lane.b32.xlu0 %v6603_v10, %s6146_s5 }
 0x3bb   : > { %1522 = vperm.xlu1 %5913, %v1500_v20  }
 0x3bd   : > { %2314 = vrot.lane.b32.xlu0 %v6592_v5, %s6147_s3 }
 0x3bf   : > { %2137 = vrot.lane.b32.xlu1 %v6592_v5, %s6146_s5 }
 0x3c1   : > { %2135 = vrot.lane.b32.xlu0 %v6594_v7, %s6146_s5 }
 0x3c3   : > { %2133 = vrot.lane.b32.xlu1 %v6600_v9, %s6146_s5 }
 0x3c7   : > { %2131 = vrot.lane.b32.xlu1 %v6606_v11, %s6146_s5 }
 0x3cb   : > { %2127 = vrot.lane.b32.xlu1 %v6613_v13, %s6146_s5 }
 0x3cf   : > { %2123 = vrot.lane.b32.xlu1 %v6588_v56, %s6146_s5  ;;  %s6154_s5 = smov 100  }
 0x3d3   : > { %2310 = vrot.lane.b32.xlu1 %v6600_v9, %s6147_s3 }
 0x3d7   : > { %2312 = vrot.lane.b32.xlu1 %v6594_v7, %s6147_s3 }
 0x40b   : > { %v1879_v21 = vpop.permute.xlu0 %1878 }
 0x40c   : > { %5551 = vmatprep.subr.msk.mxu1 %vm1880_vm5, %v1879_v21 }
 0x40d   : > { %5552 = vmatpush3.xpose.msk.msra.mxu1 %vm1880_vm5, %v1879_v21  ;;  %v1877_v22 = vpop.permute.xlu1 %1876 }
 0x40e   : > { %5553 = vmatprep.subr.msk.mxu1 %vm1880_vm5, %v1877_v22 }
 0x40f   : > { %v1871_v25 = vpop.permute.xlu0 %1870 }
 0x411   : > { %5554 = vmatpush3.xpose.msk.msra.mxu1 %vm1880_vm5, %v1877_v22  ;;  %v1875_v23 = vpop.permute.xlu1 %1874 }
 0x412   : > { %5555 = vmatprep.subr.msk.mxu1 %vm1880_vm5, %v1875_v23 }
 0x413   : > { %v1867_v26 = vpop.permute.xlu0 %1866 }
 0x415   : > { %5556 = vmatpush3.xpose.msk.msra.mxu1 %vm1880_vm5, %v1875_v23  ;;  %v1873_v24 = vpop.permute.xlu1 %1872 }
 0x416   : > { %5557 = vmatprep.subr.msk.mxu1 %vm1880_vm5, %v1873_v24 }
 0x419   : > { %5558 = vmatpush3.xpose.msk.msra.mxu1 %vm1880_vm5, %v1873_v24  ;;  %v1869_v29 = vpop.permute.xlu1 %1868 }
 0x41a   : > { %5559 = vmatprep.subr.msk.mxu1 %vm1880_vm5, %v1871_v25 }
 0x41d   : > { %5560 = vmatpush3.xpose.msk.msra.mxu1 %vm1880_vm5, %v1871_v25  ;;  %v1865_v32 = vpop.permute.xlu1 %1864 }
 0x41e   : > { %5561 = vmatprep.subr.msk.mxu1 %vm1880_vm5, %v1869_v29 }
 0x420   : > { %v1505_v30 = vpop.permute.xlu0 %1504 }
 0x421   : > { %5562 = vmatpush3.xpose.msk.msra.mxu1 %vm1880_vm5, %v1869_v29  ;;  %vm1531_vm9 = vcmp.eq.s32.totalorder %v1505_v30, %v5152_v53 }
 0x422   : > { %5563 = vmatprep.subr.msk.mxu1 %vm1880_vm5, %v1867_v26  ;;  %vm1558_vm11 = vmand %vm1531_vm9, %vm1550_vm8 }
 0x423   : > { %v6710_v46 = vsel %vm1558_vm11, 0.0, %v6148_v57 }
 0x424   : > { %v6665_v31 = vpop.permute.xlu0 %1513 }
 0x425   : > { %5564 = vmatpush3.xpose.msk.msra.mxu1 %vm1880_vm5, %v1867_v26  ;;  %vm1534_vm13 = vcmp.eq.s32.totalorder %v6665_v31, %v5152_v53 }
 0x426   : > { %5565 = vmatprep.subr.msk.mxu1 %vm1880_vm5, %v1865_v32  ;;  %vm1561_vm2 = vmand %vm1534_vm13, %vm1553_vm12  ;;  %vm1556_vm13 = vcmp.le.s32.totalorder %v6698_v51, %v1546_v12 }
 0x427   : > { %v6721_v6 = vsel %vm1561_vm2, 0.0, %v6148_v57 }
 0x428   : > { %v6669_v33 = vpop.permute.xlu0 %1519 }
 0x429   : > { %5566 = vmatpush3.xpose.msk.msra.mxu1 %vm1880_vm5, %v1865_v32  ;;  %vm1536_vm15 = vcmp.eq.s32.totalorder %v6669_v33, %v5152_v53 }
 0x42a   : > { %v1508_v34 = vpop.permute.xlu1 %1507  ;;  %vm1563_vm9 = vmand %vm1536_vm15, %vm1555_vm3  ;;  %vm3209_vm3 = vcmask 97344   ;;  %vm3676_vm15 = vcmask 130144  }
 0x42b   : > { %vm1532_vm7 = vcmp.eq.s32.totalorder %v1508_v34, %v5152_v53  ;;  %v6740_v25 = vsel %vm1563_vm9, 0.0, %v6148_v57 }
 0x42c   : > { %5568 = vmatmul.mubr.msk.f32.vlgmr.msra.gmra.mxu1 %vm1880_vm5, %v6603_v10  ;;  %v6674_v37 = vpop.permute.xlu0 %1525  ;;  %vm1559_vm10 = vmand %vm1532_vm7, %vm1551_vm6  ;;  %vm1554_vm7 = vcmp.le.s32.totalorder %v6698_v51, %v1544_v55 }
 0x42d   : > { %5570 = vmatprep.mubr.msk.f32.mxu1 %vm1880_vm5, %v6613_v13  ;;  %v6707_v58 = vsel %vm1559_vm10, 0.0, %v6148_v57  ;;  %vm1557_vm10 = vcmp.le.s32.totalorder %v6698_v51, %v1547_v0  ;;  %vm1538_vm11 = vcmp.eq.s32.totalorder %v6674_v37, %v5152_v53 }
 0x42e   : > { %v6678_v38 = vpop.permute.xlu1 %1510 }
 0x42f   : > { %vm1533_vm0 = vcmp.eq.s32.totalorder %v6678_v38, %v5152_v53 }
 0x430   : > { %5571 = vmatmul.mubr.msk.f32.gmra.mxu1 %vm1880_vm5, %v6597_v8  ;;  %v2130_v39 = vpop.permute.xlu0 %2129  ;;  %vm1560_vm6 = vmand %vm1533_vm0, %vm1552_vm14 }
 0x431   : > { %5573 = vmatprep.mubr.msk.f32.mxu1 %vm1880_vm5, %v6606_v11  ;;  %v6732_v18 = vsel %vm1560_vm6, 0.0, %v6148_v57  ;;  %vm1565_vm0 = vmand %vm1538_vm11, %vm1557_vm10 }
 0x432   : > { %v6684_v40 = vpop.permute.xlu1 %1516 }
 0x433   : > { %vm1535_vm8 = vcmp.eq.s32.totalorder %v6684_v40, %v5152_v53 }
 0x434   : > { %5574 = vmatmul.mubr.msk.f32.gmra.mxu1 %vm1880_vm5, %v6600_v9  ;;  %v2126_v41 = vpop.permute.xlu0 %2125  ;;  %vm1562_vm12 = vmand %vm1535_vm8, %vm1554_vm7 }
 0x435   : > { %5576 = vmatprep.mubr.msk.f32.mxu1 %vm1880_vm5, %v6594_v7  ;;  %v6744_v26 = vsel %vm1562_vm12, 0.0, %v6148_v57 }
 0x436   : > { %v6690_v27 = vpop.permute.xlu1 %1522 }
 0x437   : > { %vm1537_vm14 = vcmp.eq.s32.totalorder %v6690_v27, %v5152_v53 }
 0x438   : > { %5577 = vmatmul.mubr.msk.f32.gmra.mxu1 %vm1880_vm5, %v6592_v5  ;;  %v6694_v42 = vpop.permute.xlu0 %2314  ;;  %vm1564_vm2 = vmand %vm1537_vm14, %vm1556_vm13 }
 0x439   : > { %v6752_v40 = vsel %vm1564_vm2, 0.0, %v6148_v57 }
 0x43a   : > { %v2138_v43 = vpop.permute.xlu1 %2137 }
 0x43b   : > { %5579 = vmatprep.subr.mxu0 %v2138_v43 }
 0x43c   : > { %5580 = vmatpush3.msra.mxu0 %v2138_v43  ;;  %v2136_v44 = vpop.permute.xlu0 %2135 }
 0x43d   : > { %5581 = vmatprep.subr.mxu0 %v2136_v44 }
 0x43e   : > { %v2134_v47 = vpop.permute.xlu1 %2133  ;;  %5582 = vmatpush3.msra.mxu0 %v2136_v44 }
 0x43f   : > { %5583 = vmatprep.subr.mxu0 %v2134_v47 }
 0x440   : > { %5584 = vmatpush3.msra.mxu0 %v2134_v47 }
 0x442   : > { %v2132_v48 = vpop.permute.xlu1 %2131 }
 0x443   : > { %5585 = vmatprep.subr.mxu0 %v2132_v48 }
 0x444   : > { %5586 = vmatpush3.msra.mxu0 %v2132_v48 }
 0x445   : > { %5587 = vmatprep.subr.mxu0 %v2130_v39 }
 0x446   : > { %v2128_v49 = vpop.permute.xlu1 %2127  ;;  %5588 = vmatpush3.msra.mxu0 %v2130_v39  ;;  %v6750_v39 = vsel %vm1565_vm0, 0.0, %v6148_v57 }
 0x447   : > { %5589 = vmatprep.subr.mxu0 %v2128_v49 }
 0x448   : > { %5590 = vmatpush3.msra.mxu0 %v2128_v49 }
 0x449   : > { %5591 = vmatprep.subr.mxu0 %v2126_v41 }
 0x44a   : > { %v2124_v35 = vpop.permute.xlu1 %2123  ;;  %5592 = vmatpush3.msra.mxu0 %v2126_v41 }
 0x44b   : > { %5593 = vmatprep.subr.mxu0 %v2124_v35 }
 0x44c   : > { %5594 = vmatpush3.msra.mxu0 %v2124_v35 }
 0x44d   : > { %5607 = vmatprep.subr.msk.mxu0 %vm1880_vm5, %v6694_v42 }
 0x44e   : > { %v6763_v48 = vpop.permute.xlu1 %2310 }
 0x452   : > { %v6765_v49 = vpop.permute.xlu1 %2312 }
 0x4ec   : > { %v5569_v59 = vpop.f32.mrf.mxu1 }
 0x4ed   : > { %v2019_v60 = vmul.f32 0.5, %v5569_v59 }
 0x4ee   : > { %v1979_v61 = vpop.f32.mrf.mxu1 }
 0x4ef   : > { %v2018_v62 = vmul.f32 0.5, %v1979_v61  ;;  %v6714_v63 = vadd.f32 %v2019_v60, %v6707_v58 }
 0x4f0   : > { %v5572_v1 = vpop.f32.mrf.mxu1 }
 0x4f1   : > { %v2021_v2 = vmul.f32 0.5, %v5572_v1  ;;  %v2038_v3 = vsel %vm2034_vm1, %v6714_v63, -inf  ;;  %v2026_v4 = vadd.f32 %v2018_v62, %v6710_v46 }
 0x4f2   : > { %v1989_v14 = vpop.f32.mrf.mxu1  ;;  %2039 = vmax.xlane.f32.xlu0 %v2038_v3 }
 0x4f3   : > { %v2020_v15 = vmul.f32 0.5, %v1989_v14  ;;  %v2035_v16 = vsel %vm2034_vm1, %v2026_v4, -inf  ;;  %v6727_v17 = vadd.f32 %v2021_v2, %v6721_v6 }
 0x4f4   : > { %v5575_v19 = vpop.f32.mrf.mxu1  ;;  %2036 = vmax.xlane.f32.xlu1 %v2035_v16 }
 0x4f5   : > { %v2023_v20 = vmul.f32 0.5, %v5575_v19  ;;  %v2044_v21 = vsel %vm2034_vm1, %v6727_v17, -inf  ;;  %v2028_v22 = vadd.f32 %v2020_v15, %v6732_v18 }
 0x4f6   : > { %v1999_v23 = vpop.f32.mrf.mxu1  ;;  %2045 = vmax.xlane.f32.xlu0 %v2044_v21 }
 0x4f7   : > { %v2022_v24 = vmul.f32 0.5, %v1999_v23  ;;  %v2041_v31 = vsel %vm2034_vm1, %v2028_v22, -inf  ;;  %v2031_v33 = vadd.f32 %v2023_v20, %v6740_v25 }
 0x4f8   : > { %v5578_v29 = vpop.f32.mrf.mxu1 }
 0x4f9   : > { %v2025_v30 = vmul.f32 0.5, %v5578_v29  ;;  %v2030_v32 = vadd.f32 %v2022_v24, %v6744_v26  ;;  %v2050_v41 = vsel %vm2034_vm1, %v2031_v33, -inf }
 0x4fa   : > { %v2009_v34 = vpop.f32.mrf.mxu1  ;;  %2042 = vmax.xlane.f32.xlu0 %v2041_v31 }
 0x4fb   : > { %v2024_v37 = vmul.f32 0.5, %v2009_v34  ;;  %v2047_v38 = vsel %vm2034_vm1, %v2030_v32, -inf  ;;  %v2033_v43 = vadd.f32 %v2025_v30, %v6750_v39 }
 0x4fc   : > { %2048 = vmax.xlane.f32.xlu1 %v2047_v38 }
 0x4fd   : > { %v2032_v27 = vadd.f32 %v2024_v37, %v6752_v40  ;;  %v2056_v47 = vsel %vm2034_vm1, %v2033_v43, -inf }
 0x4fe   : > { %2051 = vmax.xlane.f32.xlu0 %v2050_v41 }
 0x4ff   : > { %v2053_v44 = vsel %vm2034_vm1, %v2032_v27, -inf }
 0x500   : > { %2054 = vmax.xlane.f32.xlu1 %v2053_v44 }
 0x502   : > { %2057 = vmax.xlane.f32.xlu0 %v2056_v47 }
 0x511   : > { %2306 = vrot.lane.b32.xlu1 %v6597_v8, %s6147_s3 }
 0x518   : > { %2308 = vrot.lane.b32.xlu0 %v6606_v11, %s6147_s3 }
 0x57b   : > { %v2040_v35 = vpop.xlane.xlu0 %2039 }
 0x57c   : > { %v2060_v28 = vsub.f32 %v6714_v63, %v2040_v35 }
 0x57d   : > { %v2037_v50 = vpop.xlane.xlu1 %2036 }
 0x57e   : > { %v2069_v52 = vmul.f32 1.442695, %v2060_v28  ;;  %v2059_v53 = vsub.f32 %v2026_v4, %v2037_v50 }
 0x57f   : > { %v2046_v60 = vpop.xlane.xlu0 %2045 }
 0x580   : > { %5930 = vpow2.f32 %v2069_v52  ;;  %v2067_v36 = vmul.f32 1.442695, %v2059_v53  ;;  %v2062_v62 = vsub.f32 %v6727_v17, %v2046_v60 }
 0x582   : > { %5932 = vpow2.f32 %v2067_v36  ;;  %v2073_v1 = vmul.f32 1.442695, %v2062_v62 }
 0x583   : > { %v2043_v55 = vpop.xlane.xlu0 %2042 }
 0x584   : > { %v2061_v0 = vsub.f32 %v2028_v22, %v2043_v55  ;;  %5934 = vpow2.f32 %v2073_v1 }
 0x585   : > { %v2049_v63 = vpop.xlane.xlu1 %2048 }
 0x586   : > { %v2071_v4 = vmul.f32 1.442695, %v2061_v0  ;;  %v2063_v12 = vsub.f32 %v2030_v32, %v2049_v63 }
 0x587   : > { %v2052_v61 = vpop.xlane.xlu0 %2051 }
 0x588   : > { %v2064_v2 = vsub.f32 %v2031_v33, %v2052_v61  ;;  %5936 = vpow2.f32 %v2071_v4  ;;  %v2075_v19 = vmul.f32 1.442695, %v2063_v12 }
 0x589   : > { %v2055_v14 = vpop.xlane.xlu1 %2054 }
 0x58a   : > { %v2077_v15 = vmul.f32 1.442695, %v2064_v2  ;;  %v2065_v20 = vsub.f32 %v2032_v27, %v2055_v14 }
 0x58b   : > { %v2058_v3 = vpop.xlane.xlu0 %2057 }
 0x58c   : > { %v2066_v16 = vsub.f32 %v2033_v43, %v2058_v3  ;;  %5938 = vpow2.f32 %v2077_v15  ;;  %v2079_v23 = vmul.f32 1.442695, %v2065_v20 }
 0x58d   : > { %v6768_v54 = vpop.eup %5930  ;;  %5940 = vpow2.f32 %v2075_v19  ;;  %v2307_v43 = vpop.permute.xlu1 %2306 }
 0x58e   : > { %v2086_v45 = vsel %vm2034_vm1, %v6768_v54, 0.0  ;;  %v2081_v21 = vmul.f32 1.442695, %v2066_v16 }
 0x58f   : > { %v6772_v57 = vpop.eup %5932  ;;  %2087 = vadd.xlane.f32.xlu0 %v2086_v45  ;;  %v2309_v27 = vpop.permute.xlu0 %2308 }
 0x590   : > { %v2083_v59 = vsel %vm2034_vm1, %v6772_v57, 0.0  ;;  %5942 = vpow2.f32 %v2081_v21 }
 0x591   : > { %2084 = vadd.xlane.f32.xlu1 %v2083_v59  ;;  %5944 = vpow2.f32 %v2079_v23  ;;  %v6781_v17 = vpop.eup %5934 }
 0x592   : > { %v2092_v24 = vsel %vm2034_vm1, %v6781_v17, 0.0 }
 0x595   : > { %v6783_v22 = vpop.eup %5936 }
 0x596   : > { %v2089_v30 = vsel %vm2034_vm1, %v6783_v22, 0.0 }
 0x599   : > { %v6787_v29 = vpop.eup %5938 }
 0x59a   : > { %v6791_v31 = vpop.eup %5940  ;;  %v2098_v32 = vsel %vm2034_vm1, %v6787_v29, 0.0 }
 0x59b   : > { %v2095_v34 = vsel %vm2034_vm1, %v6791_v31, 0.0 }
 0x59d   : > { %v6795_v33 = vpop.eup %5942 }
 0x59e   : > { %v6799_v37 = vpop.eup %5944  ;;  %v2104_v38 = vsel %vm2034_vm1, %v6795_v33, 0.0 }
 0x59f   : > { %v2101_v41 = vsel %vm2034_vm1, %v6799_v37, 0.0 }
 0x5a2   : > { %2302 = vrot.lane.b32.xlu1 %v6603_v10, %s6147_s3 }
 0x5a5   : > { %2304 = vrot.lane.b32.xlu0 %v6613_v13, %s6147_s3 }
 0x5c4   : > { %2093 = vadd.xlane.f32.xlu0 %v2092_v24 }
 0x5c6   : > { %2090 = vadd.xlane.f32.xlu1 %v2089_v30 }
 0x5c8   : > { %2099 = vadd.xlane.f32.xlu0 %v2098_v32 }
 0x5ca   : > { %2096 = vadd.xlane.f32.xlu1 %v2095_v34 }
 0x5cc   : > { %2105 = vadd.xlane.f32.xlu0 %v2104_v38 }
 0x5ce   : > { %2102 = vadd.xlane.f32.xlu1 %v2101_v41 }
 0x5df   : > { %2284 = vrot.lane.b32.xlu1 %v6588_v56, %s6149_s7 }
 0x5e2   : > { %2300 = vrot.lane.b32.xlu0 %v6588_v56, %s6147_s3  ;;  %s6157_s3 = smov 4  }
 0x5e3   : > { %2288 = vrot.lane.b32.xlu1 %v6613_v13, %s6149_s7 }
 0x5e6   : > { %2286 = vrot.lane.b32.xlu0 %v6603_v10, %s6149_s7 }
 0x5e7   : > { %2292 = vrot.lane.b32.xlu1 %v6606_v11, %s6149_s7 }
 0x5ea   : > { %2290 = vrot.lane.b32.xlu0 %v6597_v8, %s6149_s7 }
 0x5eb   : > { %2296 = vrot.lane.b32.xlu1 %v6594_v7, %s6149_s7 }
 0x5ee   : > { %2294 = vrot.lane.b32.xlu0 %v6600_v9, %s6149_s7 }
 0x5ef   : > { %2571 = vrot.lane.b32.xlu1 %v6592_v5, %s6150_s26 }
 0x5f2   : > { %2298 = vrot.lane.b32.xlu0 %v6592_v5, %s6149_s7  ;;  %s7870_s7 = sld [smem:[#allocation21_spill]] (!%p5289_p5) }
 0x5f3   : > { %2567 = vrot.lane.b32.xlu1 %v6600_v9, %s6150_s26 }
 0x5f6   : > { %2569 = vrot.lane.b32.xlu0 %v6594_v7, %s6150_s26 }
 0x5f7   : > { %2565 = vrot.lane.b32.xlu1 %v6606_v11, %s6150_s26 }
 0x5fa   : > { %2563 = vrot.lane.b32.xlu0 %v6597_v8, %s6150_s26 }
 0x5fb   : > { %2561 = vrot.lane.b32.xlu1 %v6613_v13, %s6150_s26 }
 0x5fe   : > { %2559 = vrot.lane.b32.xlu0 %v6603_v10, %s6150_s26 }
 0x5ff   : > { %2557 = vrot.lane.b32.xlu1 %v6588_v56, %s6150_s26  ;;  %s7869_s26 = sld [smem:[#allocation12_spill]] (!%p5289_p5) }
 0x602   : > { %2781 = vrot.lane.b32.xlu0 %v6592_v5, %s6151_s10 }
 0x603   : > { %2779 = vrot.lane.b32.xlu1 %v6594_v7, %s6151_s10 }
 0x607   : > { %2777 = vrot.lane.b32.xlu1 %v6600_v9, %s6151_s10 }
 0x618   : > { %v2088_v44 = vpop.xlane.xlu0 %2087 }
 0x619   : > { %5946 = vrcp.f32 %v2088_v44 }
 0x61a   : > { %v2085_v47 = vpop.xlane.xlu1 %2084 }
 0x61b   : > { %5948 = vrcp.f32 %v2085_v47 }
 0x61c   : > { %v2305_v53 = vpop.permute.xlu0 %2304 }
 0x626   : > { %v5947_v35 = vpop.eup %5946 }
 0x627   : > { %v2110_v52 = vmul.f32 %v5947_v35, %v6768_v54 }
 0x628   : > { %v5949_v28 = vpop.eup %5948 }
 0x629   : > { %v2108_v50 = vmul.f32 %v5949_v28, %v6772_v57 }
 0x62b   : > { %5595 = vmatprep.mubr.msk.f32.mxu0 %vm2034_vm1, %v2108_v50 }
 0x62c   : > { %5596 = vmatmul.mubr.msk.f32.vlgmr.msra.gmra.mxu0 %vm2034_vm1, %v2110_v52 }
 0x62d   : > { %5608 = vmatpush3.xpose.msk.msra.mxu0 %vm1880_vm5, %v6694_v42  ;;  %v2303_v42 = vpop.permute.xlu1 %2302 }
 0x62e   : > { %5609 = vmatprep.subr.msk.mxu0 %vm1880_vm5, %v6765_v49 }
 0x631   : > { %5610 = vmatpush3.xpose.msk.msra.mxu0 %vm1880_vm5, %v6765_v49 }
 0x632   : > { %5611 = vmatprep.subr.msk.mxu0 %vm1880_vm5, %v6763_v48 }
 0x635   : > { %5612 = vmatpush3.xpose.msk.msra.mxu0 %vm1880_vm5, %v6763_v48 }
 0x636   : > { %5613 = vmatprep.subr.msk.mxu0 %vm1880_vm5, %v2309_v27 }
 0x639   : > { %5614 = vmatpush3.xpose.msk.msra.mxu0 %vm1880_vm5, %v2309_v27 }
 0x63a   : > { %5615 = vmatprep.subr.msk.mxu0 %vm1880_vm5, %v2307_v43 }
 0x63d   : > { %5616 = vmatpush3.xpose.msk.msra.mxu0 %vm1880_vm5, %v2307_v43 }
 0x63e   : > { %5617 = vmatprep.subr.msk.mxu0 %vm1880_vm5, %v2305_v53 }
 0x641   : > { %5618 = vmatpush3.xpose.msk.msra.mxu0 %vm1880_vm5, %v2305_v53 }
 0x642   : > { %5619 = vmatprep.subr.msk.mxu0 %vm1880_vm5, %v2303_v42 }
 0x645   : > { %5620 = vmatpush3.xpose.msk.msra.mxu0 %vm1880_vm5, %v2303_v42 }
 0x64d   : > { %v2094_v49 = vpop.xlane.xlu0 %2093 }
 0x64e   : > { %5950 = vrcp.f32 %v2094_v49 }
 0x64f   : > { %v2091_v48 = vpop.xlane.xlu1 %2090 }
 0x650   : > { %5952 = vrcp.f32 %v2091_v48 }
 0x651   : > { %v2100_v36 = vpop.xlane.xlu0 %2099 }
 0x652   : > { %5954 = vrcp.f32 %v2100_v36 }
 0x653   : > { %v2097_v54 = vpop.xlane.xlu1 %2096 }
 0x654   : > { %5956 = vrcp.f32 %v2097_v54 }
 0x655   : > { %v2106_v45 = vpop.xlane.xlu0 %2105 }
 0x656   : > { %5958 = vrcp.f32 %v2106_v45 }
 0x657   : > { %v2103_v57 = vpop.xlane.xlu1 %2102 }
 0x658   : > { %5960 = vrcp.f32 %v2103_v57 }
 0x659   : > { %v2301_v59 = vpop.permute.xlu0 %2300 }
 0x65a   : > { %5621 = vmatprep.subr.msk.mxu0 %vm1880_vm5, %v2301_v59 }
 0x65b   : > { %v2285_v60 = vpop.permute.xlu1 %2284  ;;  %5622 = vmatpush3.xpose.msk.msra.mxu0 %vm1880_vm5, %v2301_v59  ;;  %v5951_v55 = vpop.eup %5950 }
 0x65c   : > { %v2114_v1 = vmul.f32 %v5951_v55, %v6781_v17 }
 0x65d   : > { %v5953_v61 = vpop.eup %5952  ;;  %v2287_v62 = vpop.permute.xlu0 %2286 }
 0x65e   : > { %v2112_v63 = vmul.f32 %v5953_v61, %v6783_v22 }
 0x65f   : > { %v2289_v0 = vpop.permute.xlu1 %2288  ;;  %v5955_v2 = vpop.eup %5954 }
 0x660   : > { %5598 = vmatprep.mubr.msk.f32.mxu0 %vm2034_vm1, %v2112_v63  ;;  %v2118_v15 = vmul.f32 %v5955_v2, %v6787_v29 }
 0x661   : > { %v5957_v3 = vpop.eup %5956  ;;  %5599 = vmatmul.mubr.msk.f32.gmra.mxu0 %vm2034_vm1, %v2114_v1  ;;  %v2291_v4 = vpop.permute.xlu0 %2290 }
 0x662   : > { %v2116_v12 = vmul.f32 %v5957_v3, %v6791_v31 }
 0x663   : > { %v2293_v14 = vpop.permute.xlu1 %2292  ;;  %v5959_v16 = vpop.eup %5958 }
 0x664   : > { %5601 = vmatprep.mubr.msk.f32.mxu0 %vm2034_vm1, %v2116_v12  ;;  %v2122_v17 = vmul.f32 %v5959_v16, %v6795_v33 }
 0x665   : > { %v5961_v19 = vpop.eup %5960  ;;  %5602 = vmatmul.mubr.msk.f32.gmra.mxu0 %vm2034_vm1, %v2118_v15  ;;  %v2295_v20 = vpop.permute.xlu0 %2294 }
 0x666   : > { %v2120_v21 = vmul.f32 %v5961_v19, %v6799_v37 }
 0x667   : > { %v2297_v23 = vpop.permute.xlu1 %2296 }
 0x668   : > { %5604 = vmatprep.mubr.msk.f32.mxu0 %vm2034_vm1, %v2120_v21 }
 0x669   : > { %5605 = vmatmul.mubr.msk.f32.gmra.mxu0 %vm2034_vm1, %v2122_v17  ;;  %v2299_v22 = vpop.permute.xlu0 %2298 }
 0x66a   : > { %5623 = vmatprep.mubr.msk.f32.mxu0 %vm1880_vm5, %v2285_v60 }
 0x66b   : > { %v2572_v24 = vpop.permute.xlu1 %2571 }
 0x66c   : > { %5635 = vmatprep.subr.mxu1 %v2572_v24 }
 0x66d   : > { %5624 = vmatmul.mubr.msk.f32.vlgmr.msra.gmra.mxu0 %vm1880_vm5, %v2287_v62  ;;  %5636 = vmatpush3.msra.mxu1 %v2572_v24  ;;  %v2570_v29 = vpop.permute.xlu0 %2569 }
 0x66e   : > { %5626 = vmatprep.mubr.msk.f32.mxu0 %vm1880_vm5, %v2289_v0  ;;  %5637 = vmatprep.subr.mxu1 %v2570_v29 }
 0x66f   : > { %v2568_v30 = vpop.permute.xlu1 %2567  ;;  %5638 = vmatpush3.msra.mxu1 %v2570_v29 }
 0x670   : > { %5639 = vmatprep.subr.mxu1 %v2568_v30 }
 0x671   : > { %5627 = vmatmul.mubr.msk.f32.gmra.mxu0 %vm1880_vm5, %v2291_v4  ;;  %5640 = vmatpush3.msra.mxu1 %v2568_v30  ;;  %v2564_v31 = vpop.permute.xlu0 %2563 }
 0x672   : > { %5629 = vmatprep.mubr.msk.f32.mxu0 %vm1880_vm5, %v2293_v14 }
 0x673   : > { %v2566_v32 = vpop.permute.xlu1 %2565 }
 0x674   : > { %5641 = vmatprep.subr.mxu1 %v2566_v32 }
 0x675   : > { %5630 = vmatmul.mubr.msk.f32.gmra.mxu0 %vm1880_vm5, %v2295_v20  ;;  %5642 = vmatpush3.msra.mxu1 %v2566_v32  ;;  %v2560_v33 = vpop.permute.xlu0 %2559 }
 0x676   : > { %5632 = vmatprep.mubr.msk.f32.mxu0 %vm1880_vm5, %v2297_v23  ;;  %5643 = vmatprep.subr.mxu1 %v2564_v31 }
 0x677   : > { %v2562_v34 = vpop.permute.xlu1 %2561  ;;  %5644 = vmatpush3.msra.mxu1 %v2564_v31 }
 0x678   : > { %5645 = vmatprep.subr.mxu1 %v2562_v34 }
 0x679   : > { %5633 = vmatmul.mubr.msk.f32.gmra.mxu0 %vm1880_vm5, %v2299_v22  ;;  %5646 = vmatpush3.msra.mxu1 %v2562_v34  ;;  %v6873_v38 = vpop.permute.xlu0 %2781 }
 0x67a   : > { %5647 = vmatprep.subr.mxu1 %v2560_v33 }
 0x67b   : > { %v2558_v37 = vpop.permute.xlu1 %2557  ;;  %5648 = vmatpush3.msra.mxu1 %v2560_v33 }
 0x67c   : > { %5649 = vmatprep.subr.mxu1 %v2558_v37 }
 0x67d   : > { %5650 = vmatpush3.msra.mxu1 %v2558_v37 }
 0x67e   : > { %5663 = vmatprep.subr.msk.mxu1 %vm1880_vm5, %v6873_v38 }
 0x67f   : > { %v6905_v30 = vpop.permute.xlu1 %2779 }
 0x683   : > { %v6907_v31 = vpop.permute.xlu1 %2777 }
 0x6ec   : > { %v5597_v41 = vpop.f32.mrf.mxu0 }
 0x6ed   : > { %2277 = vst.msk [vmem:[#allocation3 + $0x8] sm:$0xff] %vm1880_vm5, %v5597_v41 }
 0x6ee   : > { %v2237_v27 = vpop.f32.mrf.mxu0 }
 0x6ef   : > { %2276 = vst.msk [vmem:[#allocation3] sm:$0xff] %vm1880_vm5, %v2237_v27 }
 0x721   : > { %v5600_v43 = vpop.f32.mrf.mxu0 }
 0x722   : > { %2279 = vst.msk [vmem:[#allocation3 + $0x18] sm:$0xff] %vm1880_vm5, %v5600_v43 }
 0x723   : > { %v2247_v44 = vpop.f32.mrf.mxu0 }
 0x724   : > { %2278 = vst.msk [vmem:[#allocation3 + $0x10] sm:$0xff] %vm1880_vm5, %v2247_v44 }
 0x725   : > { %v5603_v47 = vpop.f32.mrf.mxu0 }
 0x726   : > { %2281 = vst.msk [vmem:[#allocation3 + $0x28] sm:$0xff] %vm1880_vm5, %v5603_v47 }
 0x727   : > { %v2257_v35 = vpop.f32.mrf.mxu0 }
 0x728   : > { %2280 = vst.msk [vmem:[#allocation3 + $0x20] sm:$0xff] %vm1880_vm5, %v2257_v35 }
 0x729   : > { %v5606_v28 = vpop.f32.mrf.mxu0 }
 0x72a   : > { %2283 = vst.msk [vmem:[#allocation3 + $0x38] sm:$0xff] %vm1880_vm5, %v5606_v28 }
 0x72b   : > { %v2267_v50 = vpop.f32.mrf.mxu0 }
 0x72c   : > { %2282 = vst.msk [vmem:[#allocation3 + $0x30] sm:$0xff] %vm1880_vm5, %v2267_v50 }
 0x72d   : > { %v5625_v52 = vpop.f32.mrf.mxu0 }
 0x72e   : > { %v2454_v53 = vmul.f32 0.5, %v5625_v52 }
 0x72f   : > { %v2414_v42 = vpop.f32.mrf.mxu0 }
 0x730   : > { %v2453_v49 = vmul.f32 0.5, %v2414_v42  ;;  %v2462_v48 = vadd.f32 %v2454_v53, %v6707_v58 }
 0x731   : > { %v5628_v36 = vpop.f32.mrf.mxu0 }
 0x732   : > { %v2456_v54 = vmul.f32 0.5, %v5628_v36  ;;  %v2472_v45 = vsel %vm2034_vm1, %v2462_v48, -inf  ;;  %v2461_v57 = vadd.f32 %v2453_v49, %v6710_v46 }
 0x733   : > { %2473 = vmax.xlane.f32.xlu0 %v2472_v45  ;;  %v2424_v59 = vpop.f32.mrf.mxu0 }
 0x734   : > { %v2455_v60 = vmul.f32 0.5, %v2424_v59  ;;  %v2469_v55 = vsel %vm2034_vm1, %v2461_v57, -inf  ;;  %v2464_v61 = vadd.f32 %v2456_v54, %v6721_v6 }
 0x735   : > { %2470 = vmax.xlane.f32.xlu1 %v2469_v55  ;;  %v5631_v62 = vpop.f32.mrf.mxu0 }
 0x736   : > { %v2458_v63 = vmul.f32 0.5, %v5631_v62  ;;  %v2478_v0 = vsel %vm2034_vm1, %v2464_v61, -inf  ;;  %v2463_v1 = vadd.f32 %v2455_v60, %v6732_v18 }
 0x737   : > { %2479 = vmax.xlane.f32.xlu0 %v2478_v0  ;;  %v2434_v2 = vpop.f32.mrf.mxu0 }
 0x738   : > { %v2457_v3 = vmul.f32 0.5, %v2434_v2  ;;  %v2475_v14 = vsel %vm2034_vm1, %v2463_v1, -inf  ;;  %v2466_v16 = vadd.f32 %v2458_v63, %v6740_v25 }
 0x739   : > { %v5634_v4 = vpop.f32.mrf.mxu0 }
 0x73a   : > { %v2460_v12 = vmul.f32 0.5, %v5634_v4  ;;  %v2465_v15 = vadd.f32 %v2457_v3, %v6744_v26  ;;  %v2484_v23 = vsel %vm2034_vm1, %v2466_v16, -inf }
 0x73b   : > { %2476 = vmax.xlane.f32.xlu0 %v2475_v14  ;;  %v2444_v19 = vpop.f32.mrf.mxu0 }
 0x73c   : > { %v2459_v20 = vmul.f32 0.5, %v2444_v19  ;;  %v2481_v21 = vsel %vm2034_vm1, %v2465_v15, -inf  ;;  %v2468_v22 = vadd.f32 %v2460_v12, %v6750_v39 }
 0x73d   : > { %2482 = vmax.xlane.f32.xlu1 %v2481_v21 }
 0x73e   : > { %v2467_v17 = vadd.f32 %v2459_v20, %v6752_v40  ;;  %v2490_v29 = vsel %vm2034_vm1, %v2468_v22, -inf }
 0x73f   : > { %2485 = vmax.xlane.f32.xlu0 %v2484_v23 }
 0x740   : > { %v2487_v24 = vsel %vm2034_vm1, %v2467_v17, -inf }
 0x741   : > { %2488 = vmax.xlane.f32.xlu1 %v2487_v24 }
 0x743   : > { %2491 = vmax.xlane.f32.xlu0 %v2490_v29 }
 0x752   : > { %2773 = vrot.lane.b32.xlu1 %v6597_v8, %s6151_s10 }
 0x759   : > { %2775 = vrot.lane.b32.xlu0 %v6606_v11, %s6151_s10 }
 0x7bc   : > { %v2474_v32 = vpop.xlane.xlu0 %2473 }
 0x7bd   : > { %v2494_v33 = vsub.f32 %v2462_v48, %v2474_v32 }
 0x7be   : > { %v2471_v34 = vpop.xlane.xlu1 %2470 }
 0x7bf   : > { %v2503_v37 = vmul.f32 1.442695, %v2494_v33  ;;  %v2493_v41 = vsub.f32 %v2461_v57, %v2471_v34 }
 0x7c0   : > { %v2480_v28 = vpop.xlane.xlu0 %2479 }
 0x7c1   : > { %5962 = vpow2.f32 %v2503_v37  ;;  %v2501_v27 = vmul.f32 1.442695, %v2493_v41  ;;  %v2496_v53 = vsub.f32 %v2464_v61, %v2480_v28 }
 0x7c3   : > { %5964 = vpow2.f32 %v2501_v27  ;;  %v2507_v48 = vmul.f32 1.442695, %v2496_v53 }
 0x7c4   : > { %v2477_v50 = vpop.xlane.xlu0 %2476 }
 0x7c5   : > { %v2495_v49 = vsub.f32 %v2463_v1, %v2477_v50  ;;  %5966 = vpow2.f32 %v2507_v48 }
 0x7c6   : > { %v2483_v42 = vpop.xlane.xlu1 %2482 }
 0x7c7   : > { %v2505_v45 = vmul.f32 1.442695, %v2495_v49  ;;  %v2497_v57 = vsub.f32 %v2465_v15, %v2483_v42 }
 0x7c8   : > { %v2486_v52 = vpop.xlane.xlu0 %2485 }
 0x7c9   : > { %v2498_v36 = vsub.f32 %v2466_v16, %v2486_v52  ;;  %5968 = vpow2.f32 %v2505_v45  ;;  %v2509_v62 = vmul.f32 1.442695, %v2497_v57 }
 0x7ca   : > { %v2489_v59 = vpop.xlane.xlu1 %2488 }
 0x7cb   : > { %v2511_v60 = vmul.f32 1.442695, %v2498_v36  ;;  %v2499_v63 = vsub.f32 %v2467_v17, %v2489_v59 }
 0x7cc   : > { %v2492_v54 = vpop.xlane.xlu0 %2491 }
 0x7cd   : > { %v2500_v55 = vsub.f32 %v2468_v22, %v2492_v54  ;;  %5970 = vpow2.f32 %v2511_v60  ;;  %v2513_v2 = vmul.f32 1.442695, %v2499_v63 }
 0x7ce   : > { %v6909_v43 = vpop.eup %5962  ;;  %5972 = vpow2.f32 %v2509_v62  ;;  %v2774_v22 = vpop.permute.xlu1 %2773 }
 0x7cf   : > { %v2520_v44 = vsel %vm2034_vm1, %v6909_v43, 0.0  ;;  %v2515_v0 = vmul.f32 1.442695, %v2500_v55 }
 0x7d0   : > { %v6913_v47 = vpop.eup %5964  ;;  %2521 = vadd.xlane.f32.xlu0 %v2520_v44  ;;  %v2776_v17 = vpop.permute.xlu0 %2775 }
 0x7d1   : > { %v2517_v35 = vsel %vm2034_vm1, %v6913_v47, 0.0  ;;  %5974 = vpow2.f32 %v2515_v0 }
 0x7d2   : > { %2518 = vadd.xlane.f32.xlu1 %v2517_v35  ;;  %5976 = vpow2.f32 %v2513_v2  ;;  %v6921_v61 = vpop.eup %5966 }
 0x7d3   : > { %v2526_v3 = vsel %vm2034_vm1, %v6921_v61, 0.0 }
 0x7d6   : > { %v6923_v1 = vpop.eup %5968 }
 0x7d7   : > { %v2523_v12 = vsel %vm2034_vm1, %v6923_v1, 0.0 }
 0x7da   : > { %v6927_v4 = vpop.eup %5970 }
 0x7db   : > { %v6931_v14 = vpop.eup %5972  ;;  %v2532_v15 = vsel %vm2034_vm1, %v6927_v4, 0.0 }
 0x7dc   : > { %v2529_v19 = vsel %vm2034_vm1, %v6931_v14, 0.0 }
 0x7de   : > { %v6935_v16 = vpop.eup %5974 }
 0x7df   : > { %v6939_v20 = vpop.eup %5976  ;;  %v2538_v21 = vsel %vm2034_vm1, %v6935_v16, 0.0 }
 0x7e0   : > { %v2535_v23 = vsel %vm2034_vm1, %v6939_v20, 0.0 }
 0x7e3   : > { %2769 = vrot.lane.b32.xlu1 %v6603_v10, %s6151_s10 }
 0x7e6   : > { %2771 = vrot.lane.b32.xlu0 %v6613_v13, %s6151_s10 }
 0x805   : > { %2527 = vadd.xlane.f32.xlu0 %v2526_v3 }
 0x807   : > { %2524 = vadd.xlane.f32.xlu1 %v2523_v12 }
 0x809   : > { %2533 = vadd.xlane.f32.xlu0 %v2532_v15 }
 0x80b   : > { %2530 = vadd.xlane.f32.xlu1 %v2529_v19 }
 0x80d   : > { %2539 = vadd.xlane.f32.xlu0 %v2538_v21 }
 0x80f   : > { %2536 = vadd.xlane.f32.xlu1 %v2535_v23 }
 0x820   : > { %2751 = vrot.lane.b32.xlu1 %v6588_v56, %s6152_s29 }
 0x823   : > { %2767 = vrot.lane.b32.xlu0 %v6588_v56, %s6151_s10  ;;  %s7866_s10 = scalar_lea.vmem %s7809_s15, %s6315_s8 }
 0x824   : > { %2755 = vrot.lane.b32.xlu1 %v6613_v13, %s6152_s29 }
 0x827   : > { %2753 = vrot.lane.b32.xlu0 %v6603_v10, %s6152_s29 }
 0x828   : > { %2759 = vrot.lane.b32.xlu1 %v6606_v11, %s6152_s29 }
 0x82b   : > { %2757 = vrot.lane.b32.xlu0 %v6597_v8, %s6152_s29 }
 0x82c   : > { %2763 = vrot.lane.b32.xlu1 %v6594_v7, %s6152_s29 }
 0x82f   : > { %2761 = vrot.lane.b32.xlu0 %v6600_v9, %s6152_s29 }
 0x830   : > { %3038 = vrot.lane.b32.xlu1 %v6592_v5, %s6153_s11 }
 0x833   : > { %2765 = vrot.lane.b32.xlu0 %v6592_v5, %s6152_s29  ;;  %s6161_s29 = smov (!%p5289_p5), 126  }
 0x834   : > { %3034 = vrot.lane.b32.xlu1 %v6600_v9, %s6153_s11 }
 0x837   : > { %3036 = vrot.lane.b32.xlu0 %v6594_v7, %s6153_s11 }
 0x838   : > { %3032 = vrot.lane.b32.xlu1 %v6606_v11, %s6153_s11 }
 0x83b   : > { %3030 = vrot.lane.b32.xlu0 %v6597_v8, %s6153_s11 }
 0x83c   : > { %3028 = vrot.lane.b32.xlu1 %v6613_v13, %s6153_s11 }
 0x83f   : > { %3026 = vrot.lane.b32.xlu0 %v6603_v10, %s6153_s11 }
 0x840   : > { %3024 = vrot.lane.b32.xlu1 %v6588_v56, %s6153_s11 }
 0x843   : > { %3248 = vrot.lane.b32.xlu0 %v6592_v5, %s6154_s5 }
 0x844   : > { %3246 = vrot.lane.b32.xlu1 %v6594_v7, %s6154_s5 }
 0x848   : > { %3244 = vrot.lane.b32.xlu1 %v6600_v9, %s6154_s5 }
 0x859   : > { %v2522_v24 = vpop.xlane.xlu0 %2521 }
 0x85a   : > { %5978 = vrcp.f32 %v2522_v24 }
 0x85b   : > { %v2519_v29 = vpop.xlane.xlu1 %2518 }
 0x85c   : > { %5980 = vrcp.f32 %v2519_v29 }
 0x85d   : > { %v2772_v41 = vpop.permute.xlu0 %2771 }
 0x867   : > { %v5979_v32 = vpop.eup %5978 }
 0x868   : > { %v2544_v37 = vmul.f32 %v5979_v32, %v6909_v43 }
 0x869   : > { %v5981_v33 = vpop.eup %5980 }
 0x86a   : > { %v2542_v34 = vmul.f32 %v5981_v33, %v6913_v47 }
 0x86c   : > { %5651 = vmatprep.mubr.msk.f32.mxu1 %vm2034_vm1, %v2542_v34 }
 0x86d   : > { %5652 = vmatmul.mubr.msk.f32.vlgmr.msra.gmra.mxu1 %vm2034_vm1, %v2544_v37 }
 0x86e   : > { %5664 = vmatpush3.xpose.msk.msra.mxu1 %vm1880_vm5, %v6873_v38  ;;  %v2770_v38 = vpop.permute.xlu1 %2769 }
 0x86f   : > { %5665 = vmatprep.subr.msk.mxu1 %vm1880_vm5, %v6905_v30 }
 0x872   : > { %5666 = vmatpush3.xpose.msk.msra.mxu1 %vm1880_vm5, %v6905_v30 }
 0x873   : > { %5667 = vmatprep.subr.msk.mxu1 %vm1880_vm5, %v6907_v31 }
 0x876   : > { %5668 = vmatpush3.xpose.msk.msra.mxu1 %vm1880_vm5, %v6907_v31 }
 0x877   : > { %5669 = vmatprep.subr.msk.mxu1 %vm1880_vm5, %v2776_v17 }
 0x87a   : > { %5670 = vmatpush3.xpose.msk.msra.mxu1 %vm1880_vm5, %v2776_v17 }
 0x87b   : > { %5671 = vmatprep.subr.msk.mxu1 %vm1880_vm5, %v2774_v22 }
 0x87e   : > { %5672 = vmatpush3.xpose.msk.msra.mxu1 %vm1880_vm5, %v2774_v22 }
 0x87f   : > { %5673 = vmatprep.subr.msk.mxu1 %vm1880_vm5, %v2772_v41 }
 0x882   : > { %5674 = vmatpush3.xpose.msk.msra.mxu1 %vm1880_vm5, %v2772_v41 }
 0x883   : > { %5675 = vmatprep.subr.msk.mxu1 %vm1880_vm5, %v2770_v38 }
 0x886   : > { %5676 = vmatpush3.xpose.msk.msra.mxu1 %vm1880_vm5, %v2770_v38 }
 0x88e   : > { %v2528_v30 = vpop.xlane.xlu0 %2527 }
 0x88f   : > { %5982 = vrcp.f32 %v2528_v30 }
 0x890   : > { %v2525_v31 = vpop.xlane.xlu1 %2524 }
 0x891   : > { %5984 = vrcp.f32 %v2525_v31 }
 0x892   : > { %v2534_v27 = vpop.xlane.xlu0 %2533 }
 0x893   : > { %5986 = vrcp.f32 %v2534_v27 }
 0x894   : > { %v2531_v43 = vpop.xlane.xlu1 %2530 }
 0x895   : > { %5988 = vrcp.f32 %v2531_v43 }
 0x896   : > { %v2540_v44 = vpop.xlane.xlu0 %2539 }
 0x897   : > { %5990 = vrcp.f32 %v2540_v44 }
 0x898   : > { %v2537_v47 = vpop.xlane.xlu1 %2536 }
 0x899   : > { %5992 = vrcp.f32 %v2537_v47 }
 0x89a   : > { %v2768_v35 = vpop.permute.xlu0 %2767 }
 0x89b   : > { %5677 = vmatprep.subr.msk.mxu1 %vm1880_vm5, %v2768_v35 }
 0x89c   : > { %v2752_v28 = vpop.permute.xlu1 %2751  ;;  %5678 = vmatpush3.xpose.msk.msra.mxu1 %vm1880_vm5, %v2768_v35  ;;  %v5983_v50 = vpop.eup %5982 }
 0x89d   : > { %v2548_v48 = vmul.f32 %v5983_v50, %v6921_v61 }
 0x89e   : > { %v5985_v52 = vpop.eup %5984  ;;  %v2754_v53 = vpop.permute.xlu0 %2753 }
 0x89f   : > { %v2546_v42 = vmul.f32 %v5985_v52, %v6923_v1 }
 0x8a0   : > { %v2756_v49 = vpop.permute.xlu1 %2755  ;;  %v5987_v36 = vpop.eup %5986 }
 0x8a1   : > { %5654 = vmatprep.mubr.msk.f32.mxu1 %vm2034_vm1, %v2546_v42  ;;  %v2552_v60 = vmul.f32 %v5987_v36, %v6927_v4 }
 0x8a2   : > { %v5989_v54 = vpop.eup %5988  ;;  %5655 = vmatmul.mubr.msk.f32.gmra.mxu1 %vm2034_vm1, %v2548_v48  ;;  %v2758_v45 = vpop.permute.xlu0 %2757 }
 0x8a3   : > { %v2550_v57 = vmul.f32 %v5989_v54, %v6931_v14 }
 0x8a4   : > { %v2760_v59 = vpop.permute.xlu1 %2759  ;;  %v5991_v55 = vpop.eup %5990 }
 0x8a5   : > { %5657 = vmatprep.mubr.msk.f32.mxu1 %vm2034_vm1, %v2550_v57  ;;  %v2556_v61 = vmul.f32 %v5991_v55, %v6935_v16 }
 0x8a6   : > { %v5993_v62 = vpop.eup %5992  ;;  %5658 = vmatmul.mubr.msk.f32.gmra.mxu1 %vm2034_vm1, %v2552_v60  ;;  %v2762_v63 = vpop.permute.xlu0 %2761 }
 0x8a7   : > { %v2554_v0 = vmul.f32 %v5993_v62, %v6939_v20 }
 0x8a8   : > { %v2764_v2 = vpop.permute.xlu1 %2763 }
 0x8a9   : > { %5660 = vmatprep.mubr.msk.f32.mxu1 %vm2034_vm1, %v2554_v0 }
 0x8aa   : > { %5661 = vmatmul.mubr.msk.f32.gmra.mxu1 %vm2034_vm1, %v2556_v61  ;;  %v2766_v1 = vpop.permute.xlu0 %2765 }
 0x8ab   : > { %5679 = vmatprep.mubr.msk.f32.mxu1 %vm1880_vm5, %v2752_v28 }
 0x8ac   : > { %v3039_v3 = vpop.permute.xlu1 %3038 }
 0x8ad   : > { %5691 = vmatprep.subr.mxu0 %v3039_v3 }
 0x8ae   : > { %5680 = vmatmul.mubr.msk.f32.vlgmr.msra.gmra.mxu1 %vm1880_vm5, %v2754_v53  ;;  %5692 = vmatpush3.msra.mxu0 %v3039_v3  ;;  %v3037_v4 = vpop.permute.xlu0 %3036 }
 0x8af   : > { %5682 = vmatprep.mubr.msk.f32.mxu1 %vm1880_vm5, %v2756_v49  ;;  %5693 = vmatprep.subr.mxu0 %v3037_v4 }
 0x8b0   : > { %v3035_v12 = vpop.permute.xlu1 %3034  ;;  %5694 = vmatpush3.msra.mxu0 %v3037_v4 }
 0x8b1   : > { %5695 = vmatprep.subr.mxu0 %v3035_v12 }
 0x8b2   : > { %5683 = vmatmul.mubr.msk.f32.gmra.mxu1 %vm1880_vm5, %v2758_v45  ;;  %5696 = vmatpush3.msra.mxu0 %v3035_v12  ;;  %v3031_v14 = vpop.permute.xlu0 %3030 }
 0x8b3   : > { %5685 = vmatprep.mubr.msk.f32.mxu1 %vm1880_vm5, %v2760_v59 }
 0x8b4   : > { %v3033_v15 = vpop.permute.xlu1 %3032 }
 0x8b5   : > { %5697 = vmatprep.subr.mxu0 %v3033_v15 }
 0x8b6   : > { %5686 = vmatmul.mubr.msk.f32.gmra.mxu1 %vm1880_vm5, %v2762_v63  ;;  %5698 = vmatpush3.msra.mxu0 %v3033_v15  ;;  %v3027_v16 = vpop.permute.xlu0 %3026 }
 0x8b7   : > { %5688 = vmatprep.mubr.msk.f32.mxu1 %vm1880_vm5, %v2764_v2  ;;  %5699 = vmatprep.subr.mxu0 %v3031_v14 }
 0x8b8   : > { %v3029_v19 = vpop.permute.xlu1 %3028  ;;  %5700 = vmatpush3.msra.mxu0 %v3031_v14 }
 0x8b9   : > { %5701 = vmatprep.subr.mxu0 %v3029_v19 }
 0x8ba   : > { %5689 = vmatmul.mubr.msk.f32.gmra.mxu1 %vm1880_vm5, %v2766_v1  ;;  %5702 = vmatpush3.msra.mxu0 %v3029_v19  ;;  %v7013_v21 = vpop.permute.xlu0 %3248 }
 0x8bb   : > { %5703 = vmatprep.subr.mxu0 %v3027_v16 }
 0x8bc   : > { %v3025_v20 = vpop.permute.xlu1 %3024  ;;  %5704 = vmatpush3.msra.mxu0 %v3027_v16 }
 0x8bd   : > { %5705 = vmatprep.subr.mxu0 %v3025_v20 }
 0x8be   : > { %5706 = vmatpush3.msra.mxu0 %v3025_v20 }
 0x8bf   : > { %5719 = vmatprep.subr.msk.mxu0 %vm1880_vm5, %v7013_v21 }
 0x8c0   : > { %v7058_v12 = vpop.permute.xlu1 %3246 }
 0x8c4   : > { %v7060_v14 = vpop.permute.xlu1 %3244 }
 0x92d   : > { %v7017_v23 = vpop.f32.mrf.mxu1 }
 0x92f   : > { %v7019_v17 = vpop.f32.mrf.mxu1 }
 0x962   : > { %v7021_v22 = vpop.f32.mrf.mxu1 }
 0x964   : > { %v7023_v24 = vpop.f32.mrf.mxu1 }
 0x966   : > { %v7025_v29 = vpop.f32.mrf.mxu1 }
 0x968   : > { %v7027_v32 = vpop.f32.mrf.mxu1 }
 0x96a   : > { %v7029_v33 = vpop.f32.mrf.mxu1 }
 0x96c   : > { %v7031_v34 = vpop.f32.mrf.mxu1 }
 0x96e   : > { %v5681_v37 = vpop.f32.mrf.mxu1 }
 0x96f   : > { %v2921_v41 = vmul.f32 0.5, %v5681_v37 }
 0x970   : > { %v2881_v38 = vpop.f32.mrf.mxu1 }
 0x971   : > { %v2929_v30 = vadd.f32 %v2921_v41, %v6707_v58  ;;  %v2920_v31 = vmul.f32 0.5, %v2881_v38 }
 0x972   : > { %v5684_v27 = vpop.f32.mrf.mxu1 }
 0x973   : > { %v2928_v43 = vadd.f32 %v2920_v31, %v6710_v46  ;;  %v2923_v44 = vmul.f32 0.5, %v5684_v27  ;;  %v2939_v47 = vsel %vm2034_vm1, %v2929_v30, -inf }
 0x974   : > { %2940 = vmax.xlane.f32.xlu0 %v2939_v47  ;;  %v2891_v35 = vpop.f32.mrf.mxu1 }
 0x975   : > { %v7037_v28 = vadd.f32 %v2923_v44, %v6721_v6  ;;  %v2922_v50 = vmul.f32 0.5, %v2891_v35  ;;  %v2936_v52 = vsel %vm2034_vm1, %v2928_v43, -inf }
 0x976   : > { %2937 = vmax.xlane.f32.xlu1 %v2936_v52  ;;  %v5687_v53 = vpop.f32.mrf.mxu1 }
 0x977   : > { %v2930_v42 = vadd.f32 %v2922_v50, %v6732_v18  ;;  %v2925_v49 = vmul.f32 0.5, %v5687_v53  ;;  %v2945_v48 = vsel %vm2034_vm1, %v7037_v28, -inf }
 0x978   : > { %2946 = vmax.xlane.f32.xlu0 %v2945_v48  ;;  %v2901_v36 = vpop.f32.mrf.mxu1 }
 0x979   : > { %v2924_v54 = vmul.f32 0.5, %v2901_v36  ;;  %v2933_v57 = vadd.f32 %v2925_v49, %v6740_v25  ;;  %v2942_v55 = vsel %vm2034_vm1, %v2930_v42, -inf }
 0x97a   : > { %v5690_v45 = vpop.f32.mrf.mxu1 }
 0x97b   : > { %v2932_v59 = vadd.f32 %v2924_v54, %v6744_v26  ;;  %v2927_v60 = vmul.f32 0.5, %v5690_v45  ;;  %v2951_v0 = vsel %vm2034_vm1, %v2933_v57, -inf }
 0x97c   : > { %2943 = vmax.xlane.f32.xlu0 %v2942_v55  ;;  %v2911_v61 = vpop.f32.mrf.mxu1 }
 0x97d   : > { %v2948_v62 = vsel %vm2034_vm1, %v2932_v59, -inf  ;;  %v2935_v63 = vadd.f32 %v2927_v60, %v6750_v39  ;;  %v2926_v1 = vmul.f32 0.5, %v2911_v61 }
 0x97e   : > { %2949 = vmax.xlane.f32.xlu1 %v2948_v62 }
 0x97f   : > { %v2957_v2 = vsel %vm2034_vm1, %v2935_v63, -inf  ;;  %v2934_v3 = vadd.f32 %v2926_v1, %v6752_v40 }
 0x980   : > { %2952 = vmax.xlane.f32.xlu0 %v2951_v0 }
 0x981   : > { %v2954_v4 = vsel %vm2034_vm1, %v2934_v3, -inf }
 0x984   : > { %2958 = vmax.xlane.f32.xlu0 %v2957_v2 }
 0x98f   : > { %3240 = vrot.lane.b32.xlu1 %v6597_v8, %s6154_s5 }
 0x99a   : > { %3242 = vrot.lane.b32.xlu0 %v6606_v11, %s6154_s5 }
 0x9b3   : > { %2955 = vmax.xlane.f32.xlu1 %v2954_v4 }
 0x9c4   : > { %3236 = vrot.lane.b32.xlu1 %v6603_v10, %s6154_s5 }
 0x9fd   : > { %v2941_v15 = vpop.xlane.xlu0 %2940 }
 0x9fe   : > { %v2961_v16 = vsub.f32 %v2929_v30, %v2941_v15 }
 0x9ff   : > { %v2938_v19 = vpop.xlane.xlu1 %2937 }
 0xa00   : > { %v2970_v20 = vmul.f32 1.442695, %v2961_v16  ;;  %v2960_v37 = vsub.f32 %v2928_v43, %v2938_v19 }
 0xa01   : > { %v2947_v41 = vpop.xlane.xlu0 %2946 }
 0xa02   : > { %5994 = vpow2.f32 %v2970_v20  ;;  %v2968_v38 = vmul.f32 1.442695, %v2960_v37  ;;  %v2963_v45 = vsub.f32 %v7037_v28, %v2947_v41 }
 0xa04   : > { %5996 = vpow2.f32 %v2968_v38 }
 0xa05   : > { %v2944_v31 = vpop.xlane.xlu0 %2943 }
 0xa06   : > { %v2962_v27 = vsub.f32 %v2930_v42, %v2944_v31 }
 0xa07   : > { %v2950_v44 = vpop.xlane.xlu1 %2949 }
 0xa08   : > { %v2972_v47 = vmul.f32 1.442695, %v2962_v27  ;;  %v2964_v35 = vsub.f32 %v2932_v59, %v2950_v44  ;;  %v2974_v59 = vmul.f32 1.442695, %v2963_v45 }
 0xa09   : > { %v2953_v54 = vpop.xlane.xlu0 %2952 }
 0xa0a   : > { %5998 = vpow2.f32 %v2972_v47  ;;  %v2976_v50 = vmul.f32 1.442695, %v2964_v35  ;;  %v2965_v60 = vsub.f32 %v2933_v57, %v2953_v54 }
 0xa0b   : > { %v3241_v2 = vpop.permute.xlu1 %3240 }
 0xa0c   : > { %6000 = vpow2.f32 %v2976_v50  ;;  %v2978_v62 = vmul.f32 1.442695, %v2965_v60 }
 0xa0d   : > { %v2959_v55 = vpop.xlane.xlu0 %2958  ;;  %6002 = vpow2.f32 %v2974_v59 }
 0xa0e   : > { %v2967_v0 = vsub.f32 %v2935_v63, %v2959_v55  ;;  %6004 = vpow2.f32 %v2978_v62 }
 0xa0f   : > { %v5995_v52 = vpop.eup %5994 }
 0xa10   : > { %v2987_v53 = vsel %vm2034_vm1, %v5995_v52, 0.0  ;;  %v2982_v61 = vmul.f32 1.442695, %v2967_v0 }
 0xa11   : > { %v5997_v49 = vpop.eup %5996  ;;  %2988 = vadd.xlane.f32.xlu0 %v2987_v53  ;;  %v3243_v41 = vpop.permute.xlu0 %3242 }
 0xa12   : > { %v2984_v30 = vsel %vm2034_vm1, %v5997_v49, 0.0  ;;  %6006 = vpow2.f32 %v2982_v61 }
 0xa13   : > { %2985 = vadd.xlane.f32.xlu1 %v2984_v30 }
 0xa17   : > { %v5999_v43 = vpop.eup %5998 }
 0xa18   : > { %v2990_v48 = vsel %vm2034_vm1, %v5999_v43, 0.0 }
 0xa19   : > { %v7065_v36 = vpop.eup %6000  ;;  %2991 = vadd.xlane.f32.xlu1 %v2990_v48 }
 0xa1a   : > { %v2996_v42 = vsel %vm2034_vm1, %v7065_v36, 0.0  ;;  %v7074_v16 = vpop.eup %6002 }
 0xa1b   : > { %v2993_v28 = vsel %vm2034_vm1, %v7074_v16, 0.0  ;;  %v7078_v19 = vpop.eup %6004 }
 0xa1c   : > { %v2999_v57 = vsel %vm2034_vm1, %v7078_v19, 0.0 }
 0xa1d   : > { %2997 = vadd.xlane.f32.xlu1 %v2996_v42 }
 0xa1f   : > { %v7082_v63 = vpop.eup %6006 }
 0xa20   : > { %v3005_v20 = vsel %vm2034_vm1, %v7082_v63, 0.0 }
 0xa27   : > { %3238 = vrot.lane.b32.xlu0 %v6613_v13, %s6154_s5 }
 0xa2e   : > { %3218 = vrot.lane.b32.xlu1 %v6588_v56, %s6155_s27 }
 0xa3c   : > { %v2956_v1 = vpop.xlane.xlu1 %2955 }
 0xa3d   : > { %v2966_v4 = vsub.f32 %v2934_v3, %v2956_v1 }
 0xa3f   : > { %v2980_v15 = vmul.f32 1.442695, %v2966_v4 }
 0xa40   : > { %v3237_v38 = vpop.permute.xlu1 %3236 }
 0xa41   : > { %6008 = vpow2.f32 %v2980_v15 }
 0xa46   : > { %2994 = vadd.xlane.f32.xlu0 %v2993_v28 }
 0xa4a   : > { %3000 = vadd.xlane.f32.xlu0 %v2999_v57 }
 0xa4e   : > { %v7086_v3 = vpop.eup %6008  ;;  %3006 = vadd.xlane.f32.xlu0 %v3005_v20 }
 0xa4f   : > { %v3002_v37 = vsel %vm2034_vm1, %v7086_v3, 0.0 }
 0xa52   : > { %3003 = vadd.xlane.f32.xlu1 %v3002_v37 }
 0xa63   : > { %3222 = vrot.lane.b32.xlu1 %v6613_v13, %s6155_s27 }
 0xa64   : > { %3234 = vrot.lane.b32.xlu0 %v6588_v56, %s6154_s5  ;;  %s7872_s5 = sld [smem:[#allocation22_spill]] (!%p5289_p5) }
 0xa67   : > { %3226 = vrot.lane.b32.xlu1 %v6606_v11, %s6155_s27 }
 0xa68   : > { %3220 = vrot.lane.b32.xlu0 %v6603_v10, %s6155_s27 }
 0xa6b   : > { %3230 = vrot.lane.b32.xlu1 %v6594_v7, %s6155_s27 }
 0xa6c   : > { %3224 = vrot.lane.b32.xlu0 %v6597_v8, %s6155_s27 }
 0xa70   : > { %3228 = vrot.lane.b32.xlu0 %v6600_v9, %s6155_s27 }
 0xa74   : > { %3232 = vrot.lane.b32.xlu0 %v6592_v5, %s6155_s27  ;;  %s7867_s27 = scalar_lea.vmem %s7815_s21, %s6315_s8 }
 0xa9a   : > { %v2989_v31 = vpop.xlane.xlu0 %2988 }
 0xa9b   : > { %6010 = vrcp.f32 %v2989_v31 }
 0xa9c   : > { %v2986_v27 = vpop.xlane.xlu1 %2985 }
 0xa9d   : > { %6012 = vrcp.f32 %v2986_v27 }
 0xaa2   : > { %v2992_v44 = vpop.xlane.xlu1 %2991 }
 0xaa3   : > { %6014 = vrcp.f32 %v2992_v44 }
 0xaa8   : > { %v6011_v47 = vpop.eup %6010 }
 0xaa9   : > { %v3011_v53 = vmul.f32 %v6011_v47, %v5995_v52 }
 0xaaa   : > { %v6013_v35 = vpop.eup %6012 }
 0xaab   : > { %v3009_v50 = vmul.f32 %v6013_v35, %v5997_v49 }
 0xaad   : > { %5707 = vmatprep.mubr.msk.f32.mxu0 %vm2034_vm1, %v3009_v50 }
 0xaae   : > { %5708 = vmatmul.mubr.msk.f32.vlgmr.msra.gmra.mxu0 %vm2034_vm1, %v3011_v53 }
 0xaaf   : > { %5720 = vmatpush3.xpose.msk.msra.mxu0 %vm1880_vm5, %v7013_v21  ;;  %v3239_v21 = vpop.permute.xlu0 %3238 }
 0xab0   : > { %v6015_v30 = vpop.eup %6014  ;;  %5721 = vmatprep.subr.msk.mxu0 %vm1880_vm5, %v7058_v12 }
 0xab1   : > { %v3013_v48 = vmul.f32 %v6015_v30, %v5999_v43 }
 0xab3   : > { %5722 = vmatpush3.xpose.msk.msra.mxu0 %vm1880_vm5, %v7058_v12  ;;  %5710 = vmatprep.mubr.msk.f32.mxu0 %vm2034_vm1, %v3013_v48  ;;  %v2998_v12 = vpop.xlane.xlu1 %2997 }
 0xab4   : > { %5723 = vmatprep.subr.msk.mxu0 %vm1880_vm5, %v7060_v14  ;;  %6016 = vrcp.f32 %v2998_v12 }
 0xab7   : > { %5724 = vmatpush3.xpose.msk.msra.mxu0 %vm1880_vm5, %v7060_v14  ;;  %v3219_v49 = vpop.permute.xlu1 %3218 }
 0xab8   : > { %5725 = vmatprep.subr.msk.mxu0 %vm1880_vm5, %v3243_v41 }
 0xabb   : > { %5726 = vmatpush3.xpose.msk.msra.mxu0 %vm1880_vm5, %v3243_v41 }
 0xabc   : > { %5727 = vmatprep.subr.msk.mxu0 %vm1880_vm5, %v3241_v2 }
 0xabf   : > { %5728 = vmatpush3.xpose.msk.msra.mxu0 %vm1880_vm5, %v3241_v2 }
 0xac0   : > { %5729 = vmatprep.subr.msk.mxu0 %vm1880_vm5, %v3239_v21 }
 0xac1   : > { %v6017_v45 = vpop.eup %6016 }
 0xac2   : > { %v3017_v55 = vmul.f32 %v6017_v45, %v7065_v36 }
 0xac3   : > { %5730 = vmatpush3.xpose.msk.msra.mxu0 %vm1880_vm5, %v3239_v21 }
 0xac4   : > { %5731 = vmatprep.subr.msk.mxu0 %vm1880_vm5, %v3237_v38 }
 0xac7   : > { %5732 = vmatpush3.xpose.msk.msra.mxu0 %vm1880_vm5, %v3237_v38 }
 0xacf   : > { %v2995_v14 = vpop.xlane.xlu0 %2994 }
 0xad0   : > { %6018 = vrcp.f32 %v2995_v14 }
 0xad3   : > { %v3001_v52 = vpop.xlane.xlu0 %3000 }
 0xad4   : > { %6020 = vrcp.f32 %v3001_v52 }
 0xad7   : > { %v3007_v43 = vpop.xlane.xlu0 %3006 }
 0xad8   : > { %6022 = vrcp.f32 %v3007_v43 }
 0xadb   : > { %v3004_v42 = vpop.xlane.xlu1 %3003  ;;  %v3235_v54 = vpop.permute.xlu0 %3234 }
 0xadc   : > { %6024 = vrcp.f32 %v3004_v42  ;;  %5733 = vmatprep.subr.msk.mxu0 %vm1880_vm5, %v3235_v54 }
 0xadd   : > { %v6019_v59 = vpop.eup %6018  ;;  %5734 = vmatpush3.xpose.msk.msra.mxu0 %vm1880_vm5, %v3235_v54 }
 0xade   : > { %v3015_v60 = vmul.f32 %v6019_v59, %v7074_v16 }
 0xadf   : > { %v3221_v1 = vpop.permute.xlu0 %3220  ;;  %v3223_v16 = vpop.permute.xlu1 %3222 }
 0xae0   : > { %5711 = vmatmul.mubr.msk.f32.gmra.mxu0 %vm2034_vm1, %v3015_v60 }
 0xae1   : > { %v6021_v62 = vpop.eup %6020  ;;  %5713 = vmatprep.mubr.msk.f32.mxu0 %vm2034_vm1, %v3017_v55 }
 0xae2   : > { %v3019_v0 = vmul.f32 %v6021_v62, %v7078_v19 }
 0xae3   : > { %v3225_v36 = vpop.permute.xlu0 %3224  ;;  %v3227_v28 = vpop.permute.xlu1 %3226 }
 0xae4   : > { %5714 = vmatmul.mubr.msk.f32.gmra.mxu0 %vm2034_vm1, %v3019_v0 }
 0xae5   : > { %v6023_v2 = vpop.eup %6022 }
 0xae6   : > { %v3023_v15 = vmul.f32 %v6023_v2, %v7082_v63 }
 0xae7   : > { %v3229_v19 = vpop.permute.xlu0 %3228  ;;  %v3231_v57 = vpop.permute.xlu1 %3230 }
 0xae9   : > { %v6025_v61 = vpop.eup %6024 }
 0xaea   : > { %v3021_v4 = vmul.f32 %v6025_v61, %v7086_v3 }
 0xaeb   : > { %v3233_v63 = vpop.permute.xlu0 %3232 }
 0xaec   : > { %5716 = vmatprep.mubr.msk.f32.mxu0 %vm2034_vm1, %v3021_v4 }
 0xaed   : > { %5717 = vmatmul.mubr.msk.f32.gmra.mxu0 %vm2034_vm1, %v3023_v15 }
 0xaee   : > { %5735 = vmatprep.mubr.msk.f32.mxu0 %vm1880_vm5, %v3219_v49 }
 0xaf1   : > { %5736 = vmatmul.mubr.msk.f32.vlgmr.msra.gmra.mxu0 %vm1880_vm5, %v3221_v1 }
 0xaf2   : > { %5738 = vmatprep.mubr.msk.f32.mxu0 %vm1880_vm5, %v3223_v16 }
 0xaf5   : > { %5739 = vmatmul.mubr.msk.f32.gmra.mxu0 %vm1880_vm5, %v3225_v36 }
 0xaf6   : > { %5741 = vmatprep.mubr.msk.f32.mxu0 %vm1880_vm5, %v3227_v28 }
 0xaf9   : > { %5742 = vmatmul.mubr.msk.f32.gmra.mxu0 %vm1880_vm5, %v3229_v19 }
 0xafa   : > { %5744 = vmatprep.mubr.msk.f32.mxu0 %vm1880_vm5, %v3231_v57 }
 0xafd   : > { %5745 = vmatmul.mubr.msk.f32.gmra.mxu0 %vm1880_vm5, %v3233_v63  ;;  %vm2742_vm5 = vcmask 64544  }
 0xb6e   : > { %v7147_v20 = vpop.f32.mrf.mxu0 }
 0xb70   : > { %v7149_v3 = vpop.f32.mrf.mxu0 }
 0xba0   : > { %v7151_v37 = vpop.f32.mrf.mxu0 }
 0xba2   : > { %v7153_v41 = vpop.f32.mrf.mxu0 }
 0xba4   : > { %v7155_v38 = vpop.f32.mrf.mxu0 }
 0xba6   : > { %v7157_v31 = vpop.f32.mrf.mxu0 }
 0xbad   : > { %v7159_v27 = vpop.f32.mrf.mxu0 }
 0xbaf   : > { %v7161_v44 = vpop.f32.mrf.mxu0 }
 0xbb1   : > { %v5737_v47 = vpop.f32.mrf.mxu0 }
 0xbb2   : > { %v3388_v35 = vmul.f32 0.5, %v5737_v47 }
 0xbb3   : > { %v3348_v50 = vpop.f32.mrf.mxu0 }
 0xbb4   : > { %v3396_v53 = vadd.f32 %v3388_v35, %v6707_v58  ;;  %v3387_v30 = vmul.f32 0.5, %v3348_v50 }
 0xbb5   : > { %v5740_v48 = vpop.f32.mrf.mxu0 }
 0xbb6   : > { %v3395_v21 = vadd.f32 %v3387_v30, %v6710_v46  ;;  %v3406_v12 = vsel %vm2034_vm1, %v3396_v53, -inf  ;;  %v3390_v52 = vmul.f32 0.5, %v5740_v48 }
 0xbb7   : > { %3407 = vmax.xlane.f32.xlu0 %v3406_v12  ;;  %v3358_v14 = vpop.f32.mrf.mxu0 }
 0xbb8   : > { %v3389_v49 = vmul.f32 0.5, %v3358_v14  ;;  %v3403_v43 = vsel %vm2034_vm1, %v3395_v21, -inf  ;;  %v3398_v59 = vadd.f32 %v3390_v52, %v6721_v6 }
 0xbb9   : > { %3404 = vmax.xlane.f32.xlu1 %v3403_v43  ;;  %v5743_v42 = vpop.f32.mrf.mxu0 }
 0xbba   : > { %v3397_v54 = vadd.f32 %v3389_v49, %v6732_v18  ;;  %v3392_v58 = vmul.f32 0.5, %v5743_v42  ;;  %v3412_v61 = vsel %vm2034_vm1, %v3398_v59, -inf }
 0xbbb   : > { %v3368_v45 = vpop.f32.mrf.mxu0 }
 0xbbc   : > { %v3391_v60 = vmul.f32 0.5, %v3368_v45  ;;  %v3409_v55 = vsel %vm2034_vm1, %v3397_v54, -inf  ;;  %v3400_v0 = vadd.f32 %v3392_v58, %v6740_v25 }
 0xbbd   : > { %3410 = vmax.xlane.f32.xlu0 %v3409_v55  ;;  %v5746_v46 = vpop.f32.mrf.mxu0 }
 0xbbe   : > { %v3399_v62 = vadd.f32 %v3391_v60, %v6744_v26  ;;  %v3394_v2 = vmul.f32 0.5, %v5746_v46  ;;  %v3418_v6 = vsel %vm2034_vm1, %v3400_v0, -inf }
 0xbbf   : > { %v3378_v25 = vpop.f32.mrf.mxu0 }
 0xbc0   : > { %v3415_v1 = vsel %vm2034_vm1, %v3399_v62, -inf  ;;  %v3402_v18 = vadd.f32 %v3394_v2, %v6750_v39  ;;  %v3393_v26 = vmul.f32 0.5, %v3378_v25 }
 0xbc1   : > { %3413 = vmax.xlane.f32.xlu0 %v3412_v61  ;;  %3416 = vmax.xlane.f32.xlu1 %v3415_v1 }
 0xbc2   : > { %v3424_v4 = vsel %vm2034_vm1, %v3402_v18, -inf  ;;  %v7186_v39 = vadd.f32 %v3393_v26, %v6752_v40 }
 0xbc4   : > { %v3421_v15 = vsel %vm2034_vm1, %v7186_v39, -inf }
 0xbc5   : > { %3419 = vmax.xlane.f32.xlu0 %v3418_v6 }
 0xbc9   : > { %3425 = vmax.xlane.f32.xlu0 %v3424_v4 }
 0xbd2   : > { %3505 = vrot.lane.b32.xlu1 %v6592_v5, %s6156_s1 }
 0xbd6   : > { %3501 = vrot.lane.b32.xlu1 %v6600_v9, %s6156_s1 }
 0xbdf   : > { %3503 = vrot.lane.b32.xlu0 %v6594_v7, %s6156_s1 }
 0xbe3   : > { %3495 = vrot.lane.b32.xlu0 %v6613_v13, %s6156_s1 }
 0xbfa   : > { %3422 = vmax.xlane.f32.xlu1 %v3421_v15 }
 0xc0b   : > { %3499 = vrot.lane.b32.xlu1 %v6606_v11, %s6156_s1 }
 0xc0f   : > { %3497 = vrot.lane.b32.xlu1 %v6597_v8, %s6156_s1 }
 0xc40   : > { %v3408_v5 = vpop.xlane.xlu0 %3407 }
 0xc41   : > { %v3428_v7 = vsub.f32 %v3396_v53, %v3408_v5 }
 0xc42   : > { %v3405_v9 = vpop.xlane.xlu1 %3404 }
 0xc43   : > { %v3437_v16 = vmul.f32 1.442695, %v3428_v7  ;;  %v3427_v13 = vsub.f32 %v3395_v21, %v3405_v9 }
 0xc45   : > { %6026 = vpow2.f32 %v3437_v16  ;;  %v3435_v36 = vmul.f32 1.442695, %v3427_v13 }
 0xc46   : > { %v3411_v28 = vpop.xlane.xlu0 %3410 }
 0xc47   : > { %6028 = vpow2.f32 %v3435_v36  ;;  %v3429_v40 = vsub.f32 %v3397_v54, %v3411_v28 }
 0xc49   : > { %v3439_v19 = vmul.f32 1.442695, %v3429_v40 }
 0xc4a   : > { %v3417_v57 = vpop.xlane.xlu1 %3416  ;;  %v3414_v63 = vpop.xlane.xlu0 %3413 }
 0xc4b   : > { %6030 = vpow2.f32 %v3439_v19  ;;  %v3431_v47 = vsub.f32 %v3399_v62, %v3417_v57  ;;  %v3430_v35 = vsub.f32 %v3398_v59, %v3414_v63 }
 0xc4d   : > { %v3443_v11 = vmul.f32 1.442695, %v3431_v47  ;;  %v3441_v50 = vmul.f32 1.442695, %v3430_v35 }
 0xc4e   : > { %v3506_v30 = vpop.permute.xlu1 %3505  ;;  %v3420_v8 = vpop.xlane.xlu0 %3419 }
 0xc4f   : > { %6032 = vpow2.f32 %v3443_v11  ;;  %v3432_v53 = vsub.f32 %v3400_v0, %v3420_v8  ;;  %5747 = vmatprep.subr.mxu0 %v3506_v30  ;;  %5851 = vmatprep.subr.mxu1 %v3506_v30 }
 0xc50   : > { %6034 = vpow2.f32 %v3441_v50  ;;  %5748 = vmatpush3.msra.mxu0 %v3506_v30  ;;  %5859 = vmatpush3.msra.mxu1 %v3506_v30 }
 0xc51   : > { %v3445_v48 = vmul.f32 1.442695, %v3432_v53 }
 0xc52   : > { %v7194_v21 = vpop.eup %6026  ;;  %v3426_v12 = vpop.xlane.xlu0 %3425 }
 0xc53   : > { %6036 = vpow2.f32 %v3445_v48  ;;  %v3434_v14 = vsub.f32 %v3402_v18, %v3426_v12  ;;  %v3454_v52 = vsel %vm2034_vm1, %v7194_v21, 0.0  ;;  %v3502_v59 = vpop.permute.xlu1 %3501 }
 0xc54   : > { %v7198_v49 = vpop.eup %6028  ;;  %3455 = vadd.xlane.f32.xlu0 %v3454_v52 }
 0xc55   : > { %v3449_v43 = vmul.f32 1.442695, %v3434_v14  ;;  %v3451_v42 = vsel %vm2034_vm1, %v7198_v49, 0.0 }
 0xc56   : > { %3452 = vadd.xlane.f32.xlu1 %v3451_v42  ;;  %v3504_v54 = vpop.permute.xlu0 %3503  ;;  %v3694_v42 = vld [vmem:[%s7865_s25 + $0x8] sm:$0xff] }
 0xc57   : > { %6038 = vpow2.f32 %v3449_v43  ;;  %5749 = vmatprep.subr.mxu0 %v3504_v54  ;;  %5852 = vmatprep.subr.mxu1 %v3504_v54 }
 0xc58   : > { %v7202_v45 = vpop.eup %6030  ;;  %5750 = vmatpush3.msra.mxu0 %v3504_v54  ;;  %5860 = vmatpush3.msra.mxu1 %v3504_v54  ;;  %v3693_v54 = vld [vmem:[%s7865_s25] sm:$0xff] }
 0xc59   : > { %5751 = vmatprep.subr.mxu0 %v3502_v59  ;;  %5853 = vmatprep.subr.mxu1 %v3502_v59  ;;  %v3457_v58 = vsel %vm2034_vm1, %v7202_v45, 0.0 }
 0xc5a   : > { %3458 = vadd.xlane.f32.xlu1 %v3457_v58  ;;  %5752 = vmatpush3.msra.mxu0 %v3502_v59 }
 0xc5b   : > { %5861 = vmatpush3.msra.mxu1 %v3502_v59 }
 0xc5c   : > { %v7206_v60 = vpop.eup %6032 }
 0xc5d   : > { %v7208_v55 = vpop.eup %6034  ;;  %v3463_v46 = vsel %vm2034_vm1, %v7206_v60, 0.0 }
 0xc5e   : > { %3464 = vadd.xlane.f32.xlu1 %v3463_v46  ;;  %v3460_v62 = vsel %vm2034_vm1, %v7208_v55, 0.0 }
 0xc5f   : > { %3461 = vadd.xlane.f32.xlu0 %v3460_v62 }
 0xc60   : > { %v7214_v0 = vpop.eup %6036 }
 0xc61   : > { %v3466_v2 = vsel %vm2034_vm1, %v7214_v0, 0.0 }
 0xc63   : > { %3467 = vadd.xlane.f32.xlu0 %v3466_v2 }
 0xc64   : > { %v7218_v61 = vpop.eup %6038 }
 0xc65   : > { %v3472_v1 = vsel %vm2034_vm1, %v7218_v61, 0.0 }
 0xc67   : > { %3473 = vadd.xlane.f32.xlu0 %v3472_v1 }
 0xc7d   : > { %3491 = vrot.lane.b32.xlu0 %v6588_v56, %s6156_s1 }
 0xc81   : > { %2720 = vrot.lane.b32.xlu0 %v7017_v23, %s6157_s3  ;;  %v3496_v23 = vpop.permute.xlu0 %3495 }
 0xc83   : > { %v3423_v18 = vpop.xlane.xlu1 %3422 }
 0xc84   : > { %v3433_v6 = vsub.f32 %v7186_v39, %v3423_v18 }
 0xc85   : > { %3187 = vrot.lane.b32.xlu0 %v7147_v20, %s6158_s14 }
 0xc86   : > { %v3447_v4 = vmul.f32 1.442695, %v3433_v6 }
 0xc87   : > { %v3500_v25 = vpop.permute.xlu1 %3499 }
 0xc88   : > { %6040 = vpow2.f32 %v3447_v4  ;;  %5753 = vmatprep.subr.mxu0 %v3500_v25  ;;  %5854 = vmatprep.subr.mxu1 %v3500_v25 }
 0xc89   : > { %2724 = vrot.lane.b32.xlu0 %v7021_v22, %s6157_s3  ;;  %5754 = vmatpush3.msra.mxu0 %v3500_v25 }
 0xc8a   : > { %5862 = vmatpush3.msra.mxu1 %v3500_v25 }
 0xc8b   : > { %v3498_v56 = vpop.permute.xlu1 %3497 }
 0xc8c   : > { %5755 = vmatprep.subr.mxu0 %v3498_v56  ;;  %5855 = vmatprep.subr.mxu1 %v3498_v56 }
 0xc8d   : > { %3191 = vrot.lane.b32.xlu0 %v7151_v37, %s6158_s14  ;;  %5756 = vmatpush3.msra.mxu0 %v3498_v56 }
 0xc8e   : > { %5863 = vmatpush3.msra.mxu1 %v3498_v56  ;;  %5757 = vmatprep.subr.mxu0 %v3496_v23 }
 0xc8f   : > { %5856 = vmatprep.subr.mxu1 %v3496_v23  ;;  %5758 = vmatpush3.msra.mxu0 %v3496_v23 }
 0xc90   : > { %5864 = vmatpush3.msra.mxu1 %v3496_v23 }
 0xc91   : > { %2728 = vrot.lane.b32.xlu0 %v7025_v29, %s6157_s3 }
 0xc95   : > { %v7235_v20 = vpop.eup %6040  ;;  %3195 = vrot.lane.b32.xlu0 %v7155_v38, %s6158_s14 }
 0xc96   : > { %v3469_v22 = vsel %vm2034_vm1, %v7235_v20, 0.0 }
 0xc97   : > { %3470 = vadd.xlane.f32.xlu1 %v3469_v22 }
 0xc99   : > { %2732 = vrot.lane.b32.xlu0 %v7029_v33, %s6157_s3 }
 0xc9d   : > { %3199 = vrot.lane.b32.xlu0 %v7159_v27, %s6158_s14 }
 0xca8   : > { %3493 = vrot.lane.b32.xlu1 %v6603_v10, %s6156_s1  ;;  %s7874_s1 = sld [smem:[#allocation15_spill]] (!%p5289_p5) }
 0xcac   : > { %2718 = vrot.lane.b32.xlu1 %v7019_v17, %s6157_s3 }
 0xcb0   : > { %3185 = vrot.lane.b32.xlu1 %v7149_v3, %s6158_s14 }
 0xcb4   : > { %2722 = vrot.lane.b32.xlu1 %v7023_v24, %s6157_s3 }
 0xcb8   : > { %3189 = vrot.lane.b32.xlu1 %v7153_v41, %s6158_s14 }
 0xcbc   : > { %2726 = vrot.lane.b32.xlu1 %v7027_v32, %s6157_s3 }
 0xcc0   : > { %3193 = vrot.lane.b32.xlu1 %v7157_v31, %s6158_s14 }
 0xcc4   : > { %2730 = vrot.lane.b32.xlu1 %v7031_v34, %s6157_s3  ;;  %s7868_s3 = sld [smem:[#allocation20_spill]] (!%p5289_p5) }
 0xcc8   : > { %3197 = vrot.lane.b32.xlu1 %v7161_v44, %s6158_s14  ;;  %s7875_s14 = sld [smem:[#allocation13_spill]] (!%p5289_p5) }
 0xcdd   : > { %v3456_v29 = vpop.xlane.xlu0 %3455 }
 0xcdf   : > { %v3453_v10 = vpop.xlane.xlu1 %3452 }
 0xce0   : > { %6042 = vrcp.f32 %v3453_v10 }
 0xce3   : > { %v3459_v17 = vpop.xlane.xlu1 %3458 }
 0xce4   : > { %6044 = vrcp.f32 %v3459_v17 }
 0xce5   : > { %6046 = vrcp.f32 %v3456_v29 }
 0xce7   : > { %v3465_v9 = vpop.xlane.xlu1 %3464 }
 0xce8   : > { %v3462_v24 = vpop.xlane.xlu0 %3461 }
 0xce9   : > { %6048 = vrcp.f32 %v3462_v24 }
 0xcea   : > { %6050 = vrcp.f32 %v3465_v9  ;;  %v6093_v9 = vld [vmem:[#allocation2 + $0x10] sm:$0xff] }
 0xcec   : > { %v3468_v33 = vpop.xlane.xlu0 %3467 }
 0xced   : > { %v6043_v3 = vpop.eup %6042  ;;  %6052 = vrcp.f32 %v3468_v33 }
 0xcee   : > { %v3476_v37 = vmul.f32 %v6043_v3, %v7198_v49 }
 0xcf0   : > { %v3474_v32 = vpop.xlane.xlu0 %3473  ;;  %5763 = vmatprep.mubr.msk.f32.mxu0 %vm2034_vm1, %v3476_v37  ;;  %v5268_v37 = vld [vmem:[%s7866_s10] ss:$0 sm:$0xff] }
 0xcf1   : > { %v6045_v41 = vpop.eup %6044  ;;  %6054 = vrcp.f32 %v3474_v32  ;;  %v6090_v32 = vld [vmem:[#allocation2 + $0x8] sm:$0xff] }
 0xcf2   : > { %v3480_v38 = vmul.f32 %v6045_v41, %v7202_v45  ;;  %v6047_v13 = vpop.eup %6046 }
 0xcf3   : > { %v3478_v19 = vmul.f32 %v6047_v13, %v7194_v21 }
 0xcf4   : > { %v3492_v34 = vpop.permute.xlu0 %3491  ;;  %5766 = vmatprep.mubr.msk.f32.mxu1 %vm2034_vm1, %v3480_v38 }
 0xcf6   : > { %v6049_v36 = vpop.eup %6048 }
 0xcf7   : > { %v6051_v40 = vpop.eup %6050  ;;  %v3482_v57 = vmul.f32 %v6049_v36, %v7208_v55 }
 0xcf8   : > { %v2721_v31 = vpop.permute.xlu0 %2720  ;;  %v3484_v35 = vmul.f32 %v6051_v40, %v7206_v60 }
 0xcf9   : > { %2744 = vst.msk [vmem:[#allocation3 + $0x8] sm:$0xff] %vm2742_vm5, %v2721_v31  ;;  %v6091_v31 = vld [vmem:[#allocation2] sm:$0xff] }
 0xcfa   : > { %v6053_v63 = vpop.eup %6052 }
 0xcfb   : > { %v3486_v11 = vmul.f32 %v6053_v63, %v7214_v0 }
 0xcfc   : > { %v3188_v27 = vpop.permute.xlu0 %3187 }
 0xcfd   : > { %3211 = vst.msk [vmem:[#allocation3 + $0x8] sm:$0xff] %vm3209_vm3, %v3188_v27 }
 0xcfe   : > { %v6055_v30 = vpop.eup %6054 }
 0xcff   : > { %v3490_v21 = vmul.f32 %v6055_v30, %v7218_v61 }
 0xd00   : > { %v2725_v44 = vpop.permute.xlu0 %2724 }
 0xd01   : > { %2746 = vst.msk [vmem:[#allocation3 + $0x18] sm:$0xff] %vm2742_vm5, %v2725_v44 }
 0xd04   : > { %v3192_v26 = vpop.permute.xlu0 %3191 }
 0xd05   : > { %3213 = vst.msk [vmem:[#allocation3 + $0x18] sm:$0xff] %vm3209_vm3, %v3192_v26 }
 0xd08   : > { %v2729_v39 = vpop.permute.xlu0 %2728 }
 0xd09   : > { %2748 = vst.msk [vmem:[#allocation3 + $0x28] sm:$0xff] %vm2742_vm5, %v2729_v39 }
 0xd0c   : > { %v3196_v15 = vpop.permute.xlu0 %3195 }
 0xd0d   : > { %3215 = vst.msk [vmem:[#allocation3 + $0x28] sm:$0xff] %vm3209_vm3, %v3196_v15  ;;  %v6092_v15 = vld [vmem:[#allocation2 + $0x18] sm:$0xff] }
 0xd10   : > { %v2733_v5 = vpop.permute.xlu0 %2732 }
 0xd11   : > { %2750 = vst.msk [vmem:[#allocation3 + $0x38] sm:$0xff] %vm2742_vm5, %v2733_v5 }
 0xd14   : > { %v3200_v7 = vpop.permute.xlu0 %3199 }
 0xd15   : > { %3217 = vst.msk [vmem:[#allocation3 + $0x38] sm:$0xff] %vm3209_vm3, %v3200_v7 }
 0xd20   : > { %v3471_v16 = vpop.xlane.xlu1 %3470 }
 0xd21   : > { %6056 = vrcp.f32 %v3471_v16 }
 0xd24   : > { %v3494_v28 = vpop.permute.xlu1 %3493 }
 0xd25   : > { %5759 = vmatprep.subr.mxu0 %v3494_v28  ;;  %5857 = vmatprep.subr.mxu1 %v3494_v28 }
 0xd26   : > { %5760 = vmatpush3.msra.mxu0 %v3494_v28  ;;  %5865 = vmatpush3.msra.mxu1 %v3494_v28 }
 0xd27   : > { %5761 = vmatprep.subr.mxu0 %v3492_v34  ;;  %5858 = vmatprep.subr.mxu1 %v3492_v34 }
 0xd28   : > { %v2719_v47 = vpop.permute.xlu1 %2718  ;;  %5762 = vmatpush3.msra.mxu0 %v3492_v34  ;;  %5866 = vmatpush3.msra.mxu1 %v3492_v34 }
 0xd29   : > { %2743 = vst.msk [vmem:[#allocation3] sm:$0xff] %vm2742_vm5, %v2719_v47  ;;  %5764 = vmatmul.mubr.msk.f32.vlgmr.msra.gmra.mxu0 %vm2034_vm1, %v3478_v19  ;;  %5767 = vmatmul.mubr.msk.f32.vlgmr.msra.gmra.mxu1 %vm2034_vm1, %v3482_v57  ;;  %v6094_v57 = vld [vmem:[#allocation2 + $0x28] sm:$0xff]  ;;  %v6095_v47 = vld [vmem:[#allocation2 + $0x20] sm:$0xff] }
 0xd2a   : > { %5769 = vmatprep.mubr.msk.f32.mxu1 %vm2034_vm1, %v3484_v35  ;;  %5775 = vmatprep.subr.mxu1 %v3694_v42 }
 0xd2b   : > { %5776 = vmatpush3.msra.mxu1 %v3694_v42 }
 0xd2c   : > { %v3186_v50 = vpop.permute.xlu1 %3185  ;;  %5777 = vmatprep.subr.mxu1 %v3693_v54 }
 0xd2d   : > { %3210 = vst.msk [vmem:[#allocation3] sm:$0xff] %vm3209_vm3, %v3186_v50  ;;  %5770 = vmatmul.mubr.msk.f32.gmra.mxu1 %vm2034_vm1, %v3486_v11 }
 0xd2e   : > { %v6057_v8 = vpop.eup %6056  ;;  %5778 = vmatpush3.msra.mxu1 %v3693_v54 }
 0xd2f   : > { %v3488_v53 = vmul.f32 %v6057_v8, %v7235_v20 }
 0xd30   : > { %v2723_v48 = vpop.permute.xlu1 %2722 }
 0xd31   : > { %2745 = vst.msk [vmem:[#allocation3 + $0x10] sm:$0xff] %vm2742_vm5, %v2723_v48  ;;  %5772 = vmatprep.mubr.msk.f32.mxu1 %vm2034_vm1, %v3488_v53 }
 0xd32   : > { %5773 = vmatmul.mubr.msk.f32.gmra.mxu1 %vm2034_vm1, %v3490_v21  ;;  %v6096_v21 = vld [vmem:[#allocation2 + $0x38] sm:$0xff] }
 0xd34   : > { %v3190_v12 = vpop.permute.xlu1 %3189 }
 0xd35   : > { %3212 = vst.msk [vmem:[#allocation3 + $0x10] sm:$0xff] %vm3209_vm3, %v3190_v12 }
 0xd38   : > { %v2727_v14 = vpop.permute.xlu1 %2726 }
 0xd39   : > { %2747 = vst.msk [vmem:[#allocation3 + $0x20] sm:$0xff] %vm2742_vm5, %v2727_v14  ;;  %v6097_v14 = vld [vmem:[#allocation2 + $0x30] sm:$0xff] }
 0xd3c   : > { %v3194_v52 = vpop.permute.xlu1 %3193 }
 0xd3d   : > { %3214 = vst.msk [vmem:[#allocation3 + $0x20] sm:$0xff] %vm3209_vm3, %v3194_v52 }
 0xd40   : > { %v2731_v49 = vpop.permute.xlu1 %2730 }
 0xd41   : > { %2749 = vst.msk [vmem:[#allocation3 + $0x30] sm:$0xff] %vm2742_vm5, %v2731_v49 }
 0xd44   : > { %v3198_v43 = vpop.permute.xlu1 %3197 }
 0xd45   : > { %3216 = vst.msk [vmem:[#allocation3 + $0x30] sm:$0xff] %vm3209_vm3, %v3198_v43 }
 0xde9   : > { %v5765_v45 = vpop.f32.mrf.mxu0  ;;  %v5768_v59 = vpop.f32.mrf.mxu1 }
 0xdea   : > { %3654 = vrot.lane.b32.xlu0 %v5765_v45, %s6159_s9 }
 0xdeb   : > { %v3605_v58 = vpop.f32.mrf.mxu0  ;;  %v3615_v60 = vpop.f32.mrf.mxu1 }
 0xdec   : > { %3652 = vrot.lane.b32.xlu1 %v3605_v58, %s6159_s9 }
 0xded   : > { %v5771_v55 = vpop.f32.mrf.mxu1 }
 0xdee   : > { %3658 = vrot.lane.b32.xlu0 %v5768_v59, %s6159_s9 }
 0xdef   : > { %v3625_v46 = vpop.f32.mrf.mxu1 }
 0xdf0   : > { %3656 = vrot.lane.b32.xlu1 %v3615_v60, %s6159_s9 }
 0xdf2   : > { %3662 = vrot.lane.b32.xlu0 %v5771_v55, %s6159_s9  ;;  %v5774_v62 = vpop.f32.mrf.mxu1 }
 0xdf4   : > { %3660 = vrot.lane.b32.xlu1 %v3625_v46, %s6159_s9  ;;  %v3635_v0 = vpop.f32.mrf.mxu1 }
 0xdf6   : > { %3666 = vrot.lane.b32.xlu0 %v5774_v62, %s6159_s9 }
 0xdf8   : > { %3664 = vrot.lane.b32.xlu1 %v3635_v0, %s6159_s9 }
 0xe5c   : > { %v3655_v2 = vpop.permute.xlu0 %3654 }
 0xe5d   : > { %3678 = vst.msk [vmem:[#allocation3 + $0x8] sm:$0xff] %vm3676_vm15, %v3655_v2 }
 0xe5e   : > { %v3653_v61 = vpop.permute.xlu1 %3652 }
 0xe5f   : > { %3677 = vst.msk [vmem:[#allocation3] sm:$0xff] %vm3676_vm15, %v3653_v61 }
 0xe60   : > { %v3659_v1 = vpop.permute.xlu0 %3658 }
 0xe61   : > { %3680 = vst.msk [vmem:[#allocation3 + $0x18] sm:$0xff] %vm3676_vm15, %v3659_v1 }
 0xe62   : > { %v3657_v18 = vpop.permute.xlu1 %3656 }
 0xe63   : > { %3679 = vst.msk [vmem:[#allocation3 + $0x10] sm:$0xff] %vm3676_vm15, %v3657_v18 }
 0xe64   : > { %v3663_v6 = vpop.permute.xlu0 %3662  ;;  %v3686_v56 = vld [vmem:[#allocation3 + $0x8] sm:$0xff] }
 0xe65   : > { %3682 = vst.msk [vmem:[#allocation3 + $0x28] sm:$0xff] %vm3676_vm15, %v3663_v6 }
 0xe66   : > { %v3661_v4 = vpop.permute.xlu1 %3660  ;;  %v3685_v25 = vld [vmem:[#allocation3] sm:$0xff] }
 0xe67   : > { %3681 = vst.msk [vmem:[#allocation3 + $0x20] sm:$0xff] %vm3676_vm15, %v3661_v4  ;;  %5779 = vmatprep.mubr.msk.f32.mxu1 %vm1584_vm4, %v3685_v25 }
 0xe68   : > { %5780 = vmatmul.mubr.msk.f32.vlgmr.msra.gmra.mxu1 %vm1584_vm4, %v3686_v56  ;;  %v3667_v23 = vpop.permute.xlu0 %3666  ;;  %v3688_v10 = vld [vmem:[#allocation3 + $0x18] sm:$0xff] }
 0xe69   : > { %3684 = vst.msk [vmem:[#allocation3 + $0x38] sm:$0xff] %vm3676_vm15, %v3667_v23 }
 0xe6a   : > { %v3665_v20 = vpop.permute.xlu1 %3664  ;;  %v3687_v22 = vld [vmem:[#allocation3 + $0x10] sm:$0xff] }
 0xe6b   : > { %3683 = vst.msk [vmem:[#allocation3 + $0x30] sm:$0xff] %vm3676_vm15, %v3665_v20  ;;  %5782 = vmatprep.mubr.msk.f32.mxu1 %vm1584_vm4, %v3687_v22 }
 0xe6c   : > { %5783 = vmatmul.mubr.msk.f32.gmra.mxu1 %vm1584_vm4, %v3688_v10  ;;  %v3690_v29 = vld [vmem:[#allocation3 + $0x28] sm:$0xff] }
 0xe6e   : > { %v3689_v17 = vld [vmem:[#allocation3 + $0x20] sm:$0xff] }
 0xe6f   : > { %5785 = vmatprep.mubr.msk.f32.mxu1 %vm1584_vm4, %v3689_v17 }
 0xe70   : > { %5786 = vmatmul.mubr.msk.f32.gmra.mxu1 %vm1584_vm4, %v3690_v29  ;;  %v3692_v33 = vld [vmem:[#allocation3 + $0x38] sm:$0xff] }
 0xe72   : > { %v3691_v24 = vld [vmem:[#allocation3 + $0x30] sm:$0xff] }
 0xe73   : > { %5788 = vmatprep.mubr.msk.f32.mxu1 %vm1584_vm4, %v3691_v24 }
 0xe74   : > { %5789 = vmatmul.mubr.msk.f32.gmra.mxu1 %vm1584_vm4, %v3692_v33 }
 0xf28   : > { %v5781_v3 = vpop.f32.mrf.mxu1 }
 0xf29   : > { %v3825_v41 = vadd.f32 %v6090_v32, %v5781_v3 }
 0xf2a   : > { %v3785_v38 = vpop.f32.mrf.mxu1 }
 0xf2b   : > { %v7318_v34 = vadd.f32 %v5268_v37, %v3825_v41  ;;  %v3824_v27 = vadd.f32 %v6091_v31, %v3785_v38 }
 0xf2c   : > { %v5784_v44 = vpop.f32.mrf.mxu1 }
 0xf2d   : > { %v7320_v26 = vadd.f32 %v5268_v37, %v3824_v27  ;;  %v3852_v39 = vsel %vm1584_vm4, %v7318_v34, 0.0  ;;  %v3827_v5 = vadd.f32 %v6092_v15, %v5784_v44 }
 0xf2e   : > { %3853 = vadd.xlane.f32.xlu0 %v3852_v39  ;;  %v3795_v7 = vpop.f32.mrf.mxu1 }
 0xf2f   : > { %v3826_v16 = vadd.f32 %v6093_v9, %v3795_v7  ;;  %v3849_v13 = vsel %vm1584_vm4, %v7320_v26, 0.0  ;;  %v7328_v40 = vadd.f32 %v5268_v37, %v3827_v5 }
 0xf30   : > { %3850 = vadd.xlane.f32.xlu1 %v3849_v13  ;;  %v5787_v36 = vpop.f32.mrf.mxu1 }
 0xf31   : > { %v7326_v28 = vadd.f32 %v5268_v37, %v3826_v16  ;;  %v3829_v63 = vadd.f32 %v6094_v57, %v5787_v36  ;;  %v3858_v53 = vsel %vm1584_vm4, %v7328_v40, 0.0 }
 0xf32   : > { %v3805_v19 = vpop.f32.mrf.mxu1 }
 0xf33   : > { %v3828_v35 = vadd.f32 %v6095_v47, %v3805_v19  ;;  %v3855_v11 = vsel %vm1584_vm4, %v7326_v28, 0.0  ;;  %v7336_v48 = vadd.f32 %v5268_v37, %v3829_v63  ;;  %v3982_v63 = vld [vmem:[%s6355_s2 + $0x8] sm:$0xff]  ;;  %v3981_v47 = vld [vmem:[%s6355_s2] sm:$0xff]  ;;  %s7871_s2 = sld [smem:[#allocation8_spill]] (!%p5289_p5) }
 0xf34   : > { %3856 = vadd.xlane.f32.xlu0 %v3855_v11  ;;  %v5790_v50 = vpop.f32.mrf.mxu1  ;;  %5791 = vmatprep.subr.mxu0 %v3982_v63 }
 0xf35   : > { %v7332_v30 = vadd.f32 %v5268_v37, %v3828_v35  ;;  %v3831_v12 = vadd.f32 %v6096_v21, %v5790_v50  ;;  %v3864_v54 = vsel %vm1584_vm4, %v7336_v48, 0.0  ;;  %5792 = vmatpush3.msra.mxu0 %v3982_v63 }
 0xf36   : > { %v3815_v8 = vpop.f32.mrf.mxu1  ;;  %5793 = vmatprep.subr.mxu0 %v3981_v47 }
 0xf37   : > { %v3830_v52 = vadd.f32 %v6097_v14, %v3815_v8  ;;  %v3861_v49 = vsel %vm1584_vm4, %v7332_v30, 0.0  ;;  %v7342_v42 = vadd.f32 %v5268_v37, %v3831_v12  ;;  %5794 = vmatpush3.msra.mxu0 %v3981_v47 }
 0xf38   : > { %3859 = vadd.xlane.f32.xlu0 %v3858_v53  ;;  %3862 = vadd.xlane.f32.xlu1 %v3861_v49 }
 0xf39   : > { %v7340_v43 = vadd.f32 %v5268_v37, %v3830_v52  ;;  %v3870_v59 = vsel %vm1584_vm4, %v7342_v42, 0.0 }
 0xf3b   : > { %v3867_v45 = vsel %vm1584_vm4, %v7340_v43, 0.0 }
 0xf3c   : > { %3865 = vadd.xlane.f32.xlu0 %v3864_v54  ;;  %3868 = vadd.xlane.f32.xlu1 %v3867_v45 }
 0xf40   : > { %3871 = vadd.xlane.f32.xlu0 %v3870_v59 }
 0xfb7   : > { %v3854_v58 = vpop.xlane.xlu0 %3853 }
 0xfb8   : > { %v3874_v60 = vmul.f32 0.0625, %v3854_v58 }
 0xfb9   : > { %v3851_v55 = vpop.xlane.xlu1 %3850 }
 0xfba   : > { %v7351_v46 = vsub.f32 %v7318_v34, %v3874_v60  ;;  %v3873_v62 = vmul.f32 0.0625, %v3851_v55 }
 0xfbc   : > { %v7354_v0 = vsub.f32 %v7320_v26, %v3873_v62  ;;  %v3890_v2 = vmul.f32 %v7351_v46, %v7351_v46 }
 0xfbd   : > { %v3857_v61 = vpop.xlane.xlu0 %3856 }
 0xfbe   : > { %v3875_v1 = vmul.f32 0.0625, %v3857_v61  ;;  %v3900_v18 = vsel %vm1584_vm4, %v3890_v2, 0.0  ;;  %v3889_v6 = vmul.f32 %v7354_v0, %v7354_v0 }
 0xfbf   : > { %3901 = vadd.xlane.f32.xlu0 %v3900_v18 }
 0xfc0   : > { %v7362_v4 = vsub.f32 %v7326_v28, %v3875_v1  ;;  %v3897_v25 = vsel %vm1584_vm4, %v3889_v6, 0.0 }
 0xfc1   : > { %v3863_v56 = vpop.xlane.xlu1 %3862  ;;  %3898 = vadd.xlane.f32.xlu1 %v3897_v25  ;;  %v3860_v23 = vpop.xlane.xlu0 %3859 }
 0xfc2   : > { %v3877_v20 = vmul.f32 0.0625, %v3863_v56  ;;  %v3876_v22 = vmul.f32 0.0625, %v3860_v23  ;;  %v3891_v10 = vmul.f32 %v7362_v4, %v7362_v4 }
 0xfc4   : > { %v7368_v17 = vsub.f32 %v7332_v30, %v3877_v20  ;;  %v7371_v29 = vsub.f32 %v7328_v40, %v3876_v22  ;;  %v3903_v24 = vsel %vm1584_vm4, %v3891_v10, 0.0  ;;  %v5269_v20 = vld [vmem:[%s954_s12] ss:$0 sm:$0xff] }
 0xfc5   : > { %v3869_v33 = vpop.xlane.xlu1 %3868  ;;  %3904 = vadd.xlane.f32.xlu1 %v3903_v24  ;;  %v3866_v3 = vpop.xlane.xlu0 %3865 }
 0xfc6   : > { %v3879_v37 = vmul.f32 0.0625, %v3869_v33  ;;  %v3878_v32 = vmul.f32 0.0625, %v3866_v3  ;;  %v3893_v41 = vmul.f32 %v7368_v17, %v7368_v17  ;;  %v3892_v38 = vmul.f32 %v7371_v29, %v7371_v29  ;;  %v5270_v3 = vld [vmem:[%s957_s6] ss:$0 sm:$0xff]  ;;  %s7873_s6 = sld [smem:[#allocation14_spill]] (!%p5289_p5) }
 0xfc8   : > { %v7379_v31 = vsub.f32 %v7340_v43, %v3879_v37  ;;  %v7382_v27 = vsub.f32 %v7336_v48, %v3878_v32  ;;  %v3909_v44 = vsel %vm1584_vm4, %v3893_v41, 0.0  ;;  %v3906_v39 = vsel %vm1584_vm4, %v3892_v38, 0.0 }
 0xfc9   : > { %3910 = vadd.xlane.f32.xlu1 %v3909_v44  ;;  %3907 = vadd.xlane.f32.xlu0 %v3906_v39  ;;  %v3872_v15 = vpop.xlane.xlu0 %3871 }
 0xfca   : > { %v3880_v5 = vmul.f32 0.0625, %v3872_v15  ;;  %v3895_v7 = vmul.f32 %v7379_v31, %v7379_v31  ;;  %v3894_v9 = vmul.f32 %v7382_v27, %v7382_v27 }
 0xfcc   : > { %v7391_v16 = vsub.f32 %v7342_v42, %v3880_v5  ;;  %v3915_v13 = vsel %vm1584_vm4, %v3895_v7, 0.0  ;;  %v3912_v36 = vsel %vm1584_vm4, %v3894_v9, 0.0 }
 0xfcd   : > { %3916 = vadd.xlane.f32.xlu1 %v3915_v13  ;;  %3913 = vadd.xlane.f32.xlu0 %v3912_v36 }
 0xfce   : > { %v3896_v19 = vmul.f32 %v7391_v16, %v7391_v16 }
 0xfd0   : > { %v3918_v57 = vsel %vm1584_vm4, %v3896_v19, 0.0 }
 0xfd1   : > { %3919 = vadd.xlane.f32.xlu0 %v3918_v57 }
0x1048   : > { %v3902_v35 = vpop.xlane.xlu0 %3901 }
0x1049   : > { %v3922_v11 = vmul.f32 0.0625, %v3902_v35 }
0x104a   : > { %v3899_v50 = vpop.xlane.xlu1 %3898 }
0x104b   : > { %v3930_v8 = vadd.f32 1e-05, %v3922_v11  ;;  %v3921_v53 = vmul.f32 0.0625, %v3899_v50 }
0x104d   : > { %6058 = vrsqrt.f32 %v3930_v8  ;;  %v3929_v21 = vadd.f32 1e-05, %v3921_v53 }
0x104e   : > { %v3905_v12 = vpop.xlane.xlu1 %3904 }
0x104f   : > { %6060 = vrsqrt.f32 %v3929_v21  ;;  %v3923_v14 = vmul.f32 0.0625, %v3905_v12  ;;  %v4197_v21 = vld [vmem:[%s6365_s28 + $0x30] sm:$0xff]  ;;  %v4195_v12 = vld [vmem:[%s6365_s28 + $0x20] sm:$0xff] }
0x1051   : > { %v3931_v52 = vadd.f32 1e-05, %v3923_v14  ;;  %v4194_v14 = vld [vmem:[%s6365_s28 + $0x18] sm:$0xff] }
0x1052   : > { %v3911_v49 = vpop.xlane.xlu1 %3910  ;;  %v3908_v54 = vpop.xlane.xlu0 %3907 }
0x1053   : > { %6062 = vrsqrt.f32 %v3931_v52  ;;  %v3925_v45 = vmul.f32 0.0625, %v3911_v49  ;;  %v3924_v59 = vmul.f32 0.0625, %v3908_v54  ;;  %v4193_v52 = vld [vmem:[%s6365_s28 + $0x10] sm:$0xff]  ;;  %v4192_v49 = vld [vmem:[%s6365_s28 + $0x8] sm:$0xff]  ;;  %v4191_v54 = vld [vmem:[%s6365_s28] sm:$0xff] }
0x1055   : > { %v3933_v58 = vadd.f32 1e-05, %v3925_v45  ;;  %v3932_v60 = vadd.f32 1e-05, %v3924_v59  ;;  %v5271_v45 = vld [vmem:[%s7867_s27] ss:$0 sm:$0xff] }
0x1056   : > { %v3917_v55 = vpop.xlane.xlu1 %3916  ;;  %v3914_v62 = vpop.xlane.xlu0 %3913 }
0x1057   : > { %6064 = vrsqrt.f32 %v3933_v58  ;;  %v3927_v2 = vmul.f32 0.0625, %v3917_v55  ;;  %v3926_v61 = vmul.f32 0.0625, %v3914_v62 }
0x1058   : > { %6066 = vrsqrt.f32 %v3932_v60 }
0x1059   : > { %v3935_v1 = vadd.f32 1e-05, %v3927_v2  ;;  %v3934_v18 = vadd.f32 1e-05, %v3926_v61 }
0x105a   : > { %v6059_v6 = vpop.eup %6058  ;;  %v3920_v25 = vpop.xlane.xlu0 %3919 }
0x105b   : > { %v3946_v56 = vmul.f32 %v6059_v6, %v7351_v46  ;;  %6068 = vrsqrt.f32 %v3935_v1  ;;  %v3928_v23 = vmul.f32 0.0625, %v3920_v25 }
0x105c   : > { %v6061_v22 = vpop.eup %6060  ;;  %6070 = vrsqrt.f32 %v3934_v18 }
0x105d   : > { %v3936_v10 = vadd.f32 1e-05, %v3928_v23  ;;  %v3945_v24 = vmul.f32 %v6061_v22, %v7354_v0  ;;  %v3960_v33 = vmul.f32 %v5269_v20, %v3946_v56 }
0x105f   : > { %6072 = vrsqrt.f32 %v3936_v10  ;;  %v3959_v46 = vmul.f32 %v5269_v20, %v3945_v24  ;;  %v3974_v38 = vadd.f32 %v5270_v3, %v3960_v33 }
0x1060   : > { %v6063_v37 = vpop.eup %6062 }
0x1061   : > { %v3973_v32 = vadd.f32 %v5270_v3, %v3959_v46  ;;  %v3947_v41 = vmul.f32 %v6063_v37, %v7362_v4 }
0x1063   : > { %5795 = vmatprep.mubr.msk.f32.mxu0 %vm1584_vm4, %v3973_v32  ;;  %v3961_v44 = vmul.f32 %v5269_v20, %v3947_v41 }
0x1064   : > { %v6065_v39 = vpop.eup %6064  ;;  %5796 = vmatmul.mubr.msk.f32.vlgmr.msra.gmra.mxu0 %vm1584_vm4, %v3974_v38 }
0x1065   : > { %v6067_v0 = vpop.eup %6066  ;;  %v3975_v15 = vadd.f32 %v5270_v3, %v3961_v44  ;;  %v3949_v5 = vmul.f32 %v6065_v39, %v7368_v17 }
0x1066   : > { %v3948_v7 = vmul.f32 %v6067_v0, %v7371_v29 }
0x1067   : > { %5798 = vmatprep.mubr.msk.f32.mxu0 %vm1584_vm4, %v3975_v15  ;;  %v3963_v9 = vmul.f32 %v5269_v20, %v3949_v5 }
0x1068   : > { %v6069_v13 = vpop.eup %6068  ;;  %v3962_v36 = vmul.f32 %v5269_v20, %v3948_v7 }
0x1069   : > { %v6071_v19 = vpop.eup %6070  ;;  %v3977_v4 = vadd.f32 %v5270_v3, %v3963_v9  ;;  %v3951_v57 = vmul.f32 %v6069_v13, %v7379_v31 }
0x106a   : > { %v3976_v63 = vadd.f32 %v5270_v3, %v3962_v36  ;;  %v3950_v47 = vmul.f32 %v6071_v19, %v7382_v27  ;;  %v4198_v27 = vld [vmem:[%s6365_s28 + $0x38] sm:$0xff] }
0x106b   : > { %v3965_v35 = vmul.f32 %v5269_v20, %v3951_v57  ;;  %5807 = vmatprep.subr.mxu1 %v4198_v27 }
0x106c   : > { %v6073_v11 = vpop.eup %6072  ;;  %5799 = vmatmul.mubr.msk.f32.gmra.mxu0 %vm1584_vm4, %v3976_v63  ;;  %v3964_v17 = vmul.f32 %v5269_v20, %v3950_v47  ;;  %5808 = vmatpush3.msra.mxu1 %v4198_v27 }
0x106d   : > { %5801 = vmatprep.mubr.msk.f32.mxu0 %vm1584_vm4, %v3977_v4  ;;  %v3979_v29 = vadd.f32 %v5270_v3, %v3965_v35  ;;  %v3952_v50 = vmul.f32 %v6073_v11, %v7391_v16  ;;  %5809 = vmatprep.subr.mxu1 %v4197_v21  ;;  %v4196_v16 = vld [vmem:[%s6365_s28 + $0x28] sm:$0xff] }
0x106e   : > { %v3978_v8 = vadd.f32 %v5270_v3, %v3964_v17  ;;  %5810 = vmatpush3.msra.mxu1 %v4197_v21 }
0x106f   : > { %v3966_v53 = vmul.f32 %v5269_v20, %v3952_v50  ;;  %5811 = vmatprep.subr.mxu1 %v4196_v16 }
0x1070   : > { %5802 = vmatmul.mubr.msk.f32.gmra.mxu0 %vm1584_vm4, %v3978_v8  ;;  %5812 = vmatpush3.msra.mxu1 %v4196_v16 }
0x1071   : > { %5804 = vmatprep.mubr.msk.f32.mxu0 %vm1584_vm4, %v3979_v29  ;;  %v3980_v31 = vadd.f32 %v5270_v3, %v3966_v53  ;;  %5813 = vmatprep.subr.mxu1 %v4195_v12 }
0x1072   : > { %5814 = vmatpush3.msra.mxu1 %v4195_v12 }
0x1073   : > { %5815 = vmatprep.subr.mxu1 %v4194_v14 }
0x1074   : > { %5805 = vmatmul.mubr.msk.f32.gmra.mxu0 %vm1584_vm4, %v3980_v31  ;;  %5816 = vmatpush3.msra.mxu1 %v4194_v14 }
0x1075   : > { %5817 = vmatprep.subr.mxu1 %v4193_v52 }
0x1076   : > { %5818 = vmatpush3.msra.mxu1 %v4193_v52 }
0x1077   : > { %5819 = vmatprep.subr.mxu1 %v4192_v49 }
0x1078   : > { %5820 = vmatpush3.msra.mxu1 %v4192_v49 }
0x1079   : > { %5821 = vmatprep.subr.mxu1 %v4191_v54 }
0x107a   : > { %5822 = vmatpush3.msra.mxu1 %v4191_v54 }
0x1124   : > { %v5797_v59 = vpop.f32.mrf.mxu0 }
0x1125   : > { %v7439_v58 = vadd.f32 %v5797_v59, %v5271_v45 }
0x1126   : > { %v4080_v60 = vpop.f32.mrf.mxu0 }
0x1127   : > { %v4120_v55 = vmul.f32 %v7439_v58, %v7439_v58  ;;  %v7443_v62 = vadd.f32 %v5271_v45, %v4080_v60 }
0x1129   : > { %v4128_v2 = vmul.f32 %v4120_v55, %v7439_v58  ;;  %v4119_v61 = vmul.f32 %v7443_v62, %v7443_v62 }
0x112b   : > { %v4136_v1 = vmul.f32 0.044715, %v4128_v2  ;;  %v4127_v18 = vmul.f32 %v4119_v61, %v7443_v62 }
0x112c   : > { %v5800_v6 = vpop.f32.mrf.mxu0 }
0x112d   : > { %v4144_v25 = vadd.f32 %v4136_v1, %v7439_v58  ;;  %v4135_v56 = vmul.f32 0.044715, %v4127_v18  ;;  %v7450_v23 = vadd.f32 %v5800_v6, %v5271_v45 }
0x112e   : > { %v4090_v20 = vpop.f32.mrf.mxu0 }
0x112f   : > { %v4152_v22 = vmul.f32 0.7978846, %v4144_v25  ;;  %v4143_v10 = vadd.f32 %v4135_v56, %v7443_v62  ;;  %v4122_v24 = vmul.f32 %v7450_v23, %v7450_v23  ;;  %v7455_v33 = vadd.f32 %v5271_v45, %v4090_v20 }
0x1130   : > { %v5803_v3 = vpop.f32.mrf.mxu0 }
0x1131   : > { %6074 = vtanh.f32 %v4152_v22  ;;  %v4151_v46 = vmul.f32 0.7978846, %v4143_v10  ;;  %v4130_v37 = vmul.f32 %v4122_v24, %v7450_v23  ;;  %v4121_v32 = vmul.f32 %v7455_v33, %v7455_v33 }
0x1132   : > { %v7460_v41 = vadd.f32 %v5803_v3, %v5271_v45  ;;  %v4100_v38 = vpop.f32.mrf.mxu0 }
0x1133   : > { %6076 = vtanh.f32 %v4151_v46  ;;  %v4138_v44 = vmul.f32 0.044715, %v4130_v37  ;;  %v4129_v39 = vmul.f32 %v4121_v32, %v7455_v33  ;;  %v7463_v0 = vadd.f32 %v5271_v45, %v4100_v38 }
0x1134   : > { %v4124_v15 = vmul.f32 %v7460_v41, %v7460_v41  ;;  %v5806_v5 = vpop.f32.mrf.mxu0 }
0x1135   : > { %v4146_v7 = vadd.f32 %v4138_v44, %v7450_v23  ;;  %v4137_v9 = vmul.f32 0.044715, %v4129_v39  ;;  %v4123_v13 = vmul.f32 %v7463_v0, %v7463_v0  ;;  %v7470_v36 = vadd.f32 %v5806_v5, %v5271_v45 }
0x1136   : > { %v4132_v19 = vmul.f32 %v4124_v15, %v7460_v41  ;;  %v4110_v4 = vpop.f32.mrf.mxu0 }
0x1137   : > { %v4154_v57 = vmul.f32 0.7978846, %v4146_v7  ;;  %v4145_v63 = vadd.f32 %v4137_v9, %v7455_v33  ;;  %v4131_v47 = vmul.f32 %v4123_v13, %v7463_v0  ;;  %v4126_v35 = vmul.f32 %v7470_v36, %v7470_v36 }
0x1138   : > { %v4140_v11 = vmul.f32 0.044715, %v4132_v19  ;;  %v4111_v17 = vadd.f32 %v5271_v45, %v4110_v4 }
0x1139   : > { %6078 = vtanh.f32 %v4154_v57  ;;  %v4153_v29 = vmul.f32 0.7978846, %v4145_v63  ;;  %v4139_v50 = vmul.f32 0.044715, %v4131_v47  ;;  %v4134_v8 = vmul.f32 %v4126_v35, %v7470_v36 }
0x113a   : > { %v4148_v53 = vadd.f32 %v4140_v11, %v7460_v41  ;;  %v4125_v31 = vmul.f32 %v4111_v17, %v4111_v17 }
0x113b   : > { %6080 = vtanh.f32 %v4153_v29  ;;  %v4147_v27 = vadd.f32 %v4139_v50, %v7463_v0  ;;  %v4142_v21 = vmul.f32 0.044715, %v4134_v8 }
0x113c   : > { %v4156_v16 = vmul.f32 0.7978846, %v4148_v53  ;;  %v4133_v12 = vmul.f32 %v4125_v31, %v4111_v17 }
0x113d   : > { %v4155_v14 = vmul.f32 0.7978846, %v4147_v27  ;;  %v4150_v52 = vadd.f32 %v4142_v21, %v7470_v36 }
0x113e   : > { %v6075_v49 = vpop.eup %6074  ;;  %6082 = vtanh.f32 %v4156_v16  ;;  %v4141_v54 = vmul.f32 0.044715, %v4133_v12 }
0x113f   : > { %v4168_v45 = vadd.f32 1.0, %v6075_v49  ;;  %6084 = vtanh.f32 %v4155_v14  ;;  %v4158_v59 = vmul.f32 0.7978846, %v4150_v52 }
0x1140   : > { %v6077_v60 = vpop.eup %6076  ;;  %v4149_v55 = vadd.f32 %v4141_v54, %v4111_v17 }
0x1141   : > { %6086 = vtanh.f32 %v4158_v59  ;;  %v4167_v2 = vadd.f32 1.0, %v6077_v60  ;;  %v4176_v61 = vmul.f32 0.5, %v4168_v45 }
0x1142   : > { %v4157_v1 = vmul.f32 0.7978846, %v4149_v55 }
0x1143   : > { %v4175_v18 = vmul.f32 0.5, %v4167_v2  ;;  %v4184_v56 = vmul.f32 %v4176_v61, %v7439_v58 }
0x1144   : > { %6088 = vtanh.f32 %v4157_v1 }
0x1145   : > { %v4183_v6 = vmul.f32 %v4175_v18, %v7443_v62 }
0x1146   : > { %v6079_v25 = vpop.eup %6078 }
0x1147   : > { %5823 = vmatprep.mubr.msk.f32.mxu1 %vm2034_vm1, %v4183_v6  ;;  %v4170_v20 = vadd.f32 1.0, %v6079_v25 }
0x1148   : > { %v6081_v22 = vpop.eup %6080  ;;  %5824 = vmatmul.mubr.msk.f32.vlgmr.msra.gmra.mxu1 %vm2034_vm1, %v4184_v56 }
0x1149   : > { %v4169_v10 = vadd.f32 1.0, %v6081_v22  ;;  %v4178_v24 = vmul.f32 0.5, %v4170_v20 }
0x114b   : > { %v6083_v3 = vpop.eup %6082  ;;  %v4177_v46 = vmul.f32 0.5, %v4169_v10  ;;  %v4186_v62 = vmul.f32 %v4178_v24, %v7450_v23 }
0x114c   : > { %v6085_v37 = vpop.eup %6084  ;;  %v4172_v32 = vadd.f32 1.0, %v6083_v3 }
0x114d   : > { %v4185_v38 = vmul.f32 %v4177_v46, %v7455_v33  ;;  %v4171_v44 = vadd.f32 1.0, %v6085_v37 }
0x114e   : > { %v6087_v39 = vpop.eup %6086  ;;  %v4180_v15 = vmul.f32 0.5, %v4172_v32 }
0x114f   : > { %5826 = vmatprep.mubr.msk.f32.mxu1 %vm2034_vm1, %v4185_v38  ;;  %v4179_v58 = vmul.f32 0.5, %v4171_v44  ;;  %v4174_v5 = vadd.f32 1.0, %v6087_v39 }
0x1150   : > { %5827 = vmatmul.mubr.msk.f32.gmra.mxu1 %vm2034_vm1, %v4186_v62  ;;  %v4188_v13 = vmul.f32 %v4180_v15, %v7460_v41 }
0x1151   : > { %v6089_v7 = vpop.eup %6088  ;;  %v4187_v9 = vmul.f32 %v4179_v58, %v7463_v0  ;;  %v4182_v33 = vmul.f32 0.5, %v4174_v5  ;;  %v5280_v0 = vld [vmem:[%s973_s24] ss:$0 sm:$0xff]  ;;  %s7876_s24 = sld [smem:[#allocation23_spill]] (!%p5289_p5) }
0x1152   : > { %v4173_v19 = vadd.f32 1.0, %v6089_v7 }
0x1153   : > { %5829 = vmatprep.mubr.msk.f32.mxu1 %vm2034_vm1, %v4187_v9  ;;  %v4190_v57 = vmul.f32 %v4182_v33, %v7470_v36 }
0x1154   : > { %5830 = vmatmul.mubr.msk.f32.gmra.mxu1 %vm2034_vm1, %v4188_v13  ;;  %v4181_v23 = vmul.f32 0.5, %v4173_v19 }
0x1156   : > { %v4189_v4 = vmul.f32 %v4181_v23, %v4111_v17 }
0x1158   : > { %5832 = vmatprep.mubr.msk.f32.mxu1 %vm2034_vm1, %v4189_v4 }
0x1159   : > { %5833 = vmatmul.mubr.msk.f32.gmra.mxu1 %vm2034_vm1, %v4190_v57 }
0x1208   : > { %v5825_v41 = vpop.f32.mrf.mxu1 }
0x1209   : > { %v4302_v63 = vadd.f32 %v5825_v41, %v5280_v0 }
0x120a   : > { %v4296_v47 = vpop.f32.mrf.mxu1 }
0x120b   : > { %v4336_v35 = vadd.f32 %v4302_v63, %v7318_v34  ;;  %v4297_v11 = vadd.f32 %v5280_v0, %v4296_v47 }
0x120d   : > { %4344 = vst.msk [vmem:[#allocation2 + $0x8] sm:$0xff] %vm1584_vm4, %v4336_v35  ;;  %v4335_v17 = vadd.f32 %v4297_v11, %v7320_v26 }
0x120f   : > { %4343 = vst.msk [vmem:[#allocation2] sm:$0xff] %vm1584_vm4, %v4335_v17 }
0x1210   : > { %v5828_v36 = vpop.f32.mrf.mxu1 }
0x1211   : > { %v4312_v29 = vadd.f32 %v5828_v36, %v5280_v0 }
0x1212   : > { %v4306_v50 = vpop.f32.mrf.mxu1 }
0x1213   : > { %v4338_v8 = vadd.f32 %v4312_v29, %v7328_v40  ;;  %v4307_v53 = vadd.f32 %v5280_v0, %v4306_v50 }
0x1214   : > { %v5831_v31 = vpop.f32.mrf.mxu1 }
0x1215   : > { %4346 = vst.msk [vmem:[#allocation2 + $0x18] sm:$0xff] %vm1584_vm4, %v4338_v8  ;;  %v4337_v27 = vadd.f32 %v4307_v53, %v7326_v28  ;;  %v4322_v21 = vadd.f32 %v5831_v31, %v5280_v0 }
0x1216   : > { %v4316_v34 = vpop.f32.mrf.mxu1 }
0x1217   : > { %4345 = vst.msk [vmem:[#allocation2 + $0x10] sm:$0xff] %vm1584_vm4, %v4337_v27  ;;  %v4340_v16 = vadd.f32 %v4322_v21, %v7336_v48  ;;  %v4317_v26 = vadd.f32 %v5280_v0, %v4316_v34 }
0x1219   : > { %4348 = vst.msk [vmem:[#allocation2 + $0x28] sm:$0xff] %vm1584_vm4, %v4340_v16  ;;  %v4339_v12 = vadd.f32 %v4317_v26, %v7332_v30  ;;  %v5834_v14 = vpop.f32.mrf.mxu1 }
0x121a   : > { %v4332_v52 = vadd.f32 %v5834_v14, %v5280_v0 }
0x121b   : > { %4347 = vst.msk [vmem:[#allocation2 + $0x20] sm:$0xff] %vm1584_vm4, %v4339_v12  ;;  %v4326_v40 = vpop.f32.mrf.mxu1 }
0x121c   : > { %v4342_v49 = vadd.f32 %v4332_v52, %v7342_v42  ;;  %v4327_v54 = vadd.f32 %v5280_v0, %v4326_v40  ;;  %4354 = sbr.rel (%p5289_p5) target bundleno = 5298 (0x14b2), region = 132 }
0x121e   : > { %4350 = vst.msk [vmem:[#allocation2 + $0x38] sm:$0xff] %vm1584_vm4, %v4342_v49  ;;  %v4341_v28 = vadd.f32 %v4327_v54, %v7340_v43 }
0x1220   : > { %4349 = vst.msk [vmem:[#allocation2 + $0x30] sm:$0xff] %vm1584_vm4, %v4341_v28 }
0x1221   : > { %v4356_v30 = vld [vmem:[%s7868_s3 + $0x8] sm:$0xff]  ;;  %v4355_v48 = vld [vmem:[%s7868_s3] sm:$0xff]  ;;  %5839 = vmatprep.mubr.msk.f32.mxu0 %vm1584_vm4, %v4335_v17  ;;  %5845 = vmatprep.mubr.msk.f32.mxu1 %vm1584_vm4, %v4339_v12  ;;  %vm4607_vm1 = vcmask 7168   ;;  %v4504_v45 = vld [vmem:[%s7869_s26 + $0x10] sm:$0xff]  ;;  %v6160_v56 = vmov 0   ;;  %vm4582_vm6 = vcmask 15360  }
0x1222   : > { %v4502_v43 = vld [vmem:[%s7869_s26] sm:$0xff]  ;;  %5835 = vmatprep.subr.mxu0 %v4356_v30  ;;  %5867 = vmatprep.subr.mxu1 %v4356_v30  ;;  %v4503_v59 = vld [vmem:[%s7869_s26 + $0x8] sm:$0xff]  ;;  %v4611_v60 = vsel %vm4607_vm1, %v4504_v45, 0.0  ;;  %v4505_v61 = vld [vmem:[%s7869_s26 + $0x18] sm:$0xff]  ;;  %vm4971_vm0 = vcmp.eq.s32.totalorder %v6698_v51, 1  ;;  %vm4970_vm2 = vcmp.eq.s32.totalorder %v6698_v51, 0 }
0x1223   : > { %v4608_v42 = vsel %vm4607_vm1, %v4502_v43, 0.0  ;;  %5836 = vmatpush3.msra.mxu0 %v4356_v30  ;;  %5869 = vmatpush3.msra.mxu1 %v4356_v30  ;;  %v4609_v55 = vsel %vm4607_vm1, %v4503_v59, 0.0  ;;  %v4613_v1 = vsel %vm4607_vm1, %v4505_v61, 0.0  ;;  %v4506_v6 = vld [vmem:[%s7869_s26 + $0x20] sm:$0xff]  ;;  %v4507_v10 = vld [vmem:[%s7869_s26 + $0x28] sm:$0xff]  ;;  %v4508_v24 = vld [vmem:[%s7869_s26 + $0x30] sm:$0xff] }
0x1224   : > { %5837 = vmatprep.subr.mxu0 %v4355_v48  ;;  %5868 = vmatprep.subr.mxu1 %v4355_v48  ;;  %v4610_v2 = vadd.f32 %v4609_v55, %v4608_v42  ;;  %v4615_v25 = vsel %vm4607_vm1, %v4506_v6, 0.0  ;;  %v7561_v3 = vld [vmem:[%s7869_s26 + $0x38] sm:$0xff]  ;;  %v4617_v46 = vsel %vm4607_vm1, %v4507_v10, 0.0  ;;  %v4619_v37 = vsel %vm4607_vm1, %v4508_v24, 0.0  ;;  %v7571_v44 = vld [vmem:[%s7870_s7] ss:$0 sm:$0xff] }
0x1225   : > { %5838 = vmatpush3.msra.mxu0 %v4355_v48  ;;  %5870 = vmatpush3.msra.mxu1 %v4355_v48  ;;  %v4511_v7 = vld [vmem:[%s7871_s2 + $0x8] sm:$0xff]  ;;  %v4510_v57 = vld [vmem:[%s7871_s2] sm:$0xff]  ;;  %v4513_v31 = vld [vmem:[%s7871_s2 + $0x18] sm:$0xff]  ;;  %s6162_s7 = smov 1.0   ;;  %vm4977_vm5 = vcmask 16384  }
0x1226   : > { %5840 = vmatmul.mubr.msk.f32.vlgmr.msra.gmra.mxu0 %vm1584_vm4, %v4336_v35  ;;  %5846 = vmatmul.mubr.msk.f32.vlgmr.msra.gmra.mxu1 %vm1584_vm4, %v4340_v16  ;;  %v4612_v18 = vadd.f32 %v4611_v60, %v4610_v2  ;;  %v4512_v40 = vld [vmem:[%s7871_s2 + $0x10] sm:$0xff]  ;;  %v4514_v60 = vld [vmem:[%s7871_s2 + $0x20] sm:$0xff] }
0x1227   : > { %5842 = vmatprep.mubr.msk.f32.mxu0 %vm1584_vm4, %v4337_v27  ;;  %5848 = vmatprep.mubr.msk.f32.mxu1 %vm1584_vm4, %v4341_v28 }
0x1228   : > { %6098 = vset.pattern.permute.xlu0 %v6160_v56  ;;  %6099 = vset.pattern.permute.xlu1 %v6160_v56  ;;  %v4614_v20 = vadd.f32 %v4613_v1, %v4612_v18 }
0x1229   : > { %4536 = vperm.xlu0 %6098, %v4502_v43   ;;  %4546 = vperm.xlu1 %6099, %v4504_v45  }
0x122a   : > { %5843 = vmatmul.mubr.msk.f32.gmra.mxu0 %vm1584_vm4, %v4338_v8  ;;  %5849 = vmatmul.mubr.msk.f32.gmra.mxu1 %vm1584_vm4, %v4342_v49  ;;  %v4616_v22 = vadd.f32 %v4615_v25, %v4614_v20  ;;  %vm4493_vm4 = vcmask 23552  }
0x122c   : > { %v4618_v32 = vadd.f32 %v4617_v46, %v4616_v22 }
0x122d   : > { %4541 = vperm.xlu0 %6098, %v4503_v59   ;;  %4551 = vperm.xlu1 %6099, %v4505_v61  }
0x122e   : > { %v7566_v38 = vadd.f32 %v4619_v37, %v4618_v32 }
0x1231   : > { %4561 = vperm.xlu1 %6099, %v4507_v10   ;;  %4556 = vperm.xlu0 %6098, %v4506_v6  }
0x1235   : > { %4566 = vperm.xlu0 %6098, %v4508_v24   ;;  %4571 = vperm.xlu1 %6099, %v7561_v3  }
0x12a4   : > { %v4537_v39 = vpop.permute.xlu0 %4536  ;;  %v4547_v36 = vpop.permute.xlu1 %4546 }
0x12a8   : > { %v4542_v17 = vpop.permute.xlu0 %4541  ;;  %v4552_v1 = vpop.permute.xlu1 %4551 }
0x12ac   : > { %v4557_v37 = vpop.permute.xlu0 %4556 }
0x12e6   : > { %v5841_v62 = vpop.f32.mrf.mxu0  ;;  %v5847_v15 = vpop.f32.mrf.mxu1 }
0x12e7   : > { %v7574_v58 = vadd.f32 %v5841_v62, %v7571_v44  ;;  %v7577_v5 = vadd.f32 %v5847_v15, %v7571_v44 }
0x12e8   : > { %v4454_v9 = vpop.f32.mrf.mxu0  ;;  %v4474_v13 = vpop.f32.mrf.mxu1 }
0x12e9   : > { %4495 = vst.msk [vmem:[%s7872_s5 + $0x8] sm:$0xff] %vm4493_vm4, %v7574_v58  ;;  %v4663_v19 = vand.u32 2147483647, %v7574_v58  ;;  %4499 = vst.msk [vmem:[%s7872_s5 + $0x28] sm:$0xff] %vm4493_vm4, %v7577_v5  ;;  %v4667_v33 = vand.u32 2147483647, %v7577_v5  ;;  %v7595_v23 = vadd.f32 %v7571_v44, %v4454_v9  ;;  %v7598_v4 = vadd.f32 %v7571_v44, %v4474_v13 }
0x12ea   : > { %v5844_v0 = vpop.f32.mrf.mxu0  ;;  %v4519_v41 = vsub.f32 %v7574_v58, %v4511_v7  ;;  %v5850_v49 = vpop.f32.mrf.mxu1  ;;  %v4515_v9 = vld [vmem:[%s7871_s2 + $0x28] sm:$0xff]  ;;  %v4516_v13 = vld [vmem:[%s7871_s2 + $0x30] sm:$0xff] }
0x12eb   : > { %v4671_v63 = vsub.f32 0.0, %v4663_v19  ;;  %v4675_v47 = vsub.f32 0.0, %v4667_v33  ;;  %4494 = vst.msk [vmem:[%s7872_s5] sm:$0xff] %vm4493_vm4, %v7595_v23  ;;  %v4662_v35 = vand.u32 2147483647, %v7595_v23  ;;  %4498 = vst.msk [vmem:[%s7872_s5 + $0x20] sm:$0xff] %vm4493_vm4, %v7598_v4  ;;  %v7617_v29 = vadd.f32 %v5844_v0, %v7571_v44 }
0x12ec   : > { %v4666_v11 = vand.u32 2147483647, %v7598_v4  ;;  %v4518_v50 = vsub.f32 %v7595_v23, %v4510_v57  ;;  %v4527_v8 = vmul.f32 %v4519_v41, %v4519_v41  ;;  %v4464_v53 = vpop.f32.mrf.mxu0  ;;  %v4484_v18 = vpop.f32.mrf.mxu1  ;;  %v4522_v22 = vsub.f32 %v7598_v4, %v4514_v60  ;;  %v4517_v57 = vld [vmem:[%s7871_s2 + $0x38] sm:$0xff] }
0x12ed   : > { %v4680_v27 = vmul.f32 1.442695, %v4671_v63  ;;  %v4688_v21 = vmul.f32 1.442695, %v4675_v47  ;;  %v4670_v34 = vsub.f32 0.0, %v4662_v35  ;;  %4497 = vst.msk [vmem:[%s7872_s5 + $0x18] sm:$0xff] %vm4493_vm4, %v7617_v29  ;;  %v7630_v52 = vadd.f32 %v7571_v44, %v4464_v53  ;;  %v4562_v53 = vpop.permute.xlu1 %4561 }
0x12ee   : > { %v4674_v16 = vsub.f32 0.0, %v4666_v11  ;;  %v4665_v26 = vand.u32 2147483647, %v7617_v29  ;;  %v4526_v12 = vmul.f32 %v4518_v50, %v4518_v50  ;;  %v4575_v14 = vmul.f32 %v4542_v17, %v4527_v8 }
0x12ef   : > { %6100 = vpow2.f32 %v4680_v27  ;;  %v4678_v54 = vmul.f32 1.442695, %v4670_v34  ;;  %v4521_v30 = vsub.f32 %v7617_v29, %v4513_v31  ;;  %4496 = vst.msk [vmem:[%s7872_s5 + $0x10] sm:$0xff] %vm4493_vm4, %v7630_v52  ;;  %v4664_v42 = vand.u32 2147483647, %v7630_v52  ;;  %v4567_v34 = vpop.permute.xlu0 %4566 }
0x12f0   : > { %v4686_v28 = vmul.f32 1.442695, %v4674_v16  ;;  %6102 = vpow2.f32 %v4688_v21  ;;  %v4673_v48 = vsub.f32 0.0, %v4665_v26  ;;  %v4574_v43 = vmul.f32 %v4537_v39, %v4526_v12 }
0x12f1   : > { %6104 = vpow2.f32 %v4678_v54  ;;  %v4520_v45 = vsub.f32 %v7630_v52, %v4512_v40  ;;  %v4529_v59 = vmul.f32 %v4521_v30, %v4521_v30  ;;  %v4584_v61 = vsel %vm4582_vm6, %v4575_v14, 0.0  ;;  %v4572_v14 = vpop.permute.xlu1 %4571 }
0x12f2   : > { %6106 = vpow2.f32 %v4686_v28  ;;  %v4684_v55 = vmul.f32 1.442695, %v4673_v48  ;;  %v4583_v2 = vsel %vm4582_vm6, %v4574_v43, 0.0  ;;  %v4672_v25 = vsub.f32 0.0, %v4664_v42 }
0x12f3   : > { %v4585_v6 = vadd.f32 %v4584_v61, %v4583_v2  ;;  %v4528_v56 = vmul.f32 %v4520_v45, %v4520_v45  ;;  %v4577_v20 = vmul.f32 %v4552_v1, %v4529_v59  ;;  %v7650_v10 = vadd.f32 %v5850_v49, %v7571_v44 }
0x12f4   : > { %6108 = vpow2.f32 %v4684_v55  ;;  %v4682_v24 = vmul.f32 1.442695, %v4672_v25  ;;  %v7653_v32 = vadd.f32 %v7571_v44, %v4484_v18  ;;  %v4530_v39 = vmul.f32 %v4522_v22, %v4522_v22 }
0x12f5   : > { %v4576_v46 = vmul.f32 %v4547_v36, %v4528_v56  ;;  %4501 = vst.msk [vmem:[%s7872_s5 + $0x38] sm:$0xff] %vm4493_vm4, %v7650_v10  ;;  %v4588_v15 = vsel %vm4582_vm6, %v4577_v20, 0.0  ;;  %v4523_v41 = vsub.f32 %v7577_v5, %v4515_v9  ;;  %v4525_v36 = vsub.f32 %v7650_v10, %v4517_v57 }
0x12f6   : > { %4500 = vst.msk [vmem:[%s7872_s5 + $0x30] sm:$0xff] %vm4493_vm4, %v7653_v32  ;;  %v4578_v44 = vmul.f32 %v4557_v37, %v4530_v39  ;;  %6110 = vpow2.f32 %v4682_v24  ;;  %v4524_v47 = vsub.f32 %v7653_v32, %v4516_v13  ;;  %v4651_v42 = vsub.f32 0.0, %v7577_v5 }
0x12f7   : > { %v4586_v62 = vsel %vm4582_vm6, %v4576_v46, 0.0  ;;  %v4531_v27 = vmul.f32 %v4523_v41, %v4523_v41  ;;  %v4533_v26 = vmul.f32 %v4525_v36, %v4525_v36  ;;  %v4647_v45 = vsub.f32 0.0, %v7574_v58 }
0x12f8   : > { %v4587_v7 = vadd.f32 %v4586_v62, %v4585_v6  ;;  %v4590_v33 = vsel %vm4582_vm6, %v4578_v44, 0.0  ;;  %v4532_v21 = vmul.f32 %v4524_v47, %v4524_v47  ;;  %v4659_v24 = vmax.f32 %v4651_v42, 0.0 }
0x12f9   : > { %v4579_v40 = vmul.f32 %v4562_v53, %v4531_v27  ;;  %v4581_v48 = vmul.f32 %v4572_v14, %v4533_v26  ;;  %v4655_v46 = vmax.f32 %v4647_v45, 0.0  ;;  %v4775_v53 = vmax.f32 %v7574_v58, 0.0 }
0x12fa   : > { %v4589_v19 = vadd.f32 %v4588_v15, %v4587_v7  ;;  %v4580_v49 = vmul.f32 %v4567_v34, %v4532_v21 }
0x12fb   : > { %v4592_v59 = vsel %vm4582_vm6, %v4579_v40, 0.0  ;;  %v4596_v25 = vsel %vm4582_vm6, %v4581_v48, 0.0  ;;  %v4779_v40 = vmax.f32 %v7577_v5, 0.0  ;;  %v4778_v5 = vmax.f32 %v7598_v4, 0.0 }
0x12fc   : > { %v6101_v0 = vpop.eup %6100  ;;  %v4591_v63 = vadd.f32 %v4590_v33, %v4589_v19  ;;  %v4594_v60 = vsel %vm4582_vm6, %v4580_v49, 0.0  ;;  %v4646_v33 = vsub.f32 0.0, %v7595_v23  ;;  %v4774_v49 = vmax.f32 %v7595_v23, 0.0 }
0x12fd   : > { %v6103_v35 = vpop.eup %6102  ;;  %v4703_v11 = vadd.f32 1.0, %v6101_v0  ;;  %v4706_v54 = vmul.f32 -0.5, %v6101_v0  ;;  %v4709_v6 = vand.u32 2147483647, %v6101_v0 }
0x12fe   : > { %v6105_v17 = vpop.eup %6104  ;;  %v4739_v50 = vadd.f32 1.0, %v6103_v35  ;;  %v4742_v43 = vmul.f32 -0.5, %v6103_v35  ;;  %v4593_v1 = vadd.f32 %v4592_v59, %v4591_v63  ;;  %v4745_v56 = vand.u32 2147483647, %v6103_v35 }
0x12ff   : > { %v7680_v8 = vpop.eup %6106  ;;  %6112 = vlog2.f32 %v4703_v11  ;;  %v4694_v31 = vadd.f32 1.0, %v6105_v17  ;;  %v4707_v55 = vadd.f32 1.0, %v4706_v54  ;;  %v4697_v2 = vmul.f32 -0.5, %v6105_v17 }
0x1300   : > { %6114 = vlog2.f32 %v4739_v50  ;;  %v4730_v12 = vadd.f32 1.0, %v7680_v8  ;;  %v4743_v18 = vadd.f32 1.0, %v4742_v43  ;;  %v4595_v20 = vadd.f32 %v4594_v60, %v4593_v1 }
0x1301   : > { %6116 = vlog2.f32 %v4694_v31  ;;  %v7682_v16 = vpop.eup %6108  ;;  %v4708_v37 = vmul.f32 %v6101_v0, %v4707_v55  ;;  %v4698_v39 = vadd.f32 1.0, %v4697_v2  ;;  %v4700_v7 = vand.u32 2147483647, %v6105_v17 }
0x1302   : > { %6118 = vlog2.f32 %v4730_v12  ;;  %v4721_v28 = vadd.f32 1.0, %v7682_v16  ;;  %v7694_v44 = vadd.f32 %v4596_v25, %v4595_v20  ;;  %v4744_v19 = vmul.f32 %v6103_v35, %v4743_v18 }
0x1303   : > { %v7686_v30 = vpop.eup %6110  ;;  %vm4710_vm7 = vcmp.lt.f32.partialorder %v4709_v6, 0.0004427343  ;;  %vm4746_vm8 = vcmp.lt.f32.partialorder %v4745_v56, 0.0004427343  ;;  %v4733_v63 = vmul.f32 -0.5, %v7680_v8  ;;  %v4699_v11 = vmul.f32 %v6105_v17, %v4698_v39 }
0x1304   : > { %6120 = vlog2.f32 %v4721_v28  ;;  %v4712_v61 = vadd.f32 1.0, %v7686_v30  ;;  %vm4701_vm9 = vcmp.lt.f32.partialorder %v4700_v7, 0.0004427343  ;;  %v4654_v31 = vmax.f32 %v4646_v33, 0.0 }
0x1305   : > { %v4734_v27 = vadd.f32 1.0, %v4733_v63  ;;  %v4724_v21 = vmul.f32 -0.5, %v7682_v16  ;;  %v4736_v26 = vand.u32 2147483647, %v7680_v8  ;;  %v4650_v54 = vsub.f32 0.0, %v7598_v4 }
0x1306   : > { %6122 = vlog2.f32 %v4712_v61  ;;  %v4715_v48 = vmul.f32 -0.5, %v7686_v30  ;;  %v4727_v42 = vand.u32 2147483647, %v7682_v16  ;;  %v4649_v2 = vsub.f32 0.0, %v7617_v29 }
0x1307   : > { %v4735_v58 = vmul.f32 %v7680_v8, %v4734_v27  ;;  %v4725_v28 = vadd.f32 1.0, %v4724_v21  ;;  %vm4737_vm10 = vcmp.lt.f32.partialorder %v4736_v26, 0.0004427343  ;;  %v4658_v23 = vmax.f32 %v4650_v54, 0.0 }
0x1308   : > { %v4716_v61 = vadd.f32 1.0, %v4715_v48  ;;  %vm4728_vm11 = vcmp.lt.f32.partialorder %v4727_v42, 0.0004427343  ;;  %v4718_v18 = vand.u32 2147483647, %v7686_v30  ;;  %v4777_v20 = vmax.f32 %v7617_v29, 0.0 }
0x1309   : > { %v4726_v8 = vmul.f32 %v7682_v16, %v4725_v28  ;;  %v4657_v4 = vmax.f32 %v4649_v2, 0.0  ;;  %v4648_v16 = vsub.f32 0.0, %v7630_v52  ;;  %v4668_v39 = vand.u32 2147483647, %v7653_v32 }
0x130a   : > { %vm4719_vm12 = vcmp.lt.f32.partialorder %v4718_v18, 0.0004427343 }
0x130b   : > { %v4656_v29 = vmax.f32 %v4648_v16, 0.0 }
0x130c   : > { %v6113_v22 = vpop.eup %6112 }
0x130d   : > { %v6115_v62 = vpop.eup %6114  ;;  %v4705_v15 = vmul.f32 0.6931472, %v6113_v22  ;;  %v4717_v22 = vmul.f32 %v7686_v30, %v4716_v61  ;;  %v4676_v30 = vsub.f32 0.0, %v4668_v39 }
0x130e   : > { %v6117_v9 = vpop.eup %6116  ;;  %v4741_v13 = vmul.f32 0.6931472, %v6115_v62  ;;  %v4776_v62 = vmax.f32 %v7630_v52, 0.0 }
0x130f   : > { %v4711_v57 = vsel %vm4710_vm7, %v4708_v37, %v4705_v15  ;;  %v4696_v41 = vmul.f32 0.6931472, %v6117_v9  ;;  %v6119_v50 = vpop.eup %6118  ;;  %v4669_v9 = vand.u32 2147483647, %v7650_v10 }
0x1310   : > { %v4747_v47 = vsel %vm4746_vm8, %v4744_v19, %v4741_v13  ;;  %v4767_v0 = vadd.f32 %v4711_v57, %v4655_v46  ;;  %v4783_v34 = vadd.f32 %v4775_v53, %v4711_v57  ;;  %v4732_v17 = vmul.f32 0.6931472, %v6119_v50 }
0x1311   : > { %v4771_v36 = vadd.f32 %v4747_v47, %v4659_v24  ;;  %v4702_v35 = vsel %vm4701_vm9, %v4699_v11, %v4696_v41  ;;  %v6121_v14 = vpop.eup %6120  ;;  %v4787_v43 = vadd.f32 %v4779_v40, %v4747_v47  ;;  %v4677_v13 = vsub.f32 0.0, %v4669_v9 }
0x1312   : > { %4808 = vrot.lane.b32.xlu1 %v4767_v0, %s6161_s29  ;;  %v4766_v12 = vadd.f32 %v4702_v35, %v4654_v31  ;;  %v4782_v45 = vadd.f32 %v4774_v49, %v4702_v35  ;;  %v4738_v59 = vsel %vm4737_vm10, %v4735_v58, %v4732_v17  ;;  %v4723_v60 = vmul.f32 0.6931472, %v6121_v14 }
0x1313   : > { %4816 = vrot.lane.b32.xlu0 %v4771_v36, %s6161_s29  ;;  %v6123_v55 = vpop.eup %6122  ;;  %v4786_v1 = vadd.f32 %v4778_v5, %v4738_v59  ;;  %v4770_v6 = vadd.f32 %v4738_v59, %v4658_v23  ;;  %v4690_v19 = vmul.f32 1.442695, %v4676_v30  ;;  %v4692_v33 = vmul.f32 1.442695, %v4677_v13 }
0x1314   : > { %v4729_v25 = vsel %vm4728_vm11, %v4726_v8, %v4723_v60  ;;  %v4714_v56 = vmul.f32 0.6931472, %v6123_v55  ;;  %v4621_v47 = vsel %vm4607_vm1, %v7561_v3, 0.0  ;;  %v4652_v31 = vsub.f32 0.0, %v7653_v32 }
0x1315   : > { %v4785_v24 = vadd.f32 %v4777_v20, %v4729_v25  ;;  %v4769_v46 = vadd.f32 %v4729_v25, %v4657_v4  ;;  %6124 = vpow2.f32 %v4690_v19  ;;  %v4622_v0 = vadd.f32 %v4621_v47, %v7566_v38  ;;  %v4640_v20 = vld [vmem:[%s7875_s14 + $0x10] sm:$0xff] }
0x1316   : > { %4856 = vrot.lane.b32.xlu1 %v4783_v34, %s6161_s29  ;;  %v4720_v37 = vsel %vm4719_vm12, %v4717_v22, %v4714_v56  ;;  %6126 = vpow2.f32 %v4692_v33  ;;  %v4780_v3 = vmax.f32 %v7653_v32, 0.0  ;;  %v4653_v40 = vsub.f32 0.0, %v7650_v10  ;;  %v4953_v32 = vld [vmem:[%s7873_s6] sm:$0xff]  ;;  %v4639_v22 = vld [vmem:[%s7875_s14 + $0x8] sm:$0xff] }
0x1317   : > { %4806 = vrot.lane.b32.xlu0 %v4766_v12, %s6161_s29  ;;  %v4784_v15 = vadd.f32 %v4776_v62, %v4720_v37  ;;  %v4768_v7 = vadd.f32 %v4720_v37, %v4656_v29  ;;  %v4781_v58 = vmax.f32 %v7650_v10, 0.0  ;;  %v4954_v10 = vld [vmem:[%s7874_s1] sm:$0xff]  ;;  %v4839_v16 = vsub.f32 1.0, %v4639_v22 }
0x1318   : > { %v4661_v48 = vmax.f32 %v4653_v40, 0.0  ;;  %v4638_v56 = vld [vmem:[%s7875_s14] sm:$0xff]  ;;  %v4792_v37 = vmul.f32 20.0, %v4640_v20  ;;  %v4791_v29 = vmul.f32 20.0, %v4639_v22 }
0x1319   : > { %v4838_v4 = vsub.f32 1.0, %v4638_v56 }
0x131a   : > { %4864 = vrot.lane.b32.xlu1 %v4787_v43, %s6161_s29 }
0x131b   : > { %4854 = vrot.lane.b32.xlu0 %v4782_v45, %s6161_s29  ;;  %v4955_v45 = vsub.f32 %v4953_v32, %v4954_v10 }
0x131d   : > { %v4956_v59 = vand.u32 2147483647, %v4955_v45 }
0x131e   : > { %4862 = vrot.lane.b32.xlu1 %v4786_v1, %s6161_s29 }
0x131f   : > { %4814 = vrot.lane.b32.xlu0 %v4770_v6, %s6161_s29  ;;  %v4957_v60 = vsel %vm4607_vm1, %v4956_v59, 0.0  ;;  %v4645_v59 = vld [vmem:[%s7875_s14 + $0x38] sm:$0xff] }
0x1322   : > { %4860 = vrot.lane.b32.xlu1 %v4785_v24, %s6161_s29  ;;  %v6125_v57 = vpop.eup %6124  ;;  %v4790_v24 = vmul.f32 20.0, %v4638_v56 }
0x1323   : > { %4812 = vrot.lane.b32.xlu0 %v4769_v46, %s6161_s29  ;;  %v4748_v41 = vadd.f32 1.0, %v6125_v57  ;;  %v6127_v52 = vpop.eup %6126  ;;  %v4751_v11 = vmul.f32 -0.5, %v6125_v57  ;;  %v4754_v35 = vand.u32 2147483647, %v6125_v57  ;;  %v4840_v46 = vsub.f32 1.0, %v4640_v20 }
0x1324   : > { %v4757_v63 = vadd.f32 1.0, %v6127_v52  ;;  %v4760_v50 = vmul.f32 -0.5, %v6127_v52  ;;  %v4763_v12 = vand.u32 2147483647, %v6127_v52 }
0x1325   : > { %6128 = vlog2.f32 %v4748_v41  ;;  %v4752_v36 = vadd.f32 1.0, %v4751_v11  ;;  %vm4755_vm13 = vcmp.lt.f32.partialorder %v4754_v35, 0.0004427343  ;;  %v4642_v41 = vld [vmem:[%s7875_s14 + $0x20] sm:$0xff] }
0x1326   : > { %4858 = vrot.lane.b32.xlu1 %v4784_v15, %s6161_s29  ;;  %6130 = vlog2.f32 %v4757_v63  ;;  %v4761_v34 = vadd.f32 1.0, %v4760_v50  ;;  %vm4764_vm14 = vcmp.lt.f32.partialorder %v4763_v12, 0.0004427343  ;;  %v4842_v11 = vsub.f32 1.0, %v4642_v41 }
0x1327   : > { %4810 = vrot.lane.b32.xlu0 %v4768_v7, %s6161_s29  ;;  %v4753_v21 = vmul.f32 %v6125_v57, %v4752_v36  ;;  %v4641_v7 = vld [vmem:[%s7875_s14 + $0x18] sm:$0xff]  ;;  %v4794_v36 = vmul.f32 20.0, %v4642_v41 }
0x1328   : > { %v4762_v14 = vmul.f32 %v6127_v52, %v4761_v34  ;;  %v4841_v52 = vsub.f32 1.0, %v4641_v7  ;;  %v4793_v63 = vmul.f32 20.0, %v4641_v7 }
0x1332   : > { %v6129_v53 = vpop.eup %6128 }
0x1333   : > { %v4750_v27 = vmul.f32 0.6931472, %v6129_v53  ;;  %v6131_v26 = vpop.eup %6130 }
0x1334   : > { %v4759_v38 = vmul.f32 0.6931472, %v6131_v26 }
0x1335   : > { %v4756_v17 = vsel %vm4755_vm13, %v4753_v21, %v4750_v27 }
0x1336   : > { %v4788_v49 = vadd.f32 %v4780_v3, %v4756_v17  ;;  %v4765_v28 = vsel %vm4764_vm14, %v4762_v14, %v4759_v38  ;;  %v4644_v14 = vld [vmem:[%s7875_s14 + $0x30] sm:$0xff] }
0x1337   : > { %v4789_v43 = vadd.f32 %v4781_v58, %v4765_v28  ;;  %v4773_v42 = vadd.f32 %v4765_v28, %v4661_v48  ;;  %v4796_v48 = vmul.f32 20.0, %v4644_v14 }
0x1346   : > { %4598 = vadd.xlane.f32.xlu0 %v7694_v44  ;;  %v4660_v44 = vmax.f32 %v4652_v31, 0.0  ;;  %v4643_v31 = vld [vmem:[%s7875_s14 + $0x28] sm:$0xff] }
0x1347   : > { %v4843_v34 = vsub.f32 1.0, %v4643_v31  ;;  %v4795_v40 = vmul.f32 20.0, %v4643_v31 }
0x1348   : > { %v4772_v54 = vadd.f32 %v4756_v17, %v4660_v44 }
0x134a   : > { %4623 = vadd.xlane.f32.xlu1 %v4622_v0 }
0x135b   : > { %4866 = vrot.lane.b32.xlu1 %v4788_v49, %s6161_s29 }
0x135c   : > { %4818 = vrot.lane.b32.xlu0 %v4772_v54, %s6161_s29 }
0x135f   : > { %4868 = vrot.lane.b32.xlu1 %v4789_v43, %s6161_s29 }
0x1360   : > { %4820 = vrot.lane.b32.xlu0 %v4773_v42, %s6161_s29 }
0x1383   : > { %4958 = vadd.xlane.f32.xlu1 %v4957_v60  ;;  %v4844_v60 = vsub.f32 1.0, %v4644_v14 }
0x1384   : > { %v4809_v5 = vpop.permute.xlu1 %4808 }
0x1385   : > { %v7748_v55 = vpop.permute.xlu0 %4816  ;;  %v4831_v33 = vmul.f32 %v4809_v5, %v4791_v29 }
0x1386   : > { %v4835_v5 = vmul.f32 %v7748_v55, %v4795_v40 }
0x1388   : > { %v4857_v23 = vpop.permute.xlu1 %4856 }
0x1389   : > { %v4807_v8 = vpop.permute.xlu0 %4806  ;;  %v4879_v9 = vmul.f32 %v4857_v23, %v4839_v16 }
0x138a   : > { %v4830_v30 = vmul.f32 %v4807_v8, %v4790_v24 }
0x138b   : > { %v4887_v47 = vadd.f32 %v4879_v9, %v4831_v33 }
0x138c   : > { %v4865_v2 = vpop.permute.xlu1 %4864 }
0x138d   : > { %v4855_v61 = vpop.permute.xlu0 %4854  ;;  %v4927_v27 = vsel %vm4607_vm1, %v4887_v47, 0.0  ;;  %v4883_v54 = vmul.f32 %v4865_v2, %v4843_v34 }
0x138e   : > { %v4878_v15 = vmul.f32 %v4855_v61, %v4838_v4 }
0x1390   : > { %v4863_v1 = vpop.permute.xlu1 %4862  ;;  %v4886_v57 = vadd.f32 %v4878_v15, %v4830_v30 }
0x1391   : > { %v4815_v18 = vpop.permute.xlu0 %4814  ;;  %v4882_v12 = vmul.f32 %v4863_v1, %v4842_v11  ;;  %v4891_v1 = vadd.f32 %v4883_v54, %v4835_v5 }
0x1392   : > { %v4926_v50 = vsel %vm4607_vm1, %v4886_v57, 0.0  ;;  %v4834_v3 = vmul.f32 %v4815_v18, %v4794_v36  ;;  %v4797_v18 = vmul.f32 20.0, %v4645_v59 }
0x1393   : > { %v4928_v26 = vadd.f32 %v4927_v27, %v4926_v50  ;;  %v4935_v55 = vsel %vm4607_vm1, %v4891_v1, 0.0 }
0x1394   : > { %v4861_v6 = vpop.permute.xlu1 %4860  ;;  %v4890_v28 = vadd.f32 %v4882_v12, %v4834_v3 }
0x1395   : > { %v4813_v25 = vpop.permute.xlu0 %4812  ;;  %v4881_v53 = vmul.f32 %v4861_v6, %v4841_v52 }
0x1396   : > { %v4833_v35 = vmul.f32 %v4813_v25, %v4793_v63  ;;  %v4933_v2 = vsel %vm4607_vm1, %v4890_v28, 0.0  ;;  %v4845_v25 = vsub.f32 1.0, %v4645_v59 }
0x1398   : > { %v4859_v39 = vpop.permute.xlu1 %4858  ;;  %v4889_v17 = vadd.f32 %v4881_v53, %v4833_v35 }
0x1399   : > { %v4811_v62 = vpop.permute.xlu0 %4810  ;;  %v4880_v13 = vmul.f32 %v4859_v39, %v4840_v46 }
0x139a   : > { %v4832_v19 = vmul.f32 %v4811_v62, %v4792_v37  ;;  %v4931_v32 = vsel %vm4607_vm1, %v4889_v17, 0.0 }
0x139c   : > { %v4888_v0 = vadd.f32 %v4880_v13, %v4832_v19 }
0x139e   : > { %v4929_v21 = vsel %vm4607_vm1, %v4888_v0, 0.0 }
0x139f   : > { %v4930_v49 = vadd.f32 %v4929_v21, %v4928_v26 }
0x13a1   : > { %v4932_v23 = vadd.f32 %v4931_v32, %v4930_v49 }
0x13a3   : > { %v4934_v24 = vadd.f32 %v4933_v2, %v4932_v23 }
0x13a5   : > { %v4936_v30 = vadd.f32 %v4935_v55, %v4934_v24 }
0x13cf   : > { %v4599_v44 = vpop.xlane.xlu0 %4598 }
0x13d0   : > { %v4600_v38 = vrot.slane %v4599_v44, 4 }
0x13d2   : > { %v4601_v58 = vadd.f32 %v4600_v38, %v4599_v44 }
0x13d3   : > { %v4819_v43 = vpop.permute.xlu0 %4818  ;;  %v4624_v42 = vpop.xlane.xlu1 %4623 }
0x13d4   : > { %v4602_v10 = vrot.slane %v4601_v58, 2  ;;  %v4625_v45 = vrot.slane %v4624_v42, 4  ;;  %v4836_v56 = vmul.f32 %v4819_v43, %v4796_v48 }
0x13d6   : > { %v4626_v8 = vadd.f32 %v4625_v45, %v4624_v42  ;;  %v4603_v61 = vadd.f32 %v4602_v10, %v4601_v58 }
0x13d7   : > { %v4867_v6 = vpop.permute.xlu1 %4866  ;;  %v4821_v16 = vpop.permute.xlu0 %4820 }
0x13d8   : > { %v4627_v20 = vrot.slane %v4626_v8, 2  ;;  %v4884_v4 = vmul.f32 %v4867_v6, %v4844_v60  ;;  %v4604_v22 = vrot.slane %v4603_v61, 1  ;;  %v4837_v29 = vmul.f32 %v4821_v16, %v4797_v18 }
0x13da   : > { %v4892_v46 = vadd.f32 %v4884_v4, %v4836_v56  ;;  %v4605_v37 = vadd.f32 %v4604_v22, %v4603_v61  ;;  %v4628_v39 = vadd.f32 %v4627_v20, %v4626_v8 }
0x13db   : > { %v4869_v62 = vpop.permute.xlu1 %4868 }
0x13dc   : > { %v4885_v15 = vmul.f32 %v4869_v62, %v4845_v25  ;;  %5871 = vpush %v4605_v37  ;;  %v4629_v7 = vrot.slane %v4628_v39, 1  ;;  %v4937_v9 = vsel %vm4607_vm1, %v4892_v46, 0.0 }
0x13dd   : > { %v4938_v33 = vadd.f32 %v4937_v9, %v4936_v30 }
0x13de   : > { %v4893_v13 = vadd.f32 %v4885_v15, %v4837_v29  ;;  %v4630_v19 = vadd.f32 %v4629_v7, %v4628_v39 }
0x13e0   : > { %5873 = vpush %v4630_v19  ;;  %v4939_v57 = vsel %vm4607_vm1, %v4893_v13, 0.0 }
0x13e1   : > { %v4940_v41 = vadd.f32 %v4939_v57, %v4938_v33 }
0x13e3   : > { %4941 = vadd.xlane.f32.xlu0 %v4940_v41 }
0x140c   : > { %v4959_v47 = vpop.xlane.xlu1 %4958 }
0x140d   : > { %s7783_s25 = spop %5871  ;;  %v4960_v0 = vrot.slane %v4959_v47, 4 }
0x140f   : > { %v4961_v11 = vadd.f32 %v4960_v0, %v4959_v47 }
0x1411   : > { %s5874_s9 = spop %5873  ;;  %v4962_v36 = vrot.slane %v4961_v11, 2 }
0x1412   : > { %s4632_s4 = smax.f32 %s6162_s7, %s5874_s9 }
0x1413   : > { %s4633_s10 = smul.f32 2.0, %s4632_s4  ;;  %v4963_v31 = vadd.f32 %v4962_v36, %v4961_v11 }
0x1415   : > { %v4634_v52 = vstv %s4633_s10  ;;  %v4964_v34 = vrot.slane %v4963_v31, 1 }
0x1416   : > { %6132 = vrcp.f32 %v4634_v52 }
0x1417   : > { %v4965_v3 = vadd.f32 %v4964_v34, %v4963_v31 }
0x1423   : > { %v6133_v63 = vpop.eup %6132 }
0x1424   : > { %5875 = vpush %v6133_v63 }
0x1455   : > { %s5876_s29 = spop %5875 }
0x1456   : > { %s4637_s11 = smul.f32 %s5876_s29, %s7783_s25 }
0x1458   : > { %v4975_v38 = vstv %s4637_s11 }
0x146c   : > { %v4942_v50 = vpop.xlane.xlu0 %4941 }
0x146d   : > { %v4943_v53 = vrot.slane %v4942_v50, 4 }
0x146f   : > { %v4944_v35 = vadd.f32 %v4943_v53, %v4942_v50 }
0x1471   : > { %v4945_v27 = vrot.slane %v4944_v35, 2 }
0x1473   : > { %v4946_v21 = vadd.f32 %v4945_v27, %v4944_v35 }
0x1475   : > { %v4947_v26 = vrot.slane %v4946_v21, 1 }
0x1477   : > { %v4948_v12 = vadd.f32 %v4947_v26, %v4946_v21 }
0x1479   : > { %5877 = vpush %v4948_v12 }
0x147a   : > { %5879 = vpush %v4965_v3 }
0x14aa   : > { %s5878_s12 = spop %5877 }
0x14ab   : > { %s4952_s6 = smul.f32 0.015625, %s5878_s12  ;;  %s5880_s27 = spop %5879 }
0x14ac   : > { %s4969_s28 = smul.f32 0.125, %s5880_s27 }
0x14ad   : > { %v4972_v44 = vstv %s4952_s6 }
0x14ae   : > { %v4973_v17 = vstv %s4969_s28 }
0x14af   : > { %v4974_v14 = vsel %vm4971_vm0, %v4972_v44, %v4973_v17 }
0x14b0   : > { %v4976_v40 = vsel %vm4970_vm2, %v4975_v38, %v4974_v14 }
0x14b1   : > { %4978 = vst.msk [vmem:[%s7876_s24] sm:$0x1] %vm4977_vm5, %v4976_v40 }
0x14b2 PF: > { %s7877_s25 = sld [smem:[#allocation4_spill]] }
0x14b8   : > { %s38_s7 = sadd.s32 1, %s7877_s25  }
0x14b9   : > { %p35_p6 = scmp.ge.s32.totalorder %s38_s7, 4  }
0x14bb   :  { %37 = sbr.rel (!%p35_p6) target bundleno = 19 (0x13), region = 199 }

</bundles_post_ra>
